<compile_context>
chip_gen: v7x
topology: tpu7x:2x2x1
jax: 0.10.0
libtpu: 0.0.40
codegen_flags: <defaults>
</compile_context>

<pallas_src>
import jax
import jax.numpy as jnp
from jax.experimental import pallas as pl
from jax.experimental.pallas import tpu as pltpu


def aesmlp_kernel(x_ref,
                  w1_ref, b1_ref,
                  w2_ref, b2_ref,
                  w3_ref, b3_ref,
                  w45_ref, b45_ref,
                  o_ref):
    """One batch tile (Bt rows) of the AESMLP affine chain.

    x_ref   : (Bt, D)     f32  (cast to bf16 in-kernel)
    w1, w2  : (in, out)   bf16     b1, b2 : (1, out) f32
    w3      : (128, 64)   f32      b3     : (1, 64)  f32
    w45_ref : (8, 64)     f32  (row 0 = (w4 @ w5)^T, rows 1..7 zero padding)
    b45_ref : (1, 1)      f32  (b4 @ w5 + b5)
    o_ref   : (1, Bt)     f32  (lane-dense output row)
    """
    f32, bf16 = jnp.float32, jnp.bfloat16

    # In-kernel cast: x DMA'd as f32 (hidden behind compute), one fewer HBM
    # pass than a wrapper-side astype.
    x = x_ref[...].astype(bf16)                                          # (Bt, D)

    # Layer 1: D -> 1024        (Dropout(0.2) -> identity at inference)
    h1 = jnp.dot(x, w1_ref[...], preferred_element_type=f32) + b1_ref[...]
    # Layer 2: 1024 -> 128      (Dropout(0.2) -> identity)
    h2 = jnp.dot(h1.astype(bf16), w2_ref[...],
                 preferred_element_type=f32) + b2_ref[...]
    # Layer 3: 128 -> 64        (Dropout(0.1) -> identity); kept f32 (tiny).
    h3 = jnp.dot(h2, w3_ref[...], preferred_element_type=f32) + b3_ref[...]   # (Bt, 64)

    # Layers 4+5 (folded): single 64-deep contraction, A @ B^T on the MXU so
    # the result is lane-dense (no masked narrow stores).  Rows 1..7 of w45
    # are zero, so only row 0 of the (8, Bt) result is meaningful.
    t = jnp.einsum("kd,nd->kn", w45_ref[...], h3,
                   preferred_element_type=f32)                            # (8, Bt)
    o_ref[...] = t[0:1, :] + b45_ref[...]


def _tile_cap_and_vmem():
    """Generation-gated batch-tile cap and scoped-VMEM budget."""
    try:
        vmem = pltpu.get_tpu_info().vmem_capacity_bytes
    except Exception:
        vmem = 64 << 20  # conservative fallback (v7x-sized)
    if vmem >= (100 << 20):       # v5e / v6e: 128 MiB VMEM per TensorCore
        return 2048, 64 << 20
    return 1024, 40 << 20          # v7x: 64 MiB per TC (keep budget <= ~48 MiB)


def aesmlp_forward(x, params, *, batch_tile=None):
    """Inference forward of AESMLP. x: (B, D) float -> (B, 1) float32.

    params: list of 5 (w, b) pairs, w stored (in_features, out_features)
    (PyTorch weight transposed), b stored (1, out_features).
    """
    B, D = x.shape
    (w1, b1), (w2, b2), (w3, b3), (w4, b4), (w5, b5) = params
    assert w1.shape[0] == D

    cap, vmem_limit = _tile_cap_and_vmem()
    if batch_tile is None:
        need = ((B + 127) // 128) * 128       # never over-pad small batches
        batch_tile = min(cap, need)
    assert batch_tile % 128 == 0, "batch_tile must be a multiple of 128"

    num_tiles = pl.cdiv(B, batch_tile)
    Bp = num_tiles * batch_tile
    if Bp != B:
        x = jnp.pad(x, ((0, Bp - B), (0, 0)))   # only when actually ragged

    bf16, f32 = jnp.bfloat16, jnp.float32
    # x stays f32 (cast happens in-kernel).  Big weights to bf16 for the MXU.
    w1b, w2b = w1.astype(bf16), w2.astype(bf16)
    b1f, b2f = b1.astype(f32), b2.astype(f32)
    w3f, b3f = w3.astype(f32), b3.astype(f32)

    # Exact fold of layers 4 and 5 (affine o affine = affine); done in f32.
    # In real deployments fold once at load time, not per call.
    w45 = w4.astype(f32) @ w5.astype(f32)                               # (64, 1)
    b45 = (b4.astype(f32) @ w5.astype(f32) + b5.astype(f32)).reshape(1, 1)
    w45p = jnp.zeros((8, w45.shape[0]), f32).at[0, :].set(w45[:, 0])    # (8, 64)

    def full_spec(arr):
        # Weights / biases are small and grid-invariant: whole array each step
        # (Pallas keeps them resident; double-buffer overhead is < 1 MiB).
        return pl.BlockSpec(arr.shape, lambda i: (0, 0))

    out = pl.pallas_call(
        aesmlp_kernel,
        out_shape=jax.ShapeDtypeStruct((1, Bp), f32),
        grid_spec=pltpu.PrefetchScalarGridSpec(
            num_scalar_prefetch=0,
            grid=(num_tiles,),
            in_specs=[
                pl.BlockSpec((batch_tile, D), lambda i: (i, 0)),   # x tile (f32)
                full_spec(w1b), full_spec(b1f),
                full_spec(w2b), full_spec(b2f),
                full_spec(w3f), full_spec(b3f),
                full_spec(w45p), full_spec(b45),
            ],
            # Lane-dense output: each grid step writes a (1, batch_tile) row.
            out_specs=pl.BlockSpec((1, batch_tile), lambda i: (0, i)),
        ),
        compiler_params=pltpu.CompilerParams(
            dimension_semantics=("parallel",),    # megacore-shardable batch axis
            vmem_limit_bytes=vmem_limit,
        ),
    )(x, w1b, b1f, w2b, b2f, w3f, b3f, w45p, b45)

    return out.reshape(Bp)[:B].reshape(B, 1)


def init_params(key, input_size):
    """Deterministic init mirroring AESMLP's nn.Linear shapes.

    PyTorch stores W as (out, in); here weights are (in, out) so the kernel
    computes x @ W directly (a real state_dict load must transpose).
    Biases are stored (1, out).
    """
    dims = [(input_size, 1024), (1024, 128), (128, 64), (64, 16), (16, 1)]
    params = []
    for fan_in, fan_out in dims:
        key, kw, kb = jax.random.split(key, 3)
        bound = 1.0 / jnp.sqrt(fan_in)
        w = jax.random.uniform(kw, (fan_in, fan_out), jnp.float32, -bound, bound)
        b = jax.random.uniform(kb, (1, fan_out), jnp.float32, -bound, bound)
        params.append((w, b))
    return params


def reference_forward(x, params):
    """Pure-JAX f32 reference (eval-mode AESMLP: affine chain, dropout=identity)."""
    h = x
    for (w, b) in params:
        h = h @ w + b
    return h


if __name__ == "__main__":
    key = jax.random.PRNGKey(0)
    kx1, kx2, kp = jax.random.split(key, 3)

    input_size = 32
    params = init_params(kp, input_size)

    # Aligned batch: multi-step (even) grid on v7x-sized tiles, single fat
    # tile on v6e/v5e; exercises the pipelined / megacore-shardable path.
    x1 = jax.random.normal(kx1, (2048, input_size), jnp.float32)
    out1 = jax.block_until_ready(aesmlp_forward(x1, params))
    ref1 = reference_forward(x1, params)
    assert out1.shape == (2048, 1)
    # bf16 weights/activations on layers 1-2 with f32 accumulation.
    assert jnp.allclose(out1, ref1, atol=2e-2, rtol=2e-2), \
        float(jnp.max(jnp.abs(out1 - ref1)))

    # Ragged small batch: exercises zero-padding + small-tile selection.
    x2 = jax.random.normal(kx2, (37, input_size), jnp.float32)
    out2 = jax.block_until_ready(aesmlp_forward(x2, params))
    ref2 = reference_forward(x2, params)
    assert out2.shape == (37, 1)
    assert jnp.allclose(out2, ref2, atol=2e-2, rtol=2e-2), \
        float(jnp.max(jnp.abs(out2 - ref2)))

    print("KERNEL_OK")
</pallas_src>

<mosaic_0001>
module attributes {stable_mosaic.version = 11 : i64} {
  func.func @aesmlp_kernel(%arg0: i32, %arg1: memref<1024x32xf32, #tpu.memory_space<vmem>>, %arg2: memref<32x1024xbf16, #tpu.memory_space<vmem>>, %arg3: memref<1x1024xf32, #tpu.memory_space<vmem>>, %arg4: memref<1024x128xbf16, #tpu.memory_space<vmem>>, %arg5: memref<1x128xf32, #tpu.memory_space<vmem>>, %arg6: memref<128x64xf32, #tpu.memory_space<vmem>>, %arg7: memref<1x64xf32, #tpu.memory_space<vmem>>, %arg8: memref<8x64xf32, #tpu.memory_space<vmem>>, %arg9: memref<1x1xf32, #tpu.memory_space<vmem>>, %arg10: memref<1x1024xf32, #tpu.memory_space<vmem>>) attributes {dimension_semantics = [#tpu.dimension_semantics<parallel>], iteration_bounds = array<i64: 2>, scalar_prefetch = 0 : i64, scratch_operands = 0 : i64, tpu.core_type = #tpu.core_type<tc>, window_params = [{transform_indices = @transform_0, window_bounds = array<i64: 1024, 32>}, {pipeline_mode = #tpu.pipeline_mode<synchronous>, transform_indices = @transform_1, window_bounds = array<i64: 32, 1024>}, {pipeline_mode = #tpu.pipeline_mode<synchronous>, transform_indices = @transform_2, window_bounds = array<i64: 1, 1024>}, {pipeline_mode = #tpu.pipeline_mode<synchronous>, transform_indices = @transform_3, window_bounds = array<i64: 1024, 128>}, {pipeline_mode = #tpu.pipeline_mode<synchronous>, transform_indices = @transform_4, window_bounds = array<i64: 1, 128>}, {pipeline_mode = #tpu.pipeline_mode<synchronous>, transform_indices = @transform_5, window_bounds = array<i64: 128, 64>}, {pipeline_mode = #tpu.pipeline_mode<synchronous>, transform_indices = @transform_6, window_bounds = array<i64: 1, 64>}, {pipeline_mode = #tpu.pipeline_mode<synchronous>, transform_indices = @transform_7, window_bounds = array<i64: 8, 64>}, {pipeline_mode = #tpu.pipeline_mode<synchronous>, transform_indices = @transform_8, window_bounds = array<i64: 1, 1>}, {transform_indices = @transform_9, window_bounds = array<i64: 1, 1024>}]} {
    %c0 = arith.constant 0 : index
    %c0_0 = arith.constant 0 : index
    %0 = vector.load %arg1[%c0, %c0_0] : memref<1024x32xf32, #tpu.memory_space<vmem>>, vector<1024x32xf32>
    %1 = arith.truncf %0 : vector<1024x32xf32> to vector<1024x32xbf16>
    %c0_1 = arith.constant 0 : index
    %c0_2 = arith.constant 0 : index
    %2 = vector.load %arg2[%c0_1, %c0_2] : memref<32x1024xbf16, #tpu.memory_space<vmem>>, vector<32x1024xbf16>
    %cst = arith.constant dense<0.000000e+00> : vector<1024x1024xf32>
    %3 = tpu.matmul %1, %2, %cst {dimension_numbers = #tpu.dot_dimension_numbers<[1], [0], [0], [1], [0, 0, 1, 1], [], []>} : vector<1024x32xbf16>, vector<32x1024xbf16>, vector<1024x1024xf32> -> vector<1024x1024xf32>
    %c0_3 = arith.constant 0 : index
    %c0_4 = arith.constant 0 : index
    %4 = vector.load %arg3[%c0_3, %c0_4] : memref<1x1024xf32, #tpu.memory_space<vmem>>, vector<1x1024xf32>
    %5 = vector.broadcast %4 : vector<1x1024xf32> to vector<1024x1024xf32>
    %6 = arith.addf %3, %5 : vector<1024x1024xf32>
    %7 = arith.truncf %6 : vector<1024x1024xf32> to vector<1024x1024xbf16>
    %c0_5 = arith.constant 0 : index
    %c0_6 = arith.constant 0 : index
    %8 = vector.load %arg4[%c0_5, %c0_6] : memref<1024x128xbf16, #tpu.memory_space<vmem>>, vector<1024x128xbf16>
    %cst_7 = arith.constant dense<0.000000e+00> : vector<1024x128xf32>
    %9 = tpu.matmul %7, %8, %cst_7 {dimension_numbers = #tpu.dot_dimension_numbers<[1], [0], [0], [1], [0, 0, 1, 1], [], []>} : vector<1024x1024xbf16>, vector<1024x128xbf16>, vector<1024x128xf32> -> vector<1024x128xf32>
    %c0_8 = arith.constant 0 : index
    %c0_9 = arith.constant 0 : index
    %10 = vector.load %arg5[%c0_8, %c0_9] : memref<1x128xf32, #tpu.memory_space<vmem>>, vector<1x128xf32>
    %11 = vector.broadcast %10 : vector<1x128xf32> to vector<1024x128xf32>
    %12 = arith.addf %9, %11 : vector<1024x128xf32>
    %c0_10 = arith.constant 0 : index
    %c0_11 = arith.constant 0 : index
    %13 = vector.load %arg6[%c0_10, %c0_11] : memref<128x64xf32, #tpu.memory_space<vmem>>, vector<128x64xf32>
    %cst_12 = arith.constant dense<0.000000e+00> : vector<1024x64xf32>
    %14 = tpu.matmul %12, %13, %cst_12 {dimension_numbers = #tpu.dot_dimension_numbers<[1], [0], [0], [1], [0, 0, 1, 1], [], []>} : vector<1024x128xf32>, vector<128x64xf32>, vector<1024x64xf32> -> vector<1024x64xf32>
    %c0_13 = arith.constant 0 : index
    %c0_14 = arith.constant 0 : index
    %15 = vector.load %arg7[%c0_13, %c0_14] : memref<1x64xf32, #tpu.memory_space<vmem>>, vector<1x64xf32>
    %16 = vector.broadcast %15 : vector<1x64xf32> to vector<1024x64xf32>
    %17 = arith.addf %14, %16 : vector<1024x64xf32>
    %c0_15 = arith.constant 0 : index
    %c0_16 = arith.constant 0 : index
    %18 = vector.load %arg8[%c0_15, %c0_16] : memref<8x64xf32, #tpu.memory_space<vmem>>, vector<8x64xf32>
    "tpu.trace_start"() <{level = 10 : i32, message = "kd,nd->kn"}> : () -> ()
    %cst_17 = arith.constant dense<0.000000e+00> : vector<8x1024xf32>
    %19 = tpu.matmul %18, %17, %cst_17 {dimension_numbers = #tpu.dot_dimension_numbers<[1], [1], [0], [0], [0, 0, 1, 0], [], []>} : vector<8x64xf32>, vector<1024x64xf32>, vector<8x1024xf32> -> vector<8x1024xf32>
    "tpu.trace_stop"() : () -> ()
    %20 = vector.extract_strided_slice %19 {offsets = [0, 0], sizes = [1, 1024], strides = [1, 1]} : vector<8x1024xf32> to vector<1x1024xf32>
    %c0_18 = arith.constant 0 : index
    %c0_19 = arith.constant 0 : index
    %21 = vector.load %arg9[%c0_18, %c0_19] : memref<1x1xf32, #tpu.memory_space<vmem>>, vector<1x1xf32>
    %22 = vector.broadcast %21 : vector<1x1xf32> to vector<1x1024xf32>
    %23 = arith.addf %20, %22 : vector<1x1024xf32>
    %c0_20 = arith.constant 0 : index
    %c0_21 = arith.constant 0 : index
    %24 = vector.load %arg10[%c0_20, %c0_21] : memref<1x1024xf32, #tpu.memory_space<vmem>>, vector<1x1024xf32>
    tpu.vector_store %arg10[%c0_20, %c0_21], %23 {strides = array<i32>} : memref<1x1024xf32, #tpu.memory_space<vmem>>, vector<1x1024xf32>,
    return
  }
  func.func @transform_0(%arg0: i32) -> (i32, i32) {
    %c0_i32 = arith.constant 0 : i32
    %c0_i32_0 = arith.constant 0 : i32
    return %arg0, %c0_i32 : i32, i32
  }
  func.func @transform_1(%arg0: i32) -> (i32, i32) {
    %c0_i32 = arith.constant 0 : i32
    %c0_i32_0 = arith.constant 0 : i32
    %c0_i32_1 = arith.constant 0 : i32
    return %c0_i32, %c0_i32_0 : i32, i32
  }
  func.func @transform_2(%arg0: i32) -> (i32, i32) {
    %c0_i32 = arith.constant 0 : i32
    %c0_i32_0 = arith.constant 0 : i32
    %c0_i32_1 = arith.constant 0 : i32
    return %c0_i32, %c0_i32_0 : i32, i32
  }
  func.func @transform_3(%arg0: i32) -> (i32, i32) {
    %c0_i32 = arith.constant 0 : i32
    %c0_i32_0 = arith.constant 0 : i32
    %c0_i32_1 = arith.constant 0 : i32
    return %c0_i32, %c0_i32_0 : i32, i32
  }
  func.func @transform_4(%arg0: i32) -> (i32, i32) {
    %c0_i32 = arith.constant 0 : i32
    %c0_i32_0 = arith.constant 0 : i32
    %c0_i32_1 = arith.constant 0 : i32
    return %c0_i32, %c0_i32_0 : i32, i32
  }
  func.func @transform_5(%arg0: i32) -> (i32, i32) {
    %c0_i32 = arith.constant 0 : i32
    %c0_i32_0 = arith.constant 0 : i32
    %c0_i32_1 = arith.constant 0 : i32
    return %c0_i32, %c0_i32_0 : i32, i32
  }
  func.func @transform_6(%arg0: i32) -> (i32, i32) {
    %c0_i32 = arith.constant 0 : i32
    %c0_i32_0 = arith.constant 0 : i32
    %c0_i32_1 = arith.constant 0 : i32
    return %c0_i32, %c0_i32_0 : i32, i32
  }
  func.func @transform_7(%arg0: i32) -> (i32, i32) {
    %c0_i32 = arith.constant 0 : i32
    %c0_i32_0 = arith.constant 0 : i32
    %c0_i32_1 = arith.constant 0 : i32
    return %c0_i32, %c0_i32_0 : i32, i32
  }
  func.func @transform_8(%arg0: i32) -> (i32, i32) {
    %c0_i32 = arith.constant 0 : i32
    %c0_i32_0 = arith.constant 0 : i32
    %c0_i32_1 = arith.constant 0 : i32
    return %c0_i32, %c0_i32_0 : i32, i32
  }
  func.func @transform_9(%arg0: i32) -> (i32, i32) {
    %c0_i32 = arith.constant 0 : i32
    %c0_i32_0 = arith.constant 0 : i32
    return %c0_i32, %arg0 : i32, i32
  }
}

</mosaic_0001>

<bundles_post_ra>
// kernel: tpu_custom_call.1
= control target key start
LH: loop header
LB: loop body
LE: loop exit
PB: predicated region body
PF: predicated region fallthrough
CT: control target
= control target key end

     0   :  { %s16942_s0 = inlined_call_operand.vmem [shape: f32[2048,32], index: 0, kind: input, shape index: {}]   ;;  %s16943_s1 = inlined_call_operand.vmem [shape: bf16[32,1024], index: 1, kind: input, shape index: {}]   ;;  %s16944_s2 = inlined_call_operand.vmem [shape: f32[1,1024], index: 2, kind: input, shape index: {}]   ;;  %s16945_s3 = inlined_call_operand.vmem [shape: bf16[1024,128], index: 3, kind: input, shape index: {}]   ;;  %s16946_s4 = inlined_call_operand.vmem [shape: f32[1,128], index: 4, kind: input, shape index: {}]   ;;  %s16947_s5 = inlined_call_operand.vmem [shape: f32[128,64], index: 5, kind: input, shape index: {}]   ;;  %s16948_s6 = inlined_call_operand.vmem [shape: f32[1,64], index: 6, kind: input, shape index: {}]   ;;  %s16949_s7 = inlined_call_operand.vmem [shape: f32[8,64], index: 7, kind: input, shape index: {}]   ;;  %s16950_s8 = inlined_call_operand.<no memory space> [shape: f32[1,1], index: 8, kind: input, shape index: {}]   ;;  %s16951_s9 = inlined_call_operand.hbm [shape: f32[1,2048], index: 9, kind: output, shape index: {}]  }
   0x1   :  { %v14_v0 = vstv %s16950_s8 }
   0x2   :  { %15 = vst [vmem:[#allocation2] sm:$0x1] %v14_v0 }
   0x3   :  { %16 = vsyncpa [#allocation4], 0 }
   0x4   :  { %18 = vsyncpa [#allocation4 + $0x1], 0  ;;  %s10656_s11 = smov 0   ;;  %s10658_s12 = smov 0  }
   0x5   :  { %s10660_s13 = smov 0   ;;  %s10662_s14 = smov 0  }
   0x6 LB: > { %s8314_s8 = sadd.s32 4294967295, %s10598_s14   ;;  %s8315_s15 = sadd.s32 4294967294, %s10598_s14   ;;  %s10598_s14 = sphi %s10662_s14, %s18408_s14   ;;  %s10594_s13 = sphi %s10660_s13, %s18407_s13   ;;  %s10590_s12 = sphi %s10658_s12, %s18406_s12   ;;  %s10586_s11 = sphi %s10656_s11, %s18405_s11  }
   0x7   : > { %s10679_s16 = sadd.s32 1, %s10598_s14   ;;  %s225_s17 = sadd.s32 1, %s10594_s13 }
   0x8   : > { %s222_s18 = ssub.s32 %s10598_s14, %s10679_s16  ;;  %p235_p0 = scmp.ne.s32.totalorder %s10594_s13, %s10590_s12 }
   0x9   : > { %p223_p1 = scmp.eq.s32.totalorder %s222_s18, 0  ;;  %p236_p2 = scmp.eq.s32.totalorder %s8314_s8, 1 }
   0xa   : > { %p241_p3 = scmp.ne.s32.totalorder %s10590_s12, %s10586_s11  ;;  %p242_p4 = scmp.eq.s32.totalorder %s8315_s15, 1 }
   0xb   : > { %s10689_s19 = scalar_select %p223_p1, %s10594_s13, %s225_s17  }
   0xc   : > { %p10691_p5 = por %p236_p2, %p235_p0  ;;  %p10695_p6 = por %p242_p4, %p241_p3 }
   0xd   : > { %p8318_p7 = scmp.ge.s32.totalorder %s10598_s14, 1  ;;  %p293_p8 = scmp.lt.s32.totalorder %s10598_s14, 3 }
   0xf   : > { %p294_p9 = pnand %p8318_p7, %p293_p8 }
  0x11   : > { %297 = sbr.rel (%p294_p9) target bundleno = 2988 (0xbac), region = 56 }
  0x18   : > { %v531_v1 = vld [vmem:[%s16943_s1 + $0x10] sm:$0xff]  ;;  %s10710_s28 = sshll.u32 %s8314_s8, 7  ;;  %v16953_v7 = vmov 0   ;;  %v529_v9 = vld [vmem:[%s16943_s1] sm:$0xff]  ;;  %v530_v15 = vld [vmem:[%s16943_s1 + $0x8] sm:$0xff]  ;;  %vm667_vm0 = vcmask 261120  }
  0x19   : > { %v535_v2 = vld [vmem:[%s16943_s1 + $0x30] sm:$0xff]  ;;  %2238 = vmatprep.mubr.bf16.mxu0 %v16953_v7  ;;  %p330_p10 = scmp.lt.s32.totalorder %s10710_s28, 255  ;;  %892 = vmatprep.mubr.bf16.mxu1 %v16953_v7  ;;  %v533_v10 = vld [vmem:[%s16943_s1 + $0x20] sm:$0xff]  ;;  %v534_v18 = vld [vmem:[%s16943_s1 + $0x28] sm:$0xff]  ;;  %vm7492_vm1 = vcmask 523264   ;;  %s326_s8 = sand.u32 1, %s10590_s12  }
  0x1a   : > { %v539_v3 = vld [vmem:[%s16943_s1 + $0x50] sm:$0xff]  ;;  %v10712_v4 = vcombine.high %v531_v1, %v535_v2  ;;  %v10714_v5 = vcombine.low %v531_v1, %v535_v2  ;;  %10467 = vset.pattern.permute.xlu0 %v16953_v7  ;;  %v8323_v11 = vcombine.high %v529_v9, %v533_v10  ;;  %v8322_v12 = vcombine.low %v529_v9, %v533_v10  ;;  %v537_v13 = vld [vmem:[%s16943_s1 + $0x40] sm:$0xff]  ;;  %v10469_v26 = vld [vmem:[%s16945_s3 + $0x8] sm:$0xff]   ;;  %s8319_s15 = sshll.u32 %s326_s8, 3  ;;  %s8242_s25 = scalar_lea.sflag [#allocation4], %s326_s8 }
  0x1b   : > { %v543_v6 = vld [vmem:[%s16943_s1 + $0x70] sm:$0xff]  ;;  %s331_s18 = scalar_select %p330_p10, %s10710_s28, 255  ;;  %v541_v14 = vld [vmem:[%s16943_s1 + $0x60] sm:$0xff]  ;;  %v8325_v22 = vcombine.high %v530_v15, %v534_v18  ;;  %v8324_v25 = vcombine.low %v530_v15, %v534_v18  ;;  %v10471_v33 = vld [vmem:[%s16945_s3 + $0x18] sm:$0xff]  }
  0x1c   : > { %v10722_v8 = vcombine.high %v539_v3, %v543_v6  ;;  %2206 = vmatprep.subr.bf16.mxu0 %v10712_v4  ;;  %v10743_v16 = vcombine.low %v539_v3, %v543_v6  ;;  %v8331_v17 = vcombine.high %v537_v13, %v541_v14  ;;  %860 = vmatprep.subr.bf16.mxu1 %v8323_v11  ;;  %v10468_v24 = vld [vmem:[%s16945_s3] sm:$0xff]   ;;  %v10470_v30 = vld [vmem:[%s16945_s3 + $0x10] sm:$0xff]   ;;  %v10473_v38 = vld [vmem:[%s16945_s3 + $0x28] sm:$0xff]   ;;  %s10602_s27 = smov [#allocation3]  }
  0x1d   : > { %2207 = vmatpush1.bf16.msra.mxu0 %v10714_v5  ;;  %s8321_s10 = sshll.u32 %s331_s18, 3  ;;  %861 = vmatpush1.bf16.msra.mxu1 %v8322_v12  ;;  %v8330_v19 = vcombine.low %v537_v13, %v541_v14  ;;  %v10472_v35 = vld [vmem:[%s16945_s3 + $0x20] sm:$0xff]   ;;  %v10474_v39 = vld [vmem:[%s16945_s3 + $0x30] sm:$0xff]   ;;  %v10475_v43 = vld [vmem:[%s16945_s3 + $0x38] sm:$0xff]   ;;  %s328_s18 = scalar_lea.vmem [#allocation3], %s8319_s15 }
  0x1e   : > { %2208 = vmatprep.subr.bf16.mxu0 %v10722_v8  ;;  %s10752_s17 = scalar_lea.vmem %s16942_s0, %s8321_s10  ;;  %862 = vmatprep.subr.bf16.mxu1 %v8331_v17  ;;  %v10476_v44 = vld [vmem:[%s16945_s3 + $0x40] sm:$0xff]   ;;  %v10477_v48 = vld [vmem:[%s16945_s3 + $0x48] sm:$0xff]   ;;  %v10478_v49 = vld [vmem:[%s16945_s3 + $0x50] sm:$0xff]   ;;  %s8256_s22 = sshll.u32 %s328_s18, 4  ;;  %s16902_s22 = int_to_ptr.vmem [resolvable:$true] %s8256_s22 }
  0x1f   : > { %v337_v20 = vld [vmem:[%s10752_s17] sm:$0xff]  ;;  %v338_v21 = vld [vmem:[%s10752_s17 + $0x8] sm:$0xff]  ;;  %v339_v27 = vld [vmem:[%s10752_s17 + $0x10] sm:$0xff]  ;;  %s10536_s26 = scalar_lea.vmem %s16902_s22, 128  ;;  %s10540_s29 = sshll.u32 %s10602_s27, 4  ;;  %s10541_s29 = int_to_ptr.vmem [resolvable:$false] %s10540_s29 }
  0x20   : > { %v10757_v23 = vpack.c.bf16 %v338_v21, %v337_v20  ;;  %v340_v28 = vld [vmem:[%s10752_s17 + $0x18] sm:$0xff]  ;;  %v341_v31 = vld [vmem:[%s10752_s17 + $0x20] sm:$0xff]  ;;  %v342_v32 = vld [vmem:[%s10752_s17 + $0x28] sm:$0xff]  ;;  %p10537_p11 = scmp.ne.s32.totalorder %s16902_s22, %s10536_s26  ;;  %s10542_s30 = scalar_lea.vmem %s10541_s29, 256 }
  0x21   : > { %2209 = vmatpush1.bf16.msra.mxu0 %v10743_v16  ;;  %863 = vmatpush1.bf16.msra.mxu1 %v8330_v19  ;;  %v10775_v29 = vpack.c.bf16 %v340_v28, %v339_v27  ;;  %v10793_v34 = vpack.c.bf16 %v342_v32, %v341_v31  ;;  %v343_v36 = vld [vmem:[%s10752_s17 + $0x30] sm:$0xff]  ;;  %v344_v37 = vld [vmem:[%s10752_s17 + $0x38] sm:$0xff]  ;;  %v345_v41 = vld [vmem:[%s10752_s17 + $0x40] sm:$0xff]  ;;  %p10543_p0 = scmp.lt.s32.totalorder %s16902_s22, %s10541_s29  ;;  %p10544_p1 = scmp.lt.s32.totalorder %s10542_s30, %s10536_s26 }
  0x22   : > { %4583 = vmatprep.subr.bf16.mxu0 %v16953_v7  ;;  %1533 = vmatprep.subr.bf16.mxu1 %v8325_v22  ;;  %v10814_v40 = vpack.c.bf16 %v344_v37, %v343_v36  ;;  %v346_v42 = vld [vmem:[%s10752_s17 + $0x48] sm:$0xff]  ;;  %v347_v46 = vld [vmem:[%s10752_s17 + $0x50] sm:$0xff]  ;;  %v348_v47 = vld [vmem:[%s10752_s17 + $0x58] sm:$0xff]  ;;  %p10538_p12 = pnand %p10537_p11, %p10691_p5 }
  0x23   : > { %v10832_v45 = vpack.c.bf16 %v346_v42, %v345_v41  ;;  %v10850_v50 = vpack.c.bf16 %v348_v47, %v347_v46  ;;  %v349_v51 = vld [vmem:[%s10752_s17 + $0x60] sm:$0xff]  ;;  %v350_v52 = vld [vmem:[%s10752_s17 + $0x68] sm:$0xff]  ;;  %v10479_v53 = vld [vmem:[%s16945_s3 + $0x58] sm:$0xff]   ;;  %p10545_p2 = por %p10544_p1, %p10543_p0 }
  0x24   : > { %8466 = vmatmul.mubr.msk.bf16.vlgmr.msra.gmra.mrb[0].mxu0 %vm667_vm0, %v10757_v23  ;;  %8338 = vmatmul.mubr.msk.bf16.vlgmr.msra.gmra.mrb[0].mxu1 %vm667_vm0, %v10757_v23  ;;  %v10480_v54 = vld [vmem:[%s16945_s3 + $0x60] sm:$0xff]   ;;  %v10868_v55 = vpack.c.bf16 %v350_v52, %v349_v51  ;;  %v351_v56 = vld [vmem:[%s10752_s17 + $0x70] sm:$0xff]  ;;  %v352_v57 = vld [vmem:[%s10752_s17 + $0x78] sm:$0xff]  ;;  %p10539_p13 = pneg %p10538_p12 }
  0x25   : > { %4584 = vmatpush1.bf16.msra.mxu0 %v10468_v24  ;;  %2248 = vmatprep.mubr.bf16.mxu0 %v16953_v7  ;;  %v10880_v58 = vpack.c.bf16 %v352_v57, %v351_v56  ;;  %v10481_v59 = vld [vmem:[%s16945_s3 + $0x68] sm:$0xff]   ;;  %v353_v60 = vld [vmem:[%s10752_s17 + $0x80] sm:$0xff]  ;;  %v355_v63 = vld [vmem:[%s10752_s17 + $0x90] sm:$0xff] }
  0x26   : > { %4585 = vmatprep.subr.bf16.mxu0 %v16953_v7  ;;  %1534 = vmatpush1.bf16.msra.mxu1 %v8324_v25  ;;  %v354_v61 = vld [vmem:[%s10752_s17 + $0x88] sm:$0xff]  ;;  %v356_v0 = vld [vmem:[%s10752_s17 + $0x98] sm:$0xff]  ;;  %v10482_v2 = vld [vmem:[%s16945_s3 + $0x70] sm:$0xff]   ;;  %p10546_p3 = pnand %p10545_p2, %p10539_p13 }
  0x27   : > { %902 = vmatprep.mubr.bf16.mxu1 %v16953_v7  ;;  %v10894_v62 = vpack.c.bf16 %v354_v61, %v353_v60  ;;  %v10904_v1 = vpack.c.bf16 %v356_v0, %v355_v63  ;;  %v357_v3 = vld [vmem:[%s10752_s17 + $0xa0] sm:$0xff]  ;;  %v358_v6 = vld [vmem:[%s10752_s17 + $0xa8] sm:$0xff]  ;;  %v359_v10 = vld [vmem:[%s10752_s17 + $0xb0] sm:$0xff] }
  0x28   : > { %v10918_v9 = vpack.c.bf16 %v358_v6, %v357_v3  ;;  %v360_v11 = vld [vmem:[%s10752_s17 + $0xb8] sm:$0xff]  ;;  %v361_v13 = vld [vmem:[%s10752_s17 + $0xc0] sm:$0xff]  ;;  %v362_v14 = vld [vmem:[%s10752_s17 + $0xc8] sm:$0xff] }
  0x29   : > { %4586 = vmatpush1.bf16.msra.mxu0 %v10469_v26  ;;  %v10928_v12 = vpack.c.bf16 %v360_v11, %v359_v10  ;;  %v10483_v15 = vld [vmem:[%s16945_s3 + $0x78] sm:$0xff]   ;;  %v10941_v17 = vpack.c.bf16 %v362_v14, %v361_v13  ;;  %v363_v18 = vld [vmem:[%s10752_s17 + $0xd0] sm:$0xff]  ;;  %v365_v21 = vld [vmem:[%s10752_s17 + $0xe0] sm:$0xff]  ;;  %v547_v11 = vlaneseq }
  0x2a   : > { %4587 = vmatprep.subr.bf16.mxu0 %v16953_v7  ;;  %v364_v19 = vld [vmem:[%s10752_s17 + $0xd8] sm:$0xff]  ;;  %v366_v22 = vld [vmem:[%s10752_s17 + $0xe8] sm:$0xff]  ;;  %v367_v25 = vld [vmem:[%s10752_s17 + $0xf0] sm:$0xff] }
  0x2b   : > { %17375 = vst [vmem:[#allocation6_spill] sm:$0xff] %v10928_v12  ;;  %17376 = vst [vmem:[#allocation7_spill] sm:$0xff] %v10941_v17  ;;  %v10952_v20 = vpack.c.bf16 %v364_v19, %v363_v18  ;;  %v10962_v24 = vpack.c.bf16 %v366_v22, %v365_v21  ;;  %v368_v26 = vld [vmem:[%s10752_s17 + $0xf8] sm:$0xff]  ;;  %v369_v28 = vld [vmem:[%s10752_s17 + $0x100] sm:$0xff] }
  0x2c   : > { %8467 = vmatmul.mubr.msk.bf16.gmra.mrb[4].mxu0 %vm667_vm0, %v10775_v29  ;;  %8339 = vmatmul.mubr.msk.bf16.gmra.mrb[4].mxu1 %vm667_vm0, %v10775_v29  ;;  %v10972_v27 = vpack.c.bf16 %v368_v26, %v367_v25  ;;  %v371_v32 = vld [vmem:[%s10752_s17 + $0x110] sm:$0xff]  ;;  %v373_v36 = vld [vmem:[%s10752_s17 + $0x120] sm:$0xff]  ;;  %v374_v37 = vld [vmem:[%s10752_s17 + $0x128] sm:$0xff] }
  0x2d   : > { %2258 = vmatprep.mubr.bf16.mxu0 %v16953_v7  ;;  %4588 = vmatpush1.bf16.msra.mxu0 %v10470_v30  ;;  %17377 = vst [vmem:[#allocation8_spill] sm:$0xff] %v10952_v20  ;;  %17378 = vst [vmem:[#allocation9_spill] sm:$0xff] %v10962_v24  ;;  %v370_v30 = vld [vmem:[%s10752_s17 + $0x108] sm:$0xff]  ;;  %v11008_v41 = vpack.c.bf16 %v374_v37, %v373_v36  ;;  %v376_v46 = vld [vmem:[%s10752_s17 + $0x138] sm:$0xff] }
  0x2e   : > { %4589 = vmatprep.subr.bf16.mxu0 %v16953_v7  ;;  %912 = vmatprep.mubr.bf16.mxu1 %v16953_v7  ;;  %17379 = vst [vmem:[#allocation10_spill] sm:$0xff] %v10972_v27  ;;  %v10982_v31 = vpack.c.bf16 %v370_v30, %v369_v28  ;;  %v379_v51 = vld [vmem:[%s10752_s17 + $0x150] sm:$0xff]  ;;  %v380_v52 = vld [vmem:[%s10752_s17 + $0x158] sm:$0xff]  ;;  %v382_v56 = vld [vmem:[%s10752_s17 + $0x168] sm:$0xff] }
  0x2f   : > { %17382 = vst [vmem:[#allocation13_spill] sm:$0xff] %v11008_v41  ;;  %v384_v60 = vld [vmem:[%s10752_s17 + $0x178] sm:$0xff]  ;;  %v385_v63 = vld [vmem:[%s10752_s17 + $0x180] sm:$0xff]  ;;  %v386_v0 = vld [vmem:[%s10752_s17 + $0x188] sm:$0xff] }
  0x30   : > { %17380 = vst [vmem:[#allocation11_spill] sm:$0xff] %v10982_v31  ;;  %v387_v3 = vld [vmem:[%s10752_s17 + $0x190] sm:$0xff]  ;;  %v388_v6 = vld [vmem:[%s10752_s17 + $0x198] sm:$0xff]  ;;  %v389_v13 = vld [vmem:[%s10752_s17 + $0x1a0] sm:$0xff] }
  0x31   : > { %4590 = vmatpush1.bf16.msra.mxu0 %v10471_v33  ;;  %v372_v33 = vld [vmem:[%s10752_s17 + $0x118] sm:$0xff]  ;;  %v11079_v10 = vpack.c.bf16 %v388_v6, %v387_v3  ;;  %v390_v14 = vld [vmem:[%s10752_s17 + $0x1a8] sm:$0xff]  ;;  %v545_v22 = vld [vmem:[%s16944_s2] sm:$0xff] }
  0x32   : > { %4591 = vmatprep.subr.bf16.mxu0 %v16953_v7  ;;  %v11091_v18 = vpack.c.bf16 %v390_v14, %v389_v13  ;;  %v391_v28 = vld [vmem:[%s10752_s17 + $0x1b0] sm:$0xff]  ;;  %v392_v30 = vld [vmem:[%s10752_s17 + $0x1b8] sm:$0xff]  ;;  %v394_v13 = vld [vmem:[%s10752_s17 + $0x1c8] sm:$0xff] }
  0x33   : > { %17389 = vst [vmem:[#allocation20_spill] sm:$0xff] %v11079_v10  ;;  %vm16322_vm2 = vmpackc.low %vm7492_vm1, %vm7492_vm1 }
  0x34   : > { %8468 = vmatmul.mubr.msk.bf16.gmra.mrb[8].mxu0 %vm667_vm0, %v10793_v34  ;;  %8340 = vmatmul.mubr.msk.bf16.gmra.mrb[8].mxu1 %vm667_vm0, %v10793_v34  ;;  %17391 = vst [vmem:[#allocation22_spill] sm:$0xff] %v11091_v18 }
  0x35   : > { %2268 = vmatprep.mubr.bf16.mxu0 %v16953_v7  ;;  %4592 = vmatpush1.bf16.msra.mxu0 %v10472_v35  ;;  %v10992_v35 = vpack.c.bf16 %v372_v33, %v371_v32 }
  0x36   : > { %4593 = vmatprep.subr.bf16.mxu0 %v16953_v7  ;;  %922 = vmatprep.mubr.bf16.mxu1 %v16953_v7 }
  0x37   : > { %17381 = vst [vmem:[#allocation12_spill] sm:$0xff] %v10992_v35 }
  0x39   : > { %4594 = vmatpush1.bf16.msra.mxu0 %v10473_v38  ;;  %v538_v38 = vld [vmem:[%s16943_s1 + $0x48] sm:$0xff] }
  0x3a   : > { %4595 = vmatprep.subr.bf16.mxu0 %v16953_v7 }
  0x3c   : > { %8469 = vmatmul.mubr.msk.bf16.gmra.mrb[12].mxu0 %vm667_vm0, %v10814_v40  ;;  %8341 = vmatmul.mubr.msk.bf16.gmra.mrb[12].mxu1 %vm667_vm0, %v10814_v40 }
  0x3d   : > { %2278 = vmatprep.mubr.bf16.mxu0 %v16953_v7  ;;  %4596 = vmatpush1.bf16.msra.mxu0 %v10474_v39  ;;  %v542_v39 = vld [vmem:[%s16943_s1 + $0x68] sm:$0xff] }
  0x3e   : > { %4597 = vmatprep.subr.bf16.mxu0 %v16953_v7  ;;  %932 = vmatprep.mubr.bf16.mxu1 %v16953_v7  ;;  %v8332_v42 = vcombine.low %v538_v38, %v542_v39 }
  0x41   : > { %4598 = vmatpush1.bf16.msra.mxu0 %v10475_v43  ;;  %v8333_v43 = vcombine.high %v538_v38, %v542_v39 }
  0x42   : > { %4599 = vmatprep.subr.bf16.mxu0 %v16953_v7 }
  0x43   : > { %1535 = vmatprep.subr.bf16.mxu1 %v8333_v43 }
  0x44   : > { %8470 = vmatmul.mubr.msk.bf16.gmra.mrb[16].mxu0 %vm667_vm0, %v10832_v45  ;;  %8342 = vmatmul.mubr.msk.bf16.gmra.mrb[16].mxu1 %vm667_vm0, %v10832_v45 }
  0x45   : > { %2288 = vmatprep.mubr.bf16.mxu0 %v16953_v7  ;;  %4600 = vmatpush1.bf16.msra.mxu0 %v10476_v44  ;;  %v375_v44 = vld [vmem:[%s10752_s17 + $0x130] sm:$0xff] }
  0x46   : > { %4601 = vmatprep.subr.bf16.mxu0 %v16953_v7  ;;  %942 = vmatprep.mubr.bf16.mxu1 %v16953_v7  ;;  %v11019_v47 = vpack.c.bf16 %v376_v46, %v375_v44 }
  0x47   : > { %1536 = vmatpush1.bf16.msra.mxu1 %v8332_v42  ;;  %v11118_v42 = vpack.c.bf16 %v392_v30, %v391_v28 }
  0x48   : > { %9526 = vmatprep.subr.bf16.mxu1 %v10712_v4  ;;  %17383 = vst [vmem:[#allocation14_spill] sm:$0xff] %v11019_v47  ;;  %v377_v4 = vld [vmem:[%s10752_s17 + $0x140] sm:$0xff] }
  0x49   : > { %4602 = vmatpush1.bf16.msra.mxu0 %v10477_v48  ;;  %v378_v48 = vld [vmem:[%s10752_s17 + $0x148] sm:$0xff]  ;;  %17394 = vst [vmem:[#allocation25_spill] sm:$0xff] %v11118_v42 }
  0x4a   : > { %4603 = vmatprep.subr.bf16.mxu0 %v16953_v7 }
  0x4c   : > { %8471 = vmatmul.mubr.msk.bf16.gmra.mrb[20].mxu0 %vm667_vm0, %v10850_v50  ;;  %8343 = vmatmul.mubr.msk.bf16.gmra.mrb[20].mxu1 %vm667_vm0, %v10850_v50 }
  0x4d   : > { %2298 = vmatprep.mubr.bf16.mxu0 %v16953_v7  ;;  %4604 = vmatpush1.bf16.msra.mxu0 %v10478_v49  ;;  %v11029_v49 = vpack.c.bf16 %v378_v48, %v377_v4 }
  0x4e   : > { %4605 = vmatprep.subr.bf16.mxu0 %v16953_v7  ;;  %952 = vmatprep.mubr.bf16.mxu1 %v16953_v7 }
  0x4f   : > { %17384 = vst [vmem:[#allocation15_spill] sm:$0xff] %v11029_v49 }
  0x51   : > { %4606 = vmatpush1.bf16.msra.mxu0 %v10479_v53  ;;  %v11039_v53 = vpack.c.bf16 %v380_v52, %v379_v51 }
  0x52   : > { %4607 = vmatprep.subr.bf16.mxu0 %v16953_v7 }
  0x53   : > { %17385 = vst [vmem:[#allocation16_spill] sm:$0xff] %v11039_v53 }
  0x54   : > { %8472 = vmatmul.mubr.msk.bf16.gmra.mrb[24].mxu0 %vm667_vm0, %v10868_v55  ;;  %8344 = vmatmul.mubr.msk.bf16.gmra.mrb[24].mxu1 %vm667_vm0, %v10868_v55 }
  0x55   : > { %2308 = vmatprep.mubr.bf16.mxu0 %v16953_v7  ;;  %4608 = vmatpush1.bf16.msra.mxu0 %v10480_v54  ;;  %v381_v54 = vld [vmem:[%s10752_s17 + $0x160] sm:$0xff] }
  0x56   : > { %4609 = vmatprep.subr.bf16.mxu0 %v16953_v7  ;;  %962 = vmatprep.mubr.bf16.mxu1 %v16953_v7  ;;  %v11049_v57 = vpack.c.bf16 %v382_v56, %v381_v54 }
  0x58   : > { %17386 = vst [vmem:[#allocation17_spill] sm:$0xff] %v11049_v57 }
  0x59   : > { %4610 = vmatpush1.bf16.msra.mxu0 %v10481_v59  ;;  %v383_v59 = vld [vmem:[%s10752_s17 + $0x170] sm:$0xff] }
  0x5a   : > { %4611 = vmatprep.subr.bf16.mxu0 %v16953_v7  ;;  %v11059_v61 = vpack.c.bf16 %v384_v60, %v383_v59 }
  0x5c   : > { %8473 = vmatmul.mubr.msk.bf16.gmra.mrb[28].mxu0 %vm667_vm0, %v10880_v58  ;;  %8345 = vmatmul.mubr.msk.bf16.gmra.mrb[28].mxu1 %vm667_vm0, %v10880_v58  ;;  %17387 = vst [vmem:[#allocation18_spill] sm:$0xff] %v11059_v61 }
  0x5d   : > { %2318 = vmatprep.mubr.bf16.mxu0 %v16953_v7  ;;  %972 = vmatprep.mubr.bf16.mxu1 %v16953_v7 }
  0x5e   : > { %4612 = vmatpush1.bf16.msra.mxu0 %v10482_v2  ;;  %v11069_v2 = vpack.c.bf16 %v386_v0, %v385_v63 }
  0x5f   : > { %4613 = vmatprep.subr.bf16.mxu0 %v16953_v7 }
  0x60   : > { %17388 = vst [vmem:[#allocation19_spill] sm:$0xff] %v11069_v2 }
  0x62   : > { %4614 = vmatpush1.bf16.msra.mxu0 %v10483_v15  ;;  %v11088_v15 = vshrl.u32 %v547_v11, 7  ;;  %v393_v11 = vld [vmem:[%s10752_s17 + $0x1c0] sm:$0xff] }
  0x63   : > { %5128 = vmatprep.subr.bf16.mxu0 %v16953_v7  ;;  %v11148_v28 = vpack.c.bf16 %v394_v13, %v393_v11 }
  0x64   : > { %8474 = vmatmul.mubr.msk.bf16.gmra.mrb[32].mxu0 %vm667_vm0, %v10894_v62  ;;  %8346 = vmatmul.mubr.msk.bf16.gmra.mrb[32].mxu1 %vm667_vm0, %v10894_v62  ;;  %17390 = vst [vmem:[#allocation21_spill] sm:$0xff] %v11088_v15  ;;  %v565_v19 = vsub.s32 4, %v11088_v15  ;;  %v16952_v21 = vsub.s32 0, %v11088_v15  ;;  %v553_v25 = vsub.s32 1, %v11088_v15  ;;  %v569_v26 = vsub.s32 5, %v11088_v15 }
  0x65   : > { %2328 = vmatprep.mubr.bf16.mxu0 %v16953_v7  ;;  %982 = vmatprep.mubr.bf16.mxu1 %v16953_v7  ;;  %17399 = vst [vmem:[#allocation30_spill] sm:$0xff] %v11148_v28 }
  0x66   : > { %v11105_v32 = vrot.slane %v545_v22, %v565_v19  ;;  %v11111_v33 = vrot.slane %v545_v22, %v16952_v21  ;;  %v11113_v37 = vrot.slane %v545_v22, %v553_v25  ;;  %v11116_v38 = vrot.slane %v545_v22, %v569_v26 }
  0x68   : > { %17392 = vst [vmem:[#allocation23_spill] sm:$0xff] %v11105_v32  ;;  %17393 = vst [vmem:[#allocation24_spill] sm:$0xff] %v11116_v38 }
  0x6c   : > { %8475 = vmatmul.mubr.msk.bf16.gmra.mrb[36].mxu0 %vm667_vm0, %v10904_v1  ;;  %8347 = vmatmul.mubr.msk.bf16.gmra.mrb[36].mxu1 %vm667_vm0, %v10904_v1 }
  0x6d   : > { %2338 = vmatprep.mubr.bf16.mxu0 %v16953_v7  ;;  %992 = vmatprep.mubr.bf16.mxu1 %v16953_v7 }
  0x74   : > { %8476 = vmatmul.mubr.msk.bf16.gmra.mrb[40].mxu0 %vm667_vm0, %v10918_v9  ;;  %8348 = vmatmul.mubr.msk.bf16.gmra.mrb[40].mxu1 %vm667_vm0, %v10918_v9 }
  0x75   : > { %2348 = vmatprep.mubr.bf16.mxu0 %v16953_v7  ;;  %1002 = vmatprep.mubr.bf16.mxu1 %v16953_v7 }
  0x7c   : > { %8477 = vmatmul.mubr.msk.bf16.gmra.mrb[44].mxu0 %vm667_vm0, %v10928_v12  ;;  %8349 = vmatmul.mubr.msk.bf16.gmra.mrb[44].mxu1 %vm667_vm0, %v10928_v12 }
  0x7d   : > { %2358 = vmatprep.mubr.bf16.mxu0 %v16953_v7  ;;  %1012 = vmatprep.mubr.bf16.mxu1 %v16953_v7 }
  0x84   : > { %8478 = vmatmul.mubr.msk.bf16.gmra.mrb[48].mxu0 %vm667_vm0, %v10941_v17  ;;  %8350 = vmatmul.mubr.msk.bf16.gmra.mrb[48].mxu1 %vm667_vm0, %v10941_v17 }
  0x85   : > { %2368 = vmatprep.mubr.bf16.mxu0 %v16953_v7  ;;  %1022 = vmatprep.mubr.bf16.mxu1 %v16953_v7 }
  0x8c   : > { %8479 = vmatmul.mubr.msk.bf16.gmra.mrb[52].mxu0 %vm667_vm0, %v10952_v20  ;;  %8351 = vmatmul.mubr.msk.bf16.gmra.mrb[52].mxu1 %vm667_vm0, %v10952_v20 }
  0x8d   : > { %2378 = vmatprep.mubr.bf16.mxu0 %v16953_v7  ;;  %1032 = vmatprep.mubr.bf16.mxu1 %v16953_v7 }
  0x94   : > { %8480 = vmatmul.mubr.msk.bf16.gmra.mrb[56].mxu0 %vm667_vm0, %v10962_v24  ;;  %8352 = vmatmul.mubr.msk.bf16.gmra.mrb[56].mxu1 %vm667_vm0, %v10962_v24 }
  0x95   : > { %2388 = vmatprep.mubr.bf16.mxu0 %v16953_v7  ;;  %1042 = vmatprep.mubr.bf16.mxu1 %v16953_v7 }
  0x9c   : > { %8481 = vmatmul.mubr.msk.bf16.gmra.mrb[60].mxu0 %vm667_vm0, %v10972_v27  ;;  %8353 = vmatmul.mubr.msk.bf16.gmra.mrb[60].mxu1 %vm667_vm0, %v10972_v27 }
  0x9d   : > { %2398 = vmatprep.mubr.bf16.mxu0 %v16953_v7  ;;  %1052 = vmatprep.mubr.bf16.mxu1 %v16953_v7 }
  0xa4   : > { %8482 = vmatmul.mubr.msk.bf16.gmra.mrb[64].mxu0 %vm667_vm0, %v10982_v31  ;;  %8354 = vmatmul.mubr.msk.bf16.gmra.mrb[64].mxu1 %vm667_vm0, %v10982_v31 }
  0xa5   : > { %2408 = vmatprep.mubr.bf16.mxu0 %v16953_v7  ;;  %1062 = vmatprep.mubr.bf16.mxu1 %v16953_v7 }
  0xac   : > { %8483 = vmatmul.mubr.msk.bf16.gmra.mrb[68].mxu0 %vm667_vm0, %v10992_v35  ;;  %8355 = vmatmul.mubr.msk.bf16.gmra.mrb[68].mxu1 %vm667_vm0, %v10992_v35 }
  0xad   : > { %2418 = vmatprep.mubr.bf16.mxu0 %v16953_v7  ;;  %1072 = vmatprep.mubr.bf16.mxu1 %v16953_v7 }
  0xb4   : > { %8484 = vmatmul.mubr.msk.bf16.gmra.mrb[72].mxu0 %vm667_vm0, %v11008_v41  ;;  %8356 = vmatmul.mubr.msk.bf16.gmra.mrb[72].mxu1 %vm667_vm0, %v11008_v41 }
  0xb5   : > { %2428 = vmatprep.mubr.bf16.mxu0 %v16953_v7  ;;  %1082 = vmatprep.mubr.bf16.mxu1 %v16953_v7 }
  0xbc   : > { %8485 = vmatmul.mubr.msk.bf16.gmra.mrb[76].mxu0 %vm667_vm0, %v11019_v47  ;;  %8357 = vmatmul.mubr.msk.bf16.gmra.mrb[76].mxu1 %vm667_vm0, %v11019_v47 }
  0xbd   : > { %2438 = vmatprep.mubr.bf16.mxu0 %v16953_v7  ;;  %1092 = vmatprep.mubr.bf16.mxu1 %v16953_v7 }
  0xc4   : > { %8486 = vmatmul.mubr.msk.bf16.gmra.mrb[80].mxu0 %vm667_vm0, %v11029_v49  ;;  %8358 = vmatmul.mubr.msk.bf16.gmra.mrb[80].mxu1 %vm667_vm0, %v11029_v49 }
  0xc5   : > { %2448 = vmatprep.mubr.bf16.mxu0 %v16953_v7  ;;  %1102 = vmatprep.mubr.bf16.mxu1 %v16953_v7 }
  0xcc   : > { %8487 = vmatmul.mubr.msk.bf16.gmra.mrb[84].mxu0 %vm667_vm0, %v11039_v53  ;;  %8359 = vmatmul.mubr.msk.bf16.gmra.mrb[84].mxu1 %vm667_vm0, %v11039_v53 }
  0xcd   : > { %2458 = vmatprep.mubr.bf16.mxu0 %v16953_v7  ;;  %1112 = vmatprep.mubr.bf16.mxu1 %v16953_v7 }
  0xd4   : > { %8488 = vmatmul.mubr.msk.bf16.gmra.mrb[88].mxu0 %vm667_vm0, %v11049_v57  ;;  %8360 = vmatmul.mubr.msk.bf16.gmra.mrb[88].mxu1 %vm667_vm0, %v11049_v57 }
  0xd5   : > { %2468 = vmatprep.mubr.bf16.mxu0 %v16953_v7  ;;  %1122 = vmatprep.mubr.bf16.mxu1 %v16953_v7 }
  0xdc   : > { %8489 = vmatmul.mubr.msk.bf16.gmra.mrb[92].mxu0 %vm667_vm0, %v11059_v61  ;;  %8361 = vmatmul.mubr.msk.bf16.gmra.mrb[92].mxu1 %vm667_vm0, %v11059_v61 }
  0xdd   : > { %2478 = vmatprep.mubr.bf16.mxu0 %v16953_v7  ;;  %1132 = vmatprep.mubr.bf16.mxu1 %v16953_v7 }
  0xe4   : > { %8490 = vmatmul.mubr.msk.bf16.gmra.mrb[96].mxu0 %vm667_vm0, %v11069_v2  ;;  %8362 = vmatmul.mubr.msk.bf16.gmra.mrb[96].mxu1 %vm667_vm0, %v11069_v2 }
  0xe5   : > { %2488 = vmatprep.mubr.bf16.mxu0 %v16953_v7  ;;  %1142 = vmatprep.mubr.bf16.mxu1 %v16953_v7 }
  0xec   : > { %8491 = vmatmul.mubr.msk.bf16.gmra.mrb[100].mxu0 %vm667_vm0, %v11079_v10  ;;  %8363 = vmatmul.mubr.msk.bf16.gmra.mrb[100].mxu1 %vm667_vm0, %v11079_v10 }
  0xed   : > { %2498 = vmatprep.mubr.bf16.mxu0 %v16953_v7  ;;  %1152 = vmatprep.mubr.bf16.mxu1 %v16953_v7 }
  0xf4   : > { %8492 = vmatmul.mubr.msk.bf16.gmra.mrb[104].mxu0 %vm667_vm0, %v11091_v18  ;;  %8364 = vmatmul.mubr.msk.bf16.gmra.mrb[104].mxu1 %vm667_vm0, %v11091_v18 }
  0xf5   : > { %2508 = vmatprep.mubr.bf16.mxu0 %v16953_v7  ;;  %1162 = vmatprep.mubr.bf16.mxu1 %v16953_v7 }
  0xf7   : > { %v2240_v36 = vpop.f32.mrb[0].mxu0  ;;  %v894_v44 = vpop.f32.mrb[0].mxu1 }
  0xf8   : > { %v2242_v39 = vpop.f32.mrb[1].mxu0  ;;  %v11121_v46 = vadd.f32 %v2240_v36, %v11105_v32  ;;  %v895_v51 = vadd.f32 %v894_v44, %v11111_v33  ;;  %v896_v52 = vpop.f32.mrb[1].mxu1 }
  0xf9   : > { %v2244_v43 = vpop.f32.mrb[2].mxu0  ;;  %v897_v54 = vadd.f32 %v896_v52, %v11113_v37  ;;  %v898_v56 = vpop.f32.mrb[2].mxu1  ;;  %v11129_v59 = vadd.f32 %v2242_v39, %v11116_v38 }
  0xfa   : > { %17395 = vst [vmem:[#allocation26_spill] sm:$0xff] %v11121_v46  ;;  %v11124_v4 = vadd.f32 %v2244_v43, %v11105_v32  ;;  %v2246_v48 = vpop.f32.mrb[3].mxu0  ;;  %v899_v63 = vadd.f32 %v898_v56, %v11111_v33  ;;  %v900_v0 = vpop.f32.mrb[3].mxu1 }
  0xfb   : > { %17397 = vst [vmem:[#allocation28_spill] sm:$0xff] %v11129_v59  ;;  %v11132_v60 = vadd.f32 %v2246_v48, %v11116_v38  ;;  %v901_v6 = vadd.f32 %v900_v0, %v11113_v37 }
  0xfc   : > { %17396 = vst [vmem:[#allocation27_spill] sm:$0xff] %v11124_v4  ;;  %8493 = vmatmul.mubr.msk.bf16.gmra.mrb[108].mxu0 %vm667_vm0, %v11118_v42  ;;  %v3552_v19 = vpack.c.bf16 %v899_v63, %v895_v51  ;;  %8365 = vmatmul.mubr.msk.bf16.gmra.mrb[108].mxu1 %vm667_vm0, %v11118_v42 }
  0xfd   : > { %17398 = vst [vmem:[#allocation29_spill] sm:$0xff] %v11132_v60  ;;  %2518 = vmatprep.mubr.bf16.mxu0 %v16953_v7  ;;  %v3553_v25 = vpack.c.bf16 %v901_v6, %v897_v54  ;;  %1172 = vmatprep.mubr.bf16.mxu1 %v16953_v7 }
  0xff   : > { %v2250_v22 = vpop.f32.mrb[4].mxu0  ;;  %v904_v36 = vpop.f32.mrb[4].mxu1 }
 0x100   : > { %v2252_v26 = vpop.f32.mrb[5].mxu0  ;;  %v11151_v43 = vadd.f32 %v904_v36, %v11111_v33  ;;  %v906_v44 = vpop.f32.mrb[5].mxu1  ;;  %v11154_v48 = vadd.f32 %v2250_v22, %v11105_v32 }
 0x101   : > { %v2254_v30 = vpop.f32.mrb[6].mxu0  ;;  %v907_v52 = vadd.f32 %v906_v44, %v11113_v37  ;;  %v908_v54 = vpop.f32.mrb[6].mxu1  ;;  %v11161_v56 = vadd.f32 %v2252_v26, %v11116_v38  ;;  %v396_v44 = vld [vmem:[%s10752_s17 + $0x1d8] sm:$0xff] }
 0x102   : > { %v2256_v39 = vpop.f32.mrb[7].mxu0  ;;  %17400 = vst [vmem:[#allocation31_spill] sm:$0xff] %v11154_v48  ;;  %v11157_v51 = vadd.f32 %v2254_v30, %v11105_v32  ;;  %v909_v0 = vadd.f32 %v908_v54, %v11111_v33  ;;  %v910_v6 = vpop.f32.mrb[7].mxu1 }
 0x103   : > { %17402 = vst [vmem:[#allocation33_spill] sm:$0xff] %v11161_v56  ;;  %v11164_v63 = vadd.f32 %v2256_v39, %v11116_v38  ;;  %v911_v13 = vadd.f32 %v910_v6, %v11113_v37  ;;  %v395_v39 = vld [vmem:[%s10752_s17 + $0x1d0] sm:$0xff] }
 0x104   : > { %17401 = vst [vmem:[#allocation32_spill] sm:$0xff] %v11157_v51  ;;  %8494 = vmatmul.mubr.msk.bf16.gmra.mrb[112].mxu0 %vm667_vm0, %v11148_v28  ;;  %8366 = vmatmul.mubr.msk.bf16.gmra.mrb[112].mxu1 %vm667_vm0, %v11148_v28  ;;  %v3560_v26 = vpack.c.bf16 %v909_v0, %v11151_v43  ;;  %v11186_v14 = vpack.c.bf16 %v396_v44, %v395_v39  ;;  %v10485_v44 = vld [vmem:[%s16945_s3 + $0x88] sm:$0xff]  }
 0x105   : > { %17403 = vst [vmem:[#allocation34_spill] sm:$0xff] %v11164_v63  ;;  %4615 = vmatprep.mubr.bf16.mxu0 %v3553_v25  ;;  %v3561_v36 = vpack.c.bf16 %v911_v13, %v907_v52  ;;  %1182 = vmatprep.mubr.bf16.mxu1 %v16953_v7  ;;  %v10484_v25 = vld [vmem:[%s16945_s3 + $0x80] sm:$0xff]  }
 0x107   : > { %v2260_v30 = vpop.f32.mrb[8].mxu0  ;;  %v914_v6 = vpop.f32.mrb[8].mxu1 }
 0x108   : > { %v2262_v54 = vpop.f32.mrb[9].mxu0  ;;  %v11184_v22 = vadd.f32 %v914_v6, %v11111_v33  ;;  %v916_v3 = vpop.f32.mrb[9].mxu1  ;;  %v11189_v43 = vadd.f32 %v2260_v30, %v11105_v32 }
 0x109   : > { %v2264_v21 = vpop.f32.mrb[10].mxu0  ;;  %v917_v0 = vadd.f32 %v916_v3, %v11113_v37  ;;  %v918_v13 = vpop.f32.mrb[10].mxu1  ;;  %v11196_v7 = vadd.f32 %v2262_v54, %v11116_v38  ;;  %v17408_v54 = vmov 0  }
 0x10a   : > { %v2266_v11 = vpop.f32.mrb[11].mxu0  ;;  %17404 = vst [vmem:[#allocation35_spill] sm:$0xff] %v11189_v43  ;;  %v11192_v52 = vadd.f32 %v2264_v21, %v11105_v32  ;;  %v11202_v39 = vadd.f32 %v918_v13, %v11111_v33  ;;  %v920_v30 = vpop.f32.mrb[11].mxu1  ;;  %v398_v13 = vld [vmem:[%s10752_s17 + $0x1e8] sm:$0xff] }
 0x10b   : > { %17406 = vst [vmem:[#allocation37_spill] sm:$0xff] %v11196_v7  ;;  %v11199_v48 = vadd.f32 %v2266_v11, %v11116_v38  ;;  %v921_v3 = vadd.f32 %v920_v30, %v11113_v37  ;;  %v10486_v11 = vld [vmem:[%s16945_s3 + $0x90] sm:$0xff]  }
 0x10c   : > { %17405 = vst [vmem:[#allocation36_spill] sm:$0xff] %v11192_v52  ;;  %4616 = vmatmul.mubr.bf16.vlgmr.msra.gmra.mrb[116].mxu0 %v3552_v19  ;;  %8367 = vmatmul.mubr.msk.bf16.gmra.mrb[116].mxu1 %vm667_vm0, %v11186_v14  ;;  %v3568_v19 = vpack.c.bf16 %v11202_v39, %v11184_v22 }
 0x10d   : > { %17407 = vst [vmem:[#allocation38_spill] sm:$0xff] %v11199_v48  ;;  %5129 = vmatpush1.bf16.msra.mxu0 %v10484_v25  ;;  %4623 = vmatprep.mubr.bf16.mxu0 %v3561_v36  ;;  %v3569_v25 = vpack.c.bf16 %v921_v3, %v917_v0  ;;  %v397_v36 = vld [vmem:[%s10752_s17 + $0x1e0] sm:$0xff] }
 0x10e   : > { %5130 = vmatprep.subr.bf16.mxu0 %v17408_v54  ;;  %1192 = vmatprep.mubr.bf16.mxu1 %v17408_v54  ;;  %v11226_v39 = vpack.c.bf16 %v398_v13, %v397_v36 }
 0x10f   : > { %v2270_v6 = vpop.f32.mrb[12].mxu0  ;;  %v924_v43 = vpop.f32.mrb[12].mxu1 }
 0x110   : > { %v2272_v30 = vpop.f32.mrb[13].mxu0  ;;  %v11224_v7 = vadd.f32 %v924_v43, %v11111_v33  ;;  %v926_v22 = vpop.f32.mrb[13].mxu1  ;;  %17409 = vst [vmem:[#allocation39_spill] sm:$0xff] %v11226_v39  ;;  %v11230_v0 = vadd.f32 %v2270_v6, %v11105_v32 }
 0x111   : > { %v2274_v21 = vpop.f32.mrb[14].mxu0  ;;  %5131 = vmatpush1.bf16.msra.mxu0 %v10485_v44  ;;  %v927_v44 = vadd.f32 %v926_v22, %v11113_v37  ;;  %v928_v48 = vpop.f32.mrb[14].mxu1  ;;  %v11237_v51 = vadd.f32 %v2272_v30, %v11116_v38  ;;  %v10487_v30 = vld [vmem:[%s16945_s3 + $0x98] sm:$0xff]  }
 0x112   : > { %v2276_v52 = vpop.f32.mrb[15].mxu0  ;;  %5132 = vmatprep.subr.bf16.mxu0 %v17408_v54  ;;  %17410 = vst [vmem:[#allocation40_spill] sm:$0xff] %v11230_v0  ;;  %v11233_v3 = vadd.f32 %v2274_v21, %v11105_v32  ;;  %v929_v36 = vadd.f32 %v928_v48, %v11111_v33  ;;  %v930_v13 = vpop.f32.mrb[15].mxu1 }
 0x113   : > { %17412 = vst [vmem:[#allocation42_spill] sm:$0xff] %v11237_v51  ;;  %v11240_v43 = vadd.f32 %v2276_v52, %v11116_v38  ;;  %v931_v21 = vadd.f32 %v930_v13, %v11113_v37  ;;  %v10488_v52 = vld [vmem:[%s16945_s3 + $0xa0] sm:$0xff]  }
 0x114   : > { %17411 = vst [vmem:[#allocation41_spill] sm:$0xff] %v11233_v3  ;;  %4624 = vmatmul.mubr.bf16.gmra.mrb[120].mxu0 %v3560_v26  ;;  %8368 = vmatmul.mubr.msk.bf16.gmra.mrb[120].mxu1 %vm667_vm0, %v11226_v39  ;;  %v3576_v48 = vpack.c.bf16 %v929_v36, %v11224_v7 }
 0x115   : > { %17413 = vst [vmem:[#allocation43_spill] sm:$0xff] %v11240_v43  ;;  %4631 = vmatprep.mubr.bf16.mxu0 %v3569_v25  ;;  %5133 = vmatpush1.bf16.msra.mxu0 %v10486_v11  ;;  %v3577_v22 = vpack.c.bf16 %v931_v21, %v927_v44  ;;  %v399_v25 = vld [vmem:[%s10752_s17 + $0x1f0] sm:$0xff]  ;;  %v400_v11 = vld [vmem:[%s10752_s17 + $0x1f8] sm:$0xff] }
 0x116   : > { %5134 = vmatprep.subr.bf16.mxu0 %v17408_v54  ;;  %1202 = vmatprep.mubr.bf16.mxu1 %v17408_v54  ;;  %v11264_v36 = vpack.c.bf16 %v400_v11, %v399_v25 }
 0x117   : > { %v2280_v26 = vpop.f32.mrb[16].mxu0  ;;  %v934_v0 = vpop.f32.mrb[16].mxu1 }
 0x118   : > { %v2282_v13 = vpop.f32.mrb[17].mxu0  ;;  %v11262_v51 = vadd.f32 %v934_v0, %v11111_v33  ;;  %v936_v7 = vpop.f32.mrb[17].mxu1  ;;  %17414 = vst [vmem:[#allocation44_spill] sm:$0xff] %v11264_v36  ;;  %v11268_v44 = vadd.f32 %v2280_v26, %v11105_v32  ;;  %v402_v26 = vld [vmem:[%s10752_s17 + $0x208] sm:$0xff] }
 0x119   : > { %v2284_v6 = vpop.f32.mrb[18].mxu0  ;;  %5135 = vmatpush1.bf16.msra.mxu0 %v10487_v30  ;;  %v937_v30 = vadd.f32 %v936_v7, %v11113_v37  ;;  %v938_v43 = vpop.f32.mrb[18].mxu1  ;;  %v11275_v56 = vadd.f32 %v2282_v13, %v11116_v38  ;;  %v401_v7 = vld [vmem:[%s10752_s17 + $0x200] sm:$0xff] }
 0x11a   : > { %v2286_v3 = vpop.f32.mrb[19].mxu0  ;;  %5136 = vmatprep.subr.bf16.mxu0 %v17408_v54  ;;  %17415 = vst [vmem:[#allocation45_spill] sm:$0xff] %v11268_v44  ;;  %v11271_v21 = vadd.f32 %v2284_v6, %v11105_v32  ;;  %v939_v25 = vadd.f32 %v938_v43, %v11111_v33  ;;  %v940_v11 = vpop.f32.mrb[19].mxu1 }
 0x11b   : > { %17417 = vst [vmem:[#allocation47_spill] sm:$0xff] %v11275_v56  ;;  %v11278_v0 = vadd.f32 %v2286_v3, %v11116_v38  ;;  %v941_v6 = vadd.f32 %v940_v11, %v11113_v37  ;;  %v11296_v56 = vpack.c.bf16 %v402_v26, %v401_v7 }
 0x11c   : > { %17416 = vst [vmem:[#allocation46_spill] sm:$0xff] %v11271_v21  ;;  %4632 = vmatmul.mubr.bf16.gmra.mrb[124].mxu0 %v3568_v19  ;;  %8369 = vmatmul.mubr.msk.bf16.gmra.mrb[124].mxu1 %vm667_vm0, %v11264_v36  ;;  %v3584_v3 = vpack.c.bf16 %v939_v25, %v11262_v51 }
 0x11d   : > { %17418 = vst [vmem:[#allocation48_spill] sm:$0xff] %v11278_v0  ;;  %4639 = vmatprep.mubr.bf16.mxu0 %v3577_v22  ;;  %5137 = vmatpush1.bf16.msra.mxu0 %v10488_v52  ;;  %v3585_v43 = vpack.c.bf16 %v941_v6, %v937_v30  ;;  %17419 = vst [vmem:[#allocation49_spill] sm:$0xff] %v11296_v56 }
 0x11e   : > { %5138 = vmatprep.subr.bf16.mxu0 %v17408_v54  ;;  %1212 = vmatprep.mubr.bf16.mxu1 %v17408_v54 }
 0x11f   : > { %v2290_v19 = vpop.f32.mrb[20].mxu0  ;;  %v944_v11 = vpop.f32.mrb[20].mxu1 }
 0x120   : > { %v2292_v22 = vpop.f32.mrb[21].mxu0  ;;  %v11294_v21 = vadd.f32 %v944_v11, %v11111_v33  ;;  %v946_v13 = vpop.f32.mrb[21].mxu1  ;;  %v11299_v51 = vadd.f32 %v2290_v19, %v11105_v32 }
 0x121   : > { %v2294_v44 = vpop.f32.mrb[22].mxu0  ;;  %v947_v30 = vadd.f32 %v946_v13, %v11113_v37  ;;  %v948_v6 = vpop.f32.mrb[22].mxu1  ;;  %v11306_v0 = vadd.f32 %v2292_v22, %v11116_v38 }
 0x122   : > { %v2296_v52 = vpop.f32.mrb[23].mxu0  ;;  %17420 = vst [vmem:[#allocation50_spill] sm:$0xff] %v11299_v51  ;;  %v11302_v25 = vadd.f32 %v2294_v44, %v11105_v32  ;;  %v949_v26 = vadd.f32 %v948_v6, %v11111_v33  ;;  %v950_v7 = vpop.f32.mrb[23].mxu1  ;;  %v404_v6 = vld [vmem:[%s10752_s17 + $0x218] sm:$0xff] }
 0x123   : > { %17422 = vst [vmem:[#allocation52_spill] sm:$0xff] %v11306_v0  ;;  %v11309_v11 = vadd.f32 %v2296_v52, %v11116_v38  ;;  %v951_v44 = vadd.f32 %v950_v7, %v11113_v37 }
 0x124   : > { %17421 = vst [vmem:[#allocation51_spill] sm:$0xff] %v11302_v25  ;;  %4640 = vmatmul.mubr.bf16.gmra.mrb[128].mxu0 %v3576_v48  ;;  %8370 = vmatmul.mubr.msk.bf16.gmra.mrb[128].mxu1 %vm667_vm0, %v11296_v56  ;;  %v3592_v22 = vpack.c.bf16 %v949_v26, %v11294_v21  ;;  %v403_v48 = vld [vmem:[%s10752_s17 + $0x210] sm:$0xff] }
 0x125   : > { %17423 = vst [vmem:[#allocation53_spill] sm:$0xff] %v11309_v11  ;;  %4647 = vmatprep.mubr.bf16.mxu0 %v3585_v43  ;;  %v3593_v63 = vpack.c.bf16 %v951_v44, %v947_v30  ;;  %1222 = vmatprep.mubr.bf16.mxu1 %v17408_v54  ;;  %v11326_v13 = vpack.c.bf16 %v404_v6, %v403_v48  ;;  %v406_v11 = vld [vmem:[%s10752_s17 + $0x228] sm:$0xff] }
 0x127   : > { %v2300_v52 = vpop.f32.mrb[24].mxu0  ;;  %v954_v19 = vpop.f32.mrb[24].mxu1  ;;  %17424 = vst [vmem:[#allocation54_spill] sm:$0xff] %v11326_v13 }
 0x128   : > { %v2302_v46 = vpop.f32.mrb[25].mxu0  ;;  %v11324_v7 = vadd.f32 %v954_v19, %v11111_v33  ;;  %v956_v51 = vpop.f32.mrb[25].mxu1  ;;  %v11329_v25 = vadd.f32 %v2300_v52, %v11105_v32 }
 0x129   : > { %v2304_v4 = vpop.f32.mrb[26].mxu0  ;;  %v957_v30 = vadd.f32 %v956_v51, %v11113_v37  ;;  %v958_v26 = vpop.f32.mrb[26].mxu1  ;;  %v11336_v44 = vadd.f32 %v2302_v46, %v11116_v38 }
 0x12a   : > { %v2306_v43 = vpop.f32.mrb[27].mxu0  ;;  %17425 = vst [vmem:[#allocation55_spill] sm:$0xff] %v11329_v25  ;;  %v11332_v21 = vadd.f32 %v2304_v4, %v11105_v32  ;;  %v959_v19 = vadd.f32 %v958_v26, %v11111_v33  ;;  %v960_v48 = vpop.f32.mrb[27].mxu1  ;;  %v10489_v4 = vld [vmem:[%s16945_s3 + $0xa8] sm:$0xff]   ;;  %v405_v26 = vld [vmem:[%s10752_s17 + $0x220] sm:$0xff] }
 0x12b   : > { %17427 = vst [vmem:[#allocation57_spill] sm:$0xff] %v11336_v44  ;;  %v11339_v0 = vadd.f32 %v2306_v43, %v11116_v38  ;;  %v961_v46 = vadd.f32 %v960_v48, %v11113_v37  ;;  %5139 = vmatpush1.bf16.msra.mxu0 %v10489_v4  ;;  %v11360_v44 = vpack.c.bf16 %v406_v11, %v405_v26 }
 0x12c   : > { %17426 = vst [vmem:[#allocation56_spill] sm:$0xff] %v11332_v21  ;;  %4648 = vmatmul.mubr.bf16.gmra.mrb[132].mxu0 %v3584_v3  ;;  %8371 = vmatmul.mubr.msk.bf16.gmra.mrb[132].mxu1 %vm667_vm0, %v11326_v13  ;;  %v3600_v3 = vpack.c.bf16 %v959_v19, %v11324_v7 }
 0x12d   : > { %17428 = vst [vmem:[#allocation58_spill] sm:$0xff] %v11339_v0  ;;  %4655 = vmatprep.mubr.bf16.mxu0 %v3593_v63  ;;  %v3601_v43 = vpack.c.bf16 %v961_v46, %v957_v30  ;;  %1232 = vmatprep.mubr.bf16.mxu1 %v17408_v54  ;;  %17429 = vst [vmem:[#allocation59_spill] sm:$0xff] %v11360_v44 }
 0x12e   : > { %5140 = vmatprep.subr.bf16.mxu0 %v17408_v54 }
 0x12f   : > { %v2310_v6 = vpop.f32.mrb[28].mxu0  ;;  %v964_v48 = vpop.f32.mrb[28].mxu1 }
 0x130   : > { %v2312_v63 = vpop.f32.mrb[29].mxu0  ;;  %v11358_v52 = vadd.f32 %v964_v48, %v11111_v33  ;;  %v966_v21 = vpop.f32.mrb[29].mxu1  ;;  %v11363_v7 = vadd.f32 %v2310_v6, %v11105_v32 }
 0x131   : > { %v2314_v51 = vpop.f32.mrb[30].mxu0  ;;  %v967_v19 = vadd.f32 %v966_v21, %v11113_v37  ;;  %v968_v4 = vpop.f32.mrb[30].mxu1  ;;  %v11370_v46 = vadd.f32 %v2312_v63, %v11116_v38 }
 0x132   : > { %v2316_v25 = vpop.f32.mrb[31].mxu0  ;;  %17430 = vst [vmem:[#allocation60_spill] sm:$0xff] %v11363_v7  ;;  %v11366_v30 = vadd.f32 %v2314_v51, %v11105_v32  ;;  %v969_v11 = vadd.f32 %v968_v4, %v11111_v33  ;;  %v970_v26 = vpop.f32.mrb[31].mxu1  ;;  %v408_v4 = vld [vmem:[%s10752_s17 + $0x238] sm:$0xff] }
 0x133   : > { %17432 = vst [vmem:[#allocation62_spill] sm:$0xff] %v11370_v46  ;;  %v11373_v48 = vadd.f32 %v2316_v25, %v11116_v38  ;;  %v971_v51 = vadd.f32 %v970_v26, %v11113_v37 }
 0x134   : > { %17431 = vst [vmem:[#allocation61_spill] sm:$0xff] %v11366_v30  ;;  %4656 = vmatmul.mubr.bf16.gmra.mrb[136].mxu0 %v3592_v22  ;;  %8372 = vmatmul.mubr.msk.bf16.gmra.mrb[136].mxu1 %vm667_vm0, %v11360_v44  ;;  %v3608_v63 = vpack.c.bf16 %v969_v11, %v11358_v52  ;;  %v407_v22 = vld [vmem:[%s10752_s17 + $0x230] sm:$0xff] }
 0x135   : > { %17433 = vst [vmem:[#allocation63_spill] sm:$0xff] %v11373_v48  ;;  %4663 = vmatprep.mubr.bf16.mxu0 %v3601_v43  ;;  %v3609_v0 = vpack.c.bf16 %v971_v51, %v967_v19  ;;  %1242 = vmatprep.mubr.bf16.mxu1 %v17408_v54  ;;  %v11390_v21 = vpack.c.bf16 %v408_v4, %v407_v22 }
 0x137   : > { %v2320_v25 = vpop.f32.mrb[32].mxu0  ;;  %v974_v6 = vpop.f32.mrb[32].mxu1  ;;  %17434 = vst [vmem:[#allocation64_spill] sm:$0xff] %v11390_v21 }
 0x138   : > { %v2322_v59 = vpop.f32.mrb[33].mxu0  ;;  %v11388_v26 = vadd.f32 %v974_v6, %v11111_v33  ;;  %v976_v7 = vpop.f32.mrb[33].mxu1  ;;  %v11393_v30 = vadd.f32 %v2320_v25, %v11105_v32 }
 0x139   : > { %v2324_v60 = vpop.f32.mrb[34].mxu0  ;;  %v977_v19 = vadd.f32 %v976_v7, %v11113_v37  ;;  %v978_v11 = vpop.f32.mrb[34].mxu1  ;;  %v11400_v51 = vadd.f32 %v2322_v59, %v11116_v38 }
 0x13a   : > { %v2326_v43 = vpop.f32.mrb[35].mxu0  ;;  %17435 = vst [vmem:[#allocation65_spill] sm:$0xff] %v11393_v30  ;;  %v11396_v52 = vadd.f32 %v2324_v60, %v11105_v32  ;;  %v979_v22 = vadd.f32 %v978_v11, %v11111_v33  ;;  %v980_v4 = vpop.f32.mrb[35].mxu1  ;;  %v410_v11 = vld [vmem:[%s10752_s17 + $0x248] sm:$0xff] }
 0x13b   : > { %17437 = vst [vmem:[#allocation67_spill] sm:$0xff] %v11400_v51  ;;  %v11403_v6 = vadd.f32 %v2326_v43, %v11116_v38  ;;  %v981_v60 = vadd.f32 %v980_v4, %v11113_v37 }
 0x13c   : > { %17436 = vst [vmem:[#allocation66_spill] sm:$0xff] %v11396_v52  ;;  %4664 = vmatmul.mubr.bf16.gmra.mrb[140].mxu0 %v3600_v3  ;;  %8373 = vmatmul.mubr.msk.bf16.gmra.mrb[140].mxu1 %vm667_vm0, %v11390_v21  ;;  %v3616_v59 = vpack.c.bf16 %v979_v22, %v11388_v26  ;;  %v409_v3 = vld [vmem:[%s10752_s17 + $0x240] sm:$0xff] }
 0x13d   : > { %17438 = vst [vmem:[#allocation68_spill] sm:$0xff] %v11403_v6  ;;  %4671 = vmatprep.mubr.bf16.mxu0 %v3609_v0  ;;  %v3617_v46 = vpack.c.bf16 %v981_v60, %v977_v19  ;;  %1252 = vmatprep.mubr.bf16.mxu1 %v17408_v54  ;;  %v11420_v7 = vpack.c.bf16 %v410_v11, %v409_v3 }
 0x13f   : > { %v2330_v43 = vpop.f32.mrb[36].mxu0  ;;  %v984_v25 = vpop.f32.mrb[36].mxu1  ;;  %17439 = vst [vmem:[#allocation69_spill] sm:$0xff] %v11420_v7 }
 0x140   : > { %v2332_v48 = vpop.f32.mrb[37].mxu0  ;;  %v11418_v4 = vadd.f32 %v984_v25, %v11111_v33  ;;  %v986_v30 = vpop.f32.mrb[37].mxu1  ;;  %v11423_v52 = vadd.f32 %v2330_v43, %v11105_v32 }
 0x141   : > { %v2334_v44 = vpop.f32.mrb[38].mxu0  ;;  %v987_v19 = vadd.f32 %v986_v30, %v11113_v37  ;;  %v988_v22 = vpop.f32.mrb[38].mxu1  ;;  %v11430_v60 = vadd.f32 %v2332_v48, %v11116_v38 }
 0x142   : > { %v2336_v0 = vpop.f32.mrb[39].mxu0  ;;  %17440 = vst [vmem:[#allocation70_spill] sm:$0xff] %v11423_v52  ;;  %v11426_v26 = vadd.f32 %v2334_v44, %v11105_v32  ;;  %v989_v3 = vadd.f32 %v988_v22, %v11111_v33  ;;  %v990_v11 = vpop.f32.mrb[39].mxu1  ;;  %v412_v22 = vld [vmem:[%s10752_s17 + $0x258] sm:$0xff] }
 0x143   : > { %17442 = vst [vmem:[#allocation72_spill] sm:$0xff] %v11430_v60  ;;  %v11433_v25 = vadd.f32 %v2336_v0, %v11116_v38  ;;  %v991_v44 = vadd.f32 %v990_v11, %v11113_v37 }
 0x144   : > { %17441 = vst [vmem:[#allocation71_spill] sm:$0xff] %v11426_v26  ;;  %4672 = vmatmul.mubr.bf16.gmra.mrb[144].mxu0 %v3608_v63  ;;  %8374 = vmatmul.mubr.msk.bf16.gmra.mrb[144].mxu1 %vm667_vm0, %v11420_v7  ;;  %v3624_v48 = vpack.c.bf16 %v989_v3, %v11418_v4  ;;  %v411_v63 = vld [vmem:[%s10752_s17 + $0x250] sm:$0xff] }
 0x145   : > { %17443 = vst [vmem:[#allocation73_spill] sm:$0xff] %v11433_v25  ;;  %4679 = vmatprep.mubr.bf16.mxu0 %v3617_v46  ;;  %v3625_v51 = vpack.c.bf16 %v991_v44, %v987_v19  ;;  %1262 = vmatprep.mubr.bf16.mxu1 %v17408_v54  ;;  %v11450_v30 = vpack.c.bf16 %v412_v22, %v411_v63  ;;  %v414_v25 = vld [vmem:[%s10752_s17 + $0x268] sm:$0xff] }
 0x147   : > { %v2340_v0 = vpop.f32.mrb[40].mxu0  ;;  %v994_v43 = vpop.f32.mrb[40].mxu1  ;;  %17444 = vst [vmem:[#allocation74_spill] sm:$0xff] %v11450_v30 }
 0x148   : > { %v2342_v6 = vpop.f32.mrb[41].mxu0  ;;  %v11448_v11 = vadd.f32 %v994_v43, %v11111_v33  ;;  %v996_v52 = vpop.f32.mrb[41].mxu1  ;;  %v11453_v26 = vadd.f32 %v2340_v0, %v11105_v32 }
 0x149   : > { %v2344_v21 = vpop.f32.mrb[42].mxu0  ;;  %v997_v19 = vadd.f32 %v996_v52, %v11113_v37  ;;  %v998_v3 = vpop.f32.mrb[42].mxu1  ;;  %v11460_v44 = vadd.f32 %v2342_v6, %v11116_v38 }
 0x14a   : > { %v2346_v46 = vpop.f32.mrb[43].mxu0  ;;  %17445 = vst [vmem:[#allocation75_spill] sm:$0xff] %v11453_v26  ;;  %v11456_v4 = vadd.f32 %v2344_v21, %v11105_v32  ;;  %v999_v43 = vadd.f32 %v998_v3, %v11111_v33  ;;  %v1000_v63 = vpop.f32.mrb[43].mxu1  ;;  %v10490_v21 = vld [vmem:[%s16945_s3 + $0xb0] sm:$0xff]   ;;  %v413_v3 = vld [vmem:[%s10752_s17 + $0x260] sm:$0xff] }
 0x14b   : > { %17447 = vst [vmem:[#allocation77_spill] sm:$0xff] %v11460_v44  ;;  %v11463_v60 = vadd.f32 %v2346_v46, %v11116_v38  ;;  %v1001_v6 = vadd.f32 %v1000_v63, %v11113_v37  ;;  %5141 = vmatpush1.bf16.msra.mxu0 %v10490_v21  ;;  %v11484_v44 = vpack.c.bf16 %v414_v25, %v413_v3 }
 0x14c   : > { %17446 = vst [vmem:[#allocation76_spill] sm:$0xff] %v11456_v4  ;;  %4680 = vmatmul.mubr.bf16.gmra.mrb[148].mxu0 %v3616_v59  ;;  %8375 = vmatmul.mubr.msk.bf16.gmra.mrb[148].mxu1 %vm667_vm0, %v11450_v30  ;;  %v3632_v59 = vpack.c.bf16 %v999_v43, %v11448_v11 }
 0x14d   : > { %17448 = vst [vmem:[#allocation78_spill] sm:$0xff] %v11463_v60  ;;  %4687 = vmatprep.mubr.bf16.mxu0 %v3625_v51  ;;  %v3633_v46 = vpack.c.bf16 %v1001_v6, %v997_v19  ;;  %1272 = vmatprep.mubr.bf16.mxu1 %v17408_v54  ;;  %17449 = vst [vmem:[#allocation79_spill] sm:$0xff] %v11484_v44 }
 0x14e   : > { %5142 = vmatprep.subr.bf16.mxu0 %v17408_v54 }
 0x14f   : > { %v2350_v22 = vpop.f32.mrb[44].mxu0  ;;  %v1004_v63 = vpop.f32.mrb[44].mxu1 }
 0x150   : > { %v2352_v51 = vpop.f32.mrb[45].mxu0  ;;  %v11482_v0 = vadd.f32 %v1004_v63, %v11111_v33  ;;  %v1006_v4 = vpop.f32.mrb[45].mxu1  ;;  %v11487_v11 = vadd.f32 %v2350_v22, %v11105_v32 }
 0x151   : > { %v2354_v52 = vpop.f32.mrb[46].mxu0  ;;  %v1007_v43 = vadd.f32 %v1006_v4, %v11113_v37  ;;  %v1008_v21 = vpop.f32.mrb[46].mxu1  ;;  %v11494_v6 = vadd.f32 %v2352_v51, %v11116_v38 }
 0x152   : > { %v2356_v26 = vpop.f32.mrb[47].mxu0  ;;  %17450 = vst [vmem:[#allocation80_spill] sm:$0xff] %v11487_v11  ;;  %v11490_v19 = vadd.f32 %v2354_v52, %v11105_v32  ;;  %v1009_v25 = vadd.f32 %v1008_v21, %v11111_v33  ;;  %v1010_v3 = vpop.f32.mrb[47].mxu1  ;;  %v416_v21 = vld [vmem:[%s10752_s17 + $0x278] sm:$0xff] }
 0x153   : > { %17452 = vst [vmem:[#allocation82_spill] sm:$0xff] %v11494_v6  ;;  %v11497_v63 = vadd.f32 %v2356_v26, %v11116_v38  ;;  %v1011_v52 = vadd.f32 %v1010_v3, %v11113_v37 }
 0x154   : > { %17451 = vst [vmem:[#allocation81_spill] sm:$0xff] %v11490_v19  ;;  %4688 = vmatmul.mubr.bf16.gmra.mrb[152].mxu0 %v3624_v48  ;;  %8376 = vmatmul.mubr.msk.bf16.gmra.mrb[152].mxu1 %vm667_vm0, %v11484_v44  ;;  %v3640_v51 = vpack.c.bf16 %v1009_v25, %v11482_v0  ;;  %v415_v48 = vld [vmem:[%s10752_s17 + $0x270] sm:$0xff] }
 0x155   : > { %17453 = vst [vmem:[#allocation83_spill] sm:$0xff] %v11497_v63  ;;  %4695 = vmatprep.mubr.bf16.mxu0 %v3633_v46  ;;  %v3641_v60 = vpack.c.bf16 %v1011_v52, %v1007_v43  ;;  %1282 = vmatprep.mubr.bf16.mxu1 %v17408_v54  ;;  %v11514_v4 = vpack.c.bf16 %v416_v21, %v415_v48 }
 0x157   : > { %v2360_v26 = vpop.f32.mrb[48].mxu0  ;;  %v1014_v22 = vpop.f32.mrb[48].mxu1  ;;  %17454 = vst [vmem:[#allocation84_spill] sm:$0xff] %v11514_v4 }
 0x158   : > { %v2362_v30 = vpop.f32.mrb[49].mxu0  ;;  %v11512_v3 = vadd.f32 %v1014_v22, %v11111_v33  ;;  %v1016_v11 = vpop.f32.mrb[49].mxu1  ;;  %v11517_v19 = vadd.f32 %v2360_v26, %v11105_v32 }
 0x159   : > { %v2364_v7 = vpop.f32.mrb[50].mxu0  ;;  %v1017_v43 = vadd.f32 %v1016_v11, %v11113_v37  ;;  %v1018_v25 = vpop.f32.mrb[50].mxu1  ;;  %v11524_v52 = vadd.f32 %v2362_v30, %v11116_v38 }
 0x15a   : > { %v2366_v46 = vpop.f32.mrb[51].mxu0  ;;  %17455 = vst [vmem:[#allocation85_spill] sm:$0xff] %v11517_v19  ;;  %v11520_v0 = vadd.f32 %v2364_v7, %v11105_v32  ;;  %v1019_v48 = vadd.f32 %v1018_v25, %v11111_v33  ;;  %v1020_v21 = vpop.f32.mrb[51].mxu1  ;;  %v418_v25 = vld [vmem:[%s10752_s17 + $0x288] sm:$0xff] }
 0x15b   : > { %17457 = vst [vmem:[#allocation87_spill] sm:$0xff] %v11524_v52  ;;  %v11527_v22 = vadd.f32 %v2366_v46, %v11116_v38  ;;  %v1021_v7 = vadd.f32 %v1020_v21, %v11113_v37 }
 0x15c   : > { %17456 = vst [vmem:[#allocation86_spill] sm:$0xff] %v11520_v0  ;;  %4696 = vmatmul.mubr.bf16.gmra.mrb[156].mxu0 %v3632_v59  ;;  %8377 = vmatmul.mubr.msk.bf16.gmra.mrb[156].mxu1 %vm667_vm0, %v11514_v4  ;;  %v3648_v30 = vpack.c.bf16 %v1019_v48, %v11512_v3  ;;  %v417_v59 = vld [vmem:[%s10752_s17 + $0x280] sm:$0xff] }
 0x15d   : > { %17458 = vst [vmem:[#allocation88_spill] sm:$0xff] %v11527_v22  ;;  %4703 = vmatprep.mubr.bf16.mxu0 %v3641_v60  ;;  %v3649_v6 = vpack.c.bf16 %v1021_v7, %v1017_v43  ;;  %1292 = vmatprep.mubr.bf16.mxu1 %v17408_v54  ;;  %v11544_v11 = vpack.c.bf16 %v418_v25, %v417_v59 }
 0x15f   : > { %v2370_v46 = vpop.f32.mrb[52].mxu0  ;;  %v1024_v26 = vpop.f32.mrb[52].mxu1  ;;  %17459 = vst [vmem:[#allocation89_spill] sm:$0xff] %v11544_v11 }
 0x160   : > { %v2372_v63 = vpop.f32.mrb[53].mxu0  ;;  %v11542_v21 = vadd.f32 %v1024_v26, %v11111_v33  ;;  %v1026_v19 = vpop.f32.mrb[53].mxu1  ;;  %v11547_v0 = vadd.f32 %v2370_v46, %v11105_v32 }
 0x161   : > { %v2374_v44 = vpop.f32.mrb[54].mxu0  ;;  %v1027_v43 = vadd.f32 %v1026_v19, %v11113_v37  ;;  %v1028_v48 = vpop.f32.mrb[54].mxu1  ;;  %v11554_v7 = vadd.f32 %v2372_v63, %v11116_v38 }
 0x162   : > { %v2376_v60 = vpop.f32.mrb[55].mxu0  ;;  %17460 = vst [vmem:[#allocation90_spill] sm:$0xff] %v11547_v0  ;;  %v11550_v3 = vadd.f32 %v2374_v44, %v11105_v32  ;;  %v1029_v59 = vadd.f32 %v1028_v48, %v11111_v33  ;;  %v1030_v25 = vpop.f32.mrb[55].mxu1  ;;  %v420_v48 = vld [vmem:[%s10752_s17 + $0x298] sm:$0xff] }
 0x163   : > { %17462 = vst [vmem:[#allocation92_spill] sm:$0xff] %v11554_v7  ;;  %v11557_v26 = vadd.f32 %v2376_v60, %v11116_v38  ;;  %v1031_v44 = vadd.f32 %v1030_v25, %v11113_v37 }
 0x164   : > { %17461 = vst [vmem:[#allocation91_spill] sm:$0xff] %v11550_v3  ;;  %4704 = vmatmul.mubr.bf16.gmra.mrb[160].mxu0 %v3640_v51  ;;  %8378 = vmatmul.mubr.msk.bf16.gmra.mrb[160].mxu1 %vm667_vm0, %v11544_v11  ;;  %v3656_v63 = vpack.c.bf16 %v1029_v59, %v11542_v21  ;;  %v419_v51 = vld [vmem:[%s10752_s17 + $0x290] sm:$0xff] }
 0x165   : > { %17463 = vst [vmem:[#allocation93_spill] sm:$0xff] %v11557_v26  ;;  %4711 = vmatprep.mubr.bf16.mxu0 %v3649_v6  ;;  %v3657_v52 = vpack.c.bf16 %v1031_v44, %v1027_v43  ;;  %1302 = vmatprep.mubr.bf16.mxu1 %v17408_v54  ;;  %v11574_v19 = vpack.c.bf16 %v420_v48, %v419_v51  ;;  %v422_v26 = vld [vmem:[%s10752_s17 + $0x2a8] sm:$0xff] }
 0x167   : > { %v2380_v60 = vpop.f32.mrb[56].mxu0  ;;  %v1034_v46 = vpop.f32.mrb[56].mxu1  ;;  %17464 = vst [vmem:[#allocation94_spill] sm:$0xff] %v11574_v19 }
 0x168   : > { %v2382_v22 = vpop.f32.mrb[57].mxu0  ;;  %v11572_v25 = vadd.f32 %v1034_v46, %v11111_v33  ;;  %v1036_v0 = vpop.f32.mrb[57].mxu1  ;;  %v11577_v3 = vadd.f32 %v2380_v60, %v11105_v32 }
 0x169   : > { %v2384_v4 = vpop.f32.mrb[58].mxu0  ;;  %v1037_v43 = vadd.f32 %v1036_v0, %v11113_v37  ;;  %v1038_v59 = vpop.f32.mrb[58].mxu1  ;;  %v11584_v44 = vadd.f32 %v2382_v22, %v11116_v38 }
 0x16a   : > { %v2386_v6 = vpop.f32.mrb[59].mxu0  ;;  %17465 = vst [vmem:[#allocation95_spill] sm:$0xff] %v11577_v3  ;;  %v11580_v21 = vadd.f32 %v2384_v4, %v11105_v32  ;;  %v1039_v46 = vadd.f32 %v1038_v59, %v11111_v33  ;;  %v1040_v51 = vpop.f32.mrb[59].mxu1  ;;  %v10491_v4 = vld [vmem:[%s16945_s3 + $0xb8] sm:$0xff]   ;;  %v421_v59 = vld [vmem:[%s10752_s17 + $0x2a0] sm:$0xff] }
 0x16b   : > { %17467 = vst [vmem:[#allocation97_spill] sm:$0xff] %v11584_v44  ;;  %v11587_v7 = vadd.f32 %v2386_v6, %v11116_v38  ;;  %v1041_v22 = vadd.f32 %v1040_v51, %v11113_v37  ;;  %5143 = vmatpush1.bf16.msra.mxu0 %v10491_v4  ;;  %v11608_v44 = vpack.c.bf16 %v422_v26, %v421_v59 }
 0x16c   : > { %17466 = vst [vmem:[#allocation96_spill] sm:$0xff] %v11580_v21  ;;  %4712 = vmatmul.mubr.bf16.gmra.mrb[164].mxu0 %v3648_v30  ;;  %8379 = vmatmul.mubr.msk.bf16.gmra.mrb[164].mxu1 %vm667_vm0, %v11574_v19  ;;  %v3664_v30 = vpack.c.bf16 %v1039_v46, %v11572_v25 }
 0x16d   : > { %17468 = vst [vmem:[#allocation98_spill] sm:$0xff] %v11587_v7  ;;  %4719 = vmatprep.mubr.bf16.mxu0 %v3657_v52  ;;  %v3665_v6 = vpack.c.bf16 %v1041_v22, %v1037_v43  ;;  %1312 = vmatprep.mubr.bf16.mxu1 %v17408_v54  ;;  %17469 = vst [vmem:[#allocation99_spill] sm:$0xff] %v11608_v44 }
 0x16e   : > { %5144 = vmatprep.subr.bf16.mxu0 %v17408_v54 }
 0x16f   : > { %v2390_v48 = vpop.f32.mrb[60].mxu0  ;;  %v1044_v51 = vpop.f32.mrb[60].mxu1 }
 0x170   : > { %v2392_v52 = vpop.f32.mrb[61].mxu0  ;;  %v11606_v60 = vadd.f32 %v1044_v51, %v11111_v33  ;;  %v1046_v21 = vpop.f32.mrb[61].mxu1  ;;  %v11611_v25 = vadd.f32 %v2390_v48, %v11105_v32 }
 0x171   : > { %v2394_v0 = vpop.f32.mrb[62].mxu0  ;;  %v1047_v46 = vadd.f32 %v1046_v21, %v11113_v37  ;;  %v1048_v4 = vpop.f32.mrb[62].mxu1  ;;  %v11618_v22 = vadd.f32 %v2392_v52, %v11116_v38 }
 0x172   : > { %v2396_v3 = vpop.f32.mrb[63].mxu0  ;;  %17470 = vst [vmem:[#allocation100_spill] sm:$0xff] %v11611_v25  ;;  %v11614_v43 = vadd.f32 %v2394_v0, %v11105_v32  ;;  %v1049_v26 = vadd.f32 %v1048_v4, %v11111_v33  ;;  %v1050_v59 = vpop.f32.mrb[63].mxu1  ;;  %v424_v4 = vld [vmem:[%s10752_s17 + $0x2b8] sm:$0xff] }
 0x173   : > { %17472 = vst [vmem:[#allocation102_spill] sm:$0xff] %v11618_v22  ;;  %v11621_v51 = vadd.f32 %v2396_v3, %v11116_v38  ;;  %v1051_v0 = vadd.f32 %v1050_v59, %v11113_v37 }
 0x174   : > { %17471 = vst [vmem:[#allocation101_spill] sm:$0xff] %v11614_v43  ;;  %4720 = vmatmul.mubr.bf16.gmra.mrb[168].mxu0 %v3656_v63  ;;  %8380 = vmatmul.mubr.msk.bf16.gmra.mrb[168].mxu1 %vm667_vm0, %v11608_v44  ;;  %v3672_v52 = vpack.c.bf16 %v1049_v26, %v11606_v60  ;;  %v423_v63 = vld [vmem:[%s10752_s17 + $0x2b0] sm:$0xff] }
 0x175   : > { %17473 = vst [vmem:[#allocation103_spill] sm:$0xff] %v11621_v51  ;;  %4727 = vmatprep.mubr.bf16.mxu0 %v3665_v6  ;;  %v3673_v7 = vpack.c.bf16 %v1051_v0, %v1047_v46  ;;  %1322 = vmatprep.mubr.bf16.mxu1 %v17408_v54  ;;  %v11638_v21 = vpack.c.bf16 %v424_v4, %v423_v63 }
 0x177   : > { %v2400_v3 = vpop.f32.mrb[64].mxu0  ;;  %v1054_v48 = vpop.f32.mrb[64].mxu1  ;;  %17474 = vst [vmem:[#allocation104_spill] sm:$0xff] %v11638_v21 }
 0x178   : > { %v2402_v19 = vpop.f32.mrb[65].mxu0  ;;  %v11636_v59 = vadd.f32 %v1054_v48, %v11111_v33  ;;  %v1056_v25 = vpop.f32.mrb[65].mxu1  ;;  %v11641_v43 = vadd.f32 %v2400_v3, %v11105_v32 }
 0x179   : > { %v2404_v11 = vpop.f32.mrb[66].mxu0  ;;  %v1057_v46 = vadd.f32 %v1056_v25, %v11113_v37  ;;  %v1058_v26 = vpop.f32.mrb[66].mxu1  ;;  %v11648_v0 = vadd.f32 %v2402_v19, %v11116_v38 }
 0x17a   : > { %v2406_v6 = vpop.f32.mrb[67].mxu0  ;;  %17475 = vst [vmem:[#allocation105_spill] sm:$0xff] %v11641_v43  ;;  %v11644_v60 = vadd.f32 %v2404_v11, %v11105_v32  ;;  %v1059_v63 = vadd.f32 %v1058_v26, %v11111_v33  ;;  %v1060_v4 = vpop.f32.mrb[67].mxu1  ;;  %v426_v26 = vld [vmem:[%s10752_s17 + $0x2c8] sm:$0xff] }
 0x17b   : > { %17477 = vst [vmem:[#allocation107_spill] sm:$0xff] %v11648_v0  ;;  %v11651_v48 = vadd.f32 %v2406_v6, %v11116_v38  ;;  %v1061_v11 = vadd.f32 %v1060_v4, %v11113_v37 }
 0x17c   : > { %17476 = vst [vmem:[#allocation106_spill] sm:$0xff] %v11644_v60  ;;  %4728 = vmatmul.mubr.bf16.gmra.mrb[172].mxu0 %v3664_v30  ;;  %8381 = vmatmul.mubr.msk.bf16.gmra.mrb[172].mxu1 %vm667_vm0, %v11638_v21  ;;  %v3680_v19 = vpack.c.bf16 %v1059_v63, %v11636_v59  ;;  %v425_v30 = vld [vmem:[%s10752_s17 + $0x2c0] sm:$0xff] }
 0x17d   : > { %17478 = vst [vmem:[#allocation108_spill] sm:$0xff] %v11651_v48  ;;  %4735 = vmatprep.mubr.bf16.mxu0 %v3673_v7  ;;  %v3681_v22 = vpack.c.bf16 %v1061_v11, %v1057_v46  ;;  %1332 = vmatprep.mubr.bf16.mxu1 %v17408_v54  ;;  %v11668_v25 = vpack.c.bf16 %v426_v26, %v425_v30 }
 0x17f   : > { %v2410_v6 = vpop.f32.mrb[68].mxu0  ;;  %v1064_v3 = vpop.f32.mrb[68].mxu1  ;;  %17479 = vst [vmem:[#allocation109_spill] sm:$0xff] %v11668_v25 }
 0x180   : > { %v2412_v51 = vpop.f32.mrb[69].mxu0  ;;  %v11666_v4 = vadd.f32 %v1064_v3, %v11111_v33  ;;  %v1066_v43 = vpop.f32.mrb[69].mxu1  ;;  %v11671_v60 = vadd.f32 %v2410_v6, %v11105_v32 }
 0x181   : > { %v2414_v44 = vpop.f32.mrb[70].mxu0  ;;  %v1067_v46 = vadd.f32 %v1066_v43, %v11113_v37  ;;  %v1068_v63 = vpop.f32.mrb[70].mxu1  ;;  %v11678_v11 = vadd.f32 %v2412_v51, %v11116_v38 }
 0x182   : > { %v2416_v7 = vpop.f32.mrb[71].mxu0  ;;  %17480 = vst [vmem:[#allocation110_spill] sm:$0xff] %v11671_v60  ;;  %v11674_v59 = vadd.f32 %v2414_v44, %v11105_v32  ;;  %v1069_v30 = vadd.f32 %v1068_v63, %v11111_v33  ;;  %v1070_v26 = vpop.f32.mrb[71].mxu1  ;;  %v428_v63 = vld [vmem:[%s10752_s17 + $0x2d8] sm:$0xff] }
 0x183   : > { %17482 = vst [vmem:[#allocation112_spill] sm:$0xff] %v11678_v11  ;;  %v11681_v3 = vadd.f32 %v2416_v7, %v11116_v38  ;;  %v1071_v44 = vadd.f32 %v1070_v26, %v11113_v37 }
 0x184   : > { %17481 = vst [vmem:[#allocation111_spill] sm:$0xff] %v11674_v59  ;;  %4736 = vmatmul.mubr.bf16.gmra.mrb[176].mxu0 %v3672_v52  ;;  %8382 = vmatmul.mubr.msk.bf16.gmra.mrb[176].mxu1 %vm667_vm0, %v11668_v25  ;;  %v3688_v51 = vpack.c.bf16 %v1069_v30, %v11666_v4  ;;  %v427_v52 = vld [vmem:[%s10752_s17 + $0x2d0] sm:$0xff] }
 0x185   : > { %17483 = vst [vmem:[#allocation113_spill] sm:$0xff] %v11681_v3  ;;  %4743 = vmatprep.mubr.bf16.mxu0 %v3681_v22  ;;  %v3689_v0 = vpack.c.bf16 %v1071_v44, %v1067_v46  ;;  %1342 = vmatprep.mubr.bf16.mxu1 %v17408_v54  ;;  %v11698_v43 = vpack.c.bf16 %v428_v63, %v427_v52  ;;  %v430_v3 = vld [vmem:[%s10752_s17 + $0x2e8] sm:$0xff] }
 0x187   : > { %v2420_v7 = vpop.f32.mrb[72].mxu0  ;;  %v1074_v6 = vpop.f32.mrb[72].mxu1  ;;  %17484 = vst [vmem:[#allocation114_spill] sm:$0xff] %v11698_v43 }
 0x188   : > { %v2422_v48 = vpop.f32.mrb[73].mxu0  ;;  %v11696_v26 = vadd.f32 %v1074_v6, %v11111_v33  ;;  %v1076_v60 = vpop.f32.mrb[73].mxu1  ;;  %v11701_v59 = vadd.f32 %v2420_v7, %v11105_v32 }
 0x189   : > { %v2424_v21 = vpop.f32.mrb[74].mxu0  ;;  %v1077_v46 = vadd.f32 %v1076_v60, %v11113_v37  ;;  %v1078_v30 = vpop.f32.mrb[74].mxu1  ;;  %v11708_v44 = vadd.f32 %v2422_v48, %v11116_v38 }
 0x18a   : > { %v2426_v22 = vpop.f32.mrb[75].mxu0  ;;  %17485 = vst [vmem:[#allocation115_spill] sm:$0xff] %v11701_v59  ;;  %v11704_v4 = vadd.f32 %v2424_v21, %v11105_v32  ;;  %v1079_v6 = vadd.f32 %v1078_v30, %v11111_v33  ;;  %v1080_v52 = vpop.f32.mrb[75].mxu1  ;;  %v10492_v21 = vld [vmem:[%s16945_s3 + $0xc0] sm:$0xff]  }
 0x18b   : > { %17487 = vst [vmem:[#allocation117_spill] sm:$0xff] %v11708_v44  ;;  %v11711_v11 = vadd.f32 %v2426_v22, %v11116_v38  ;;  %v1081_v48 = vadd.f32 %v1080_v52, %v11113_v37  ;;  %5145 = vmatpush1.bf16.msra.mxu0 %v10492_v21  ;;  %v429_v30 = vld [vmem:[%s10752_s17 + $0x2e0] sm:$0xff] }
 0x18c   : > { %17486 = vst [vmem:[#allocation116_spill] sm:$0xff] %v11704_v4  ;;  %4744 = vmatmul.mubr.bf16.gmra.mrb[180].mxu0 %v3680_v19  ;;  %8383 = vmatmul.mubr.msk.bf16.gmra.mrb[180].mxu1 %vm667_vm0, %v11698_v43  ;;  %v3696_v19 = vpack.c.bf16 %v1079_v6, %v11696_v26  ;;  %v11732_v44 = vpack.c.bf16 %v430_v3, %v429_v30 }
 0x18d   : > { %17488 = vst [vmem:[#allocation118_spill] sm:$0xff] %v11711_v11  ;;  %4751 = vmatprep.mubr.bf16.mxu0 %v3689_v0  ;;  %v3697_v22 = vpack.c.bf16 %v1081_v48, %v1077_v46  ;;  %1352 = vmatprep.mubr.bf16.mxu1 %v17408_v54 }
 0x18e   : > { %5146 = vmatprep.subr.bf16.mxu0 %v17408_v54  ;;  %17489 = vst [vmem:[#allocation119_spill] sm:$0xff] %v11732_v44 }
 0x18f   : > { %v2430_v63 = vpop.f32.mrb[76].mxu0  ;;  %v1084_v52 = vpop.f32.mrb[76].mxu1 }
 0x190   : > { %v2432_v0 = vpop.f32.mrb[77].mxu0  ;;  %v11730_v7 = vadd.f32 %v1084_v52, %v11111_v33  ;;  %v1086_v4 = vpop.f32.mrb[77].mxu1  ;;  %v11735_v26 = vadd.f32 %v2430_v63, %v11105_v32 }
 0x191   : > { %v2434_v60 = vpop.f32.mrb[78].mxu0  ;;  %v1087_v6 = vadd.f32 %v1086_v4, %v11113_v37  ;;  %v1088_v21 = vpop.f32.mrb[78].mxu1  ;;  %v11742_v48 = vadd.f32 %v2432_v0, %v11116_v38 }
 0x192   : > { %v2436_v59 = vpop.f32.mrb[79].mxu0  ;;  %17490 = vst [vmem:[#allocation120_spill] sm:$0xff] %v11735_v26  ;;  %v11738_v46 = vadd.f32 %v2434_v60, %v11105_v32  ;;  %v1089_v3 = vadd.f32 %v1088_v21, %v11111_v33  ;;  %v1090_v30 = vpop.f32.mrb[79].mxu1  ;;  %v432_v21 = vld [vmem:[%s10752_s17 + $0x2f8] sm:$0xff] }
 0x193   : > { %17492 = vst [vmem:[#allocation122_spill] sm:$0xff] %v11742_v48  ;;  %v11745_v52 = vadd.f32 %v2436_v59, %v11116_v38  ;;  %v1091_v60 = vadd.f32 %v1090_v30, %v11113_v37 }
 0x194   : > { %17491 = vst [vmem:[#allocation121_spill] sm:$0xff] %v11738_v46  ;;  %4752 = vmatmul.mubr.bf16.gmra.mrb[184].mxu0 %v3688_v51  ;;  %8384 = vmatmul.mubr.msk.bf16.gmra.mrb[184].mxu1 %vm667_vm0, %v11732_v44  ;;  %v3704_v0 = vpack.c.bf16 %v1089_v3, %v11730_v7  ;;  %v431_v51 = vld [vmem:[%s10752_s17 + $0x2f0] sm:$0xff] }
 0x195   : > { %17493 = vst [vmem:[#allocation123_spill] sm:$0xff] %v11745_v52  ;;  %4759 = vmatprep.mubr.bf16.mxu0 %v3697_v22  ;;  %v3705_v11 = vpack.c.bf16 %v1091_v60, %v1087_v6  ;;  %1362 = vmatprep.mubr.bf16.mxu1 %v17408_v54  ;;  %v11762_v4 = vpack.c.bf16 %v432_v21, %v431_v51 }
 0x197   : > { %v2440_v59 = vpop.f32.mrb[80].mxu0  ;;  %v1094_v63 = vpop.f32.mrb[80].mxu1  ;;  %17494 = vst [vmem:[#allocation124_spill] sm:$0xff] %v11762_v4 }
 0x198   : > { %v2442_v43 = vpop.f32.mrb[81].mxu0  ;;  %v11760_v30 = vadd.f32 %v1094_v63, %v11111_v33  ;;  %v1096_v26 = vpop.f32.mrb[81].mxu1  ;;  %v11765_v46 = vadd.f32 %v2440_v59, %v11105_v32 }
 0x199   : > { %v2444_v25 = vpop.f32.mrb[82].mxu0  ;;  %v1097_v6 = vadd.f32 %v1096_v26, %v11113_v37  ;;  %v1098_v3 = vpop.f32.mrb[82].mxu1  ;;  %v11772_v60 = vadd.f32 %v2442_v43, %v11116_v38 }
 0x19a   : > { %v2446_v22 = vpop.f32.mrb[83].mxu0  ;;  %17495 = vst [vmem:[#allocation125_spill] sm:$0xff] %v11765_v46  ;;  %v11768_v7 = vadd.f32 %v2444_v25, %v11105_v32  ;;  %v1099_v51 = vadd.f32 %v1098_v3, %v11111_v33  ;;  %v1100_v21 = vpop.f32.mrb[83].mxu1  ;;  %v434_v3 = vld [vmem:[%s10752_s17 + $0x308] sm:$0xff] }
 0x19b   : > { %17497 = vst [vmem:[#allocation127_spill] sm:$0xff] %v11772_v60  ;;  %v11775_v63 = vadd.f32 %v2446_v22, %v11116_v38  ;;  %v1101_v25 = vadd.f32 %v1100_v21, %v11113_v37 }
 0x19c   : > { %17496 = vst [vmem:[#allocation126_spill] sm:$0xff] %v11768_v7  ;;  %4760 = vmatmul.mubr.bf16.gmra.mrb[188].mxu0 %v3696_v19  ;;  %8385 = vmatmul.mubr.msk.bf16.gmra.mrb[188].mxu1 %vm667_vm0, %v11762_v4  ;;  %v3712_v43 = vpack.c.bf16 %v1099_v51, %v11760_v30  ;;  %v433_v19 = vld [vmem:[%s10752_s17 + $0x300] sm:$0xff] }
 0x19d   : > { %17498 = vst [vmem:[#allocation128_spill] sm:$0xff] %v11775_v63  ;;  %4767 = vmatprep.mubr.bf16.mxu0 %v3705_v11  ;;  %v3713_v48 = vpack.c.bf16 %v1101_v25, %v1097_v6  ;;  %1372 = vmatprep.mubr.bf16.mxu1 %v17408_v54  ;;  %v11792_v26 = vpack.c.bf16 %v434_v3, %v433_v19 }
 0x19f   : > { %v2450_v22 = vpop.f32.mrb[84].mxu0  ;;  %v1104_v59 = vpop.f32.mrb[84].mxu1  ;;  %17499 = vst [vmem:[#allocation129_spill] sm:$0xff] %v11792_v26 }
 0x1a0   : > { %v2452_v52 = vpop.f32.mrb[85].mxu0  ;;  %v11790_v21 = vadd.f32 %v1104_v59, %v11111_v33  ;;  %v1106_v46 = vpop.f32.mrb[85].mxu1  ;;  %v11795_v7 = vadd.f32 %v2450_v22, %v11105_v32 }
 0x1a1   : > { %v2454_v44 = vpop.f32.mrb[86].mxu0  ;;  %v1107_v6 = vadd.f32 %v1106_v46, %v11113_v37  ;;  %v1108_v51 = vpop.f32.mrb[86].mxu1  ;;  %v11802_v25 = vadd.f32 %v2452_v52, %v11116_v38 }
 0x1a2   : > { %v2456_v11 = vpop.f32.mrb[87].mxu0  ;;  %17500 = vst [vmem:[#allocation130_spill] sm:$0xff] %v11795_v7  ;;  %v11798_v30 = vadd.f32 %v2454_v44, %v11105_v32  ;;  %v1109_v19 = vadd.f32 %v1108_v51, %v11111_v33  ;;  %v1110_v3 = vpop.f32.mrb[87].mxu1  ;;  %v436_v51 = vld [vmem:[%s10752_s17 + $0x318] sm:$0xff] }
 0x1a3   : > { %17502 = vst [vmem:[#allocation132_spill] sm:$0xff] %v11802_v25  ;;  %v11805_v59 = vadd.f32 %v2456_v11, %v11116_v38  ;;  %v1111_v44 = vadd.f32 %v1110_v3, %v11113_v37 }
 0x1a4   : > { %17501 = vst [vmem:[#allocation131_spill] sm:$0xff] %v11798_v30  ;;  %4768 = vmatmul.mubr.bf16.gmra.mrb[192].mxu0 %v3704_v0  ;;  %8386 = vmatmul.mubr.msk.bf16.gmra.mrb[192].mxu1 %vm667_vm0, %v11792_v26  ;;  %v3720_v52 = vpack.c.bf16 %v1109_v19, %v11790_v21  ;;  %v435_v0 = vld [vmem:[%s10752_s17 + $0x310] sm:$0xff] }
 0x1a5   : > { %17503 = vst [vmem:[#allocation133_spill] sm:$0xff] %v11805_v59  ;;  %4775 = vmatprep.mubr.bf16.mxu0 %v3713_v48  ;;  %v3721_v60 = vpack.c.bf16 %v1111_v44, %v1107_v6  ;;  %1382 = vmatprep.mubr.bf16.mxu1 %v17408_v54  ;;  %v11822_v46 = vpack.c.bf16 %v436_v51, %v435_v0  ;;  %v438_v59 = vld [vmem:[%s10752_s17 + $0x328] sm:$0xff] }
 0x1a7   : > { %v2460_v11 = vpop.f32.mrb[88].mxu0  ;;  %v1114_v22 = vpop.f32.mrb[88].mxu1  ;;  %17504 = vst [vmem:[#allocation134_spill] sm:$0xff] %v11822_v46 }
 0x1a8   : > { %v2462_v63 = vpop.f32.mrb[89].mxu0  ;;  %v11820_v3 = vadd.f32 %v1114_v22, %v11111_v33  ;;  %v1116_v7 = vpop.f32.mrb[89].mxu1  ;;  %v11825_v30 = vadd.f32 %v2460_v11, %v11105_v32 }
 0x1a9   : > { %v2464_v4 = vpop.f32.mrb[90].mxu0  ;;  %v1117_v6 = vadd.f32 %v1116_v7, %v11113_v37  ;;  %v1118_v19 = vpop.f32.mrb[90].mxu1  ;;  %v11832_v44 = vadd.f32 %v2462_v63, %v11116_v38 }
 0x1aa   : > { %v2466_v48 = vpop.f32.mrb[91].mxu0  ;;  %17505 = vst [vmem:[#allocation135_spill] sm:$0xff] %v11825_v30  ;;  %v11828_v21 = vadd.f32 %v2464_v4, %v11105_v32  ;;  %v1119_v22 = vadd.f32 %v1118_v19, %v11111_v33  ;;  %v1120_v0 = vpop.f32.mrb[91].mxu1  ;;  %v10493_v4 = vld [vmem:[%s16945_s3 + $0xc8] sm:$0xff]   ;;  %v437_v19 = vld [vmem:[%s10752_s17 + $0x320] sm:$0xff] }
 0x1ab   : > { %17507 = vst [vmem:[#allocation137_spill] sm:$0xff] %v11832_v44  ;;  %v11835_v25 = vadd.f32 %v2466_v48, %v11116_v38  ;;  %v1121_v63 = vadd.f32 %v1120_v0, %v11113_v37  ;;  %5147 = vmatpush1.bf16.msra.mxu0 %v10493_v4  ;;  %v11856_v44 = vpack.c.bf16 %v438_v59, %v437_v19 }
 0x1ac   : > { %17506 = vst [vmem:[#allocation136_spill] sm:$0xff] %v11828_v21  ;;  %4776 = vmatmul.mubr.bf16.gmra.mrb[196].mxu0 %v3712_v43  ;;  %8387 = vmatmul.mubr.msk.bf16.gmra.mrb[196].mxu1 %vm667_vm0, %v11822_v46  ;;  %v3728_v43 = vpack.c.bf16 %v1119_v22, %v11820_v3 }
 0x1ad   : > { %17508 = vst [vmem:[#allocation138_spill] sm:$0xff] %v11835_v25  ;;  %4783 = vmatprep.mubr.bf16.mxu0 %v3721_v60  ;;  %v3729_v48 = vpack.c.bf16 %v1121_v63, %v1117_v6  ;;  %1392 = vmatprep.mubr.bf16.mxu1 %v17408_v54  ;;  %17509 = vst [vmem:[#allocation139_spill] sm:$0xff] %v11856_v44 }
 0x1ae   : > { %5148 = vmatprep.subr.bf16.mxu0 %v17408_v54 }
 0x1af   : > { %v2470_v51 = vpop.f32.mrb[92].mxu0  ;;  %v1124_v0 = vpop.f32.mrb[92].mxu1 }
 0x1b0   : > { %v2472_v60 = vpop.f32.mrb[93].mxu0  ;;  %v11854_v11 = vadd.f32 %v1124_v0, %v11111_v33  ;;  %v1126_v21 = vpop.f32.mrb[93].mxu1  ;;  %v11859_v3 = vadd.f32 %v2470_v51, %v11105_v32 }
 0x1b1   : > { %v2474_v7 = vpop.f32.mrb[94].mxu0  ;;  %v1127_v22 = vadd.f32 %v1126_v21, %v11113_v37  ;;  %v1128_v4 = vpop.f32.mrb[94].mxu1  ;;  %v11866_v63 = vadd.f32 %v2472_v60, %v11116_v38 }
 0x1b2   : > { %v2476_v30 = vpop.f32.mrb[95].mxu0  ;;  %17510 = vst [vmem:[#allocation140_spill] sm:$0xff] %v11859_v3  ;;  %v11862_v6 = vadd.f32 %v2474_v7, %v11105_v32  ;;  %v1129_v59 = vadd.f32 %v1128_v4, %v11111_v33  ;;  %v1130_v19 = vpop.f32.mrb[95].mxu1  ;;  %v440_v4 = vld [vmem:[%s10752_s17 + $0x338] sm:$0xff] }
 0x1b3   : > { %17512 = vst [vmem:[#allocation142_spill] sm:$0xff] %v11866_v63  ;;  %v11869_v0 = vadd.f32 %v2476_v30, %v11116_v38  ;;  %v1131_v7 = vadd.f32 %v1130_v19, %v11113_v37 }
 0x1b4   : > { %17511 = vst [vmem:[#allocation141_spill] sm:$0xff] %v11862_v6  ;;  %4784 = vmatmul.mubr.bf16.gmra.mrb[200].mxu0 %v3720_v52  ;;  %8388 = vmatmul.mubr.msk.bf16.gmra.mrb[200].mxu1 %vm667_vm0, %v11856_v44  ;;  %v3736_v60 = vpack.c.bf16 %v1129_v59, %v11854_v11  ;;  %v439_v52 = vld [vmem:[%s10752_s17 + $0x330] sm:$0xff] }
 0x1b5   : > { %17513 = vst [vmem:[#allocation143_spill] sm:$0xff] %v11869_v0  ;;  %4791 = vmatprep.mubr.bf16.mxu0 %v3729_v48  ;;  %v3737_v25 = vpack.c.bf16 %v1131_v7, %v1127_v22  ;;  %1402 = vmatprep.mubr.bf16.mxu1 %v17408_v54  ;;  %v11886_v21 = vpack.c.bf16 %v440_v4, %v439_v52 }
 0x1b7   : > { %v2480_v30 = vpop.f32.mrb[96].mxu0  ;;  %v1134_v51 = vpop.f32.mrb[96].mxu1  ;;  %17514 = vst [vmem:[#allocation144_spill] sm:$0xff] %v11886_v21 }
 0x1b8   : > { %v2482_v46 = vpop.f32.mrb[97].mxu0  ;;  %v11884_v19 = vadd.f32 %v1134_v51, %v11111_v33  ;;  %v1136_v3 = vpop.f32.mrb[97].mxu1  ;;  %v11889_v6 = vadd.f32 %v2480_v30, %v11105_v32 }
 0x1b9   : > { %v2484_v26 = vpop.f32.mrb[98].mxu0  ;;  %v1137_v22 = vadd.f32 %v1136_v3, %v11113_v37  ;;  %v1138_v59 = vpop.f32.mrb[98].mxu1  ;;  %v11896_v7 = vadd.f32 %v2482_v46, %v11116_v38 }
 0x1ba   : > { %v2486_v48 = vpop.f32.mrb[99].mxu0  ;;  %17515 = vst [vmem:[#allocation145_spill] sm:$0xff] %v11889_v6  ;;  %v11892_v11 = vadd.f32 %v2484_v26, %v11105_v32  ;;  %v1139_v52 = vadd.f32 %v1138_v59, %v11111_v33  ;;  %v1140_v4 = vpop.f32.mrb[99].mxu1  ;;  %v442_v59 = vld [vmem:[%s10752_s17 + $0x348] sm:$0xff] }
 0x1bb   : > { %17517 = vst [vmem:[#allocation147_spill] sm:$0xff] %v11896_v7  ;;  %v11899_v51 = vadd.f32 %v2486_v48, %v11116_v38  ;;  %v1141_v26 = vadd.f32 %v1140_v4, %v11113_v37 }
 0x1bc   : > { %17516 = vst [vmem:[#allocation146_spill] sm:$0xff] %v11892_v11  ;;  %4792 = vmatmul.mubr.bf16.gmra.mrb[204].mxu0 %v3728_v43  ;;  %8389 = vmatmul.mubr.msk.bf16.gmra.mrb[204].mxu1 %vm667_vm0, %v11886_v21  ;;  %v3744_v46 = vpack.c.bf16 %v1139_v52, %v11884_v19  ;;  %v441_v43 = vld [vmem:[%s10752_s17 + $0x340] sm:$0xff] }
 0x1bd   : > { %17518 = vst [vmem:[#allocation148_spill] sm:$0xff] %v11899_v51  ;;  %4799 = vmatprep.mubr.bf16.mxu0 %v3737_v25  ;;  %v3745_v63 = vpack.c.bf16 %v1141_v26, %v1137_v22  ;;  %1412 = vmatprep.mubr.bf16.mxu1 %v17408_v54  ;;  %v11916_v3 = vpack.c.bf16 %v442_v59, %v441_v43 }
 0x1bf   : > { %v2490_v48 = vpop.f32.mrb[100].mxu0  ;;  %v1144_v30 = vpop.f32.mrb[100].mxu1  ;;  %17519 = vst [vmem:[#allocation149_spill] sm:$0xff] %v11916_v3 }
 0x1c0   : > { %v2492_v0 = vpop.f32.mrb[101].mxu0  ;;  %v11914_v4 = vadd.f32 %v1144_v30, %v11111_v33  ;;  %v1146_v6 = vpop.f32.mrb[101].mxu1  ;;  %v11919_v11 = vadd.f32 %v2490_v48, %v11105_v32 }
 0x1c1   : > { %v2494_v44 = vpop.f32.mrb[102].mxu0  ;;  %v1147_v22 = vadd.f32 %v1146_v6, %v11113_v37  ;;  %v1148_v52 = vpop.f32.mrb[102].mxu1  ;;  %v11926_v26 = vadd.f32 %v2492_v0, %v11116_v38 }
 0x1c2   : > { %v2496_v25 = vpop.f32.mrb[103].mxu0  ;;  %17520 = vst [vmem:[#allocation150_spill] sm:$0xff] %v11919_v11  ;;  %v11922_v19 = vadd.f32 %v2494_v44, %v11105_v32  ;;  %v1149_v43 = vadd.f32 %v1148_v52, %v11111_v33  ;;  %v1150_v59 = vpop.f32.mrb[103].mxu1  ;;  %v444_v52 = vld [vmem:[%s10752_s17 + $0x358] sm:$0xff] }
 0x1c3   : > { %17522 = vst [vmem:[#allocation152_spill] sm:$0xff] %v11926_v26  ;;  %v11929_v30 = vadd.f32 %v2496_v25, %v11116_v38  ;;  %v1151_v44 = vadd.f32 %v1150_v59, %v11113_v37 }
 0x1c4   : > { %17521 = vst [vmem:[#allocation151_spill] sm:$0xff] %v11922_v19  ;;  %4800 = vmatmul.mubr.bf16.gmra.mrb[208].mxu0 %v3736_v60  ;;  %8390 = vmatmul.mubr.msk.bf16.gmra.mrb[208].mxu1 %vm667_vm0, %v11916_v3  ;;  %v3752_v0 = vpack.c.bf16 %v1149_v43, %v11914_v4  ;;  %v443_v60 = vld [vmem:[%s10752_s17 + $0x350] sm:$0xff] }
 0x1c5   : > { %17523 = vst [vmem:[#allocation153_spill] sm:$0xff] %v11929_v30  ;;  %4807 = vmatprep.mubr.bf16.mxu0 %v3745_v63  ;;  %v3753_v7 = vpack.c.bf16 %v1151_v44, %v1147_v22  ;;  %1422 = vmatprep.mubr.bf16.mxu1 %v17408_v54  ;;  %v11946_v6 = vpack.c.bf16 %v444_v52, %v443_v60  ;;  %v446_v30 = vld [vmem:[%s10752_s17 + $0x368] sm:$0xff] }
 0x1c7   : > { %v2500_v25 = vpop.f32.mrb[104].mxu0  ;;  %v1154_v48 = vpop.f32.mrb[104].mxu1  ;;  %17524 = vst [vmem:[#allocation154_spill] sm:$0xff] %v11946_v6 }
 0x1c8   : > { %v2502_v51 = vpop.f32.mrb[105].mxu0  ;;  %v11944_v59 = vadd.f32 %v1154_v48, %v11111_v33  ;;  %v1156_v11 = vpop.f32.mrb[105].mxu1  ;;  %v11949_v19 = vadd.f32 %v2500_v25, %v11105_v32 }
 0x1c9   : > { %v2504_v21 = vpop.f32.mrb[106].mxu0  ;;  %v1157_v22 = vadd.f32 %v1156_v11, %v11113_v37  ;;  %v1158_v43 = vpop.f32.mrb[106].mxu1  ;;  %v11956_v44 = vadd.f32 %v2502_v51, %v11116_v38 }
 0x1ca   : > { %v2506_v63 = vpop.f32.mrb[107].mxu0  ;;  %17525 = vst [vmem:[#allocation155_spill] sm:$0xff] %v11949_v19  ;;  %v11952_v4 = vadd.f32 %v2504_v21, %v11105_v32  ;;  %v1159_v48 = vadd.f32 %v1158_v43, %v11111_v33  ;;  %v1160_v60 = vpop.f32.mrb[107].mxu1  ;;  %v10494_v21 = vld [vmem:[%s16945_s3 + $0xd0] sm:$0xff]   ;;  %v445_v43 = vld [vmem:[%s10752_s17 + $0x360] sm:$0xff] }
 0x1cb   : > { %17527 = vst [vmem:[#allocation157_spill] sm:$0xff] %v11956_v44  ;;  %v11959_v26 = vadd.f32 %v2506_v63, %v11116_v38  ;;  %v1161_v51 = vadd.f32 %v1160_v60, %v11113_v37  ;;  %5149 = vmatpush1.bf16.msra.mxu0 %v10494_v21  ;;  %v11978_v44 = vpack.c.bf16 %v446_v30, %v445_v43 }
 0x1cc   : > { %17526 = vst [vmem:[#allocation156_spill] sm:$0xff] %v11952_v4  ;;  %4808 = vmatmul.mubr.bf16.gmra.mrb[212].mxu0 %v3744_v46  ;;  %8391 = vmatmul.mubr.msk.bf16.gmra.mrb[212].mxu1 %vm667_vm0, %v11946_v6  ;;  %v3760_v46 = vpack.c.bf16 %v1159_v48, %v11944_v59 }
 0x1cd   : > { %17528 = vst [vmem:[#allocation158_spill] sm:$0xff] %v11959_v26  ;;  %4815 = vmatprep.mubr.bf16.mxu0 %v3753_v7  ;;  %v3761_v63 = vpack.c.bf16 %v1161_v51, %v1157_v22  ;;  %1432 = vmatprep.mubr.bf16.mxu1 %v17408_v54  ;;  %17529 = vst [vmem:[#allocation159_spill] sm:$0xff] %v11978_v44 }
 0x1ce   : > { %5150 = vmatprep.subr.bf16.mxu0 %v17408_v54 }
 0x1cf   : > { %v2510_v52 = vpop.f32.mrb[108].mxu0  ;;  %v1164_v60 = vpop.f32.mrb[108].mxu1 }
 0x1d0   : > { %v2512_v7 = vpop.f32.mrb[109].mxu0  ;;  %v1165_v25 = vadd.f32 %v1164_v60, %v11111_v33  ;;  %v1166_v4 = vpop.f32.mrb[109].mxu1  ;;  %v11981_v59 = vadd.f32 %v2510_v52, %v11105_v32 }
 0x1d1   : > { %v2514_v11 = vpop.f32.mrb[110].mxu0  ;;  %v1167_v48 = vadd.f32 %v1166_v4, %v11113_v37  ;;  %v1168_v21 = vpop.f32.mrb[110].mxu1  ;;  %v11988_v51 = vadd.f32 %v2512_v7, %v11116_v38 }
 0x1d2   : > { %v2516_v19 = vpop.f32.mrb[111].mxu0  ;;  %17530 = vst [vmem:[#allocation160_spill] sm:$0xff] %v11981_v59  ;;  %v11984_v22 = vadd.f32 %v2514_v11, %v11105_v32  ;;  %v1169_v30 = vadd.f32 %v1168_v21, %v11111_v33  ;;  %v1170_v43 = vpop.f32.mrb[111].mxu1  ;;  %v448_v21 = vld [vmem:[%s10752_s17 + $0x378] sm:$0xff] }
 0x1d3   : > { %17532 = vst [vmem:[#allocation162_spill] sm:$0xff] %v11988_v51  ;;  %v11991_v26 = vadd.f32 %v2516_v19, %v11116_v38  ;;  %v1171_v11 = vadd.f32 %v1170_v43, %v11113_v37 }
 0x1d4   : > { %17531 = vst [vmem:[#allocation161_spill] sm:$0xff] %v11984_v22  ;;  %4816 = vmatmul.mubr.bf16.gmra.mrb[216].mxu0 %v3752_v0  ;;  %8392 = vmatmul.mubr.msk.bf16.gmra.mrb[216].mxu1 %vm667_vm0, %v11978_v44  ;;  %v3768_v7 = vpack.c.bf16 %v1169_v30, %v1165_v25  ;;  %v447_v0 = vld [vmem:[%s10752_s17 + $0x370] sm:$0xff] }
 0x1d5   : > { %17533 = vst [vmem:[#allocation163_spill] sm:$0xff] %v11991_v26  ;;  %4823 = vmatprep.mubr.bf16.mxu0 %v3761_v63  ;;  %v3769_v19 = vpack.c.bf16 %v1171_v11, %v1167_v48  ;;  %1442 = vmatprep.mubr.bf16.mxu1 %v17408_v54  ;;  %v12005_v59 = vpack.c.bf16 %v448_v21, %v447_v0 }
 0x1d7   : > { %v2520_v60 = vpop.f32.mrb[112].mxu0  ;;  %v1174_v13 = vpop.f32.mrb[112].mxu1  ;;  %17534 = vst [vmem:[#allocation164_spill] sm:$0xff] %v12005_v59 }
 0x1d8   : > { %v2522_v6 = vpop.f32.mrb[113].mxu0  ;;  %v1175_v63 = vadd.f32 %v1174_v13, %v11111_v33  ;;  %v1176_v43 = vpop.f32.mrb[113].mxu1  ;;  %v12008_v4 = vadd.f32 %v2520_v60, %v11105_v32 }
 0x1d9   : > { %v2524_v3 = vpop.f32.mrb[114].mxu0  ;;  %v1177_v48 = vadd.f32 %v1176_v43, %v11113_v37  ;;  %v1178_v30 = vpop.f32.mrb[114].mxu1  ;;  %v12015_v11 = vadd.f32 %v2522_v6, %v11116_v38 }
 0x1da   : > { %v2526_v52 = vpop.f32.mrb[115].mxu0  ;;  %17535 = vst [vmem:[#allocation165_spill] sm:$0xff] %v12008_v4  ;;  %v12011_v25 = vadd.f32 %v2524_v3, %v11105_v32  ;;  %v1179_v13 = vadd.f32 %v1178_v30, %v11111_v33  ;;  %v1180_v0 = vpop.f32.mrb[115].mxu1 }
 0x1db   : > { %17537 = vst [vmem:[#allocation167_spill] sm:$0xff] %v12015_v11  ;;  %v12018_v22 = vadd.f32 %v2526_v52, %v11116_v38  ;;  %v1181_v3 = vadd.f32 %v1180_v0, %v11113_v37  ;;  %v450_v52 = vld [vmem:[%s10752_s17 + $0x388] sm:$0xff] }
 0x1dc   : > { %17536 = vst [vmem:[#allocation166_spill] sm:$0xff] %v12011_v25  ;;  %4824 = vmatmul.mubr.bf16.gmra.mrb[220].mxu0 %v3760_v46  ;;  %8393 = vmatmul.mubr.msk.bf16.gmra.mrb[220].mxu1 %vm667_vm0, %v12005_v59  ;;  %v3776_v6 = vpack.c.bf16 %v1179_v13, %v1175_v63  ;;  %v449_v46 = vld [vmem:[%s10752_s17 + $0x380] sm:$0xff] }
 0x1dd   : > { %17538 = vst [vmem:[#allocation168_spill] sm:$0xff] %v12018_v22  ;;  %4831 = vmatprep.mubr.bf16.mxu0 %v3769_v19  ;;  %v3777_v43 = vpack.c.bf16 %v1181_v3, %v1177_v48  ;;  %1452 = vmatprep.mubr.bf16.mxu1 %v17408_v54  ;;  %v12032_v4 = vpack.c.bf16 %v450_v52, %v449_v46  ;;  %v452_v46 = vld [vmem:[%s10752_s17 + $0x398] sm:$0xff] }
 0x1df   : > { %v1184_v30 = vpop.f32.mrb[116].mxu1  ;;  %17539 = vst [vmem:[#allocation169_spill] sm:$0xff] %v12032_v4 }
 0x1e0   : > { %v1185_v60 = vadd.f32 %v1184_v30, %v11111_v33  ;;  %v1186_v19 = vpop.f32.mrb[117].mxu1  ;;  %v451_v30 = vld [vmem:[%s10752_s17 + $0x390] sm:$0xff] }
 0x1e1   : > { %v1187_v0 = vadd.f32 %v1186_v19, %v11113_v37  ;;  %v1188_v21 = vpop.f32.mrb[118].mxu1 }
 0x1e2   : > { %v1189_v25 = vadd.f32 %v1188_v21, %v11111_v33  ;;  %v1190_v63 = vpop.f32.mrb[119].mxu1  ;;  %v12043_v21 = vpack.c.bf16 %v452_v46, %v451_v30  ;;  %v453_v46 = vld [vmem:[%s10752_s17 + $0x3a0] sm:$0xff] }
 0x1e3   : > { %v1191_v48 = vadd.f32 %v1190_v63, %v11113_v37 }
 0x1e4   : > { %4832 = vmatmul.mubr.bf16.gmra.mrb[224].mxu0 %v3768_v7  ;;  %8394 = vmatmul.mubr.msk.bf16.gmra.mrb[224].mxu1 %vm667_vm0, %v12032_v4  ;;  %v3784_v13 = vpack.c.bf16 %v1189_v25, %v1185_v60  ;;  %17540 = vst [vmem:[#allocation170_spill] sm:$0xff] %v12043_v21  ;;  %v10495_v60 = vld [vmem:[%s16945_s3 + $0xd8] sm:$0xff]  }
 0x1e5   : > { %4839 = vmatprep.mubr.bf16.mxu0 %v3777_v43  ;;  %v3785_v3 = vpack.c.bf16 %v1191_v48, %v1187_v0  ;;  %1462 = vmatprep.mubr.bf16.mxu1 %v17408_v54 }
 0x1e6   : > { %5151 = vmatpush1.bf16.msra.mxu0 %v10495_v60 }
 0x1e7   : > { %v1194_v52 = vpop.f32.mrb[120].mxu1  ;;  %5152 = vmatprep.subr.bf16.mxu0 %v17408_v54 }
 0x1e8   : > { %v1195_v19 = vadd.f32 %v1194_v52, %v11111_v33  ;;  %v1196_v7 = vpop.f32.mrb[121].mxu1 }
 0x1e9   : > { %v1197_v43 = vadd.f32 %v1196_v7, %v11113_v37  ;;  %v1198_v63 = vpop.f32.mrb[122].mxu1 }
 0x1ea   : > { %v1199_v11 = vadd.f32 %v1198_v63, %v11111_v33  ;;  %v1200_v25 = vpop.f32.mrb[123].mxu1 }
 0x1eb   : > { %v1201_v0 = vadd.f32 %v1200_v25, %v11113_v37 }
 0x1ec   : > { %4840 = vmatmul.mubr.bf16.gmra.mrb[228].mxu0 %v3776_v6  ;;  %8395 = vmatmul.mubr.msk.bf16.gmra.mrb[228].mxu1 %vm667_vm0, %v12043_v21  ;;  %v3792_v48 = vpack.c.bf16 %v1199_v11, %v1195_v19  ;;  %v454_v6 = vld [vmem:[%s10752_s17 + $0x3a8] sm:$0xff] }
 0x1ed   : > { %4847 = vmatprep.mubr.bf16.mxu0 %v3785_v3  ;;  %v3793_v30 = vpack.c.bf16 %v1201_v0, %v1197_v43  ;;  %1472 = vmatprep.mubr.bf16.mxu1 %v17408_v54  ;;  %v12058_v63 = vpack.c.bf16 %v454_v6, %v453_v46  ;;  %v456_v46 = vld [vmem:[%s10752_s17 + $0x3b8] sm:$0xff] }
 0x1ef   : > { %v1204_v52 = vpop.f32.mrb[124].mxu1  ;;  %17541 = vst [vmem:[#allocation171_spill] sm:$0xff] %v12058_v63 }
 0x1f0   : > { %v1205_v7 = vadd.f32 %v1204_v52, %v11111_v33  ;;  %v1206_v3 = vpop.f32.mrb[125].mxu1  ;;  %v455_v52 = vld [vmem:[%s10752_s17 + $0x3b0] sm:$0xff] }
 0x1f1   : > { %v1207_v25 = vadd.f32 %v1206_v3, %v11113_v37  ;;  %v1208_v22 = vpop.f32.mrb[126].mxu1 }
 0x1f2   : > { %v1209_v11 = vadd.f32 %v1208_v22, %v11111_v33  ;;  %v1210_v19 = vpop.f32.mrb[127].mxu1  ;;  %v12069_v22 = vpack.c.bf16 %v456_v46, %v455_v52  ;;  %v458_v52 = vld [vmem:[%s10752_s17 + $0x3c8] sm:$0xff] }
 0x1f3   : > { %v1211_v43 = vadd.f32 %v1210_v19, %v11113_v37 }
 0x1f4   : > { %4848 = vmatmul.mubr.bf16.gmra.mrb[232].mxu0 %v3784_v13  ;;  %8396 = vmatmul.mubr.msk.bf16.gmra.mrb[232].mxu1 %vm667_vm0, %v12058_v63  ;;  %v3800_v60 = vpack.c.bf16 %v1209_v11, %v1205_v7  ;;  %17542 = vst [vmem:[#allocation172_spill] sm:$0xff] %v12069_v22 }
 0x1f5   : > { %4855 = vmatprep.mubr.bf16.mxu0 %v3793_v30  ;;  %v3801_v0 = vpack.c.bf16 %v1211_v43, %v1207_v25  ;;  %1482 = vmatprep.mubr.bf16.mxu1 %v17408_v54 }
 0x1f7   : > { %v1214_v6 = vpop.f32.mrb[128].mxu1 }
 0x1f8   : > { %v1215_v13 = vadd.f32 %v1214_v6, %v11111_v33  ;;  %v1216_v3 = vpop.f32.mrb[129].mxu1  ;;  %v457_v6 = vld [vmem:[%s10752_s17 + $0x3c0] sm:$0xff] }
 0x1f9   : > { %v1217_v30 = vadd.f32 %v1216_v3, %v11113_v37  ;;  %v1218_v19 = vpop.f32.mrb[130].mxu1 }
 0x1fa   : > { %v1219_v51 = vadd.f32 %v1218_v19, %v11111_v33  ;;  %v1220_v7 = vpop.f32.mrb[131].mxu1  ;;  %v12080_v19 = vpack.c.bf16 %v458_v52, %v457_v6  ;;  %v460_v6 = vld [vmem:[%s10752_s17 + $0x3d8] sm:$0xff] }
 0x1fb   : > { %v1221_v25 = vadd.f32 %v1220_v7, %v11113_v37 }
 0x1fc   : > { %4856 = vmatmul.mubr.bf16.gmra.mrb[236].mxu0 %v3792_v48  ;;  %8397 = vmatmul.mubr.msk.bf16.gmra.mrb[236].mxu1 %vm667_vm0, %v12069_v22  ;;  %v3808_v11 = vpack.c.bf16 %v1219_v51, %v1215_v13  ;;  %17543 = vst [vmem:[#allocation173_spill] sm:$0xff] %v12080_v19 }
 0x1fd   : > { %4863 = vmatprep.mubr.bf16.mxu0 %v3801_v0  ;;  %v3809_v43 = vpack.c.bf16 %v1221_v25, %v1217_v30  ;;  %1492 = vmatprep.mubr.bf16.mxu1 %v17408_v54 }
 0x1ff   : > { %v1224_v46 = vpop.f32.mrb[132].mxu1 }
 0x200   : > { %v1225_v48 = vadd.f32 %v1224_v46, %v11111_v33  ;;  %v1226_v3 = vpop.f32.mrb[133].mxu1  ;;  %v459_v46 = vld [vmem:[%s10752_s17 + $0x3d0] sm:$0xff] }
 0x201   : > { %v1227_v0 = vadd.f32 %v1226_v3, %v11113_v37  ;;  %v1228_v7 = vpop.f32.mrb[134].mxu1 }
 0x202   : > { %v1229_v26 = vadd.f32 %v1228_v7, %v11111_v33  ;;  %v1230_v51 = vpop.f32.mrb[135].mxu1  ;;  %v12091_v7 = vpack.c.bf16 %v460_v6, %v459_v46  ;;  %v461_v6 = vld [vmem:[%s10752_s17 + $0x3e0] sm:$0xff] }
 0x203   : > { %v1231_v13 = vadd.f32 %v1230_v51, %v11113_v37 }
 0x204   : > { %4864 = vmatmul.mubr.bf16.gmra.mrb[240].mxu0 %v3800_v60  ;;  %8398 = vmatmul.mubr.msk.bf16.gmra.mrb[240].mxu1 %vm667_vm0, %v12080_v19  ;;  %v3816_v30 = vpack.c.bf16 %v1229_v26, %v1225_v48  ;;  %17544 = vst [vmem:[#allocation174_spill] sm:$0xff] %v12091_v7  ;;  %v10496_v48 = vld [vmem:[%s16945_s3 + $0xe0] sm:$0xff]  }
 0x205   : > { %4871 = vmatprep.mubr.bf16.mxu0 %v3809_v43  ;;  %v3817_v25 = vpack.c.bf16 %v1231_v13, %v1227_v0  ;;  %1502 = vmatprep.mubr.bf16.mxu1 %v17408_v54 }
 0x206   : > { %5153 = vmatpush1.bf16.msra.mxu0 %v10496_v48 }
 0x207   : > { %v1234_v52 = vpop.f32.mrb[136].mxu1  ;;  %5154 = vmatprep.subr.bf16.mxu0 %v17408_v54 }
 0x208   : > { %v1235_v3 = vadd.f32 %v1234_v52, %v11111_v33  ;;  %v1236_v60 = vpop.f32.mrb[137].mxu1 }
 0x209   : > { %v1237_v43 = vadd.f32 %v1236_v60, %v11113_v37  ;;  %v1238_v51 = vpop.f32.mrb[138].mxu1 }
 0x20a   : > { %v1239_v32 = vadd.f32 %v1238_v51, %v11111_v33  ;;  %v1240_v26 = vpop.f32.mrb[139].mxu1 }
 0x20b   : > { %v1241_v0 = vadd.f32 %v1240_v26, %v11113_v37 }
 0x20c   : > { %4872 = vmatmul.mubr.bf16.gmra.mrb[244].mxu0 %v3808_v11  ;;  %8399 = vmatmul.mubr.msk.bf16.gmra.mrb[244].mxu1 %vm667_vm0, %v12091_v7  ;;  %v3824_v13 = vpack.c.bf16 %v1239_v32, %v1235_v3  ;;  %v462_v11 = vld [vmem:[%s10752_s17 + $0x3e8] sm:$0xff] }
 0x20d   : > { %4879 = vmatprep.mubr.bf16.mxu0 %v3817_v25  ;;  %v3825_v46 = vpack.c.bf16 %v1241_v0, %v1237_v43  ;;  %1512 = vmatprep.mubr.bf16.mxu1 %v17408_v54  ;;  %v12106_v51 = vpack.c.bf16 %v462_v11, %v461_v6  ;;  %v464_v6 = vld [vmem:[%s10752_s17 + $0x3f8] sm:$0xff] }
 0x20f   : > { %v1244_v52 = vpop.f32.mrb[140].mxu1  ;;  %17545 = vst [vmem:[#allocation175_spill] sm:$0xff] %v12106_v51 }
 0x210   : > { %v1245_v60 = vadd.f32 %v1244_v52, %v11111_v33  ;;  %v1246_v25 = vpop.f32.mrb[141].mxu1  ;;  %v463_v52 = vld [vmem:[%s10752_s17 + $0x3f0] sm:$0xff]  ;;  %s16900_s17 = scalar_lea.hbm %s16951_s9, %s10710_s28 }
 0x211   : > { %v1247_v26 = vadd.f32 %v1246_v25, %v11113_v37  ;;  %v1248_v38 = vpop.f32.mrb[142].mxu1 }
 0x212   : > { %v1249_v32 = vadd.f32 %v1248_v38, %v11111_v33  ;;  %v1250_v3 = vpop.f32.mrb[143].mxu1 }
 0x213   : > { %v1251_v43 = vadd.f32 %v1250_v3, %v11113_v37 }
 0x214   : > { %4880 = vmatmul.mubr.bf16.gmra.mrb[248].mxu0 %v3816_v30  ;;  %v3832_v48 = vpack.c.bf16 %v1249_v32, %v1245_v60  ;;  %8400 = vmatmul.mubr.msk.bf16.gmra.mrb[248].mxu1 %vm667_vm0, %v12106_v51  ;;  %v12117_v30 = vpack.c.bf16 %v464_v6, %v463_v52 }
 0x215   : > { %4887 = vmatprep.mubr.bf16.mxu0 %v3825_v46  ;;  %v3833_v0 = vpack.c.bf16 %v1251_v43, %v1247_v26  ;;  %1522 = vmatprep.mubr.bf16.mxu1 %v17408_v54 }
 0x216   : > { %17546 = vst [vmem:[#allocation176_spill] sm:$0xff] %v12117_v30 }
 0x217   : > { %v1254_v11 = vpop.f32.mrb[144].mxu1 }
 0x218   : > { %v1255_v25 = vadd.f32 %v1254_v11, %v11111_v33  ;;  %v1256_v7 = vpop.f32.mrb[145].mxu1 }
 0x219   : > { %v1257_v38 = vadd.f32 %v1256_v7, %v11113_v37  ;;  %v1258_v46 = vpop.f32.mrb[146].mxu1 }
 0x21a   : > { %v1259_v60 = vadd.f32 %v1258_v46, %v11111_v33  ;;  %v1260_v32 = vpop.f32.mrb[147].mxu1 }
 0x21b   : > { %v1261_v26 = vadd.f32 %v1260_v32, %v11113_v37 }
 0x21c   : > { %4888 = vmatmul.mubr.bf16.gmra.mrb[252].mxu0 %v3824_v13  ;;  %v3840_v3 = vpack.c.bf16 %v1259_v60, %v1255_v25  ;;  %8401 = vmatmul.mubr.msk.bf16.gmra.mrb[252].mxu1 %vm667_vm0, %v12117_v30 }
 0x21d   : > { %4895 = vmatprep.mubr.bf16.mxu0 %v3833_v0  ;;  %v3841_v43 = vpack.c.bf16 %v1261_v26, %v1257_v38  ;;  %1565 = vmatprep.mubr.bf16.mxu1 %v17408_v54 }
 0x21f   : > { %v1264_v11 = vpop.f32.mrb[148].mxu1 }
 0x220   : > { %v1265_v52 = vadd.f32 %v1264_v11, %v11111_v33  ;;  %v1266_v6 = vpop.f32.mrb[149].mxu1 }
 0x221   : > { %v1267_v7 = vadd.f32 %v1266_v6, %v11113_v37  ;;  %v1268_v13 = vpop.f32.mrb[150].mxu1 }
 0x222   : > { %v1269_v46 = vadd.f32 %v1268_v13, %v11111_v33  ;;  %v1270_v0 = vpop.f32.mrb[151].mxu1 }
 0x223   : > { %v1271_v25 = vadd.f32 %v1270_v0, %v11113_v37 }
 0x224   : > { %4896 = vmatmul.mubr.bf16.gmra.mrb[0].mxu0 %v3832_v48  ;;  %v3848_v60 = vpack.c.bf16 %v1269_v46, %v1265_v52  ;;  %8402 = vmatmul.mubr.msk.bf16.vlgmr.msra.gmra.mrb[0].mxu1 %vm667_vm0, %v10757_v23 }
 0x225   : > { %4903 = vmatprep.mubr.bf16.mxu0 %v3841_v43  ;;  %v3849_v38 = vpack.c.bf16 %v1271_v25, %v1267_v7  ;;  %1575 = vmatprep.mubr.bf16.mxu1 %v17408_v54  ;;  %v10497_v7 = vld [vmem:[%s16945_s3 + $0xe8] sm:$0xff]  }
 0x226   : > { %9528 = vmatpush1.bf16.msra.mxu1 %v10714_v5  ;;  %5155 = vmatpush1.bf16.msra.mxu0 %v10497_v7 }
 0x227   : > { %9527 = vmatprep.subr.bf16.mxu1 %v10722_v8  ;;  %v1274_v32 = vpop.f32.mrb[152].mxu1  ;;  %5156 = vmatprep.subr.bf16.mxu0 %v17408_v54 }
 0x228   : > { %v1275_v48 = vadd.f32 %v1274_v32, %v11111_v33  ;;  %v1276_v26 = vpop.f32.mrb[153].mxu1 }
 0x229   : > { %v1277_v11 = vadd.f32 %v1276_v26, %v11113_v37  ;;  %v1278_v43 = vpop.f32.mrb[154].mxu1 }
 0x22a   : > { %9529 = vmatpush1.bf16.msra.mxu1 %v10743_v16  ;;  %v1279_v52 = vadd.f32 %v1278_v43, %v11111_v33  ;;  %v1280_v6 = vpop.f32.mrb[155].mxu1 }
 0x22b   : > { %v1281_v5 = vadd.f32 %v1280_v6, %v11113_v37 }
 0x22c   : > { %4904 = vmatmul.mubr.bf16.gmra.mrb[4].mxu0 %v3840_v3  ;;  %v3856_v8 = vpack.c.bf16 %v1279_v52, %v1275_v48  ;;  %8403 = vmatmul.mubr.msk.bf16.gmra.mrb[4].mxu1 %vm667_vm0, %v10775_v29 }
 0x22d   : > { %4911 = vmatprep.mubr.bf16.mxu0 %v3849_v38  ;;  %v3857_v13 = vpack.c.bf16 %v1281_v5, %v1277_v11  ;;  %1585 = vmatprep.mubr.bf16.mxu1 %v17408_v54 }
 0x22f   : > { %v1284_v16 = vpop.f32.mrb[156].mxu1 }
 0x230   : > { %v1285_v3 = vadd.f32 %v1284_v16, %v11111_v33  ;;  %v1286_v46 = vpop.f32.mrb[157].mxu1 }
 0x231   : > { %v1287_v0 = vadd.f32 %v1286_v46, %v11113_v37  ;;  %v1288_v25 = vpop.f32.mrb[158].mxu1 }
 0x232   : > { %v1289_v38 = vadd.f32 %v1288_v25, %v11111_v33  ;;  %v1290_v32 = vpop.f32.mrb[159].mxu1 }
 0x233   : > { %v1291_v48 = vadd.f32 %v1290_v32, %v11113_v37 }
 0x234   : > { %4912 = vmatmul.mubr.bf16.gmra.mrb[8].mxu0 %v3848_v60  ;;  %v3864_v26 = vpack.c.bf16 %v1289_v38, %v1285_v3  ;;  %8404 = vmatmul.mubr.msk.bf16.gmra.mrb[8].mxu1 %vm667_vm0, %v10793_v34 }
 0x235   : > { %4919 = vmatprep.mubr.bf16.mxu0 %v3857_v13  ;;  %v3865_v11 = vpack.c.bf16 %v1291_v48, %v1287_v0  ;;  %1595 = vmatprep.mubr.bf16.mxu1 %v17408_v54 }
 0x237   : > { %v1294_v43 = vpop.f32.mrb[160].mxu1 }
 0x238   : > { %v1295_v52 = vadd.f32 %v1294_v43, %v11111_v33  ;;  %v1296_v6 = vpop.f32.mrb[161].mxu1 }
 0x239   : > { %v1297_v7 = vadd.f32 %v1296_v6, %v11113_v37  ;;  %v1298_v60 = vpop.f32.mrb[162].mxu1 }
 0x23a   : > { %v1299_v5 = vadd.f32 %v1298_v60, %v11111_v33  ;;  %v1300_v13 = vpop.f32.mrb[163].mxu1 }
 0x23b   : > { %v1301_v16 = vadd.f32 %v1300_v13, %v11113_v37 }
 0x23c   : > { %4920 = vmatmul.mubr.bf16.gmra.mrb[12].mxu0 %v3856_v8  ;;  %v3872_v3 = vpack.c.bf16 %v1299_v5, %v1295_v52  ;;  %8405 = vmatmul.mubr.msk.bf16.gmra.mrb[12].mxu1 %vm667_vm0, %v10814_v40 }
 0x23d   : > { %4927 = vmatprep.mubr.bf16.mxu0 %v3865_v11  ;;  %v3873_v46 = vpack.c.bf16 %v1301_v16, %v1297_v7  ;;  %1605 = vmatprep.mubr.bf16.mxu1 %v17408_v54 }
 0x23f   : > { %v1304_v0 = vpop.f32.mrb[164].mxu1 }
 0x240   : > { %v1305_v25 = vadd.f32 %v1304_v0, %v11111_v33  ;;  %v1306_v38 = vpop.f32.mrb[165].mxu1  ;;  %v10498_v0 = vld [vmem:[%s16945_s3 + $0xf0] sm:$0xff]  }
 0x241   : > { %v1307_v32 = vadd.f32 %v1306_v38, %v11113_v37  ;;  %v1308_v8 = vpop.f32.mrb[166].mxu1  ;;  %5157 = vmatpush1.bf16.msra.mxu0 %v10498_v0 }
 0x242   : > { %v1309_v48 = vadd.f32 %v1308_v8, %v11111_v33  ;;  %v1310_v11 = vpop.f32.mrb[167].mxu1  ;;  %5158 = vmatprep.subr.bf16.mxu0 %v17408_v54 }
 0x243   : > { %v1311_v43 = vadd.f32 %v1310_v11, %v11113_v37 }
 0x244   : > { %4928 = vmatmul.mubr.bf16.gmra.mrb[16].mxu0 %v3864_v26  ;;  %v3880_v52 = vpack.c.bf16 %v1309_v48, %v1305_v25  ;;  %8406 = vmatmul.mubr.msk.bf16.gmra.mrb[16].mxu1 %vm667_vm0, %v10832_v45 }
 0x245   : > { %4935 = vmatprep.mubr.bf16.mxu0 %v3873_v46  ;;  %v3881_v6 = vpack.c.bf16 %v1311_v43, %v1307_v32  ;;  %1615 = vmatprep.mubr.bf16.mxu1 %v17408_v54 }
 0x247   : > { %v1314_v7 = vpop.f32.mrb[168].mxu1 }
 0x248   : > { %v1315_v60 = vadd.f32 %v1314_v7, %v11111_v33  ;;  %v1316_v5 = vpop.f32.mrb[169].mxu1 }
 0x249   : > { %v1317_v13 = vadd.f32 %v1316_v5, %v11113_v37  ;;  %v1318_v26 = vpop.f32.mrb[170].mxu1 }
 0x24a   : > { %v1319_v16 = vadd.f32 %v1318_v26, %v11111_v33  ;;  %v1320_v46 = vpop.f32.mrb[171].mxu1 }
 0x24b   : > { %v1321_v25 = vadd.f32 %v1320_v46, %v11113_v37 }
 0x24c   : > { %4936 = vmatmul.mubr.bf16.gmra.mrb[20].mxu0 %v3872_v3  ;;  %v3888_v38 = vpack.c.bf16 %v1319_v16, %v1315_v60  ;;  %8407 = vmatmul.mubr.msk.bf16.gmra.mrb[20].mxu1 %vm667_vm0, %v10850_v50 }
 0x24d   : > { %4943 = vmatprep.mubr.bf16.mxu0 %v3881_v6  ;;  %v3889_v32 = vpack.c.bf16 %v1321_v25, %v1317_v13  ;;  %1625 = vmatprep.mubr.bf16.mxu1 %v17408_v54 }
 0x24f   : > { %v1324_v3 = vpop.f32.mrb[172].mxu1 }
 0x250   : > { %v1325_v8 = vadd.f32 %v1324_v3, %v11111_v33  ;;  %v1326_v48 = vpop.f32.mrb[173].mxu1 }
 0x251   : > { %v1327_v11 = vadd.f32 %v1326_v48, %v11113_v37  ;;  %v1328_v43 = vpop.f32.mrb[174].mxu1 }
 0x252   : > { %v1329_v6 = vadd.f32 %v1328_v43, %v11111_v33  ;;  %v1330_v7 = vpop.f32.mrb[175].mxu1 }
 0x253   : > { %v1331_v60 = vadd.f32 %v1330_v7, %v11113_v37 }
 0x254   : > { %4944 = vmatmul.mubr.bf16.gmra.mrb[24].mxu0 %v3880_v52  ;;  %v3896_v5 = vpack.c.bf16 %v1329_v6, %v1325_v8  ;;  %8408 = vmatmul.mubr.msk.bf16.gmra.mrb[24].mxu1 %vm667_vm0, %v10868_v55 }
 0x255   : > { %4951 = vmatprep.mubr.bf16.mxu0 %v3889_v32  ;;  %v3897_v13 = vpack.c.bf16 %v1331_v60, %v1327_v11  ;;  %1635 = vmatprep.mubr.bf16.mxu1 %v17408_v54 }
 0x257   : > { %v1334_v26 = vpop.f32.mrb[176].mxu1 }
 0x258   : > { %v1335_v16 = vadd.f32 %v1334_v26, %v11111_v33  ;;  %v1336_v46 = vpop.f32.mrb[177].mxu1 }
 0x259   : > { %v1337_v0 = vadd.f32 %v1336_v46, %v11113_v37  ;;  %v1338_v52 = vpop.f32.mrb[178].mxu1 }
 0x25a   : > { %v1339_v25 = vadd.f32 %v1338_v52, %v11111_v33  ;;  %v1340_v32 = vpop.f32.mrb[179].mxu1 }
 0x25b   : > { %v1341_v3 = vadd.f32 %v1340_v32, %v11113_v37 }
 0x25c   : > { %4952 = vmatmul.mubr.bf16.gmra.mrb[28].mxu0 %v3888_v38  ;;  %v3904_v8 = vpack.c.bf16 %v1339_v25, %v1335_v16  ;;  %8409 = vmatmul.mubr.msk.bf16.gmra.mrb[28].mxu1 %vm667_vm0, %v10880_v58 }
 0x25d   : > { %4959 = vmatprep.mubr.bf16.mxu0 %v3897_v13  ;;  %v3905_v48 = vpack.c.bf16 %v1341_v3, %v1337_v0  ;;  %1645 = vmatprep.mubr.bf16.mxu1 %v17408_v54 }
 0x25f   : > { %v1344_v11 = vpop.f32.mrb[180].mxu1 }
 0x260   : > { %v1345_v43 = vadd.f32 %v1344_v11, %v11111_v33  ;;  %v1346_v6 = vpop.f32.mrb[181].mxu1  ;;  %v10499_v11 = vld [vmem:[%s16945_s3 + $0xf8] sm:$0xff]  }
 0x261   : > { %v1347_v7 = vadd.f32 %v1346_v6, %v11113_v37  ;;  %v1348_v38 = vpop.f32.mrb[182].mxu1  ;;  %5159 = vmatpush1.bf16.msra.mxu0 %v10499_v11 }
 0x262   : > { %v1349_v60 = vadd.f32 %v1348_v38, %v11111_v33  ;;  %v1350_v13 = vpop.f32.mrb[183].mxu1  ;;  %5673 = vmatprep.subr.bf16.mxu0 %v17408_v54 }
 0x263   : > { %v1351_v26 = vadd.f32 %v1350_v13, %v11113_v37 }
 0x264   : > { %4960 = vmatmul.mubr.bf16.gmra.mrb[32].mxu0 %v3896_v5  ;;  %v3912_v16 = vpack.c.bf16 %v1349_v60, %v1345_v43  ;;  %8410 = vmatmul.mubr.msk.bf16.gmra.mrb[32].mxu1 %vm667_vm0, %v10894_v62 }
 0x265   : > { %4967 = vmatprep.mubr.bf16.mxu0 %v3905_v48  ;;  %v3913_v46 = vpack.c.bf16 %v1351_v26, %v1347_v7  ;;  %1655 = vmatprep.mubr.bf16.mxu1 %v17408_v54 }
 0x267   : > { %v1354_v0 = vpop.f32.mrb[184].mxu1 }
 0x268   : > { %v1355_v52 = vadd.f32 %v1354_v0, %v11111_v33  ;;  %v1356_v25 = vpop.f32.mrb[185].mxu1 }
 0x269   : > { %v1357_v32 = vadd.f32 %v1356_v25, %v11113_v37  ;;  %v1358_v5 = vpop.f32.mrb[186].mxu1 }
 0x26a   : > { %v1359_v3 = vadd.f32 %v1358_v5, %v11111_v33  ;;  %v1360_v48 = vpop.f32.mrb[187].mxu1 }
 0x26b   : > { %v1361_v43 = vadd.f32 %v1360_v48, %v11113_v37 }
 0x26c   : > { %4968 = vmatmul.mubr.bf16.gmra.mrb[36].mxu0 %v3904_v8  ;;  %v3920_v6 = vpack.c.bf16 %v1359_v3, %v1355_v52  ;;  %8411 = vmatmul.mubr.msk.bf16.gmra.mrb[36].mxu1 %vm667_vm0, %v10904_v1 }
 0x26d   : > { %4975 = vmatprep.mubr.bf16.mxu0 %v3913_v46  ;;  %v3921_v7 = vpack.c.bf16 %v1361_v43, %v1357_v32  ;;  %1665 = vmatprep.mubr.bf16.mxu1 %v17408_v54 }
 0x26f   : > { %v1364_v8 = vpop.f32.mrb[188].mxu1 }
 0x270   : > { %v1365_v38 = vadd.f32 %v1364_v8, %v11111_v33  ;;  %v1366_v60 = vpop.f32.mrb[189].mxu1 }
 0x271   : > { %v1367_v13 = vadd.f32 %v1366_v60, %v11113_v37  ;;  %v1368_v26 = vpop.f32.mrb[190].mxu1 }
 0x272   : > { %v1369_v46 = vadd.f32 %v1368_v26, %v11111_v33  ;;  %v1370_v0 = vpop.f32.mrb[191].mxu1 }
 0x273   : > { %v1371_v52 = vadd.f32 %v1370_v0, %v11113_v37 }
 0x274   : > { %4976 = vmatmul.mubr.bf16.gmra.mrb[40].mxu0 %v3912_v16  ;;  %v3928_v25 = vpack.c.bf16 %v1369_v46, %v1365_v38  ;;  %8412 = vmatmul.mubr.msk.bf16.gmra.mrb[40].mxu1 %vm667_vm0, %v10918_v9 }
 0x275   : > { %4983 = vmatprep.mubr.bf16.mxu0 %v3921_v7  ;;  %v3929_v32 = vpack.c.bf16 %v1371_v52, %v1367_v13  ;;  %1675 = vmatprep.mubr.bf16.mxu1 %v17408_v54 }
 0x277   : > { %v1374_v5 = vpop.f32.mrb[192].mxu1 }
 0x278   : > { %v1375_v3 = vadd.f32 %v1374_v5, %v11111_v33  ;;  %v1376_v48 = vpop.f32.mrb[193].mxu1 }
 0x279   : > { %v1377_v11 = vadd.f32 %v1376_v48, %v11113_v37  ;;  %v1378_v16 = vpop.f32.mrb[194].mxu1 }
 0x27a   : > { %v1379_v43 = vadd.f32 %v1378_v16, %v11111_v33  ;;  %v1380_v7 = vpop.f32.mrb[195].mxu1 }
 0x27b   : > { %v1381_v8 = vadd.f32 %v1380_v7, %v11113_v37 }
 0x27c   : > { %4984 = vmatmul.mubr.bf16.gmra.mrb[44].mxu0 %v3920_v6  ;;  %v3936_v38 = vpack.c.bf16 %v1379_v43, %v1375_v3  ;;  %8413 = vmatmul.mubr.msk.bf16.gmra.mrb[44].mxu1 %vm667_vm0, %v10928_v12 }
 0x27d   : > { %4991 = vmatprep.mubr.bf16.mxu0 %v3929_v32  ;;  %v3937_v60 = vpack.c.bf16 %v1381_v8, %v1377_v11  ;;  %1685 = vmatprep.mubr.bf16.mxu1 %v17408_v54 }
 0x27f   : > { %v1384_v13 = vpop.f32.mrb[196].mxu1 }
 0x280   : > { %v1385_v26 = vadd.f32 %v1384_v13, %v11111_v33  ;;  %v1386_v46 = vpop.f32.mrb[197].mxu1 }
 0x281   : > { %v1387_v0 = vadd.f32 %v1386_v46, %v11113_v37  ;;  %v1388_v6 = vpop.f32.mrb[198].mxu1 }
 0x282   : > { %v1389_v52 = vadd.f32 %v1388_v6, %v11111_v33  ;;  %v1390_v32 = vpop.f32.mrb[199].mxu1 }
 0x283   : > { %v1391_v5 = vadd.f32 %v1390_v32, %v11113_v37 }
 0x284   : > { %4992 = vmatmul.mubr.bf16.gmra.mrb[48].mxu0 %v3928_v25  ;;  %v3944_v3 = vpack.c.bf16 %v1389_v52, %v1385_v26  ;;  %8414 = vmatmul.mubr.msk.bf16.gmra.mrb[48].mxu1 %vm667_vm0, %v10941_v17 }
 0x285   : > { %4999 = vmatprep.mubr.bf16.mxu0 %v3937_v60  ;;  %v3945_v48 = vpack.c.bf16 %v1391_v5, %v1387_v0  ;;  %1695 = vmatprep.mubr.bf16.mxu1 %v17408_v54 }
 0x287   : > { %v1394_v11 = vpop.f32.mrb[200].mxu1 }
 0x288   : > { %v1395_v16 = vadd.f32 %v1394_v11, %v11111_v33  ;;  %v1396_v43 = vpop.f32.mrb[201].mxu1 }
 0x289   : > { %v1397_v7 = vadd.f32 %v1396_v43, %v11113_v37  ;;  %v1398_v25 = vpop.f32.mrb[202].mxu1 }
 0x28a   : > { %v1399_v8 = vadd.f32 %v1398_v25, %v11111_v33  ;;  %v1400_v60 = vpop.f32.mrb[203].mxu1 }
 0x28b   : > { %v1401_v13 = vadd.f32 %v1400_v60, %v11113_v37 }
 0x28c   : > { %5000 = vmatmul.mubr.bf16.gmra.mrb[52].mxu0 %v3936_v38  ;;  %v3952_v26 = vpack.c.bf16 %v1399_v8, %v1395_v16  ;;  %8415 = vmatmul.mubr.msk.bf16.gmra.mrb[52].mxu1 %vm667_vm0, %v10952_v20  ;;  %v17566_v20 = vld [vmem:[#allocation149_spill] sm:$0xff] }
 0x28d   : > { %5007 = vmatprep.mubr.bf16.mxu0 %v3945_v48  ;;  %v3953_v46 = vpack.c.bf16 %v1401_v13, %v1397_v7  ;;  %1705 = vmatprep.mubr.bf16.mxu1 %v17408_v54 }
 0x28f   : > { %v1404_v0 = vpop.f32.mrb[204].mxu1 }
 0x290   : > { %v1405_v6 = vadd.f32 %v1404_v0, %v11111_v33  ;;  %v1406_v52 = vpop.f32.mrb[205].mxu1 }
 0x291   : > { %v1407_v32 = vadd.f32 %v1406_v52, %v11113_v37  ;;  %v1408_v38 = vpop.f32.mrb[206].mxu1 }
 0x292   : > { %v1409_v5 = vadd.f32 %v1408_v38, %v11111_v33  ;;  %v1410_v48 = vpop.f32.mrb[207].mxu1 }
 0x293   : > { %v1411_v11 = vadd.f32 %v1410_v48, %v11113_v37 }
 0x294   : > { %5008 = vmatmul.mubr.bf16.gmra.mrb[56].mxu0 %v3944_v3  ;;  %v3960_v16 = vpack.c.bf16 %v1409_v5, %v1405_v6  ;;  %8416 = vmatmul.mubr.msk.bf16.gmra.mrb[56].mxu1 %vm667_vm0, %v10962_v24  ;;  %v17565_v24 = vld [vmem:[#allocation144_spill] sm:$0xff] }
 0x295   : > { %5015 = vmatprep.mubr.bf16.mxu0 %v3953_v46  ;;  %v3961_v43 = vpack.c.bf16 %v1411_v11, %v1407_v32  ;;  %1715 = vmatprep.mubr.bf16.mxu1 %v17408_v54 }
 0x297   : > { %v1414_v7 = vpop.f32.mrb[208].mxu1 }
 0x298   : > { %v1415_v25 = vadd.f32 %v1414_v7, %v11111_v33  ;;  %v1416_v8 = vpop.f32.mrb[209].mxu1 }
 0x299   : > { %v1417_v60 = vadd.f32 %v1416_v8, %v11113_v37  ;;  %v1418_v3 = vpop.f32.mrb[210].mxu1 }
 0x29a   : > { %v1419_v13 = vadd.f32 %v1418_v3, %v11111_v33  ;;  %v1420_v46 = vpop.f32.mrb[211].mxu1 }
 0x29b   : > { %v1421_v0 = vadd.f32 %v1420_v46, %v11113_v37 }
 0x29c   : > { %5016 = vmatmul.mubr.bf16.gmra.mrb[60].mxu0 %v3952_v26  ;;  %v3968_v6 = vpack.c.bf16 %v1419_v13, %v1415_v25  ;;  %8417 = vmatmul.mubr.msk.bf16.gmra.mrb[60].mxu1 %vm667_vm0, %v10972_v27 }
 0x29d   : > { %5023 = vmatprep.mubr.bf16.mxu0 %v3961_v43  ;;  %v3969_v52 = vpack.c.bf16 %v1421_v0, %v1417_v60  ;;  %1725 = vmatprep.mubr.bf16.mxu1 %v17408_v54 }
 0x29f   : > { %v1424_v32 = vpop.f32.mrb[212].mxu1 }
 0x2a0   : > { %v1425_v38 = vadd.f32 %v1424_v32, %v11111_v33  ;;  %v1426_v5 = vpop.f32.mrb[213].mxu1 }
 0x2a1   : > { %v1427_v48 = vadd.f32 %v1426_v5, %v11113_v37  ;;  %v1428_v26 = vpop.f32.mrb[214].mxu1 }
 0x2a2   : > { %v1429_v11 = vadd.f32 %v1428_v26, %v11111_v33  ;;  %v1430_v43 = vpop.f32.mrb[215].mxu1 }
 0x2a3   : > { %v1431_v7 = vadd.f32 %v1430_v43, %v11113_v37 }
 0x2a4   : > { %5024 = vmatmul.mubr.bf16.gmra.mrb[64].mxu0 %v3960_v16  ;;  %v3976_v25 = vpack.c.bf16 %v1429_v11, %v1425_v38  ;;  %8418 = vmatmul.mubr.msk.bf16.gmra.mrb[64].mxu1 %vm667_vm0, %v10982_v31 }
 0x2a5   : > { %5031 = vmatprep.mubr.bf16.mxu0 %v3969_v52  ;;  %v3977_v8 = vpack.c.bf16 %v1431_v7, %v1427_v48  ;;  %1735 = vmatprep.mubr.bf16.mxu1 %v17408_v54 }
 0x2a7   : > { %v1434_v60 = vpop.f32.mrb[216].mxu1 }
 0x2a8   : > { %v1435_v3 = vadd.f32 %v1434_v60, %v11111_v33  ;;  %v1436_v13 = vpop.f32.mrb[217].mxu1 }
 0x2a9   : > { %v1437_v46 = vadd.f32 %v1436_v13, %v11113_v37  ;;  %v1438_v16 = vpop.f32.mrb[218].mxu1 }
 0x2aa   : > { %v1439_v0 = vadd.f32 %v1438_v16, %v11111_v33  ;;  %v1440_v52 = vpop.f32.mrb[219].mxu1 }
 0x2ab   : > { %v1441_v32 = vadd.f32 %v1440_v52, %v11113_v37 }
 0x2ac   : > { %5032 = vmatmul.mubr.bf16.gmra.mrb[68].mxu0 %v3968_v6  ;;  %v3984_v38 = vpack.c.bf16 %v1439_v0, %v1435_v3  ;;  %8419 = vmatmul.mubr.msk.bf16.gmra.mrb[68].mxu1 %vm667_vm0, %v10992_v35  ;;  %v17562_v35 = vld [vmem:[#allocation129_spill] sm:$0xff] }
 0x2ad   : > { %5039 = vmatprep.mubr.bf16.mxu0 %v3977_v8  ;;  %v3985_v5 = vpack.c.bf16 %v1441_v32, %v1437_v46  ;;  %1745 = vmatprep.mubr.bf16.mxu1 %v17408_v54 }
 0x2af   : > { %v1444_v48 = vpop.f32.mrb[220].mxu1 }
 0x2b0   : > { %v1445_v26 = vadd.f32 %v1444_v48, %v11111_v33  ;;  %v1446_v11 = vpop.f32.mrb[221].mxu1 }
 0x2b1   : > { %v1447_v43 = vadd.f32 %v1446_v11, %v11113_v37  ;;  %v1448_v6 = vpop.f32.mrb[222].mxu1 }
 0x2b2   : > { %v1449_v7 = vadd.f32 %v1448_v6, %v11111_v33  ;;  %v1450_v8 = vpop.f32.mrb[223].mxu1 }
 0x2b3   : > { %v1451_v60 = vadd.f32 %v1450_v8, %v11113_v37 }
 0x2b4   : > { %5040 = vmatmul.mubr.bf16.gmra.mrb[72].mxu0 %v3976_v25  ;;  %v3992_v3 = vpack.c.bf16 %v1449_v7, %v1445_v26  ;;  %8420 = vmatmul.mubr.msk.bf16.gmra.mrb[72].mxu1 %vm667_vm0, %v11008_v41  ;;  %v17561_v41 = vld [vmem:[#allocation124_spill] sm:$0xff] }
 0x2b5   : > { %5047 = vmatprep.mubr.bf16.mxu0 %v3985_v5  ;;  %v3993_v13 = vpack.c.bf16 %v1451_v60, %v1447_v43  ;;  %1755 = vmatprep.mubr.bf16.mxu1 %v17408_v54 }
 0x2b7   : > { %v1454_v46 = vpop.f32.mrb[224].mxu1 }
 0x2b8   : > { %v1455_v16 = vadd.f32 %v1454_v46, %v11111_v33  ;;  %v1456_v0 = vpop.f32.mrb[225].mxu1 }
 0x2b9   : > { %v1457_v52 = vadd.f32 %v1456_v0, %v11113_v37  ;;  %v1458_v25 = vpop.f32.mrb[226].mxu1 }
 0x2ba   : > { %v1459_v32 = vadd.f32 %v1458_v25, %v11111_v33  ;;  %v1460_v5 = vpop.f32.mrb[227].mxu1 }
 0x2bb   : > { %v1461_v48 = vadd.f32 %v1460_v5, %v11113_v37 }
 0x2bc   : > { %5048 = vmatmul.mubr.bf16.gmra.mrb[76].mxu0 %v3984_v38  ;;  %v4000_v26 = vpack.c.bf16 %v1459_v32, %v1455_v16  ;;  %8421 = vmatmul.mubr.msk.bf16.gmra.mrb[76].mxu1 %vm667_vm0, %v11019_v47 }
 0x2bd   : > { %5055 = vmatprep.mubr.bf16.mxu0 %v3993_v13  ;;  %v4001_v11 = vpack.c.bf16 %v1461_v48, %v1457_v52  ;;  %1765 = vmatprep.mubr.bf16.mxu1 %v17408_v54 }
 0x2bf   : > { %v1464_v43 = vpop.f32.mrb[228].mxu1 }
 0x2c0   : > { %v1465_v6 = vadd.f32 %v1464_v43, %v11111_v33  ;;  %v1466_v7 = vpop.f32.mrb[229].mxu1 }
 0x2c1   : > { %v1467_v8 = vadd.f32 %v1466_v7, %v11113_v37  ;;  %v1468_v38 = vpop.f32.mrb[230].mxu1 }
 0x2c2   : > { %v1469_v60 = vadd.f32 %v1468_v38, %v11111_v33  ;;  %v1470_v13 = vpop.f32.mrb[231].mxu1 }
 0x2c3   : > { %v1471_v46 = vadd.f32 %v1470_v13, %v11113_v37 }
 0x2c4   : > { %5056 = vmatmul.mubr.bf16.gmra.mrb[80].mxu0 %v3992_v3  ;;  %v4008_v16 = vpack.c.bf16 %v1469_v60, %v1465_v6  ;;  %8422 = vmatmul.mubr.msk.bf16.gmra.mrb[80].mxu1 %vm667_vm0, %v11029_v49 }
 0x2c5   : > { %5063 = vmatprep.mubr.bf16.mxu0 %v4001_v11  ;;  %v4009_v0 = vpack.c.bf16 %v1471_v46, %v1467_v8  ;;  %1775 = vmatprep.mubr.bf16.mxu1 %v17408_v54 }
 0x2c7   : > { %v1474_v52 = vpop.f32.mrb[232].mxu1 }
 0x2c8   : > { %v1475_v25 = vadd.f32 %v1474_v52, %v11111_v33  ;;  %v1476_v32 = vpop.f32.mrb[233].mxu1 }
 0x2c9   : > { %v1477_v5 = vadd.f32 %v1476_v32, %v11113_v37  ;;  %v1478_v3 = vpop.f32.mrb[234].mxu1 }
 0x2ca   : > { %v1479_v48 = vadd.f32 %v1478_v3, %v11111_v33  ;;  %v1480_v11 = vpop.f32.mrb[235].mxu1 }
 0x2cb   : > { %v1481_v43 = vadd.f32 %v1480_v11, %v11113_v37 }
 0x2cc   : > { %5064 = vmatmul.mubr.bf16.gmra.mrb[84].mxu0 %v4000_v26  ;;  %v4016_v6 = vpack.c.bf16 %v1479_v48, %v1475_v25  ;;  %8423 = vmatmul.mubr.msk.bf16.gmra.mrb[84].mxu1 %vm667_vm0, %v11039_v53  ;;  %v17558_v53 = vld [vmem:[#allocation109_spill] sm:$0xff] }
 0x2cd   : > { %5071 = vmatprep.mubr.bf16.mxu0 %v4009_v0  ;;  %v4017_v7 = vpack.c.bf16 %v1481_v43, %v1477_v5  ;;  %1785 = vmatprep.mubr.bf16.mxu1 %v17408_v54 }
 0x2cf   : > { %v1484_v8 = vpop.f32.mrb[236].mxu1 }
 0x2d0   : > { %v1485_v38 = vadd.f32 %v1484_v8, %v11111_v33  ;;  %v1486_v60 = vpop.f32.mrb[237].mxu1 }
 0x2d1   : > { %v1487_v13 = vadd.f32 %v1486_v60, %v11113_v37  ;;  %v1488_v26 = vpop.f32.mrb[238].mxu1 }
 0x2d2   : > { %v1489_v46 = vadd.f32 %v1488_v26, %v11111_v33  ;;  %v1490_v0 = vpop.f32.mrb[239].mxu1 }
 0x2d3   : > { %v1491_v52 = vadd.f32 %v1490_v0, %v11113_v37 }
 0x2d4   : > { %5072 = vmatmul.mubr.bf16.gmra.mrb[88].mxu0 %v4008_v16  ;;  %v4024_v25 = vpack.c.bf16 %v1489_v46, %v1485_v38  ;;  %8424 = vmatmul.mubr.msk.bf16.gmra.mrb[88].mxu1 %vm667_vm0, %v11049_v57  ;;  %v17557_v57 = vld [vmem:[#allocation104_spill] sm:$0xff] }
 0x2d5   : > { %5079 = vmatprep.mubr.bf16.mxu0 %v4017_v7  ;;  %v4025_v32 = vpack.c.bf16 %v1491_v52, %v1487_v13  ;;  %1795 = vmatprep.mubr.bf16.mxu1 %v17408_v54 }
 0x2d7   : > { %v1494_v5 = vpop.f32.mrb[240].mxu1 }
 0x2d8   : > { %v1495_v3 = vadd.f32 %v1494_v5, %v11111_v33  ;;  %v1496_v48 = vpop.f32.mrb[241].mxu1 }
 0x2d9   : > { %v1497_v11 = vadd.f32 %v1496_v48, %v11113_v37  ;;  %v1498_v16 = vpop.f32.mrb[242].mxu1 }
 0x2da   : > { %v1499_v43 = vadd.f32 %v1498_v16, %v11111_v33  ;;  %v1500_v7 = vpop.f32.mrb[243].mxu1 }
 0x2db   : > { %v1501_v8 = vadd.f32 %v1500_v7, %v11113_v37 }
 0x2dc   : > { %5080 = vmatmul.mubr.bf16.gmra.mrb[92].mxu0 %v4016_v6  ;;  %v4032_v38 = vpack.c.bf16 %v1499_v43, %v1495_v3  ;;  %8425 = vmatmul.mubr.msk.bf16.gmra.mrb[92].mxu1 %vm667_vm0, %v11059_v61 }
 0x2dd   : > { %5087 = vmatprep.mubr.bf16.mxu0 %v4025_v32  ;;  %v4033_v60 = vpack.c.bf16 %v1501_v8, %v1497_v11  ;;  %1805 = vmatprep.mubr.bf16.mxu1 %v17408_v54 }
 0x2df   : > { %v1504_v13 = vpop.f32.mrb[244].mxu1 }
 0x2e0   : > { %v1505_v26 = vadd.f32 %v1504_v13, %v11111_v33  ;;  %v1506_v46 = vpop.f32.mrb[245].mxu1 }
 0x2e1   : > { %v1507_v0 = vadd.f32 %v1506_v46, %v11113_v37  ;;  %v1508_v6 = vpop.f32.mrb[246].mxu1 }
 0x2e2   : > { %v1509_v52 = vadd.f32 %v1508_v6, %v11111_v33  ;;  %v1510_v32 = vpop.f32.mrb[247].mxu1 }
 0x2e3   : > { %v1511_v5 = vadd.f32 %v1510_v32, %v11113_v37  ;;  %v557_v32 = vsub.s32 2, %v11088_v15 }
 0x2e4   : > { %5088 = vmatmul.mubr.bf16.gmra.mrb[96].mxu0 %v4024_v25  ;;  %v4040_v3 = vpack.c.bf16 %v1509_v52, %v1505_v26  ;;  %8426 = vmatmul.mubr.msk.bf16.gmra.mrb[96].mxu1 %vm667_vm0, %v11069_v2 }
 0x2e5   : > { %5095 = vmatprep.mubr.bf16.mxu0 %v4033_v60  ;;  %v4041_v48 = vpack.c.bf16 %v1511_v5, %v1507_v0  ;;  %1815 = vmatprep.mubr.bf16.mxu1 %v17408_v54 }
 0x2e7   : > { %v1514_v11 = vpop.f32.mrb[248].mxu1 }
 0x2e8   : > { %v1515_v16 = vadd.f32 %v1514_v11, %v11111_v33  ;;  %v1516_v43 = vpop.f32.mrb[249].mxu1 }
 0x2e9   : > { %v1517_v7 = vadd.f32 %v1516_v43, %v11113_v37  ;;  %v1518_v25 = vpop.f32.mrb[250].mxu1 }
 0x2ea   : > { %v1519_v8 = vadd.f32 %v1518_v25, %v11111_v33  ;;  %v1520_v60 = vpop.f32.mrb[251].mxu1  ;;  %v10532_v25 = vld [vmem:[%s16944_s2] sm:$0xff] }
 0x2eb   : > { %v1521_v13 = vadd.f32 %v1520_v60, %v11113_v37 }
 0x2ec   : > { %5096 = vmatmul.mubr.bf16.gmra.mrb[100].mxu0 %v4032_v38  ;;  %v4048_v26 = vpack.c.bf16 %v1519_v8, %v1515_v16  ;;  %8427 = vmatmul.mubr.msk.bf16.gmra.mrb[100].mxu1 %vm667_vm0, %v11079_v10  ;;  %v12333_v8 = vrot.slane %v10532_v25, %v557_v32  ;;  %v17554_v10 = vld [vmem:[#allocation89_spill] sm:$0xff] }
 0x2ed   : > { %5103 = vmatprep.mubr.bf16.mxu0 %v4041_v48  ;;  %v4049_v46 = vpack.c.bf16 %v1521_v13, %v1517_v7  ;;  %1825 = vmatprep.mubr.bf16.mxu1 %v17408_v54  ;;  %v561_v48 = vsub.s32 3, %v11088_v15  ;;  %v17550_v15 = vld [vmem:[#allocation69_spill] sm:$0xff] }
 0x2ef   : > { %v1524_v0 = vpop.f32.mrb[252].mxu1  ;;  %v12335_v13 = vrot.slane %v10532_v25, %v561_v48 }
 0x2f0   : > { %v1525_v6 = vadd.f32 %v1524_v0, %v11111_v33  ;;  %v1526_v52 = vpop.f32.mrb[253].mxu1 }
 0x2f1   : > { %v1527_v38 = vadd.f32 %v1526_v52, %v11113_v37  ;;  %v1528_v5 = vpop.f32.mrb[254].mxu1 }
 0x2f2   : > { %v1529_v11 = vadd.f32 %v1528_v5, %v11111_v33  ;;  %v1530_v16 = vpop.f32.mrb[255].mxu1 }
 0x2f3   : > { %v1531_v43 = vadd.f32 %v1530_v16, %v11113_v37 }
 0x2f4   : > { %5104 = vmatmul.mubr.bf16.gmra.mrb[104].mxu0 %v4040_v3  ;;  %v4056_v7 = vpack.c.bf16 %v1529_v11, %v1525_v6  ;;  %8428 = vmatmul.mubr.msk.bf16.gmra.mrb[104].mxu1 %vm667_vm0, %v11091_v18  ;;  %v17553_v18 = vld [vmem:[#allocation84_spill] sm:$0xff] }
 0x2f5   : > { %5111 = vmatprep.mubr.bf16.mxu0 %v4049_v46  ;;  %v4057_v60 = vpack.c.bf16 %v1531_v43, %v1527_v38  ;;  %1835 = vmatprep.mubr.bf16.mxu1 %v17408_v54 }
 0x2f7   : > { %v1567_v33 = vpop.f32.mrb[0].mxu1 }
 0x2f8   : > { %v1568_v3 = vadd.f32 %v1567_v33, %v12333_v8  ;;  %v1569_v46 = vpop.f32.mrb[1].mxu1 }
 0x2f9   : > { %v1570_v37 = vadd.f32 %v1569_v46, %v12335_v13  ;;  %v1571_v0 = vpop.f32.mrb[2].mxu1 }
 0x2fa   : > { %v1572_v6 = vadd.f32 %v1571_v0, %v12333_v8  ;;  %v1573_v52 = vpop.f32.mrb[3].mxu1 }
 0x2fb   : > { %v1574_v32 = vadd.f32 %v1573_v52, %v12335_v13 }
 0x2fc   : > { %5112 = vmatmul.mubr.bf16.gmra.mrb[108].mxu0 %v4048_v26  ;;  %v3554_v5 = vpack.c.bf16 %v1572_v6, %v1568_v3  ;;  %8429 = vmatmul.mubr.msk.bf16.gmra.mrb[108].mxu1 %vm667_vm0, %v11118_v42 }
 0x2fd   : > { %5119 = vmatprep.mubr.bf16.mxu0 %v4057_v60  ;;  %v3555_v38 = vpack.c.bf16 %v1574_v32, %v1570_v37  ;;  %1845 = vmatprep.mubr.bf16.mxu1 %v17408_v54  ;;  %v10500_v37 = vld [vmem:[%s16945_s3 + $0x100] sm:$0xff]  }
 0x2ff   : > { %v1577_v48 = vpop.f32.mrb[4].mxu1 }
 0x300   : > { %v1578_v11 = vadd.f32 %v1577_v48, %v12333_v8  ;;  %v1579_v16 = vpop.f32.mrb[5].mxu1 }
 0x301   : > { %v1580_v43 = vadd.f32 %v1579_v16, %v12335_v13  ;;  %v1581_v26 = vpop.f32.mrb[6].mxu1  ;;  %v10501_v16 = vld [vmem:[%s16945_s3 + $0x108] sm:$0xff]  }
 0x302   : > { %v1582_v25 = vadd.f32 %v1581_v26, %v12333_v8  ;;  %v1583_v60 = vpop.f32.mrb[7].mxu1 }
 0x303   : > { %v1584_v33 = vadd.f32 %v1583_v60, %v12335_v13 }
 0x304   : > { %5120 = vmatmul.mubr.bf16.gmra.mrb[112].mxu0 %v4056_v7  ;;  %8430 = vmatmul.mubr.msk.bf16.gmra.mrb[112].mxu1 %vm667_vm0, %v11148_v28  ;;  %v3562_v3 = vpack.c.bf16 %v1582_v25, %v1578_v11  ;;  %v10502_v25 = vld [vmem:[%s16945_s3 + $0x110] sm:$0xff]  }
 0x305   : > { %5160 = vmatprep.mubr.bf16.mxu0 %v3555_v38  ;;  %v3563_v46 = vpack.c.bf16 %v1584_v33, %v1580_v43  ;;  %1855 = vmatprep.mubr.bf16.mxu1 %v17408_v54 }
 0x307   : > { %v1587_v0 = vpop.f32.mrb[8].mxu1 }
 0x308   : > { %v1588_v7 = vadd.f32 %v1587_v0, %v12333_v8  ;;  %v1589_v6 = vpop.f32.mrb[9].mxu1 }
 0x309   : > { %v1590_v52 = vadd.f32 %v1589_v6, %v12335_v13  ;;  %v1591_v32 = vpop.f32.mrb[10].mxu1 }
 0x30a   : > { %v1592_v38 = vadd.f32 %v1591_v32, %v12333_v8  ;;  %v1593_v48 = vpop.f32.mrb[11].mxu1 }
 0x30b   : > { %v1594_v11 = vadd.f32 %v1593_v48, %v12335_v13  ;;  %v10504_v48 = vld [vmem:[%s16945_s3 + $0x120] sm:$0xff]  }
 0x30c   : > { %5161 = vmatmul.mubr.bf16.vlgmr.msra.gmra.mrb[116].mxu0 %v3554_v5  ;;  %8431 = vmatmul.mubr.msk.bf16.gmra.mrb[116].mxu1 %vm667_vm0, %v11186_v14  ;;  %v3570_v43 = vpack.c.bf16 %v1592_v38, %v1588_v7 }
 0x30d   : > { %5674 = vmatpush1.bf16.msra.mxu0 %v10500_v37  ;;  %5168 = vmatprep.mubr.bf16.mxu0 %v3563_v46  ;;  %v3571_v26 = vpack.c.bf16 %v1594_v11, %v1590_v52  ;;  %v10503_v52 = vld [vmem:[%s16945_s3 + $0x118] sm:$0xff]  }
 0x30e   : > { %5675 = vmatprep.subr.bf16.mxu0 %v17408_v54  ;;  %1865 = vmatprep.mubr.bf16.mxu1 %v17408_v54 }
 0x30f   : > { %v1597_v5 = vpop.f32.mrb[12].mxu1 }
 0x310   : > { %v1598_v60 = vadd.f32 %v1597_v5, %v12333_v8  ;;  %v1599_v33 = vpop.f32.mrb[13].mxu1 }
 0x311   : > { %5676 = vmatpush1.bf16.msra.mxu0 %v10501_v16  ;;  %v1600_v46 = vadd.f32 %v1599_v33, %v12335_v13  ;;  %v1601_v37 = vpop.f32.mrb[14].mxu1 }
 0x312   : > { %5677 = vmatprep.subr.bf16.mxu0 %v17408_v54  ;;  %v1602_v0 = vadd.f32 %v1601_v37, %v12333_v8  ;;  %v1603_v7 = vpop.f32.mrb[15].mxu1 }
 0x313   : > { %v1604_v6 = vadd.f32 %v1603_v7, %v12335_v13 }
 0x314   : > { %5169 = vmatmul.mubr.bf16.gmra.mrb[120].mxu0 %v3562_v3  ;;  %8432 = vmatmul.mubr.msk.bf16.gmra.mrb[120].mxu1 %vm667_vm0, %v11226_v39  ;;  %v3578_v32 = vpack.c.bf16 %v1602_v0, %v1598_v60 }
 0x315   : > { %5176 = vmatprep.mubr.bf16.mxu0 %v3571_v26  ;;  %5678 = vmatpush1.bf16.msra.mxu0 %v10502_v25  ;;  %v3579_v38 = vpack.c.bf16 %v1604_v6, %v1600_v46 }
 0x316   : > { %5679 = vmatprep.subr.bf16.mxu0 %v17408_v54  ;;  %1875 = vmatprep.mubr.bf16.mxu1 %v17408_v54 }
 0x317   : > { %v1607_v3 = vpop.f32.mrb[16].mxu1 }
 0x318   : > { %v1608_v11 = vadd.f32 %v1607_v3, %v12333_v8  ;;  %v1609_v16 = vpop.f32.mrb[17].mxu1 }
 0x319   : > { %5680 = vmatpush1.bf16.msra.mxu0 %v10503_v52  ;;  %v1610_v26 = vadd.f32 %v1609_v16, %v12335_v13  ;;  %v1611_v5 = vpop.f32.mrb[18].mxu1 }
 0x31a   : > { %5681 = vmatprep.subr.bf16.mxu0 %v17408_v54  ;;  %v1612_v25 = vadd.f32 %v1611_v5, %v12333_v8  ;;  %v1613_v60 = vpop.f32.mrb[19].mxu1 }
 0x31b   : > { %v1614_v33 = vadd.f32 %v1613_v60, %v12335_v13 }
 0x31c   : > { %5177 = vmatmul.mubr.bf16.gmra.mrb[124].mxu0 %v3570_v43  ;;  %8433 = vmatmul.mubr.msk.bf16.gmra.mrb[124].mxu1 %vm667_vm0, %v11264_v36  ;;  %v3586_v46 = vpack.c.bf16 %v1612_v25, %v1608_v11 }
 0x31d   : > { %5184 = vmatprep.mubr.bf16.mxu0 %v3579_v38  ;;  %5682 = vmatpush1.bf16.msra.mxu0 %v10504_v48  ;;  %v3587_v37 = vpack.c.bf16 %v1614_v33, %v1610_v26 }
 0x31e   : > { %5683 = vmatprep.subr.bf16.mxu0 %v17408_v54  ;;  %1885 = vmatprep.mubr.bf16.mxu1 %v17408_v54 }
 0x31f   : > { %v1617_v0 = vpop.f32.mrb[20].mxu1 }
 0x320   : > { %v1618_v7 = vadd.f32 %v1617_v0, %v12333_v8  ;;  %v1619_v43 = vpop.f32.mrb[21].mxu1  ;;  %v10505_v0 = vld [vmem:[%s16945_s3 + $0x128] sm:$0xff]  }
 0x321   : > { %v1620_v6 = vadd.f32 %v1619_v43, %v12335_v13  ;;  %v1621_v52 = vpop.f32.mrb[22].mxu1  ;;  %v17547_v43 = vld [vmem:[#allocation54_spill] sm:$0xff]  ;;  %5684 = vmatpush1.bf16.msra.mxu0 %v10505_v0 }
 0x322   : > { %v1622_v38 = vadd.f32 %v1621_v52, %v12333_v8  ;;  %v1623_v3 = vpop.f32.mrb[23].mxu1  ;;  %5685 = vmatprep.subr.bf16.mxu0 %v17408_v54 }
 0x323   : > { %v1624_v48 = vadd.f32 %v1623_v3, %v12335_v13 }
 0x324   : > { %5185 = vmatmul.mubr.bf16.gmra.mrb[128].mxu0 %v3578_v32  ;;  %8434 = vmatmul.mubr.msk.bf16.gmra.mrb[128].mxu1 %vm667_vm0, %v11296_v56  ;;  %v3594_v11 = vpack.c.bf16 %v1622_v38, %v1618_v7 }
 0x325   : > { %5192 = vmatprep.mubr.bf16.mxu0 %v3587_v37  ;;  %v3595_v16 = vpack.c.bf16 %v1624_v48, %v1620_v6  ;;  %1895 = vmatprep.mubr.bf16.mxu1 %v17408_v54 }
 0x327   : > { %v1627_v26 = vpop.f32.mrb[24].mxu1 }
 0x328   : > { %v1628_v5 = vadd.f32 %v1627_v26, %v12333_v8  ;;  %v1629_v25 = vpop.f32.mrb[25].mxu1 }
 0x329   : > { %v1630_v60 = vadd.f32 %v1629_v25, %v12335_v13  ;;  %v1631_v32 = vpop.f32.mrb[26].mxu1 }
 0x32a   : > { %v1632_v33 = vadd.f32 %v1631_v32, %v12333_v8  ;;  %v1633_v37 = vpop.f32.mrb[27].mxu1  ;;  %v17548_v32 = vld [vmem:[#allocation59_spill] sm:$0xff] }
 0x32b   : > { %v1634_v7 = vadd.f32 %v1633_v37, %v12335_v13 }
 0x32c   : > { %5193 = vmatmul.mubr.bf16.gmra.mrb[132].mxu0 %v3586_v46  ;;  %8435 = vmatmul.mubr.msk.bf16.gmra.mrb[132].mxu1 %vm667_vm0, %v17547_v43  ;;  %v3602_v6 = vpack.c.bf16 %v1632_v33, %v1628_v5 }
 0x32d   : > { %5200 = vmatprep.mubr.bf16.mxu0 %v3595_v16  ;;  %v3603_v52 = vpack.c.bf16 %v1634_v7, %v1630_v60  ;;  %1905 = vmatprep.mubr.bf16.mxu1 %v17408_v54 }
 0x32f   : > { %v1637_v46 = vpop.f32.mrb[28].mxu1 }
 0x330   : > { %v1638_v38 = vadd.f32 %v1637_v46, %v12333_v8  ;;  %v1639_v3 = vpop.f32.mrb[29].mxu1 }
 0x331   : > { %v1640_v48 = vadd.f32 %v1639_v3, %v12335_v13  ;;  %v1641_v26 = vpop.f32.mrb[30].mxu1 }
 0x332   : > { %v1642_v16 = vadd.f32 %v1641_v26, %v12333_v8  ;;  %v1643_v25 = vpop.f32.mrb[31].mxu1 }
 0x333   : > { %v1644_v5 = vadd.f32 %v1643_v25, %v12335_v13  ;;  %v17549_v25 = vld [vmem:[#allocation64_spill] sm:$0xff] }
 0x334   : > { %5201 = vmatmul.mubr.bf16.gmra.mrb[136].mxu0 %v3594_v11  ;;  %8436 = vmatmul.mubr.msk.bf16.gmra.mrb[136].mxu1 %vm667_vm0, %v17548_v32  ;;  %v3610_v60 = vpack.c.bf16 %v1642_v16, %v1638_v38 }
 0x335   : > { %5208 = vmatprep.mubr.bf16.mxu0 %v3603_v52  ;;  %v3611_v33 = vpack.c.bf16 %v1644_v5, %v1640_v48  ;;  %1915 = vmatprep.mubr.bf16.mxu1 %v17408_v54 }
 0x337   : > { %v1647_v37 = vpop.f32.mrb[32].mxu1 }
 0x338   : > { %v1648_v0 = vadd.f32 %v1647_v37, %v12333_v8  ;;  %v1649_v7 = vpop.f32.mrb[33].mxu1 }
 0x339   : > { %v1650_v46 = vadd.f32 %v1649_v7, %v12335_v13  ;;  %v1651_v11 = vpop.f32.mrb[34].mxu1 }
 0x33a   : > { %v1652_v3 = vadd.f32 %v1651_v11, %v12333_v8  ;;  %v1653_v52 = vpop.f32.mrb[35].mxu1 }
 0x33b   : > { %v1654_v26 = vadd.f32 %v1653_v52, %v12335_v13 }
 0x33c   : > { %5209 = vmatmul.mubr.bf16.gmra.mrb[140].mxu0 %v3602_v6  ;;  %8437 = vmatmul.mubr.msk.bf16.gmra.mrb[140].mxu1 %vm667_vm0, %v17549_v25  ;;  %v3618_v38 = vpack.c.bf16 %v1652_v3, %v1648_v0 }
 0x33d   : > { %5216 = vmatprep.mubr.bf16.mxu0 %v3611_v33  ;;  %v3619_v48 = vpack.c.bf16 %v1654_v26, %v1650_v46  ;;  %1925 = vmatprep.mubr.bf16.mxu1 %v17408_v54 }
 0x33f   : > { %v1657_v16 = vpop.f32.mrb[36].mxu1 }
 0x340   : > { %v1658_v5 = vadd.f32 %v1657_v16, %v12333_v8  ;;  %v1659_v37 = vpop.f32.mrb[37].mxu1 }
 0x341   : > { %v1660_v7 = vadd.f32 %v1659_v37, %v12335_v13  ;;  %v1661_v6 = vpop.f32.mrb[38].mxu1 }
 0x342   : > { %v1662_v11 = vadd.f32 %v1661_v6, %v12333_v8  ;;  %v1663_v33 = vpop.f32.mrb[39].mxu1 }
 0x343   : > { %v1664_v52 = vadd.f32 %v1663_v33, %v12335_v13  ;;  %v10506_v33 = vld [vmem:[%s16945_s3 + $0x130] sm:$0xff]  }
 0x344   : > { %5217 = vmatmul.mubr.bf16.gmra.mrb[144].mxu0 %v3610_v60  ;;  %8438 = vmatmul.mubr.msk.bf16.gmra.mrb[144].mxu1 %vm667_vm0, %v17550_v15  ;;  %v3626_v0 = vpack.c.bf16 %v1662_v11, %v1658_v5 }
 0x345   : > { %5224 = vmatprep.mubr.bf16.mxu0 %v3619_v48  ;;  %v3627_v46 = vpack.c.bf16 %v1664_v52, %v1660_v7  ;;  %1935 = vmatprep.mubr.bf16.mxu1 %v17408_v54  ;;  %v17551_v7 = vld [vmem:[#allocation74_spill] sm:$0xff] }
 0x346   : > { %5686 = vmatpush1.bf16.msra.mxu0 %v10506_v33 }
 0x347   : > { %v1667_v3 = vpop.f32.mrb[40].mxu1  ;;  %5687 = vmatprep.subr.bf16.mxu0 %v17408_v54 }
 0x348   : > { %v1668_v26 = vadd.f32 %v1667_v3, %v12333_v8  ;;  %v1669_v16 = vpop.f32.mrb[41].mxu1 }
 0x349   : > { %v1670_v37 = vadd.f32 %v1669_v16, %v12335_v13  ;;  %v1671_v60 = vpop.f32.mrb[42].mxu1 }
 0x34a   : > { %v1672_v6 = vadd.f32 %v1671_v60, %v12333_v8  ;;  %v1673_v48 = vpop.f32.mrb[43].mxu1 }
 0x34b   : > { %v1674_v5 = vadd.f32 %v1673_v48, %v12335_v13 }
 0x34c   : > { %5225 = vmatmul.mubr.bf16.gmra.mrb[148].mxu0 %v3618_v38  ;;  %8439 = vmatmul.mubr.msk.bf16.gmra.mrb[148].mxu1 %vm667_vm0, %v17551_v7  ;;  %v3634_v11 = vpack.c.bf16 %v1672_v6, %v1668_v26  ;;  %v17552_v6 = vld [vmem:[#allocation79_spill] sm:$0xff] }
 0x34d   : > { %5232 = vmatprep.mubr.bf16.mxu0 %v3627_v46  ;;  %v3635_v52 = vpack.c.bf16 %v1674_v5, %v1670_v37  ;;  %1945 = vmatprep.mubr.bf16.mxu1 %v17408_v54 }
 0x34f   : > { %v1677_v38 = vpop.f32.mrb[44].mxu1 }
 0x350   : > { %v1678_v3 = vadd.f32 %v1677_v38, %v12333_v8  ;;  %v1679_v16 = vpop.f32.mrb[45].mxu1 }
 0x351   : > { %v1680_v60 = vadd.f32 %v1679_v16, %v12335_v13  ;;  %v1681_v28 = vpop.f32.mrb[46].mxu1 }
 0x352   : > { %v1682_v46 = vadd.f32 %v1681_v28, %v12333_v8  ;;  %v1683_v48 = vpop.f32.mrb[47].mxu1 }
 0x353   : > { %v1684_v26 = vadd.f32 %v1683_v48, %v12335_v13 }
 0x354   : > { %5233 = vmatmul.mubr.bf16.gmra.mrb[152].mxu0 %v3626_v0  ;;  %8440 = vmatmul.mubr.msk.bf16.gmra.mrb[152].mxu1 %vm667_vm0, %v17552_v6  ;;  %v3642_v37 = vpack.c.bf16 %v1682_v46, %v1678_v3 }
 0x355   : > { %5240 = vmatprep.mubr.bf16.mxu0 %v3635_v52  ;;  %v3643_v33 = vpack.c.bf16 %v1684_v26, %v1680_v60  ;;  %1955 = vmatprep.mubr.bf16.mxu1 %v17408_v54 }
 0x357   : > { %v1687_v5 = vpop.f32.mrb[48].mxu1 }
 0x358   : > { %v1688_v38 = vadd.f32 %v1687_v5, %v12333_v8  ;;  %v1689_v42 = vpop.f32.mrb[49].mxu1 }
 0x359   : > { %v1690_v16 = vadd.f32 %v1689_v42, %v12335_v13  ;;  %v1691_v0 = vpop.f32.mrb[50].mxu1 }
 0x35a   : > { %v1692_v28 = vadd.f32 %v1691_v0, %v12333_v8  ;;  %v1693_v52 = vpop.f32.mrb[51].mxu1 }
 0x35b   : > { %v1694_v48 = vadd.f32 %v1693_v52, %v12335_v13 }
 0x35c   : > { %5241 = vmatmul.mubr.bf16.gmra.mrb[156].mxu0 %v3634_v11  ;;  %8441 = vmatmul.mubr.msk.bf16.gmra.mrb[156].mxu1 %vm667_vm0, %v17553_v18  ;;  %v3650_v3 = vpack.c.bf16 %v1692_v28, %v1688_v38 }
 0x35d   : > { %5248 = vmatprep.mubr.bf16.mxu0 %v3643_v33  ;;  %v3651_v60 = vpack.c.bf16 %v1694_v48, %v1690_v16  ;;  %1965 = vmatprep.mubr.bf16.mxu1 %v17408_v54 }
 0x35f   : > { %v1697_v46 = vpop.f32.mrb[52].mxu1 }
 0x360   : > { %v1698_v26 = vadd.f32 %v1697_v46, %v12333_v8  ;;  %v1699_v5 = vpop.f32.mrb[53].mxu1 }
 0x361   : > { %v1700_v42 = vadd.f32 %v1699_v5, %v12335_v13  ;;  %v1701_v11 = vpop.f32.mrb[54].mxu1 }
 0x362   : > { %v1702_v0 = vadd.f32 %v1701_v11, %v12333_v8  ;;  %v1703_v33 = vpop.f32.mrb[55].mxu1 }
 0x363   : > { %v1704_v52 = vadd.f32 %v1703_v33, %v12335_v13  ;;  %v10507_v33 = vld [vmem:[%s16945_s3 + $0x138] sm:$0xff]  }
 0x364   : > { %5249 = vmatmul.mubr.bf16.gmra.mrb[160].mxu0 %v3642_v37  ;;  %8442 = vmatmul.mubr.msk.bf16.gmra.mrb[160].mxu1 %vm667_vm0, %v17554_v10  ;;  %v3658_v38 = vpack.c.bf16 %v1702_v0, %v1698_v26 }
 0x365   : > { %5256 = vmatprep.mubr.bf16.mxu0 %v3651_v60  ;;  %v3659_v16 = vpack.c.bf16 %v1704_v52, %v1700_v42  ;;  %1975 = vmatprep.mubr.bf16.mxu1 %v17408_v54  ;;  %v17555_v42 = vld [vmem:[#allocation94_spill] sm:$0xff] }
 0x366   : > { %5688 = vmatpush1.bf16.msra.mxu0 %v10507_v33 }
 0x367   : > { %v1707_v28 = vpop.f32.mrb[56].mxu1  ;;  %5689 = vmatprep.subr.bf16.mxu0 %v17408_v54 }
 0x368   : > { %v1708_v48 = vadd.f32 %v1707_v28, %v12333_v8  ;;  %v1709_v46 = vpop.f32.mrb[57].mxu1 }
 0x369   : > { %v1710_v5 = vadd.f32 %v1709_v46, %v12335_v13  ;;  %v1711_v37 = vpop.f32.mrb[58].mxu1 }
 0x36a   : > { %v1712_v11 = vadd.f32 %v1711_v37, %v12333_v8  ;;  %v1713_v60 = vpop.f32.mrb[59].mxu1 }
 0x36b   : > { %v1714_v26 = vadd.f32 %v1713_v60, %v12335_v13 }
 0x36c   : > { %5257 = vmatmul.mubr.bf16.gmra.mrb[164].mxu0 %v3650_v3  ;;  %8443 = vmatmul.mubr.msk.bf16.gmra.mrb[164].mxu1 %vm667_vm0, %v17555_v42  ;;  %v3666_v0 = vpack.c.bf16 %v1712_v11, %v1708_v48  ;;  %v17556_v11 = vld [vmem:[#allocation99_spill] sm:$0xff] }
 0x36d   : > { %5264 = vmatprep.mubr.bf16.mxu0 %v3659_v16  ;;  %v3667_v52 = vpack.c.bf16 %v1714_v26, %v1710_v5  ;;  %1985 = vmatprep.mubr.bf16.mxu1 %v17408_v54 }
 0x36f   : > { %v1717_v3 = vpop.f32.mrb[60].mxu1 }
 0x370   : > { %v1718_v28 = vadd.f32 %v1717_v3, %v12333_v8  ;;  %v1719_v46 = vpop.f32.mrb[61].mxu1 }
 0x371   : > { %v1720_v37 = vadd.f32 %v1719_v46, %v12335_v13  ;;  %v1721_v2 = vpop.f32.mrb[62].mxu1 }
 0x372   : > { %v1722_v16 = vadd.f32 %v1721_v2, %v12333_v8  ;;  %v1723_v60 = vpop.f32.mrb[63].mxu1 }
 0x373   : > { %v1724_v48 = vadd.f32 %v1723_v60, %v12335_v13 }
 0x374   : > { %5265 = vmatmul.mubr.bf16.gmra.mrb[168].mxu0 %v3658_v38  ;;  %8444 = vmatmul.mubr.msk.bf16.gmra.mrb[168].mxu1 %vm667_vm0, %v17556_v11  ;;  %v3674_v5 = vpack.c.bf16 %v1722_v16, %v1718_v28 }
 0x375   : > { %5272 = vmatprep.mubr.bf16.mxu0 %v3667_v52  ;;  %v3675_v33 = vpack.c.bf16 %v1724_v48, %v1720_v37  ;;  %1995 = vmatprep.mubr.bf16.mxu1 %v17408_v54 }
 0x377   : > { %v1727_v26 = vpop.f32.mrb[64].mxu1 }
 0x378   : > { %v1728_v3 = vadd.f32 %v1727_v26, %v12333_v8  ;;  %v1729_v61 = vpop.f32.mrb[65].mxu1 }
 0x379   : > { %v1730_v46 = vadd.f32 %v1729_v61, %v12335_v13  ;;  %v1731_v38 = vpop.f32.mrb[66].mxu1 }
 0x37a   : > { %v1732_v2 = vadd.f32 %v1731_v38, %v12333_v8  ;;  %v1733_v52 = vpop.f32.mrb[67].mxu1 }
 0x37b   : > { %v1734_v60 = vadd.f32 %v1733_v52, %v12335_v13 }
 0x37c   : > { %5273 = vmatmul.mubr.bf16.gmra.mrb[172].mxu0 %v3666_v0  ;;  %8445 = vmatmul.mubr.msk.bf16.gmra.mrb[172].mxu1 %vm667_vm0, %v17557_v57  ;;  %v3682_v28 = vpack.c.bf16 %v1732_v2, %v1728_v3 }
 0x37d   : > { %5280 = vmatprep.mubr.bf16.mxu0 %v3675_v33  ;;  %v3683_v37 = vpack.c.bf16 %v1734_v60, %v1730_v46  ;;  %2005 = vmatprep.mubr.bf16.mxu1 %v17408_v54 }
 0x37f   : > { %v1737_v16 = vpop.f32.mrb[68].mxu1 }
 0x380   : > { %v1738_v48 = vadd.f32 %v1737_v16, %v12333_v8  ;;  %v1739_v26 = vpop.f32.mrb[69].mxu1 }
 0x381   : > { %v1740_v61 = vadd.f32 %v1739_v26, %v12335_v13  ;;  %v1741_v0 = vpop.f32.mrb[70].mxu1 }
 0x382   : > { %v1742_v38 = vadd.f32 %v1741_v0, %v12333_v8  ;;  %v1743_v33 = vpop.f32.mrb[71].mxu1 }
 0x383   : > { %v1744_v52 = vadd.f32 %v1743_v33, %v12335_v13  ;;  %v10508_v33 = vld [vmem:[%s16945_s3 + $0x140] sm:$0xff]  }
 0x384   : > { %5281 = vmatmul.mubr.bf16.gmra.mrb[176].mxu0 %v3674_v5  ;;  %8446 = vmatmul.mubr.msk.bf16.gmra.mrb[176].mxu1 %vm667_vm0, %v17558_v53  ;;  %v3690_v3 = vpack.c.bf16 %v1742_v38, %v1738_v48 }
 0x385   : > { %5288 = vmatprep.mubr.bf16.mxu0 %v3683_v37  ;;  %v3691_v46 = vpack.c.bf16 %v1744_v52, %v1740_v61  ;;  %2015 = vmatprep.mubr.bf16.mxu1 %v17408_v54  ;;  %v17559_v61 = vld [vmem:[#allocation114_spill] sm:$0xff] }
 0x386   : > { %5690 = vmatpush1.bf16.msra.mxu0 %v10508_v33 }
 0x387   : > { %v1747_v2 = vpop.f32.mrb[72].mxu1  ;;  %5691 = vmatprep.subr.bf16.mxu0 %v17408_v54 }
 0x388   : > { %v1748_v60 = vadd.f32 %v1747_v2, %v12333_v8  ;;  %v1749_v16 = vpop.f32.mrb[73].mxu1 }
 0x389   : > { %v1750_v26 = vadd.f32 %v1749_v16, %v12335_v13  ;;  %v1751_v5 = vpop.f32.mrb[74].mxu1 }
 0x38a   : > { %v1752_v0 = vadd.f32 %v1751_v5, %v12333_v8  ;;  %v1753_v37 = vpop.f32.mrb[75].mxu1 }
 0x38b   : > { %v1754_v48 = vadd.f32 %v1753_v37, %v12335_v13 }
 0x38c   : > { %5289 = vmatmul.mubr.bf16.gmra.mrb[180].mxu0 %v3682_v28  ;;  %8447 = vmatmul.mubr.msk.bf16.gmra.mrb[180].mxu1 %vm667_vm0, %v17559_v61  ;;  %v3698_v38 = vpack.c.bf16 %v1752_v0, %v1748_v60  ;;  %v17560_v0 = vld [vmem:[#allocation119_spill] sm:$0xff] }
 0x38d   : > { %5296 = vmatprep.mubr.bf16.mxu0 %v3691_v46  ;;  %v3699_v52 = vpack.c.bf16 %v1754_v48, %v1750_v26  ;;  %2025 = vmatprep.mubr.bf16.mxu1 %v17408_v54 }
 0x38f   : > { %v1757_v28 = vpop.f32.mrb[76].mxu1 }
 0x390   : > { %v1758_v2 = vadd.f32 %v1757_v28, %v12333_v8  ;;  %v1759_v16 = vpop.f32.mrb[77].mxu1 }
 0x391   : > { %v1760_v5 = vadd.f32 %v1759_v16, %v12335_v13  ;;  %v1761_v49 = vpop.f32.mrb[78].mxu1 }
 0x392   : > { %v1762_v46 = vadd.f32 %v1761_v49, %v12333_v8  ;;  %v1763_v37 = vpop.f32.mrb[79].mxu1 }
 0x393   : > { %v1764_v60 = vadd.f32 %v1763_v37, %v12335_v13 }
 0x394   : > { %5297 = vmatmul.mubr.bf16.gmra.mrb[184].mxu0 %v3690_v3  ;;  %8448 = vmatmul.mubr.msk.bf16.gmra.mrb[184].mxu1 %vm667_vm0, %v17560_v0  ;;  %v3706_v26 = vpack.c.bf16 %v1762_v46, %v1758_v2 }
 0x395   : > { %5304 = vmatprep.mubr.bf16.mxu0 %v3699_v52  ;;  %v3707_v33 = vpack.c.bf16 %v1764_v60, %v1760_v5  ;;  %2035 = vmatprep.mubr.bf16.mxu1 %v17408_v54 }
 0x397   : > { %v1767_v48 = vpop.f32.mrb[80].mxu1 }
 0x398   : > { %v1768_v28 = vadd.f32 %v1767_v48, %v12333_v8  ;;  %v1769_v47 = vpop.f32.mrb[81].mxu1 }
 0x399   : > { %v1770_v16 = vadd.f32 %v1769_v47, %v12335_v13  ;;  %v1771_v3 = vpop.f32.mrb[82].mxu1 }
 0x39a   : > { %v1772_v49 = vadd.f32 %v1771_v3, %v12333_v8  ;;  %v1773_v52 = vpop.f32.mrb[83].mxu1 }
 0x39b   : > { %v1774_v37 = vadd.f32 %v1773_v52, %v12335_v13 }
 0x39c   : > { %5305 = vmatmul.mubr.bf16.gmra.mrb[188].mxu0 %v3698_v38  ;;  %8449 = vmatmul.mubr.msk.bf16.gmra.mrb[188].mxu1 %vm667_vm0, %v17561_v41  ;;  %v3714_v2 = vpack.c.bf16 %v1772_v49, %v1768_v28 }
 0x39d   : > { %5312 = vmatprep.mubr.bf16.mxu0 %v3707_v33  ;;  %v3715_v5 = vpack.c.bf16 %v1774_v37, %v1770_v16  ;;  %2045 = vmatprep.mubr.bf16.mxu1 %v17408_v54 }
 0x39f   : > { %v1777_v46 = vpop.f32.mrb[84].mxu1 }
 0x3a0   : > { %v1778_v60 = vadd.f32 %v1777_v46, %v12333_v8  ;;  %v1779_v48 = vpop.f32.mrb[85].mxu1 }
 0x3a1   : > { %v1780_v47 = vadd.f32 %v1779_v48, %v12335_v13  ;;  %v1781_v38 = vpop.f32.mrb[86].mxu1 }
 0x3a2   : > { %v1782_v3 = vadd.f32 %v1781_v38, %v12333_v8  ;;  %v1783_v33 = vpop.f32.mrb[87].mxu1 }
 0x3a3   : > { %v1784_v52 = vadd.f32 %v1783_v33, %v12335_v13  ;;  %v10509_v33 = vld [vmem:[%s16945_s3 + $0x148] sm:$0xff]  }
 0x3a4   : > { %5313 = vmatmul.mubr.bf16.gmra.mrb[192].mxu0 %v3706_v26  ;;  %8450 = vmatmul.mubr.msk.bf16.gmra.mrb[192].mxu1 %vm667_vm0, %v17562_v35  ;;  %v3722_v28 = vpack.c.bf16 %v1782_v3, %v1778_v60 }
 0x3a5   : > { %5320 = vmatprep.mubr.bf16.mxu0 %v3715_v5  ;;  %v3723_v16 = vpack.c.bf16 %v1784_v52, %v1780_v47  ;;  %2055 = vmatprep.mubr.bf16.mxu1 %v17408_v54  ;;  %v17563_v47 = vld [vmem:[#allocation134_spill] sm:$0xff] }
 0x3a6   : > { %5692 = vmatpush1.bf16.msra.mxu0 %v10509_v33 }
 0x3a7   : > { %v1787_v49 = vpop.f32.mrb[88].mxu1  ;;  %5693 = vmatprep.subr.bf16.mxu0 %v17408_v54 }
 0x3a8   : > { %v1788_v37 = vadd.f32 %v1787_v49, %v12333_v8  ;;  %v1789_v46 = vpop.f32.mrb[89].mxu1 }
 0x3a9   : > { %v1790_v48 = vadd.f32 %v1789_v46, %v12335_v13  ;;  %v1791_v26 = vpop.f32.mrb[90].mxu1 }
 0x3aa   : > { %v1792_v38 = vadd.f32 %v1791_v26, %v12333_v8  ;;  %v1793_v5 = vpop.f32.mrb[91].mxu1 }
 0x3ab   : > { %v1794_v60 = vadd.f32 %v1793_v5, %v12335_v13 }
 0x3ac   : > { %5321 = vmatmul.mubr.bf16.gmra.mrb[196].mxu0 %v3714_v2  ;;  %8451 = vmatmul.mubr.msk.bf16.gmra.mrb[196].mxu1 %vm667_vm0, %v17563_v47  ;;  %v3730_v3 = vpack.c.bf16 %v1792_v38, %v1788_v37  ;;  %v17564_v38 = vld [vmem:[#allocation139_spill] sm:$0xff] }
 0x3ad   : > { %5328 = vmatprep.mubr.bf16.mxu0 %v3723_v16  ;;  %v3731_v52 = vpack.c.bf16 %v1794_v60, %v1790_v48  ;;  %2065 = vmatprep.mubr.bf16.mxu1 %v17408_v54 }
 0x3af   : > { %v1797_v2 = vpop.f32.mrb[92].mxu1 }
 0x3b0   : > { %v1798_v49 = vadd.f32 %v1797_v2, %v12333_v8  ;;  %v1799_v46 = vpop.f32.mrb[93].mxu1 }
 0x3b1   : > { %v1800_v26 = vadd.f32 %v1799_v46, %v12335_v13  ;;  %v1801_v31 = vpop.f32.mrb[94].mxu1 }
 0x3b2   : > { %v1802_v16 = vadd.f32 %v1801_v31, %v12333_v8  ;;  %v1803_v5 = vpop.f32.mrb[95].mxu1 }
 0x3b3   : > { %v1804_v37 = vadd.f32 %v1803_v5, %v12335_v13 }
 0x3b4   : > { %5329 = vmatmul.mubr.bf16.gmra.mrb[200].mxu0 %v3722_v28  ;;  %8452 = vmatmul.mubr.msk.bf16.gmra.mrb[200].mxu1 %vm667_vm0, %v17564_v38  ;;  %v3738_v48 = vpack.c.bf16 %v1802_v16, %v1798_v49 }
 0x3b5   : > { %5336 = vmatprep.mubr.bf16.mxu0 %v3731_v52  ;;  %v3739_v33 = vpack.c.bf16 %v1804_v37, %v1800_v26  ;;  %2075 = vmatprep.mubr.bf16.mxu1 %v17408_v54 }
 0x3b7   : > { %v1807_v60 = vpop.f32.mrb[96].mxu1 }
 0x3b8   : > { %v1808_v2 = vadd.f32 %v1807_v60, %v12333_v8  ;;  %v1809_v27 = vpop.f32.mrb[97].mxu1 }
 0x3b9   : > { %v1810_v46 = vadd.f32 %v1809_v27, %v12335_v13  ;;  %v1811_v28 = vpop.f32.mrb[98].mxu1 }
 0x3ba   : > { %v1812_v31 = vadd.f32 %v1811_v28, %v12333_v8  ;;  %v1813_v52 = vpop.f32.mrb[99].mxu1 }
 0x3bb   : > { %v1814_v5 = vadd.f32 %v1813_v52, %v12335_v13 }
 0x3bc   : > { %5337 = vmatmul.mubr.bf16.gmra.mrb[204].mxu0 %v3730_v3  ;;  %8453 = vmatmul.mubr.msk.bf16.gmra.mrb[204].mxu1 %vm667_vm0, %v17565_v24  ;;  %v3746_v49 = vpack.c.bf16 %v1812_v31, %v1808_v2 }
 0x3bd   : > { %5344 = vmatprep.mubr.bf16.mxu0 %v3739_v33  ;;  %v3747_v26 = vpack.c.bf16 %v1814_v5, %v1810_v46  ;;  %2085 = vmatprep.mubr.bf16.mxu1 %v17408_v54 }
 0x3bf   : > { %v1817_v16 = vpop.f32.mrb[100].mxu1 }
 0x3c0   : > { %v1818_v37 = vadd.f32 %v1817_v16, %v12333_v8  ;;  %v1819_v60 = vpop.f32.mrb[101].mxu1 }
 0x3c1   : > { %v1820_v27 = vadd.f32 %v1819_v60, %v12335_v13  ;;  %v1821_v3 = vpop.f32.mrb[102].mxu1 }
 0x3c2   : > { %v1822_v28 = vadd.f32 %v1821_v3, %v12333_v8  ;;  %v1823_v33 = vpop.f32.mrb[103].mxu1 }
 0x3c3   : > { %v1824_v52 = vadd.f32 %v1823_v33, %v12335_v13  ;;  %v10510_v33 = vld [vmem:[%s16945_s3 + $0x150] sm:$0xff]  }
 0x3c4   : > { %5345 = vmatmul.mubr.bf16.gmra.mrb[208].mxu0 %v3738_v48  ;;  %8454 = vmatmul.mubr.msk.bf16.gmra.mrb[208].mxu1 %vm667_vm0, %v17566_v20  ;;  %v3754_v2 = vpack.c.bf16 %v1822_v28, %v1818_v37 }
 0x3c5   : > { %5352 = vmatprep.mubr.bf16.mxu0 %v3747_v26  ;;  %v3755_v46 = vpack.c.bf16 %v1824_v52, %v1820_v27  ;;  %2095 = vmatprep.mubr.bf16.mxu1 %v17408_v54  ;;  %v17567_v27 = vld [vmem:[#allocation154_spill] sm:$0xff] }
 0x3c6   : > { %5694 = vmatpush1.bf16.msra.mxu0 %v10510_v33 }
 0x3c7   : > { %v1827_v31 = vpop.f32.mrb[104].mxu1  ;;  %5695 = vmatprep.subr.bf16.mxu0 %v17408_v54 }
 0x3c8   : > { %v1828_v5 = vadd.f32 %v1827_v31, %v12333_v8  ;;  %v1829_v16 = vpop.f32.mrb[105].mxu1 }
 0x3c9   : > { %v1830_v60 = vadd.f32 %v1829_v16, %v12335_v13  ;;  %v1831_v48 = vpop.f32.mrb[106].mxu1 }
 0x3ca   : > { %v1832_v3 = vadd.f32 %v1831_v48, %v12333_v8  ;;  %v1833_v26 = vpop.f32.mrb[107].mxu1 }
 0x3cb   : > { %v1834_v37 = vadd.f32 %v1833_v26, %v12335_v13 }
 0x3cc   : > { %5353 = vmatmul.mubr.bf16.gmra.mrb[212].mxu0 %v3746_v49  ;;  %8455 = vmatmul.mubr.msk.bf16.gmra.mrb[212].mxu1 %vm667_vm0, %v17567_v27  ;;  %v3762_v28 = vpack.c.bf16 %v1832_v3, %v1828_v5 }
 0x3cd   : > { %5360 = vmatprep.mubr.bf16.mxu0 %v3755_v46  ;;  %v3763_v52 = vpack.c.bf16 %v1834_v37, %v1830_v60  ;;  %2105 = vmatprep.mubr.bf16.mxu1 %v17408_v54 }
 0x3cf   : > { %v1837_v49 = vpop.f32.mrb[108].mxu1 }
 0x3d0   : > { %v1838_v31 = vadd.f32 %v1837_v49, %v12333_v8  ;;  %v1839_v16 = vpop.f32.mrb[109].mxu1 }
 0x3d1   : > { %v1840_v48 = vadd.f32 %v1839_v16, %v12335_v13  ;;  %v1841_v17 = vpop.f32.mrb[110].mxu1 }
 0x3d2   : > { %v1842_v46 = vadd.f32 %v1841_v17, %v12333_v8  ;;  %v1843_v26 = vpop.f32.mrb[111].mxu1 }
 0x3d3   : > { %v1844_v5 = vadd.f32 %v1843_v26, %v12335_v13 }
 0x3d4   : > { %5361 = vmatmul.mubr.bf16.gmra.mrb[216].mxu0 %v3754_v2  ;;  %8456 = vmatmul.mubr.msk.bf16.gmra.mrb[216].mxu1 %vm667_vm0, %v11978_v44  ;;  %v3770_v60 = vpack.c.bf16 %v1842_v46, %v1838_v31 }
 0x3d5   : > { %5368 = vmatprep.mubr.bf16.mxu0 %v3763_v52  ;;  %v3771_v3 = vpack.c.bf16 %v1844_v5, %v1840_v48  ;;  %2115 = vmatprep.mubr.bf16.mxu1 %v17408_v54 }
 0x3d7   : > { %v1847_v33 = vpop.f32.mrb[112].mxu1 }
 0x3d8   : > { %v1848_v37 = vadd.f32 %v1847_v33, %v12333_v8  ;;  %v1849_v49 = vpop.f32.mrb[113].mxu1 }
 0x3d9   : > { %v1850_v16 = vadd.f32 %v1849_v49, %v12335_v13  ;;  %v1851_v2 = vpop.f32.mrb[114].mxu1 }
 0x3da   : > { %v1852_v17 = vadd.f32 %v1851_v2, %v12333_v8  ;;  %v1853_v52 = vpop.f32.mrb[115].mxu1 }
 0x3db   : > { %v1854_v26 = vadd.f32 %v1853_v52, %v12335_v13 }
 0x3dc   : > { %5369 = vmatmul.mubr.bf16.gmra.mrb[220].mxu0 %v3762_v28  ;;  %8457 = vmatmul.mubr.msk.bf16.gmra.mrb[220].mxu1 %vm667_vm0, %v12005_v59  ;;  %v3778_v31 = vpack.c.bf16 %v1852_v17, %v1848_v37 }
 0x3dd   : > { %5376 = vmatprep.mubr.bf16.mxu0 %v3771_v3  ;;  %v3779_v48 = vpack.c.bf16 %v1854_v26, %v1850_v16  ;;  %2125 = vmatprep.mubr.bf16.mxu1 %v17408_v54 }
 0x3df   : > { %v1857_v46 = vpop.f32.mrb[116].mxu1 }
 0x3e0   : > { %v1858_v5 = vadd.f32 %v1857_v46, %v12333_v8  ;;  %v1859_v33 = vpop.f32.mrb[117].mxu1 }
 0x3e1   : > { %v1860_v49 = vadd.f32 %v1859_v33, %v12335_v13  ;;  %v1861_v28 = vpop.f32.mrb[118].mxu1 }
 0x3e2   : > { %v1862_v2 = vadd.f32 %v1861_v28, %v12333_v8  ;;  %v1863_v3 = vpop.f32.mrb[119].mxu1 }
 0x3e3   : > { %v1864_v52 = vadd.f32 %v1863_v3, %v12335_v13  ;;  %v10511_v3 = vld [vmem:[%s16945_s3 + $0x158] sm:$0xff]  }
 0x3e4   : > { %5377 = vmatmul.mubr.bf16.gmra.mrb[224].mxu0 %v3770_v60  ;;  %8458 = vmatmul.mubr.msk.bf16.gmra.mrb[224].mxu1 %vm667_vm0, %v12032_v4  ;;  %v3786_v37 = vpack.c.bf16 %v1862_v2, %v1858_v5 }
 0x3e5   : > { %5384 = vmatprep.mubr.bf16.mxu0 %v3779_v48  ;;  %v3787_v16 = vpack.c.bf16 %v1864_v52, %v1860_v49  ;;  %2135 = vmatprep.mubr.bf16.mxu1 %v17408_v54 }
 0x3e6   : > { %5696 = vmatpush1.bf16.msra.mxu0 %v10511_v3 }
 0x3e7   : > { %v1867_v17 = vpop.f32.mrb[120].mxu1  ;;  %5697 = vmatprep.subr.bf16.mxu0 %v17408_v54 }
 0x3e8   : > { %v1868_v26 = vadd.f32 %v1867_v17, %v12333_v8  ;;  %v1869_v46 = vpop.f32.mrb[121].mxu1 }
 0x3e9   : > { %v1870_v33 = vadd.f32 %v1869_v46, %v12335_v13  ;;  %v1871_v60 = vpop.f32.mrb[122].mxu1 }
 0x3ea   : > { %v1872_v28 = vadd.f32 %v1871_v60, %v12333_v8  ;;  %v1873_v48 = vpop.f32.mrb[123].mxu1 }
 0x3eb   : > { %v1874_v5 = vadd.f32 %v1873_v48, %v12335_v13 }
 0x3ec   : > { %5385 = vmatmul.mubr.bf16.gmra.mrb[228].mxu0 %v3778_v31  ;;  %8459 = vmatmul.mubr.msk.bf16.gmra.mrb[228].mxu1 %vm667_vm0, %v12043_v21  ;;  %v3794_v49 = vpack.c.bf16 %v1872_v28, %v1868_v26 }
 0x3ed   : > { %5392 = vmatprep.mubr.bf16.mxu0 %v3787_v16  ;;  %v3795_v2 = vpack.c.bf16 %v1874_v5, %v1870_v33  ;;  %2145 = vmatprep.mubr.bf16.mxu1 %v17408_v54 }
 0x3ef   : > { %v1877_v31 = vpop.f32.mrb[124].mxu1 }
 0x3f0   : > { %v1878_v52 = vadd.f32 %v1877_v31, %v12333_v8  ;;  %v1879_v17 = vpop.f32.mrb[125].mxu1 }
 0x3f1   : > { %v1880_v46 = vadd.f32 %v1879_v17, %v12335_v13  ;;  %v1881_v60 = vpop.f32.mrb[126].mxu1 }
 0x3f2   : > { %v1882_v16 = vadd.f32 %v1881_v60, %v12333_v8  ;;  %v1883_v48 = vpop.f32.mrb[127].mxu1 }
 0x3f3   : > { %v1884_v26 = vadd.f32 %v1883_v48, %v12335_v13 }
 0x3f4   : > { %5393 = vmatmul.mubr.bf16.gmra.mrb[232].mxu0 %v3786_v37  ;;  %8460 = vmatmul.mubr.msk.bf16.gmra.mrb[232].mxu1 %vm667_vm0, %v12058_v63  ;;  %v3802_v33 = vpack.c.bf16 %v1882_v16, %v1878_v52 }
 0x3f5   : > { %5400 = vmatprep.mubr.bf16.mxu0 %v3795_v2  ;;  %v3803_v28 = vpack.c.bf16 %v1884_v26, %v1880_v46  ;;  %2155 = vmatprep.mubr.bf16.mxu1 %v17408_v54 }
 0x3f7   : > { %v1887_v3 = vpop.f32.mrb[128].mxu1 }
 0x3f8   : > { %v1888_v5 = vadd.f32 %v1887_v3, %v12333_v8  ;;  %v1889_v31 = vpop.f32.mrb[129].mxu1 }
 0x3f9   : > { %v1890_v17 = vadd.f32 %v1889_v31, %v12335_v13  ;;  %v1891_v37 = vpop.f32.mrb[130].mxu1 }
 0x3fa   : > { %v1892_v60 = vadd.f32 %v1891_v37, %v12333_v8  ;;  %v1893_v2 = vpop.f32.mrb[131].mxu1 }
 0x3fb   : > { %v1894_v48 = vadd.f32 %v1893_v2, %v12335_v13 }
 0x3fc   : > { %5401 = vmatmul.mubr.bf16.gmra.mrb[236].mxu0 %v3794_v49  ;;  %8461 = vmatmul.mubr.msk.bf16.gmra.mrb[236].mxu1 %vm667_vm0, %v12069_v22  ;;  %v3810_v52 = vpack.c.bf16 %v1892_v60, %v1888_v5 }
 0x3fd   : > { %5408 = vmatprep.mubr.bf16.mxu0 %v3803_v28  ;;  %v3811_v46 = vpack.c.bf16 %v1894_v48, %v1890_v17  ;;  %2165 = vmatprep.mubr.bf16.mxu1 %v17408_v54 }
 0x3ff   : > { %v1897_v16 = vpop.f32.mrb[132].mxu1 }
 0x400   : > { %v1898_v26 = vadd.f32 %v1897_v16, %v12333_v8  ;;  %v1899_v3 = vpop.f32.mrb[133].mxu1 }
 0x401   : > { %v1900_v31 = vadd.f32 %v1899_v3, %v12335_v13  ;;  %v1901_v49 = vpop.f32.mrb[134].mxu1 }
 0x402   : > { %v1902_v37 = vadd.f32 %v1901_v49, %v12333_v8  ;;  %v1903_v28 = vpop.f32.mrb[135].mxu1 }
 0x403   : > { %v1904_v2 = vadd.f32 %v1903_v28, %v12335_v13  ;;  %v10512_v28 = vld [vmem:[%s16945_s3 + $0x160] sm:$0xff]  }
 0x404   : > { %5409 = vmatmul.mubr.bf16.gmra.mrb[240].mxu0 %v3802_v33  ;;  %8462 = vmatmul.mubr.msk.bf16.gmra.mrb[240].mxu1 %vm667_vm0, %v12080_v19  ;;  %v3818_v5 = vpack.c.bf16 %v1902_v37, %v1898_v26 }
 0x405   : > { %5416 = vmatprep.mubr.bf16.mxu0 %v3811_v46  ;;  %v3819_v17 = vpack.c.bf16 %v1904_v2, %v1900_v31  ;;  %2175 = vmatprep.mubr.bf16.mxu1 %v17408_v54  ;;  %v17568_v31 = vld [vmem:[#allocation174_spill] sm:$0xff] }
 0x406   : > { %5698 = vmatpush1.bf16.msra.mxu0 %v10512_v28 }
 0x407   : > { %v1907_v60 = vpop.f32.mrb[136].mxu1  ;;  %5699 = vmatprep.subr.bf16.mxu0 %v17408_v54 }
 0x408   : > { %v1908_v48 = vadd.f32 %v1907_v60, %v12333_v8  ;;  %v1909_v16 = vpop.f32.mrb[137].mxu1 }
 0x409   : > { %v1910_v3 = vadd.f32 %v1909_v16, %v12335_v13  ;;  %v1911_v33 = vpop.f32.mrb[138].mxu1 }
 0x40a   : > { %v1912_v49 = vadd.f32 %v1911_v33, %v12333_v8  ;;  %v1913_v46 = vpop.f32.mrb[139].mxu1 }
 0x40b   : > { %v1914_v26 = vadd.f32 %v1913_v46, %v12335_v13 }
 0x40c   : > { %5417 = vmatmul.mubr.bf16.gmra.mrb[244].mxu0 %v3810_v52  ;;  %8463 = vmatmul.mubr.msk.bf16.gmra.mrb[244].mxu1 %vm667_vm0, %v17568_v31  ;;  %v3826_v37 = vpack.c.bf16 %v1912_v49, %v1908_v48 }
 0x40d   : > { %5424 = vmatprep.mubr.bf16.mxu0 %v3819_v17  ;;  %v3827_v2 = vpack.c.bf16 %v1914_v26, %v1910_v3  ;;  %2185 = vmatprep.mubr.bf16.mxu1 %v17408_v54 }
 0x40f   : > { %v1917_v52 = vpop.f32.mrb[140].mxu1 }
 0x410   : > { %v1918_v60 = vadd.f32 %v1917_v52, %v12333_v8  ;;  %v1919_v16 = vpop.f32.mrb[141].mxu1 }
 0x411   : > { %v1920_v33 = vadd.f32 %v1919_v16, %v12335_v13  ;;  %v1921_v12 = vpop.f32.mrb[142].mxu1 }
 0x412   : > { %v1922_v17 = vadd.f32 %v1921_v12, %v12333_v8  ;;  %v1923_v46 = vpop.f32.mrb[143].mxu1 }
 0x413   : > { %v1924_v48 = vadd.f32 %v1923_v46, %v12335_v13 }
 0x414   : > { %5425 = vmatmul.mubr.bf16.gmra.mrb[248].mxu0 %v3818_v5  ;;  %v3834_v49 = vpack.c.bf16 %v1922_v17, %v1918_v60  ;;  %8464 = vmatmul.mubr.msk.bf16.gmra.mrb[248].mxu1 %vm667_vm0, %v12106_v51 }
 0x415   : > { %5432 = vmatprep.mubr.bf16.mxu0 %v3827_v2  ;;  %v3835_v3 = vpack.c.bf16 %v1924_v48, %v1920_v33  ;;  %2195 = vmatprep.mubr.bf16.mxu1 %v17408_v54 }
 0x417   : > { %v1927_v28 = vpop.f32.mrb[144].mxu1 }
 0x418   : > { %v1928_v26 = vadd.f32 %v1927_v28, %v12333_v8  ;;  %v1929_v52 = vpop.f32.mrb[145].mxu1 }
 0x419   : > { %v1930_v16 = vadd.f32 %v1929_v52, %v12335_v13  ;;  %v1931_v5 = vpop.f32.mrb[146].mxu1 }
 0x41a   : > { %v1932_v12 = vadd.f32 %v1931_v5, %v12333_v8  ;;  %v1933_v2 = vpop.f32.mrb[147].mxu1 }
 0x41b   : > { %v1934_v60 = vadd.f32 %v1933_v2, %v12335_v13 }
 0x41c   : > { %5433 = vmatmul.mubr.bf16.gmra.mrb[252].mxu0 %v3826_v37  ;;  %v3842_v17 = vpack.c.bf16 %v1932_v12, %v1928_v26  ;;  %8465 = vmatmul.mubr.msk.bf16.gmra.mrb[252].mxu1 %vm667_vm0, %v12117_v30 }
 0x41d   : > { %5440 = vmatprep.mubr.bf16.mxu0 %v3835_v3  ;;  %v3843_v33 = vpack.c.bf16 %v1934_v60, %v1930_v16  ;;  %2528 = vmatprep.mubr.bf16.mxu1 %v17408_v54 }
 0x41f   : > { %v1937_v46 = vpop.f32.mrb[148].mxu1 }
 0x420   : > { %v1938_v48 = vadd.f32 %v1937_v46, %v12333_v8  ;;  %v1939_v28 = vpop.f32.mrb[149].mxu1 }
 0x421   : > { %v1940_v52 = vadd.f32 %v1939_v28, %v12335_v13  ;;  %v1941_v37 = vpop.f32.mrb[150].mxu1 }
 0x422   : > { %v1942_v5 = vadd.f32 %v1941_v37, %v12333_v8  ;;  %v1943_v3 = vpop.f32.mrb[151].mxu1 }
 0x423   : > { %v1944_v26 = vadd.f32 %v1943_v3, %v12335_v13 }
 0x424   : > { %5441 = vmatmul.mubr.bf16.gmra.mrb[0].mxu0 %v3834_v49  ;;  %v3850_v12 = vpack.c.bf16 %v1942_v5, %v1938_v48  ;;  %8495 = vmatmul.mubr.msk.bf16.vlgmr.msra.gmra.mrb[0].mxu1 %vm667_vm0, %v11186_v14  ;;  %v10513_v48 = vld [vmem:[%s16945_s3 + $0x168] sm:$0xff]  }
 0x425   : > { %5448 = vmatprep.mubr.bf16.mxu0 %v3843_v33  ;;  %v3851_v16 = vpack.c.bf16 %v1944_v26, %v1940_v52  ;;  %2538 = vmatprep.mubr.bf16.mxu1 %v17408_v54 }
 0x426   : > { %5700 = vmatpush1.bf16.msra.mxu0 %v10513_v48 }
 0x427   : > { %v1947_v2 = vpop.f32.mrb[152].mxu1  ;;  %5701 = vmatprep.subr.bf16.mxu0 %v17408_v54 }
 0x428   : > { %v1948_v60 = vadd.f32 %v1947_v2, %v12333_v8  ;;  %v1949_v46 = vpop.f32.mrb[153].mxu1 }
 0x429   : > { %v1950_v28 = vadd.f32 %v1949_v46, %v12335_v13  ;;  %v1951_v49 = vpop.f32.mrb[154].mxu1 }
 0x42a   : > { %v1952_v37 = vadd.f32 %v1951_v49, %v12333_v8  ;;  %v1953_v33 = vpop.f32.mrb[155].mxu1 }
 0x42b   : > { %v1954_v52 = vadd.f32 %v1953_v33, %v12335_v13 }
 0x42c   : > { %5449 = vmatmul.mubr.bf16.gmra.mrb[4].mxu0 %v3842_v17  ;;  %v3858_v5 = vpack.c.bf16 %v1952_v37, %v1948_v60  ;;  %8496 = vmatmul.mubr.msk.bf16.gmra.mrb[4].mxu1 %vm667_vm0, %v11226_v39 }
 0x42d   : > { %5456 = vmatprep.mubr.bf16.mxu0 %v3851_v16  ;;  %v3859_v3 = vpack.c.bf16 %v1954_v52, %v1950_v28  ;;  %2548 = vmatprep.mubr.bf16.mxu1 %v17408_v54 }
 0x42f   : > { %v1957_v17 = vpop.f32.mrb[156].mxu1 }
 0x430   : > { %v1958_v26 = vadd.f32 %v1957_v17, %v12333_v8  ;;  %v1959_v2 = vpop.f32.mrb[157].mxu1 }
 0x431   : > { %v1960_v46 = vadd.f32 %v1959_v2, %v12335_v13  ;;  %v1961_v49 = vpop.f32.mrb[158].mxu1 }
 0x432   : > { %v1962_v16 = vadd.f32 %v1961_v49, %v12333_v8  ;;  %v1963_v60 = vpop.f32.mrb[159].mxu1 }
 0x433   : > { %v1964_v37 = vadd.f32 %v1963_v60, %v12335_v13 }
 0x434   : > { %5457 = vmatmul.mubr.bf16.gmra.mrb[8].mxu0 %v3850_v12  ;;  %v3866_v33 = vpack.c.bf16 %v1962_v16, %v1958_v26  ;;  %8497 = vmatmul.mubr.msk.bf16.gmra.mrb[8].mxu1 %vm667_vm0, %v11264_v36  ;;  %v17707_v36 = vld [vmem:[#allocation8_spill] sm:$0xff] }
 0x435   : > { %5464 = vmatprep.mubr.bf16.mxu0 %v3859_v3  ;;  %v3867_v28 = vpack.c.bf16 %v1964_v37, %v1960_v46  ;;  %2558 = vmatprep.mubr.bf16.mxu1 %v17408_v54 }
 0x437   : > { %v1967_v48 = vpop.f32.mrb[160].mxu1 }
 0x438   : > { %v1968_v52 = vadd.f32 %v1967_v48, %v12333_v8  ;;  %v1969_v17 = vpop.f32.mrb[161].mxu1 }
 0x439   : > { %v1970_v2 = vadd.f32 %v1969_v17, %v12335_v13  ;;  %v1971_v12 = vpop.f32.mrb[162].mxu1 }
 0x43a   : > { %v1972_v49 = vadd.f32 %v1971_v12, %v12333_v8  ;;  %v1973_v3 = vpop.f32.mrb[163].mxu1 }
 0x43b   : > { %v1974_v26 = vadd.f32 %v1973_v3, %v12335_v13 }
 0x43c   : > { %5465 = vmatmul.mubr.bf16.gmra.mrb[12].mxu0 %v3858_v5  ;;  %v3874_v16 = vpack.c.bf16 %v1972_v49, %v1968_v52  ;;  %8498 = vmatmul.mubr.msk.bf16.gmra.mrb[12].mxu1 %vm667_vm0, %v11296_v56 }
 0x43d   : > { %5472 = vmatprep.mubr.bf16.mxu0 %v3867_v28  ;;  %v3875_v46 = vpack.c.bf16 %v1974_v26, %v1970_v2  ;;  %2568 = vmatprep.mubr.bf16.mxu1 %v17408_v54 }
 0x43f   : > { %v1977_v60 = vpop.f32.mrb[164].mxu1 }
 0x440   : > { %v1978_v37 = vadd.f32 %v1977_v60, %v12333_v8  ;;  %v1979_v48 = vpop.f32.mrb[165].mxu1 }
 0x441   : > { %v1980_v17 = vadd.f32 %v1979_v48, %v12335_v13  ;;  %v1981_v5 = vpop.f32.mrb[166].mxu1 }
 0x442   : > { %v1982_v12 = vadd.f32 %v1981_v5, %v12333_v8  ;;  %v1983_v28 = vpop.f32.mrb[167].mxu1 }
 0x443   : > { %v1984_v52 = vadd.f32 %v1983_v28, %v12335_v13 }
 0x444   : > { %5473 = vmatmul.mubr.bf16.gmra.mrb[16].mxu0 %v3866_v33  ;;  %v3882_v49 = vpack.c.bf16 %v1982_v12, %v1978_v37  ;;  %8499 = vmatmul.mubr.msk.bf16.gmra.mrb[16].mxu1 %vm667_vm0, %v17547_v43  ;;  %v10514_v37 = vld [vmem:[%s16945_s3 + $0x170] sm:$0xff]  }
 0x445   : > { %5480 = vmatprep.mubr.bf16.mxu0 %v3875_v46  ;;  %v3883_v2 = vpack.c.bf16 %v1984_v52, %v1980_v17  ;;  %2578 = vmatprep.mubr.bf16.mxu1 %v17408_v54  ;;  %v17689_v43 = vld [vmem:[#allocation6_spill] sm:$0xff] }
 0x446   : > { %5702 = vmatpush1.bf16.msra.mxu0 %v10514_v37 }
 0x447   : > { %v1987_v3 = vpop.f32.mrb[168].mxu1  ;;  %5703 = vmatprep.subr.bf16.mxu0 %v17408_v54 }
 0x448   : > { %v1988_v26 = vadd.f32 %v1987_v3, %v12333_v8  ;;  %v1989_v60 = vpop.f32.mrb[169].mxu1 }
 0x449   : > { %v1990_v48 = vadd.f32 %v1989_v60, %v12335_v13  ;;  %v1991_v33 = vpop.f32.mrb[170].mxu1 }
 0x44a   : > { %v1992_v5 = vadd.f32 %v1991_v33, %v12333_v8  ;;  %v1993_v46 = vpop.f32.mrb[171].mxu1 }
 0x44b   : > { %v1994_v17 = vadd.f32 %v1993_v46, %v12335_v13 }
 0x44c   : > { %5481 = vmatmul.mubr.bf16.gmra.mrb[20].mxu0 %v3874_v16  ;;  %v3890_v12 = vpack.c.bf16 %v1992_v5, %v1988_v26  ;;  %8500 = vmatmul.mubr.msk.bf16.gmra.mrb[20].mxu1 %vm667_vm0, %v17548_v32 }
 0x44d   : > { %5488 = vmatprep.mubr.bf16.mxu0 %v3883_v2  ;;  %v3891_v28 = vpack.c.bf16 %v1994_v17, %v1990_v48  ;;  %2588 = vmatprep.mubr.bf16.mxu1 %v17408_v54 }
 0x44f   : > { %v1997_v16 = vpop.f32.mrb[172].mxu1 }
 0x450   : > { %v1998_v52 = vadd.f32 %v1997_v16, %v12333_v8  ;;  %v1999_v3 = vpop.f32.mrb[173].mxu1 }
 0x451   : > { %v2000_v60 = vadd.f32 %v1999_v3, %v12335_v13  ;;  %v2001_v33 = vpop.f32.mrb[174].mxu1 }
 0x452   : > { %v2002_v2 = vadd.f32 %v2001_v33, %v12333_v8  ;;  %v2003_v26 = vpop.f32.mrb[175].mxu1 }
 0x453   : > { %v2004_v5 = vadd.f32 %v2003_v26, %v12335_v13 }
 0x454   : > { %5489 = vmatmul.mubr.bf16.gmra.mrb[24].mxu0 %v3882_v49  ;;  %v3898_v46 = vpack.c.bf16 %v2002_v2, %v1998_v52  ;;  %8501 = vmatmul.mubr.msk.bf16.gmra.mrb[24].mxu1 %vm667_vm0, %v17549_v25 }
 0x455   : > { %5496 = vmatprep.mubr.bf16.mxu0 %v3891_v28  ;;  %v3899_v48 = vpack.c.bf16 %v2004_v5, %v2000_v60  ;;  %2598 = vmatprep.mubr.bf16.mxu1 %v17408_v54 }
 0x457   : > { %v2007_v37 = vpop.f32.mrb[176].mxu1 }
 0x458   : > { %v2008_v17 = vadd.f32 %v2007_v37, %v12333_v8  ;;  %v2009_v16 = vpop.f32.mrb[177].mxu1 }
 0x459   : > { %v2010_v3 = vadd.f32 %v2009_v16, %v12335_v13  ;;  %v2011_v49 = vpop.f32.mrb[178].mxu1 }
 0x45a   : > { %v2012_v33 = vadd.f32 %v2011_v49, %v12333_v8  ;;  %v2013_v28 = vpop.f32.mrb[179].mxu1 }
 0x45b   : > { %v2014_v52 = vadd.f32 %v2013_v28, %v12335_v13 }
 0x45c   : > { %5497 = vmatmul.mubr.bf16.gmra.mrb[28].mxu0 %v3890_v12  ;;  %v3906_v2 = vpack.c.bf16 %v2012_v33, %v2008_v17  ;;  %8502 = vmatmul.mubr.msk.bf16.gmra.mrb[28].mxu1 %vm667_vm0, %v17550_v15  ;;  %v17686_v15 = vld [vmem:[#allocation117_spill] sm:$0xff] }
 0x45d   : > { %5504 = vmatprep.mubr.bf16.mxu0 %v3899_v48  ;;  %v3907_v60 = vpack.c.bf16 %v2014_v52, %v2010_v3  ;;  %2608 = vmatprep.mubr.bf16.mxu1 %v17408_v54 }
 0x45f   : > { %v2017_v26 = vpop.f32.mrb[180].mxu1 }
 0x460   : > { %v2018_v5 = vadd.f32 %v2017_v26, %v12333_v8  ;;  %v2019_v37 = vpop.f32.mrb[181].mxu1 }
 0x461   : > { %v2020_v16 = vadd.f32 %v2019_v37, %v12335_v13  ;;  %v2021_v12 = vpop.f32.mrb[182].mxu1 }
 0x462   : > { %v2022_v49 = vadd.f32 %v2021_v12, %v12333_v8  ;;  %v2023_v48 = vpop.f32.mrb[183].mxu1 }
 0x463   : > { %v2024_v17 = vadd.f32 %v2023_v48, %v12335_v13 }
 0x464   : > { %5505 = vmatmul.mubr.bf16.gmra.mrb[32].mxu0 %v3898_v46  ;;  %v3914_v33 = vpack.c.bf16 %v2022_v49, %v2018_v5  ;;  %8503 = vmatmul.mubr.msk.bf16.gmra.mrb[32].mxu1 %vm667_vm0, %v17551_v7  ;;  %v10515_v5 = vld [vmem:[%s16945_s3 + $0x178] sm:$0xff]  }
 0x465   : > { %5512 = vmatprep.mubr.bf16.mxu0 %v3907_v60  ;;  %v3915_v3 = vpack.c.bf16 %v2024_v17, %v2020_v16  ;;  %2618 = vmatprep.mubr.bf16.mxu1 %v17408_v54  ;;  %v17685_v7 = vld [vmem:[#allocation118_spill] sm:$0xff] }
 0x466   : > { %5704 = vmatpush1.bf16.msra.mxu0 %v10515_v5  ;;  %v17687_v25 = vpack.c.bf16 %v17685_v7, %v17686_v15  ;;  %v17713_v7 = vld [vmem:[#allocation133_spill] sm:$0xff] }
 0x467   : > { %v2027_v28 = vpop.f32.mrb[184].mxu1  ;;  %6218 = vmatprep.subr.bf16.mxu0 %v17408_v54 }
 0x468   : > { %v2028_v52 = vadd.f32 %v2027_v28, %v12333_v8  ;;  %v2029_v26 = vpop.f32.mrb[185].mxu1 }
 0x469   : > { %v2030_v37 = vadd.f32 %v2029_v26, %v12335_v13  ;;  %v2031_v46 = vpop.f32.mrb[186].mxu1 }
 0x46a   : > { %v2032_v12 = vadd.f32 %v2031_v46, %v12333_v8  ;;  %v2033_v60 = vpop.f32.mrb[187].mxu1 }
 0x46b   : > { %v2034_v16 = vadd.f32 %v2033_v60, %v12335_v13 }
 0x46c   : > { %5513 = vmatmul.mubr.bf16.gmra.mrb[36].mxu0 %v3906_v2  ;;  %v3922_v49 = vpack.c.bf16 %v2032_v12, %v2028_v52  ;;  %8504 = vmatmul.mubr.msk.bf16.gmra.mrb[36].mxu1 %vm667_vm0, %v17552_v6 }
 0x46d   : > { %5520 = vmatprep.mubr.bf16.mxu0 %v3915_v3  ;;  %v3923_v48 = vpack.c.bf16 %v2034_v16, %v2030_v37  ;;  %2628 = vmatprep.mubr.bf16.mxu1 %v17408_v54 }
 0x46f   : > { %v2037_v2 = vpop.f32.mrb[188].mxu1 }
 0x470   : > { %v2038_v17 = vadd.f32 %v2037_v2, %v12333_v8  ;;  %v2039_v28 = vpop.f32.mrb[189].mxu1 }
 0x471   : > { %v2040_v26 = vadd.f32 %v2039_v28, %v12335_v13  ;;  %v2041_v46 = vpop.f32.mrb[190].mxu1 }
 0x472   : > { %v2042_v3 = vadd.f32 %v2041_v46, %v12333_v8  ;;  %v2043_v52 = vpop.f32.mrb[191].mxu1 }
 0x473   : > { %v2044_v12 = vadd.f32 %v2043_v52, %v12335_v13 }
 0x474   : > { %5521 = vmatmul.mubr.bf16.gmra.mrb[40].mxu0 %v3914_v33  ;;  %v3930_v60 = vpack.c.bf16 %v2042_v3, %v2038_v17  ;;  %8505 = vmatmul.mubr.msk.bf16.gmra.mrb[40].mxu1 %vm667_vm0, %v17553_v18  ;;  %v17678_v18 = vld [vmem:[#allocation112_spill] sm:$0xff] }
 0x475   : > { %5528 = vmatprep.mubr.bf16.mxu0 %v3923_v48  ;;  %v3931_v37 = vpack.c.bf16 %v2044_v12, %v2040_v26  ;;  %2638 = vmatprep.mubr.bf16.mxu1 %v17408_v54 }
 0x477   : > { %v2047_v5 = vpop.f32.mrb[192].mxu1 }
 0x478   : > { %v2048_v16 = vadd.f32 %v2047_v5, %v12333_v8  ;;  %v2049_v2 = vpop.f32.mrb[193].mxu1 }
 0x479   : > { %v2050_v28 = vadd.f32 %v2049_v2, %v12335_v13  ;;  %v2051_v33 = vpop.f32.mrb[194].mxu1 }
 0x47a   : > { %v2052_v46 = vadd.f32 %v2051_v33, %v12333_v8  ;;  %v2053_v48 = vpop.f32.mrb[195].mxu1 }
 0x47b   : > { %v2054_v17 = vadd.f32 %v2053_v48, %v12335_v13 }
 0x47c   : > { %5529 = vmatmul.mubr.bf16.gmra.mrb[44].mxu0 %v3922_v49  ;;  %v3938_v3 = vpack.c.bf16 %v2052_v46, %v2048_v16  ;;  %8506 = vmatmul.mubr.msk.bf16.gmra.mrb[44].mxu1 %vm667_vm0, %v17554_v10 }
 0x47d   : > { %5536 = vmatprep.mubr.bf16.mxu0 %v3931_v37  ;;  %v3939_v26 = vpack.c.bf16 %v2054_v17, %v2050_v28  ;;  %2648 = vmatprep.mubr.bf16.mxu1 %v17408_v54 }
 0x47f   : > { %v2057_v52 = vpop.f32.mrb[196].mxu1 }
 0x480   : > { %v2058_v12 = vadd.f32 %v2057_v52, %v12333_v8  ;;  %v2059_v5 = vpop.f32.mrb[197].mxu1 }
 0x481   : > { %v2060_v2 = vadd.f32 %v2059_v5, %v12335_v13  ;;  %v2061_v49 = vpop.f32.mrb[198].mxu1 }
 0x482   : > { %v2062_v33 = vadd.f32 %v2061_v49, %v12333_v8  ;;  %v2063_v37 = vpop.f32.mrb[199].mxu1 }
 0x483   : > { %v2064_v16 = vadd.f32 %v2063_v37, %v12335_v13 }
 0x484   : > { %5537 = vmatmul.mubr.bf16.gmra.mrb[48].mxu0 %v3930_v60  ;;  %v3946_v46 = vpack.c.bf16 %v2062_v33, %v2058_v12  ;;  %8507 = vmatmul.mubr.msk.bf16.gmra.mrb[48].mxu1 %vm667_vm0, %v17555_v42 }
 0x485   : > { %5544 = vmatprep.mubr.bf16.mxu0 %v3939_v26  ;;  %v3947_v28 = vpack.c.bf16 %v2064_v16, %v2060_v2  ;;  %2658 = vmatprep.mubr.bf16.mxu1 %v17408_v54 }
 0x487   : > { %v2067_v48 = vpop.f32.mrb[200].mxu1 }
 0x488   : > { %v2068_v17 = vadd.f32 %v2067_v48, %v12333_v8  ;;  %v2069_v52 = vpop.f32.mrb[201].mxu1 }
 0x489   : > { %v2070_v5 = vadd.f32 %v2069_v52, %v12335_v13  ;;  %v2071_v60 = vpop.f32.mrb[202].mxu1 }
 0x48a   : > { %v2072_v49 = vadd.f32 %v2071_v60, %v12333_v8  ;;  %v2073_v26 = vpop.f32.mrb[203].mxu1 }
 0x48b   : > { %v2074_v12 = vadd.f32 %v2073_v26, %v12335_v13 }
 0x48c   : > { %5545 = vmatmul.mubr.bf16.gmra.mrb[52].mxu0 %v3938_v3  ;;  %v3954_v33 = vpack.c.bf16 %v2072_v49, %v2068_v17  ;;  %8508 = vmatmul.mubr.msk.bf16.gmra.mrb[52].mxu1 %vm667_vm0, %v17556_v11  ;;  %v536_v49 = vld [vmem:[%s16943_s1 + $0x38] sm:$0xff] }
 0x48d   : > { %5552 = vmatprep.mubr.bf16.mxu0 %v3947_v28  ;;  %v3955_v2 = vpack.c.bf16 %v2074_v12, %v2070_v5  ;;  %2668 = vmatprep.mubr.bf16.mxu1 %v17408_v54  ;;  %v532_v5 = vld [vmem:[%s16943_s1 + $0x18] sm:$0xff] }
 0x48e   : > { %v8328_v12 = vcombine.low %v532_v5, %v536_v49 }
 0x48f   : > { %v2077_v37 = vpop.f32.mrb[204].mxu1 }
 0x490   : > { %v2078_v16 = vadd.f32 %v2077_v37, %v12333_v8  ;;  %v2079_v48 = vpop.f32.mrb[205].mxu1  ;;  %v8329_v37 = vcombine.high %v532_v5, %v536_v49 }
 0x491   : > { %v2080_v52 = vadd.f32 %v2079_v48, %v12335_v13  ;;  %v2081_v3 = vpop.f32.mrb[206].mxu1 }
 0x492   : > { %v2082_v60 = vadd.f32 %v2081_v3, %v12333_v8  ;;  %v2083_v28 = vpop.f32.mrb[207].mxu1  ;;  %2879 = vmatprep.subr.bf16.mxu1 %v8329_v37 }
 0x493   : > { %v2084_v17 = vadd.f32 %v2083_v28, %v12335_v13  ;;  %2880 = vmatpush1.bf16.msra.mxu1 %v8328_v12 }
 0x494   : > { %5553 = vmatmul.mubr.bf16.gmra.mrb[56].mxu0 %v3946_v46  ;;  %v3962_v26 = vpack.c.bf16 %v2082_v60, %v2078_v16  ;;  %8509 = vmatmul.mubr.msk.bf16.gmra.mrb[56].mxu1 %vm667_vm0, %v17557_v57  ;;  %v17670_v57 = vld [vmem:[#allocation107_spill] sm:$0xff] }
 0x495   : > { %5560 = vmatprep.mubr.bf16.mxu0 %v3955_v2  ;;  %v3963_v46 = vpack.c.bf16 %v2084_v17, %v2080_v52  ;;  %2678 = vmatprep.mubr.bf16.mxu1 %v17408_v54 }
 0x497   : > { %v2087_v2 = vpop.f32.mrb[208].mxu1 }
 0x498   : > { %v2088_v48 = vadd.f32 %v2087_v2, %v12333_v8  ;;  %v2089_v3 = vpop.f32.mrb[209].mxu1 }
 0x499   : > { %v2090_v28 = vadd.f32 %v2089_v3, %v12335_v13  ;;  %v2091_v11 = vpop.f32.mrb[210].mxu1 }
 0x49a   : > { %v2092_v16 = vadd.f32 %v2091_v11, %v12333_v8  ;;  %v2093_v60 = vpop.f32.mrb[211].mxu1 }
 0x49b   : > { %v2094_v5 = vadd.f32 %v2093_v60, %v12335_v13 }
 0x49c   : > { %5561 = vmatmul.mubr.bf16.gmra.mrb[60].mxu0 %v3954_v33  ;;  %v3970_v49 = vpack.c.bf16 %v2092_v16, %v2088_v48  ;;  %8510 = vmatmul.mubr.msk.bf16.gmra.mrb[60].mxu1 %vm667_vm0, %v17558_v53 }
 0x49d   : > { %5568 = vmatprep.mubr.bf16.mxu0 %v3963_v46  ;;  %v3971_v52 = vpack.c.bf16 %v2094_v5, %v2090_v28  ;;  %2688 = vmatprep.mubr.bf16.mxu1 %v17408_v54 }
 0x49f   : > { %v2097_v17 = vpop.f32.mrb[212].mxu1 }
 0x4a0   : > { %v2098_v12 = vadd.f32 %v2097_v17, %v12333_v8  ;;  %v2099_v37 = vpop.f32.mrb[213].mxu1 }
 0x4a1   : > { %v2100_v2 = vadd.f32 %v2099_v37, %v12335_v13  ;;  %v2101_v33 = vpop.f32.mrb[214].mxu1 }
 0x4a2   : > { %v2102_v11 = vadd.f32 %v2101_v33, %v12333_v8  ;;  %v2103_v46 = vpop.f32.mrb[215].mxu1 }
 0x4a3   : > { %v2104_v48 = vadd.f32 %v2103_v46, %v12335_v13 }
 0x4a4   : > { %5569 = vmatmul.mubr.bf16.gmra.mrb[64].mxu0 %v3962_v26  ;;  %v3978_v3 = vpack.c.bf16 %v2102_v11, %v2098_v12  ;;  %8511 = vmatmul.mubr.msk.bf16.gmra.mrb[64].mxu1 %vm667_vm0, %v17559_v61 }
 0x4a5   : > { %5576 = vmatprep.mubr.bf16.mxu0 %v3971_v52  ;;  %v3979_v28 = vpack.c.bf16 %v2104_v48, %v2100_v2  ;;  %2698 = vmatprep.mubr.bf16.mxu1 %v17408_v54 }
 0x4a7   : > { %v2107_v16 = vpop.f32.mrb[216].mxu1 }
 0x4a8   : > { %v2108_v60 = vadd.f32 %v2107_v16, %v12333_v8  ;;  %v2109_v5 = vpop.f32.mrb[217].mxu1 }
 0x4a9   : > { %v2110_v17 = vadd.f32 %v2109_v5, %v12335_v13  ;;  %v2111_v26 = vpop.f32.mrb[218].mxu1 }
 0x4aa   : > { %v2112_v37 = vadd.f32 %v2111_v26, %v12333_v8  ;;  %v2113_v52 = vpop.f32.mrb[219].mxu1 }
 0x4ab   : > { %v2114_v12 = vadd.f32 %v2113_v52, %v12335_v13 }
 0x4ac   : > { %5577 = vmatmul.mubr.bf16.gmra.mrb[68].mxu0 %v3970_v49  ;;  %v3986_v33 = vpack.c.bf16 %v2112_v37, %v2108_v60  ;;  %8512 = vmatmul.mubr.msk.bf16.gmra.mrb[68].mxu1 %vm667_vm0, %v17560_v0  ;;  %v17662_v0 = vld [vmem:[#allocation102_spill] sm:$0xff] }
 0x4ad   : > { %5584 = vmatprep.mubr.bf16.mxu0 %v3979_v28  ;;  %v3987_v2 = vpack.c.bf16 %v2114_v12, %v2110_v17  ;;  %2708 = vmatprep.mubr.bf16.mxu1 %v17408_v54 }
 0x4af   : > { %v2117_v11 = vpop.f32.mrb[220].mxu1 }
 0x4b0   : > { %v2118_v46 = vadd.f32 %v2117_v11, %v12333_v8  ;;  %v2119_v48 = vpop.f32.mrb[221].mxu1 }
 0x4b1   : > { %v2120_v16 = vadd.f32 %v2119_v48, %v12335_v13  ;;  %v2121_v49 = vpop.f32.mrb[222].mxu1 }
 0x4b2   : > { %v2122_v5 = vadd.f32 %v2121_v49, %v12333_v8  ;;  %v2123_v28 = vpop.f32.mrb[223].mxu1 }
 0x4b3   : > { %v2124_v60 = vadd.f32 %v2123_v28, %v12335_v13 }
 0x4b4   : > { %5585 = vmatmul.mubr.bf16.gmra.mrb[72].mxu0 %v3978_v3  ;;  %v3994_v26 = vpack.c.bf16 %v2122_v5, %v2118_v46  ;;  %8513 = vmatmul.mubr.msk.bf16.gmra.mrb[72].mxu1 %vm667_vm0, %v17561_v41 }
 0x4b5   : > { %5592 = vmatprep.mubr.bf16.mxu0 %v3987_v2  ;;  %v3995_v17 = vpack.c.bf16 %v2124_v60, %v2120_v16  ;;  %2718 = vmatprep.mubr.bf16.mxu1 %v17408_v54 }
 0x4b7   : > { %v2127_v37 = vpop.f32.mrb[224].mxu1 }
 0x4b8   : > { %v2128_v52 = vadd.f32 %v2127_v37, %v12333_v8  ;;  %v2129_v12 = vpop.f32.mrb[225].mxu1 }
 0x4b9   : > { %v2130_v11 = vadd.f32 %v2129_v12, %v12335_v13  ;;  %v2131_v3 = vpop.f32.mrb[226].mxu1 }
 0x4ba   : > { %v2132_v48 = vadd.f32 %v2131_v3, %v12333_v8  ;;  %v2133_v2 = vpop.f32.mrb[227].mxu1 }
 0x4bb   : > { %v2134_v46 = vadd.f32 %v2133_v2, %v12335_v13 }
 0x4bc   : > { %5593 = vmatmul.mubr.bf16.gmra.mrb[76].mxu0 %v3986_v33  ;;  %v4002_v49 = vpack.c.bf16 %v2132_v48, %v2128_v52  ;;  %8514 = vmatmul.mubr.msk.bf16.gmra.mrb[76].mxu1 %vm667_vm0, %v17562_v35 }
 0x4bd   : > { %5600 = vmatprep.mubr.bf16.mxu0 %v3995_v17  ;;  %v4003_v16 = vpack.c.bf16 %v2134_v46, %v2130_v11  ;;  %2728 = vmatprep.mubr.bf16.mxu1 %v17408_v54 }
 0x4bf   : > { %v2137_v5 = vpop.f32.mrb[228].mxu1 }
 0x4c0   : > { %v2138_v28 = vadd.f32 %v2137_v5, %v12333_v8  ;;  %v2139_v60 = vpop.f32.mrb[229].mxu1 }
 0x4c1   : > { %v2140_v37 = vadd.f32 %v2139_v60, %v12335_v13  ;;  %v2141_v33 = vpop.f32.mrb[230].mxu1 }
 0x4c2   : > { %v2142_v12 = vadd.f32 %v2141_v33, %v12333_v8  ;;  %v2143_v17 = vpop.f32.mrb[231].mxu1 }
 0x4c3   : > { %v2144_v52 = vadd.f32 %v2143_v17, %v12335_v13 }
 0x4c4   : > { %5601 = vmatmul.mubr.bf16.gmra.mrb[80].mxu0 %v3994_v26  ;;  %v4010_v3 = vpack.c.bf16 %v2142_v12, %v2138_v28  ;;  %8515 = vmatmul.mubr.msk.bf16.gmra.mrb[80].mxu1 %vm667_vm0, %v17563_v47  ;;  %v17656_v47 = vld [vmem:[#allocation97_spill] sm:$0xff] }
 0x4c5   : > { %5608 = vmatprep.mubr.bf16.mxu0 %v4003_v16  ;;  %v4011_v11 = vpack.c.bf16 %v2144_v52, %v2140_v37  ;;  %2738 = vmatprep.mubr.bf16.mxu1 %v17408_v54 }
 0x4c7   : > { %v2147_v48 = vpop.f32.mrb[232].mxu1 }
 0x4c8   : > { %v2148_v2 = vadd.f32 %v2147_v48, %v12333_v8  ;;  %v2149_v46 = vpop.f32.mrb[233].mxu1 }
 0x4c9   : > { %v2150_v5 = vadd.f32 %v2149_v46, %v12335_v13  ;;  %v2151_v26 = vpop.f32.mrb[234].mxu1 }
 0x4ca   : > { %v2152_v60 = vadd.f32 %v2151_v26, %v12333_v8  ;;  %v2153_v16 = vpop.f32.mrb[235].mxu1 }
 0x4cb   : > { %v2154_v28 = vadd.f32 %v2153_v16, %v12335_v13 }
 0x4cc   : > { %5609 = vmatmul.mubr.bf16.gmra.mrb[84].mxu0 %v4002_v49  ;;  %v4018_v33 = vpack.c.bf16 %v2152_v60, %v2148_v2  ;;  %8516 = vmatmul.mubr.msk.bf16.gmra.mrb[84].mxu1 %vm667_vm0, %v17564_v38  ;;  %v17655_v38 = vld [vmem:[#allocation98_spill] sm:$0xff] }
 0x4cd   : > { %5616 = vmatprep.mubr.bf16.mxu0 %v4011_v11  ;;  %v4019_v37 = vpack.c.bf16 %v2154_v28, %v2150_v5  ;;  %2748 = vmatprep.mubr.bf16.mxu1 %v17408_v54  ;;  %v17657_v35 = vpack.c.bf16 %v17655_v38, %v17656_v47 }
 0x4cf   : > { %v2157_v12 = vpop.f32.mrb[236].mxu1 }
 0x4d0   : > { %v2158_v17 = vadd.f32 %v2157_v12, %v12333_v8  ;;  %v2159_v52 = vpop.f32.mrb[237].mxu1 }
 0x4d1   : > { %v2160_v48 = vadd.f32 %v2159_v52, %v12335_v13  ;;  %v2161_v49 = vpop.f32.mrb[238].mxu1 }
 0x4d2   : > { %v2162_v46 = vadd.f32 %v2161_v49, %v12333_v8  ;;  %v2163_v11 = vpop.f32.mrb[239].mxu1 }
 0x4d3   : > { %v2164_v2 = vadd.f32 %v2163_v11, %v12335_v13 }
 0x4d4   : > { %5617 = vmatmul.mubr.bf16.gmra.mrb[88].mxu0 %v4010_v3  ;;  %v4026_v26 = vpack.c.bf16 %v2162_v46, %v2158_v17  ;;  %8517 = vmatmul.mubr.msk.bf16.gmra.mrb[88].mxu1 %vm667_vm0, %v17565_v24 }
 0x4d5   : > { %5624 = vmatprep.mubr.bf16.mxu0 %v4019_v37  ;;  %v4027_v5 = vpack.c.bf16 %v2164_v2, %v2160_v48  ;;  %2758 = vmatprep.mubr.bf16.mxu1 %v17408_v54 }
 0x4d7   : > { %v2167_v60 = vpop.f32.mrb[240].mxu1 }
 0x4d8   : > { %v2168_v16 = vadd.f32 %v2167_v60, %v12333_v8  ;;  %v2169_v28 = vpop.f32.mrb[241].mxu1 }
 0x4d9   : > { %v2170_v12 = vadd.f32 %v2169_v28, %v12335_v13  ;;  %v2171_v3 = vpop.f32.mrb[242].mxu1 }
 0x4da   : > { %v2172_v52 = vadd.f32 %v2171_v3, %v12333_v8  ;;  %v2173_v37 = vpop.f32.mrb[243].mxu1 }
 0x4db   : > { %v2174_v17 = vadd.f32 %v2173_v37, %v12335_v13 }
 0x4dc   : > { %5625 = vmatmul.mubr.bf16.gmra.mrb[92].mxu0 %v4018_v33  ;;  %v4034_v49 = vpack.c.bf16 %v2172_v52, %v2168_v16  ;;  %8518 = vmatmul.mubr.msk.bf16.gmra.mrb[92].mxu1 %vm667_vm0, %v17566_v20  ;;  %v17649_v20 = vld [vmem:[#allocation93_spill] sm:$0xff] }
 0x4dd   : > { %5632 = vmatprep.mubr.bf16.mxu0 %v4027_v5  ;;  %v4035_v48 = vpack.c.bf16 %v2174_v17, %v2170_v12  ;;  %2768 = vmatprep.mubr.bf16.mxu1 %v17408_v54 }
 0x4df   : > { %v2177_v46 = vpop.f32.mrb[244].mxu1 }
 0x4e0   : > { %v2178_v11 = vadd.f32 %v2177_v46, %v12333_v8  ;;  %v2179_v2 = vpop.f32.mrb[245].mxu1 }
 0x4e1   : > { %v2180_v60 = vadd.f32 %v2179_v2, %v12335_v13  ;;  %v2181_v33 = vpop.f32.mrb[246].mxu1 }
 0x4e2   : > { %v2182_v28 = vadd.f32 %v2181_v33, %v12333_v8  ;;  %v2183_v5 = vpop.f32.mrb[247].mxu1 }
 0x4e3   : > { %v2184_v16 = vadd.f32 %v2183_v5, %v12335_v13 }
 0x4e4   : > { %5633 = vmatmul.mubr.bf16.gmra.mrb[96].mxu0 %v4026_v26  ;;  %v4042_v3 = vpack.c.bf16 %v2182_v28, %v2178_v11  ;;  %8519 = vmatmul.mubr.msk.bf16.gmra.mrb[96].mxu1 %vm667_vm0, %v17567_v27 }
 0x4e5   : > { %5640 = vmatprep.mubr.bf16.mxu0 %v4035_v48  ;;  %v4043_v12 = vpack.c.bf16 %v2184_v16, %v2180_v60  ;;  %2778 = vmatprep.mubr.bf16.mxu1 %v17408_v54 }
 0x4e7   : > { %v2187_v52 = vpop.f32.mrb[248].mxu1 }
 0x4e8   : > { %v2188_v37 = vadd.f32 %v2187_v52, %v12333_v8  ;;  %v2189_v17 = vpop.f32.mrb[249].mxu1 }
 0x4e9   : > { %v2190_v46 = vadd.f32 %v2189_v17, %v12335_v13  ;;  %v2191_v26 = vpop.f32.mrb[250].mxu1 }
 0x4ea   : > { %v2192_v2 = vadd.f32 %v2191_v26, %v12333_v8  ;;  %v2193_v48 = vpop.f32.mrb[251].mxu1 }
 0x4eb   : > { %v2194_v11 = vadd.f32 %v2193_v48, %v12335_v13  ;;  %v17572_v48 = vld [vmem:[#allocation27_spill] sm:$0xff] }
 0x4ec   : > { %5641 = vmatmul.mubr.bf16.gmra.mrb[100].mxu0 %v4034_v49  ;;  %v4050_v33 = vpack.c.bf16 %v2192_v2, %v2188_v37  ;;  %8520 = vmatmul.mubr.msk.bf16.gmra.mrb[100].mxu1 %vm667_vm0, %v11978_v44 }
 0x4ed   : > { %5648 = vmatprep.mubr.bf16.mxu0 %v4043_v12  ;;  %v4051_v60 = vpack.c.bf16 %v2194_v11, %v2190_v46  ;;  %2788 = vmatprep.mubr.bf16.mxu1 %v17408_v54  ;;  %v17573_v11 = vld [vmem:[#allocation26_spill] sm:$0xff] }
 0x4ef   : > { %v2197_v28 = vpop.f32.mrb[252].mxu1 }
 0x4f0   : > { %v2198_v5 = vadd.f32 %v2197_v28, %v12333_v8  ;;  %v2199_v16 = vpop.f32.mrb[253].mxu1  ;;  %v17576_v28 = vld [vmem:[#allocation33_spill] sm:$0xff] }
 0x4f1   : > { %v2200_v52 = vadd.f32 %v2199_v16, %v12335_v13  ;;  %v2201_v49 = vpop.f32.mrb[254].mxu1  ;;  %v10517_v16 = vld [vmem:[%s16945_s3 + $0x188] sm:$0xff]  }
 0x4f2   : > { %v2202_v17 = vadd.f32 %v2201_v49, %v12333_v8  ;;  %v2203_v12 = vpop.f32.mrb[255].mxu1  ;;  %v17569_v8 = vld [vmem:[#allocation29_spill] sm:$0xff]  ;;  %v17578_v49 = vld [vmem:[#allocation32_spill] sm:$0xff] }
 0x4f3   : > { %v2204_v37 = vadd.f32 %v2203_v12, %v12335_v13  ;;  %v10516_v13 = vld [vmem:[%s16945_s3 + $0x180] sm:$0xff]  }
 0x4f4   : > { %5649 = vmatmul.mubr.bf16.gmra.mrb[104].mxu0 %v4042_v3  ;;  %v4058_v26 = vpack.c.bf16 %v2202_v17, %v2198_v5  ;;  %8521 = vmatmul.mubr.msk.bf16.gmra.mrb[104].mxu1 %vm667_vm0, %v12005_v59  ;;  %v17570_v3 = vld [vmem:[#allocation28_spill] sm:$0xff]  ;;  %v17579_v17 = vld [vmem:[#allocation31_spill] sm:$0xff]  ;;  %v17647_v59 = vld [vmem:[#allocation85_spill] sm:$0xff] }
 0x4f5   : > { %5656 = vmatprep.mubr.bf16.mxu0 %v4051_v60  ;;  %v4059_v46 = vpack.c.bf16 %v2204_v37, %v2200_v52  ;;  %2798 = vmatprep.mubr.bf16.mxu1 %v17408_v54  ;;  %v17571_v2 = vpack.c.bf16 %v17569_v8, %v17570_v3  ;;  %v17575_v60 = vld [vmem:[#allocation34_spill] sm:$0xff]  ;;  %v17580_v12 = vpack.c.bf16 %v17578_v49, %v17579_v17  ;;  %v10520_v3 = vld [vmem:[%s16945_s3 + $0x1a0] sm:$0xff]   ;;  %v17590_v49 = vld [vmem:[#allocation41_spill] sm:$0xff] }
 0x4f6   : > { %v17577_v5 = vpack.c.bf16 %v17575_v60, %v17576_v28  ;;  %v10518_v52 = vld [vmem:[%s16945_s3 + $0x190] sm:$0xff]   ;;  %v10519_v8 = vld [vmem:[%s16945_s3 + $0x198] sm:$0xff]   ;;  %v17591_v17 = vld [vmem:[#allocation40_spill] sm:$0xff] }
 0x4f7   : > { %v17581_v37 = vld [vmem:[#allocation38_spill] sm:$0xff] }
 0x4f8   : > { %v540_v28 = vld [vmem:[%s16943_s1 + $0x58] sm:$0xff] }
 0x4fc   : > { %5657 = vmatmul.mubr.bf16.gmra.mrb[108].mxu0 %v4050_v33  ;;  %8522 = vmatmul.mubr.msk.bf16.gmra.mrb[108].mxu1 %vm667_vm0, %v12032_v4  ;;  %v17574_v33 = vpack.c.bf16 %v17572_v48, %v17573_v11  ;;  %v17587_v11 = vld [vmem:[#allocation43_spill] sm:$0xff]  ;;  %v17644_v4 = vld [vmem:[#allocation24_spill] sm:$0xff] }
 0x4fd   : > { %5664 = vmatprep.mubr.bf16.mxu0 %v4059_v46  ;;  %2808 = vmatprep.mubr.bf16.mxu1 %v17408_v54 }
 0x504   : > { %5665 = vmatmul.mubr.bf16.gmra.mrb[112].mxu0 %v4058_v26  ;;  %8523 = vmatmul.mubr.msk.bf16.gmra.mrb[112].mxu1 %vm667_vm0, %v12043_v21  ;;  %v17582_v26 = vld [vmem:[#allocation37_spill] sm:$0xff] }
 0x505   : > { %5705 = vmatprep.mubr.bf16.mxu0 %v17571_v2  ;;  %2818 = vmatprep.mubr.bf16.mxu1 %v17408_v54  ;;  %v17583_v46 = vpack.c.bf16 %v17581_v37, %v17582_v26  ;;  %v17584_v2 = vld [vmem:[#allocation36_spill] sm:$0xff]  ;;  %v17594_v26 = vld [vmem:[#allocation47_spill] sm:$0xff] }
 0x506   : > { %v17593_v37 = vld [vmem:[#allocation48_spill] sm:$0xff] }
 0x50c   : > { %5706 = vmatmul.mubr.bf16.vlgmr.msra.gmra.mrb[116].mxu0 %v17574_v33  ;;  %8524 = vmatmul.mubr.msk.bf16.gmra.mrb[116].mxu1 %vm667_vm0, %v12058_v63  ;;  %v17588_v33 = vld [vmem:[#allocation42_spill] sm:$0xff]  ;;  %v17641_v63 = vld [vmem:[#allocation88_spill] sm:$0xff] }
 0x50d   : > { %5713 = vmatprep.mubr.bf16.mxu0 %v17577_v5  ;;  %6219 = vmatpush1.bf16.msra.mxu0 %v10516_v13  ;;  %v17585_v13 = vld [vmem:[#allocation35_spill] sm:$0xff]  ;;  %v17589_v60 = vpack.c.bf16 %v17587_v11, %v17588_v33  ;;  %v10521_v33 = vld [vmem:[%s16945_s3 + $0x1a8] sm:$0xff]  }
 0x50e   : > { %6220 = vmatprep.subr.bf16.mxu0 %v17408_v54  ;;  %2828 = vmatprep.mubr.bf16.mxu1 %v17408_v54  ;;  %v17586_v48 = vpack.c.bf16 %v17584_v2, %v17585_v13  ;;  %v544_v5 = vld [vmem:[%s16943_s1 + $0x78] sm:$0xff]  ;;  %v17599_v13 = vld [vmem:[#allocation53_spill] sm:$0xff] }
 0x511   : > { %6221 = vmatpush1.bf16.msra.mxu0 %v10517_v16  ;;  %v8336_v16 = vcombine.low %v540_v28, %v544_v5 }
 0x512   : > { %6222 = vmatprep.subr.bf16.mxu0 %v17408_v54 }
 0x514   : > { %5714 = vmatmul.mubr.bf16.gmra.mrb[120].mxu0 %v17580_v12  ;;  %8525 = vmatmul.mubr.msk.bf16.gmra.mrb[120].mxu1 %vm667_vm0, %v12069_v22  ;;  %v17592_v12 = vpack.c.bf16 %v17590_v49, %v17591_v17  ;;  %v17608_v17 = vld [vmem:[#allocation56_spill] sm:$0xff]  ;;  %v17638_v22 = vld [vmem:[#allocation81_spill] sm:$0xff] }
 0x515   : > { %5721 = vmatprep.mubr.bf16.mxu0 %v17583_v46  ;;  %6223 = vmatpush1.bf16.msra.mxu0 %v10518_v52  ;;  %v8337_v52 = vcombine.high %v540_v28, %v544_v5  ;;  %v17595_v46 = vpack.c.bf16 %v17593_v37, %v17594_v26  ;;  %v17603_v28 = vld [vmem:[#allocation50_spill] sm:$0xff]  ;;  %v2530_v26 = vpop.f32.mrb[0].mxu1 }
 0x516   : > { %6224 = vmatprep.subr.bf16.mxu0 %v17408_v54  ;;  %2838 = vmatprep.mubr.bf16.mxu1 %v17408_v54 }
 0x517   : > { %2881 = vmatprep.subr.bf16.mxu1 %v8337_v52  ;;  %v17606_v52 = vld [vmem:[#allocation57_spill] sm:$0xff] }
 0x518   : > { %2882 = vmatpush1.bf16.msra.mxu1 %v8336_v16  ;;  %v17605_v16 = vld [vmem:[#allocation58_spill] sm:$0xff] }
 0x519   : > { %6225 = vmatpush1.bf16.msra.mxu0 %v10519_v8  ;;  %v17596_v8 = vld [vmem:[#allocation46_spill] sm:$0xff]  ;;  %v17607_v49 = vpack.c.bf16 %v17605_v16, %v17606_v52  ;;  %v17618_v16 = vld [vmem:[#allocation67_spill] sm:$0xff] }
 0x51a   : > { %6226 = vmatprep.subr.bf16.mxu0 %v17408_v54 }
 0x51c   : > { %5722 = vmatmul.mubr.bf16.gmra.mrb[124].mxu0 %v17586_v48  ;;  %8526 = vmatmul.mubr.msk.bf16.gmra.mrb[124].mxu1 %vm667_vm0, %v12080_v19  ;;  %v17600_v48 = vld [vmem:[#allocation52_spill] sm:$0xff] }
 0x51d   : > { %5729 = vmatprep.mubr.bf16.mxu0 %v17589_v60  ;;  %6227 = vmatpush1.bf16.msra.mxu0 %v10520_v3  ;;  %v17597_v3 = vld [vmem:[#allocation45_spill] sm:$0xff]  ;;  %v17601_v11 = vpack.c.bf16 %v17599_v13, %v17600_v48  ;;  %v17602_v60 = vld [vmem:[#allocation51_spill] sm:$0xff] }
 0x51e   : > { %6228 = vmatprep.subr.bf16.mxu0 %v17408_v54  ;;  %2848 = vmatprep.mubr.bf16.mxu1 %v17408_v54  ;;  %v17598_v2 = vpack.c.bf16 %v17596_v8, %v17597_v3  ;;  %v17604_v5 = vpack.c.bf16 %v17602_v60, %v17603_v28  ;;  %v17612_v8 = vld [vmem:[#allocation62_spill] sm:$0xff] }
 0x521   : > { %6229 = vmatpush1.bf16.msra.mxu0 %v10521_v33  ;;  %v17615_v33 = vld [vmem:[#allocation60_spill] sm:$0xff] }
 0x522   : > { %6230 = vmatprep.subr.bf16.mxu0 %v17408_v54 }
 0x524   : > { %5730 = vmatmul.mubr.bf16.gmra.mrb[128].mxu0 %v17592_v12  ;;  %8527 = vmatmul.mubr.msk.bf16.gmra.mrb[128].mxu1 %vm667_vm0, %v17568_v31  ;;  %v17609_v12 = vld [vmem:[#allocation55_spill] sm:$0xff] }
 0x525   : > { %5737 = vmatprep.mubr.bf16.mxu0 %v17595_v46  ;;  %2858 = vmatprep.mubr.bf16.mxu1 %v17408_v54  ;;  %v17610_v37 = vpack.c.bf16 %v17608_v17, %v17609_v12  ;;  %v17611_v46 = vld [vmem:[#allocation63_spill] sm:$0xff] }
 0x526   : > { %v17613_v3 = vpack.c.bf16 %v17611_v46, %v17612_v8  ;;  %v17635_v31 = vld [vmem:[#allocation83_spill] sm:$0xff] }
 0x52c   : > { %5738 = vmatmul.mubr.bf16.gmra.mrb[132].mxu0 %v17598_v2  ;;  %8528 = vmatmul.mubr.msk.bf16.gmra.mrb[132].mxu1 %vm667_vm0, %v12106_v51  ;;  %v2532_v2 = vpop.f32.mrb[1].mxu1  ;;  %v17632_v51 = vld [vmem:[#allocation76_spill] sm:$0xff] }
 0x52d   : > { %5745 = vmatprep.mubr.bf16.mxu0 %v17601_v11  ;;  %2868 = vmatprep.mubr.bf16.mxu1 %v17408_v54  ;;  %v2534_v13 = vpop.f32.mrb[2].mxu1  ;;  %v17614_v11 = vld [vmem:[#allocation61_spill] sm:$0xff] }
 0x52e   : > { %v2536_v48 = vpop.f32.mrb[3].mxu1  ;;  %v17616_v60 = vpack.c.bf16 %v17614_v11, %v17615_v33  ;;  %v17624_v11 = vld [vmem:[#allocation72_spill] sm:$0xff] }
 0x52f   : > { %v12961_v28 = vpop.f32.mrb[4].mxu1 }
 0x534   : > { %5746 = vmatmul.mubr.bf16.gmra.mrb[136].mxu0 %v17604_v5  ;;  %8529 = vmatmul.mubr.msk.bf16.gmra.mrb[136].mxu1 %vm667_vm0, %v12117_v30  ;;  %v17617_v5 = vld [vmem:[#allocation68_spill] sm:$0xff] }
 0x535   : > { %5753 = vmatprep.mubr.bf16.mxu0 %v17607_v49  ;;  %2911 = vmatprep.mubr.bf16.mxu1 %v17408_v54  ;;  %v17619_v52 = vpack.c.bf16 %v17617_v5, %v17618_v16  ;;  %v2542_v49 = vpop.f32.mrb[5].mxu1 }
 0x536   : > { %v2544_v17 = vpop.f32.mrb[6].mxu1 }
 0x537   : > { %v2546_v12 = vpop.f32.mrb[7].mxu1 }
 0x538   : > { %v12972_v8 = vpop.f32.mrb[8].mxu1 }
 0x539   : > { %v12980_v5 = vpop.f32.mrb[9].mxu1 }
 0x53c   : > { %5754 = vmatmul.mubr.bf16.gmra.mrb[140].mxu0 %v17610_v37  ;;  %8530 = vmatmul.mubr.msk.bf16.vlgmr.msra.gmra.mrb[140].mxu1 %vm667_vm0, %v10757_v23  ;;  %v17620_v23 = vld [vmem:[#allocation66_spill] sm:$0xff]  ;;  %v17621_v37 = vld [vmem:[#allocation65_spill] sm:$0xff] }
 0x53d   : > { %5761 = vmatprep.mubr.bf16.mxu0 %v17613_v3  ;;  %2921 = vmatprep.mubr.bf16.mxu1 %v17408_v54  ;;  %v17622_v46 = vpack.c.bf16 %v17620_v23, %v17621_v37  ;;  %v17623_v3 = vld [vmem:[#allocation73_spill] sm:$0xff]  ;;  %v17627_v23 = vld [vmem:[#allocation70_spill] sm:$0xff] }
 0x53e   : > { %v17625_v33 = vpack.c.bf16 %v17623_v3, %v17624_v11  ;;  %v17629_v3 = vld [vmem:[#allocation78_spill] sm:$0xff]  ;;  %v17630_v11 = vld [vmem:[#allocation77_spill] sm:$0xff] }
 0x544   : > { %5762 = vmatmul.mubr.bf16.gmra.mrb[144].mxu0 %v17616_v60  ;;  %8531 = vmatmul.mubr.msk.bf16.gmra.mrb[144].mxu1 %vm667_vm0, %v10775_v29  ;;  %v10522_v60 = vld [vmem:[%s16945_s3 + $0x1b0] sm:$0xff]   ;;  %v12982_v29 = vpop.f32.mrb[10].mxu1 }
 0x545   : > { %5769 = vmatprep.mubr.bf16.mxu0 %v17619_v52  ;;  %2931 = vmatprep.mubr.bf16.mxu1 %v17408_v54  ;;  %v12986_v16 = vpop.f32.mrb[11].mxu1  ;;  %v17626_v52 = vld [vmem:[#allocation71_spill] sm:$0xff] }
 0x546   : > { %6231 = vmatpush1.bf16.msra.mxu0 %v10522_v60  ;;  %v17628_v37 = vpack.c.bf16 %v17626_v52, %v17627_v23  ;;  %v17633_v52 = vld [vmem:[#allocation75_spill] sm:$0xff]  ;;  %v13124_v47 = vadd.f32 %v12986_v16, %v17644_v4  ;;  %v17669_v16 = vld [vmem:[#allocation108_spill] sm:$0xff] }
 0x547   : > { %6232 = vmatprep.subr.bf16.mxu0 %v17408_v54  ;;  %v17634_v23 = vpack.c.bf16 %v17632_v51, %v17633_v52  ;;  %v17639_v51 = vld [vmem:[#allocation80_spill] sm:$0xff]  ;;  %v17671_v42 = vpack.c.bf16 %v17669_v16, %v17670_v57 }
 0x548   : > { %v17640_v52 = vpack.c.bf16 %v17638_v22, %v17639_v51  ;;  %v13042_v22 = vadd.f32 %v2532_v2, %v17644_v4  ;;  %v13045_v51 = vadd.f32 %v2536_v48, %v17644_v4  ;;  %v17650_v2 = vld [vmem:[#allocation92_spill] sm:$0xff] }
 0x549   : > { %v17651_v24 = vpack.c.bf16 %v17649_v20, %v17650_v2 }
 0x54c   : > { %5770 = vmatmul.mubr.bf16.gmra.mrb[148].mxu0 %v17622_v46  ;;  %8532 = vmatmul.mubr.msk.bf16.gmra.mrb[148].mxu1 %vm667_vm0, %v10793_v34  ;;  %v12993_v46 = vpop.f32.mrb[12].mxu1 }
 0x54d   : > { %5777 = vmatprep.mubr.bf16.mxu0 %v17625_v33  ;;  %2941 = vmatprep.mubr.bf16.mxu1 %v17408_v54  ;;  %v17631_v33 = vpack.c.bf16 %v17629_v3, %v17630_v11  ;;  %v12998_v30 = vpop.f32.mrb[13].mxu1  ;;  %v17636_v3 = vld [vmem:[#allocation82_spill] sm:$0xff] }
 0x54e   : > { %v13000_v34 = vpop.f32.mrb[14].mxu1  ;;  %v17637_v11 = vpack.c.bf16 %v17635_v31, %v17636_v3  ;;  %v17642_v31 = vld [vmem:[#allocation87_spill] sm:$0xff] }
 0x54f   : > { %v13004_v60 = vpop.f32.mrb[15].mxu1  ;;  %v17643_v3 = vpack.c.bf16 %v17641_v63, %v17642_v31 }
 0x554   : > { %5778 = vmatmul.mubr.bf16.gmra.mrb[152].mxu0 %v17628_v37  ;;  %8533 = vmatmul.mubr.msk.bf16.gmra.mrb[152].mxu1 %vm667_vm0, %v10814_v40  ;;  %v13010_v37 = vpop.f32.mrb[16].mxu1 }
 0x555   : > { %5785 = vmatprep.mubr.bf16.mxu0 %v17631_v33  ;;  %2951 = vmatprep.mubr.bf16.mxu1 %v17408_v54  ;;  %v13015_v33 = vpop.f32.mrb[17].mxu1 }
 0x556   : > { %v13017_v19 = vpop.f32.mrb[18].mxu1  ;;  %v13202_v57 = vadd.f32 %v13015_v33, %v17644_v4 }
 0x557   : > { %v13021_v40 = vpop.f32.mrb[19].mxu1 }
 0x55c   : > { %5786 = vmatmul.mubr.bf16.gmra.mrb[156].mxu0 %v17634_v23  ;;  %8534 = vmatmul.mubr.msk.bf16.gmra.mrb[156].mxu1 %vm667_vm0, %v10832_v45  ;;  %v13027_v23 = vpop.f32.mrb[20].mxu1 }
 0x55d   : > { %5793 = vmatprep.mubr.bf16.mxu0 %v17637_v11  ;;  %2961 = vmatprep.mubr.bf16.mxu1 %v17408_v54  ;;  %v13032_v11 = vpop.f32.mrb[21].mxu1 }
 0x55e   : > { %v13034_v21 = vpop.f32.mrb[22].mxu1 }
 0x55f   : > { %v13038_v45 = vpop.f32.mrb[23].mxu1 }
 0x564   : > { %5794 = vmatmul.mubr.bf16.gmra.mrb[160].mxu0 %v17640_v52  ;;  %8535 = vmatmul.mubr.msk.bf16.gmra.mrb[160].mxu1 %vm667_vm0, %v10850_v50  ;;  %v17645_v52 = vld [vmem:[#allocation23_spill] sm:$0xff]  ;;  %v2590_v50 = vpop.f32.mrb[24].mxu1 }
 0x565   : > { %5801 = vmatprep.mubr.bf16.mxu0 %v17643_v3  ;;  %2971 = vmatprep.mubr.bf16.mxu1 %v17408_v54  ;;  %v13048_v63 = vadd.f32 %v2530_v26, %v17645_v52  ;;  %v13051_v31 = vadd.f32 %v2534_v13, %v17645_v52  ;;  %v17646_v3 = vld [vmem:[#allocation86_spill] sm:$0xff]  ;;  %v13062_v48 = vadd.f32 %v2590_v50, %v17645_v52  ;;  %v13067_v13 = vpop.f32.mrb[25].mxu1 }
 0x566   : > { %v17648_v44 = vpack.c.bf16 %v17646_v3, %v17647_v59  ;;  %v10523_v26 = vld [vmem:[%s16945_s3 + $0x1b8] sm:$0xff]   ;;  %v2594_v59 = vpop.f32.mrb[26].mxu1  ;;  %v13080_v3 = vadd.f32 %v2542_v49, %v17644_v4  ;;  %v13083_v50 = vadd.f32 %v2546_v12, %v17644_v4  ;;  %v13088_v2 = vadd.f32 %v12961_v28, %v17645_v52 }
 0x567   : > { %6233 = vmatpush1.bf16.msra.mxu0 %v10523_v26  ;;  %v13074_v20 = vadd.f32 %v2594_v59, %v17645_v52  ;;  %v17652_v59 = vld [vmem:[#allocation91_spill] sm:$0xff]  ;;  %v13128_v38 = vadd.f32 %v12972_v8, %v17645_v52  ;;  %v13210_v16 = vadd.f32 %v13010_v37, %v17645_v52  ;;  %v13288_v15 = vadd.f32 %v13067_v13, %v17644_v4 }
 0x568   : > { %6234 = vmatprep.subr.bf16.mxu0 %v17408_v54  ;;  %v17661_v12 = vld [vmem:[#allocation103_spill] sm:$0xff] }
 0x569   : > { %v17663_v61 = vpack.c.bf16 %v17661_v12, %v17662_v0  ;;  %v13165_v0 = vadd.f32 %v13004_v60, %v17644_v4  ;;  %v13169_v12 = vadd.f32 %v12993_v46, %v17645_v52  ;;  %v17677_v60 = vld [vmem:[#allocation113_spill] sm:$0xff] }
 0x56a   : > { %v17679_v6 = vpack.c.bf16 %v17677_v60, %v17678_v18  ;;  %v13246_v60 = vadd.f32 %v13032_v11, %v17644_v4  ;;  %v17683_v11 = vld [vmem:[#allocation110_spill] sm:$0xff] }
 0x56c   : > { %5802 = vmatmul.mubr.bf16.gmra.mrb[164].mxu0 %v17648_v44  ;;  %8536 = vmatmul.mubr.msk.bf16.gmra.mrb[164].mxu1 %vm667_vm0, %v10868_v55  ;;  %v13091_v55 = vadd.f32 %v2544_v17, %v17645_v52  ;;  %v17653_v44 = vld [vmem:[#allocation90_spill] sm:$0xff] }
 0x56d   : > { %5809 = vmatprep.mubr.bf16.mxu0 %v17651_v24  ;;  %v13076_v24 = vpop.f32.mrb[27].mxu1  ;;  %2981 = vmatprep.mubr.bf16.mxu1 %v17408_v54  ;;  %v17654_v27 = vpack.c.bf16 %v17652_v59, %v17653_v44  ;;  %v17658_v59 = vld [vmem:[#allocation96_spill] sm:$0xff] }
 0x56e   : > { %v2600_v49 = vpop.f32.mrb[28].mxu1 }
 0x56f   : > { %v13104_v28 = vadd.f32 %v2600_v49, %v17645_v52  ;;  %v13106_v17 = vpop.f32.mrb[29].mxu1  ;;  %v17659_v49 = vld [vmem:[#allocation95_spill] sm:$0xff] }
 0x570   : > { %v2604_v41 = vpop.f32.mrb[30].mxu1  ;;  %v17660_v26 = vpack.c.bf16 %v17658_v59, %v17659_v49  ;;  %v17666_v49 = vld [vmem:[#allocation101_spill] sm:$0xff] }
 0x571   : > { %v13115_v44 = vpop.f32.mrb[31].mxu1 }
 0x574   : > { %5810 = vmatmul.mubr.bf16.gmra.mrb[168].mxu0 %v17654_v27  ;;  %8537 = vmatmul.mubr.msk.bf16.gmra.mrb[168].mxu1 %vm667_vm0, %v10880_v58  ;;  %v13113_v27 = vadd.f32 %v2604_v41, %v17645_v52  ;;  %v13132_v58 = vadd.f32 %v12982_v29, %v17645_v52 }
 0x575   : > { %5817 = vmatprep.mubr.bf16.mxu0 %v17657_v35  ;;  %2991 = vmatprep.mubr.bf16.mxu1 %v17408_v54  ;;  %v13120_v35 = vadd.f32 %v12980_v5, %v17644_v4  ;;  %v2610_v5 = vpop.f32.mrb[32].mxu1 }
 0x576   : > { %v13145_v8 = vadd.f32 %v2610_v5, %v17645_v52  ;;  %v13147_v29 = vpop.f32.mrb[33].mxu1  ;;  %v17667_v5 = vld [vmem:[#allocation100_spill] sm:$0xff] }
 0x577   : > { %v2614_v53 = vpop.f32.mrb[34].mxu1  ;;  %v17668_v41 = vpack.c.bf16 %v17666_v49, %v17667_v5  ;;  %v17674_v5 = vld [vmem:[#allocation106_spill] sm:$0xff] }
 0x578   : > { %17664 = vst [vmem:[#allocation29_spill] sm:$0xff] %v13145_v8  ;;  %v13156_v59 = vpop.f32.mrb[35].mxu1 }
 0x57c   : > { %5818 = vmatmul.mubr.bf16.gmra.mrb[172].mxu0 %v17660_v26  ;;  %8538 = vmatmul.mubr.msk.bf16.gmra.mrb[172].mxu1 %vm667_vm0, %v10894_v62  ;;  %v13154_v26 = vadd.f32 %v2614_v53, %v17645_v52  ;;  %v13173_v62 = vadd.f32 %v13000_v34, %v17645_v52 }
 0x57d   : > { %5825 = vmatprep.mubr.bf16.mxu0 %v17663_v61  ;;  %3001 = vmatprep.mubr.bf16.mxu1 %v17408_v54  ;;  %v13161_v61 = vadd.f32 %v12998_v30, %v17644_v4  ;;  %v2620_v30 = vpop.f32.mrb[36].mxu1 }
 0x57e   : > { %17665 = vst [vmem:[#allocation28_spill] sm:$0xff] %v13154_v26  ;;  %v13186_v46 = vadd.f32 %v2620_v30, %v17645_v52  ;;  %v13188_v34 = vpop.f32.mrb[37].mxu1  ;;  %v17675_v30 = vld [vmem:[#allocation105_spill] sm:$0xff] }
 0x57f   : > { %v2624_v10 = vpop.f32.mrb[38].mxu1  ;;  %v17676_v53 = vpack.c.bf16 %v17674_v5, %v17675_v30  ;;  %v13250_v30 = vadd.f32 %v13038_v45, %v17644_v4  ;;  %v17694_v45 = vld [vmem:[#allocation123_spill] sm:$0xff] }
 0x580   : > { %17672 = vst [vmem:[#allocation27_spill] sm:$0xff] %v13186_v46  ;;  %v13197_v49 = vpop.f32.mrb[39].mxu1  ;;  %v17698_v46 = vld [vmem:[#allocation7_spill] sm:$0xff] }
 0x581   : > { %v2630_v33 = vpop.f32.mrb[40].mxu1 }
 0x582   : > { %v13227_v37 = vadd.f32 %v2630_v33, %v17645_v52  ;;  %v13259_v33 = vadd.f32 %v13034_v21, %v17645_v52 }
 0x584   : > { %5826 = vmatmul.mubr.bf16.gmra.mrb[176].mxu0 %v17668_v41  ;;  %8539 = vmatmul.mubr.msk.bf16.gmra.mrb[176].mxu1 %vm667_vm0, %v10904_v1  ;;  %v13195_v41 = vadd.f32 %v2624_v10, %v17645_v52  ;;  %v13214_v1 = vadd.f32 %v13017_v19, %v17645_v52  ;;  %17680 = vst [vmem:[#allocation34_spill] sm:$0xff] %v13227_v37  ;;  %v10524_v19 = vld [vmem:[%s16945_s3 + $0x1c0] sm:$0xff]   ;;  %v13232_v10 = vpop.f32.mrb[41].mxu1  ;;  %v17695_v37 = vld [vmem:[#allocation122_spill] sm:$0xff] }
 0x585   : > { %5833 = vmatprep.mubr.bf16.mxu0 %v17671_v42  ;;  %3011 = vmatprep.mubr.bf16.mxu1 %v17408_v54  ;;  %v13206_v42 = vadd.f32 %v13021_v40, %v17644_v4  ;;  %v2634_v5 = vpop.f32.mrb[42].mxu1 }
 0x586   : > { %17673 = vst [vmem:[#allocation26_spill] sm:$0xff] %v13195_v41  ;;  %6235 = vmatpush1.bf16.msra.mxu0 %v10524_v19  ;;  %v13239_v18 = vadd.f32 %v2634_v5, %v17645_v52  ;;  %v17682_v5 = vld [vmem:[#allocation111_spill] sm:$0xff]  ;;  %v17703_v19 = vld [vmem:[#allocation128_spill] sm:$0xff] }
 0x587   : > { %6236 = vmatprep.subr.bf16.mxu0 %v17408_v54 }
 0x588   : > { %17681 = vst [vmem:[#allocation33_spill] sm:$0xff] %v13239_v18  ;;  %v17696_v18 = vpack.c.bf16 %v17694_v45, %v17695_v37  ;;  %v13319_v37 = vadd.f32 %v13106_v17, %v17644_v4  ;;  %v17735_v45 = vld [vmem:[#allocation143_spill] sm:$0xff] }
 0x58c   : > { %5834 = vmatmul.mubr.bf16.gmra.mrb[180].mxu0 %v17676_v53  ;;  %8540 = vmatmul.mubr.msk.bf16.gmra.mrb[180].mxu1 %vm667_vm0, %v10918_v9  ;;  %v13255_v9 = vadd.f32 %v13027_v23, %v17645_v52  ;;  %v17684_v53 = vpack.c.bf16 %v17682_v5, %v17683_v11 }
 0x58d   : > { %5841 = vmatprep.mubr.bf16.mxu0 %v17679_v6  ;;  %v13241_v6 = vpop.f32.mrb[43].mxu1  ;;  %3021 = vmatprep.mubr.bf16.mxu1 %v17408_v54 }
 0x58e   : > { %v2640_v40 = vpop.f32.mrb[44].mxu1 }
 0x58f   : > { %v13272_v23 = vadd.f32 %v2640_v40, %v17645_v52  ;;  %v13274_v21 = vpop.f32.mrb[45].mxu1  ;;  %v17691_v40 = vld [vmem:[#allocation116_spill] sm:$0xff] }
 0x590   : > { %v2644_v32 = vpop.f32.mrb[46].mxu1 }
 0x591   : > { %17688 = vst [vmem:[#allocation32_spill] sm:$0xff] %v13272_v23  ;;  %v13283_v5 = vpop.f32.mrb[47].mxu1  ;;  %v17704_v23 = vld [vmem:[#allocation127_spill] sm:$0xff] }
 0x594   : > { %5842 = vmatmul.mubr.bf16.gmra.mrb[184].mxu0 %v17684_v53  ;;  %8541 = vmatmul.mubr.msk.bf16.gmra.mrb[184].mxu1 %vm667_vm0, %v17689_v43  ;;  %v13281_v53 = vadd.f32 %v2644_v32, %v17645_v52  ;;  %v17692_v43 = vld [vmem:[#allocation115_spill] sm:$0xff]  ;;  %v2650_v32 = vpop.f32.mrb[48].mxu1 }
 0x595   : > { %5849 = vmatprep.mubr.bf16.mxu0 %v17687_v25  ;;  %3031 = vmatprep.mubr.bf16.mxu1 %v17408_v54  ;;  %v13292_v25 = vadd.f32 %v13076_v24, %v17644_v4  ;;  %v17693_v11 = vpack.c.bf16 %v17691_v40, %v17692_v43  ;;  %v13305_v13 = vadd.f32 %v2650_v32, %v17645_v52  ;;  %v13307_v24 = vpop.f32.mrb[49].mxu1 }
 0x596   : > { %17690 = vst [vmem:[#allocation31_spill] sm:$0xff] %v13281_v53  ;;  %v2654_v56 = vpop.f32.mrb[50].mxu1  ;;  %v17705_v53 = vpack.c.bf16 %v17703_v19, %v17704_v23  ;;  %v13350_v19 = vadd.f32 %v13147_v29, %v17644_v4  ;;  %v13354_v23 = vadd.f32 %v13156_v59, %v17644_v4  ;;  %v10525_v59 = vld [vmem:[%s16945_s3 + $0x1c8] sm:$0xff]  }
 0x597   : > { %17697 = vst [vmem:[#allocation38_spill] sm:$0xff] %v13305_v13  ;;  %v13312_v40 = vadd.f32 %v2654_v56, %v17645_v52  ;;  %v13314_v43 = vpop.f32.mrb[51].mxu1  ;;  %v17714_v13 = vld [vmem:[#allocation132_spill] sm:$0xff]  ;;  %6237 = vmatpush1.bf16.msra.mxu0 %v10525_v59 }
 0x598   : > { %v2660_v56 = vpop.f32.mrb[52].mxu1  ;;  %17709 = vst [vmem:[#allocation43_spill] sm:$0xff] %v13350_v19  ;;  %6238 = vmatprep.subr.bf16.mxu0 %v17408_v54  ;;  %v17728_v19 = vld [vmem:[#allocation10_spill] sm:$0xff] }
 0x599   : > { %17699 = vst [vmem:[#allocation37_spill] sm:$0xff] %v13312_v40  ;;  %v13336_v17 = vadd.f32 %v2660_v56, %v17645_v52  ;;  %v17715_v40 = vpack.c.bf16 %v17713_v7, %v17714_v13  ;;  %v13384_v7 = vadd.f32 %v13188_v34, %v17644_v4  ;;  %v13388_v13 = vadd.f32 %v13197_v49, %v17644_v4  ;;  %v17725_v34 = vld [vmem:[#allocation137_spill] sm:$0xff] }
 0x59b   : > { %17706 = vst [vmem:[#allocation36_spill] sm:$0xff] %v13336_v17  ;;  %17719 = vst [vmem:[#allocation40_spill] sm:$0xff] %v13384_v7 }
 0x59c   : > { %5850 = vmatmul.mubr.bf16.gmra.mrb[188].mxu0 %v17693_v11  ;;  %8542 = vmatmul.mubr.msk.bf16.gmra.mrb[188].mxu1 %vm667_vm0, %v17698_v46  ;;  %v17700_v11 = vld [vmem:[#allocation121_spill] sm:$0xff]  ;;  %v17701_v46 = vld [vmem:[#allocation120_spill] sm:$0xff]  ;;  %17720 = vst [vmem:[#allocation48_spill] sm:$0xff] %v13388_v13  ;;  %v17739_v13 = vld [vmem:[#allocation11_spill] sm:$0xff] }
 0x59d   : > { %5857 = vmatprep.mubr.bf16.mxu0 %v17696_v18  ;;  %3041 = vmatprep.mubr.bf16.mxu1 %v17408_v54  ;;  %v13323_v18 = vadd.f32 %v13115_v44, %v17644_v4  ;;  %v17702_v32 = vpack.c.bf16 %v17700_v11, %v17701_v46  ;;  %v13338_v44 = vpop.f32.mrb[53].mxu1 }
 0x59e   : > { %v2664_v41 = vpop.f32.mrb[54].mxu1 }
 0x59f   : > { %v13343_v11 = vadd.f32 %v2664_v41, %v17645_v52  ;;  %v13345_v46 = vpop.f32.mrb[55].mxu1 }
 0x5a0   : > { %v2670_v41 = vpop.f32.mrb[56].mxu1 }
 0x5a1   : > { %17708 = vst [vmem:[#allocation35_spill] sm:$0xff] %v13343_v11  ;;  %v13367_v29 = vadd.f32 %v2670_v41, %v17645_v52  ;;  %v17721_v41 = vld [vmem:[#allocation131_spill] sm:$0xff]  ;;  %v17724_v11 = vld [vmem:[#allocation138_spill] sm:$0xff] }
 0x5a2   : > { %v17726_v8 = vpack.c.bf16 %v17724_v11, %v17725_v34  ;;  %v13416_v11 = vadd.f32 %v13232_v10, %v17644_v4 }
 0x5a3   : > { %17716 = vst [vmem:[#allocation42_spill] sm:$0xff] %v13367_v29  ;;  %v17736_v29 = vld [vmem:[#allocation142_spill] sm:$0xff] }
 0x5a4   : > { %5858 = vmatmul.mubr.bf16.gmra.mrb[192].mxu0 %v17702_v32  ;;  %8543 = vmatmul.mubr.msk.bf16.gmra.mrb[192].mxu1 %vm667_vm0, %v17707_v36  ;;  %v17710_v32 = vld [vmem:[#allocation126_spill] sm:$0xff]  ;;  %v17711_v36 = vld [vmem:[#allocation125_spill] sm:$0xff]  ;;  %17730 = vst [vmem:[#allocation45_spill] sm:$0xff] %v13416_v11 }
 0x5a5   : > { %5865 = vmatprep.mubr.bf16.mxu0 %v17705_v53  ;;  %3051 = vmatprep.mubr.bf16.mxu1 %v17408_v54  ;;  %v17712_v56 = vpack.c.bf16 %v17710_v32, %v17711_v36  ;;  %v13372_v53 = vpop.f32.mrb[57].mxu1  ;;  %v17717_v32 = vld [vmem:[#allocation9_spill] sm:$0xff] }
 0x5a6   : > { %v2674_v17 = vpop.f32.mrb[58].mxu1 }
 0x5a7   : > { %v13377_v36 = vadd.f32 %v2674_v17, %v17645_v52  ;;  %v17722_v17 = vld [vmem:[#allocation130_spill] sm:$0xff] }
 0x5a8   : > { %v17723_v59 = vpack.c.bf16 %v17721_v41, %v17722_v17 }
 0x5a9   : > { %17718 = vst [vmem:[#allocation41_spill] sm:$0xff] %v13377_v36  ;;  %v17737_v36 = vpack.c.bf16 %v17735_v45, %v17736_v29  ;;  %v13447_v45 = vadd.f32 %v13274_v21, %v17644_v4  ;;  %v13451_v29 = vadd.f32 %v13283_v5, %v17644_v4 }
 0x5ab   : > { %17741 = vst [vmem:[#allocation50_spill] sm:$0xff] %v13447_v45  ;;  %17742 = vst [vmem:[#allocation58_spill] sm:$0xff] %v13451_v29  ;;  %v17772_v29 = vld [vmem:[#allocation14_spill] sm:$0xff] }
 0x5ac   : > { %5866 = vmatmul.mubr.bf16.gmra.mrb[196].mxu0 %v17712_v56  ;;  %8544 = vmatmul.mubr.msk.bf16.gmra.mrb[196].mxu1 %vm667_vm0, %v17717_v32  ;;  %v13379_v56 = vpop.f32.mrb[59].mxu1 }
 0x5ad   : > { %5873 = vmatprep.mubr.bf16.mxu0 %v17715_v40  ;;  %3061 = vmatprep.mubr.bf16.mxu1 %v17408_v54  ;;  %v2680_v32 = vpop.f32.mrb[60].mxu1  ;;  %v17746_v40 = vld [vmem:[#allocation148_spill] sm:$0xff] }
 0x5ae   : > { %v13402_v49 = vadd.f32 %v2680_v32, %v17645_v52  ;;  %v13404_v26 = vpop.f32.mrb[61].mxu1  ;;  %v17732_v32 = vld [vmem:[#allocation136_spill] sm:$0xff] }
 0x5af   : > { %v2684_v39 = vpop.f32.mrb[62].mxu1 }
 0x5b0   : > { %17727 = vst [vmem:[#allocation47_spill] sm:$0xff] %v13402_v49  ;;  %v13409_v41 = vadd.f32 %v2684_v39, %v17645_v52  ;;  %v13411_v17 = vpop.f32.mrb[63].mxu1  ;;  %v17747_v49 = vld [vmem:[#allocation147_spill] sm:$0xff] }
 0x5b1   : > { %v2690_v39 = vpop.f32.mrb[64].mxu1 }
 0x5b2   : > { %17729 = vst [vmem:[#allocation46_spill] sm:$0xff] %v13409_v41  ;;  %v13433_v10 = vadd.f32 %v2690_v39, %v17645_v52  ;;  %v17748_v41 = vpack.c.bf16 %v17746_v40, %v17747_v49  ;;  %v13478_v40 = vadd.f32 %v13307_v24, %v17644_v4  ;;  %v13482_v49 = vadd.f32 %v13314_v43, %v17644_v4  ;;  %v10526_v43 = vld [vmem:[%s16945_s3 + $0x1d0] sm:$0xff]  }
 0x5b3   : > { %6239 = vmatpush1.bf16.msra.mxu0 %v10526_v43 }
 0x5b4   : > { %5874 = vmatmul.mubr.bf16.gmra.mrb[200].mxu0 %v17723_v59  ;;  %8545 = vmatmul.mubr.msk.bf16.gmra.mrb[200].mxu1 %vm667_vm0, %v17728_v19  ;;  %v17733_v19 = vld [vmem:[#allocation135_spill] sm:$0xff]  ;;  %17738 = vst [vmem:[#allocation52_spill] sm:$0xff] %v13433_v10  ;;  %17752 = vst [vmem:[#allocation55_spill] sm:$0xff] %v13478_v40  ;;  %v17757_v59 = vld [vmem:[#allocation153_spill] sm:$0xff] }
 0x5b5   : > { %5881 = vmatprep.mubr.bf16.mxu0 %v17726_v8  ;;  %3071 = vmatprep.mubr.bf16.mxu1 %v17408_v54  ;;  %v13420_v8 = vadd.f32 %v13241_v6, %v17644_v4  ;;  %v17734_v34 = vpack.c.bf16 %v17732_v32, %v17733_v19  ;;  %v13435_v6 = vpop.f32.mrb[65].mxu1  ;;  %17753 = vst [vmem:[#allocation63_spill] sm:$0xff] %v13482_v49  ;;  %v17758_v10 = vld [vmem:[#allocation152_spill] sm:$0xff] }
 0x5b6   : > { %v2694_v7 = vpop.f32.mrb[66].mxu1  ;;  %6240 = vmatprep.subr.bf16.mxu0 %v17408_v54 }
 0x5b7   : > { %17731 = vst [vmem:[#allocation53_spill] sm:$0xff] %v13420_v8  ;;  %v13440_v32 = vadd.f32 %v2694_v7, %v17645_v52  ;;  %v13442_v19 = vpop.f32.mrb[67].mxu1  ;;  %v17750_v8 = vld [vmem:[#allocation12_spill] sm:$0xff] }
 0x5b8   : > { %v2700_v7 = vpop.f32.mrb[68].mxu1 }
 0x5b9   : > { %17740 = vst [vmem:[#allocation51_spill] sm:$0xff] %v13440_v32  ;;  %v13464_v21 = vadd.f32 %v2700_v7, %v17645_v52  ;;  %v13466_v5 = vpop.f32.mrb[69].mxu1  ;;  %v17759_v32 = vpack.c.bf16 %v17757_v59, %v17758_v10  ;;  %v13512_v59 = vadd.f32 %v13338_v44, %v17644_v4  ;;  %v13516_v10 = vadd.f32 %v13345_v46, %v17644_v4  ;;  %v17769_v44 = vld [vmem:[#allocation157_spill] sm:$0xff] }
 0x5ba   : > { %v2704_v11 = vpop.f32.mrb[70].mxu1 }
 0x5bb   : > { %17749 = vst [vmem:[#allocation57_spill] sm:$0xff] %v13464_v21  ;;  %17763 = vst [vmem:[#allocation60_spill] sm:$0xff] %v13512_v59 }
 0x5bc   : > { %5882 = vmatmul.mubr.bf16.gmra.mrb[204].mxu0 %v17734_v34  ;;  %8546 = vmatmul.mubr.msk.bf16.gmra.mrb[204].mxu1 %vm667_vm0, %v17739_v13  ;;  %v17743_v34 = vld [vmem:[#allocation141_spill] sm:$0xff]  ;;  %v17744_v13 = vld [vmem:[#allocation140_spill] sm:$0xff]  ;;  %17764 = vst [vmem:[#allocation68_spill] sm:$0xff] %v13516_v10  ;;  %v17782_v10 = vld [vmem:[#allocation15_spill] sm:$0xff] }
 0x5bd   : > { %5889 = vmatprep.mubr.bf16.mxu0 %v17737_v36  ;;  %3081 = vmatprep.mubr.bf16.mxu1 %v17408_v54  ;;  %v17745_v39 = vpack.c.bf16 %v17743_v34, %v17744_v13  ;;  %v13471_v34 = vadd.f32 %v2704_v11, %v17645_v52  ;;  %v13473_v13 = vpop.f32.mrb[71].mxu1  ;;  %v17779_v36 = vld [vmem:[#allocation163_spill] sm:$0xff] }
 0x5be   : > { %v2710_v11 = vpop.f32.mrb[72].mxu1 }
 0x5bf   : > { %17751 = vst [vmem:[#allocation56_spill] sm:$0xff] %v13471_v34  ;;  %v13495_v24 = vadd.f32 %v2710_v11, %v17645_v52  ;;  %v17765_v11 = vld [vmem:[#allocation151_spill] sm:$0xff]  ;;  %v17768_v34 = vld [vmem:[#allocation158_spill] sm:$0xff] }
 0x5c0   : > { %v17770_v40 = vpack.c.bf16 %v17768_v34, %v17769_v44  ;;  %v13544_v34 = vadd.f32 %v13372_v53, %v17644_v4 }
 0x5c1   : > { %17760 = vst [vmem:[#allocation62_spill] sm:$0xff] %v13495_v24  ;;  %v17780_v24 = vld [vmem:[#allocation162_spill] sm:$0xff] }
 0x5c2   : > { %17774 = vst [vmem:[#allocation65_spill] sm:$0xff] %v13544_v34 }
 0x5c4   : > { %5890 = vmatmul.mubr.bf16.gmra.mrb[208].mxu0 %v17745_v39  ;;  %8547 = vmatmul.mubr.msk.bf16.gmra.mrb[208].mxu1 %vm667_vm0, %v17750_v8  ;;  %v17754_v39 = vld [vmem:[#allocation146_spill] sm:$0xff]  ;;  %v17755_v8 = vld [vmem:[#allocation145_spill] sm:$0xff] }
 0x5c5   : > { %5897 = vmatprep.mubr.bf16.mxu0 %v17748_v41  ;;  %3091 = vmatprep.mubr.bf16.mxu1 %v17408_v54  ;;  %v17756_v7 = vpack.c.bf16 %v17754_v39, %v17755_v8  ;;  %v13500_v41 = vpop.f32.mrb[73].mxu1  ;;  %v17761_v39 = vld [vmem:[#allocation13_spill] sm:$0xff] }
 0x5c6   : > { %v2714_v21 = vpop.f32.mrb[74].mxu1 }
 0x5c7   : > { %v13505_v8 = vadd.f32 %v2714_v21, %v17645_v52  ;;  %v17766_v21 = vld [vmem:[#allocation150_spill] sm:$0xff] }
 0x5c8   : > { %v17767_v43 = vpack.c.bf16 %v17765_v11, %v17766_v21 }
 0x5c9   : > { %17762 = vst [vmem:[#allocation61_spill] sm:$0xff] %v13505_v8  ;;  %v17781_v8 = vpack.c.bf16 %v17779_v36, %v17780_v24  ;;  %v13575_v36 = vadd.f32 %v13404_v26, %v17644_v4  ;;  %v13579_v24 = vadd.f32 %v13411_v17, %v17644_v4 }
 0x5cc   : > { %5898 = vmatmul.mubr.bf16.gmra.mrb[212].mxu0 %v17756_v7  ;;  %8548 = vmatmul.mubr.msk.bf16.gmra.mrb[212].mxu1 %vm667_vm0, %v17761_v39  ;;  %v13507_v7 = vpop.f32.mrb[75].mxu1 }
 0x5cd   : > { %5905 = vmatprep.mubr.bf16.mxu0 %v17759_v32  ;;  %3101 = vmatprep.mubr.bf16.mxu1 %v17408_v54  ;;  %v2720_v39 = vpop.f32.mrb[76].mxu1  ;;  %v17786_v32 = vld [vmem:[#allocation168_spill] sm:$0xff] }
 0x5ce   : > { %v13530_v46 = vadd.f32 %v2720_v39, %v17645_v52  ;;  %v13532_v49 = vpop.f32.mrb[77].mxu1  ;;  %v17776_v39 = vld [vmem:[#allocation156_spill] sm:$0xff] }
 0x5cf   : > { %v2724_v45 = vpop.f32.mrb[78].mxu1 }
 0x5d0   : > { %17771 = vst [vmem:[#allocation67_spill] sm:$0xff] %v13530_v46  ;;  %v13537_v11 = vadd.f32 %v2724_v45, %v17645_v52  ;;  %v13539_v21 = vpop.f32.mrb[79].mxu1  ;;  %v17787_v46 = vld [vmem:[#allocation167_spill] sm:$0xff] }
 0x5d1   : > { %v2730_v45 = vpop.f32.mrb[80].mxu1 }
 0x5d2   : > { %17773 = vst [vmem:[#allocation66_spill] sm:$0xff] %v13537_v11  ;;  %v13561_v53 = vadd.f32 %v2730_v45, %v17645_v52  ;;  %v17788_v11 = vpack.c.bf16 %v17786_v32, %v17787_v46  ;;  %v13606_v32 = vadd.f32 %v13435_v6, %v17644_v4  ;;  %v13610_v46 = vadd.f32 %v13442_v19, %v17644_v4  ;;  %v10527_v19 = vld [vmem:[%s16945_s3 + $0x1d8] sm:$0xff]  }
 0x5d3   : > { %6241 = vmatpush1.bf16.msra.mxu0 %v10527_v19  ;;  %v17802_v19 = vld [vmem:[#allocation19_spill] sm:$0xff] }
 0x5d4   : > { %5906 = vmatmul.mubr.bf16.gmra.mrb[216].mxu0 %v17767_v43  ;;  %8549 = vmatmul.mubr.msk.bf16.gmra.mrb[216].mxu1 %vm667_vm0, %v17772_v29  ;;  %v17777_v29 = vld [vmem:[#allocation155_spill] sm:$0xff]  ;;  %v17795_v43 = vpack.c.bf16 %v13045_v51, %v13042_v22  ;;  %v13640_v22 = vadd.f32 %v13466_v5, %v17644_v4  ;;  %v13644_v51 = vadd.f32 %v13473_v13, %v17644_v4 }
 0x5d5   : > { %5913 = vmatprep.mubr.bf16.mxu0 %v17770_v40  ;;  %3111 = vmatprep.mubr.bf16.mxu1 %v17408_v54  ;;  %v13548_v40 = vadd.f32 %v13379_v56, %v17644_v4  ;;  %v17778_v44 = vpack.c.bf16 %v17776_v39, %v17777_v29  ;;  %v13563_v56 = vpop.f32.mrb[81].mxu1  ;;  %v17798_v5 = vpack.c.bf16 %v13083_v50, %v13080_v3 }
 0x5d6   : > { %v2734_v59 = vpop.f32.mrb[82].mxu1  ;;  %6242 = vmatprep.subr.bf16.mxu0 %v17408_v54  ;;  %v13672_v3 = vadd.f32 %v13500_v41, %v17644_v4  ;;  %v13676_v50 = vadd.f32 %v13507_v7, %v17644_v4 }
 0x5d7   : > { %17775 = vst [vmem:[#allocation73_spill] sm:$0xff] %v13548_v40  ;;  %v13568_v39 = vadd.f32 %v2734_v59, %v17645_v52  ;;  %v13570_v29 = vpop.f32.mrb[83].mxu1  ;;  %v17790_v40 = vld [vmem:[#allocation16_spill] sm:$0xff] }
 0x5d8   : > { %v2740_v59 = vpop.f32.mrb[84].mxu1 }
 0x5d9   : > { %v13592_v26 = vadd.f32 %v2740_v59, %v17645_v52  ;;  %v13594_v17 = vpop.f32.mrb[85].mxu1 }
 0x5da   : > { %v2744_v34 = vpop.f32.mrb[86].mxu1 }
 0x5db   : > { %17789 = vst [vmem:[#allocation72_spill] sm:$0xff] %v13592_v26 }
 0x5dc   : > { %5914 = vmatmul.mubr.bf16.gmra.mrb[220].mxu0 %v17778_v44  ;;  %8550 = vmatmul.mubr.msk.bf16.gmra.mrb[220].mxu1 %vm667_vm0, %v17782_v10  ;;  %v17783_v44 = vld [vmem:[#allocation161_spill] sm:$0xff]  ;;  %v17784_v10 = vld [vmem:[#allocation160_spill] sm:$0xff] }
 0x5dd   : > { %5921 = vmatprep.mubr.bf16.mxu0 %v17781_v8  ;;  %3121 = vmatprep.mubr.bf16.mxu1 %v17408_v54  ;;  %v17785_v45 = vpack.c.bf16 %v17783_v44, %v17784_v10  ;;  %v13599_v44 = vadd.f32 %v2744_v34, %v17645_v52  ;;  %v13601_v10 = vpop.f32.mrb[87].mxu1 }
 0x5de   : > { %v2750_v34 = vpop.f32.mrb[88].mxu1 }
 0x5df   : > { %17791 = vst [vmem:[#allocation71_spill] sm:$0xff] %v13599_v44  ;;  %v13623_v6 = vadd.f32 %v2750_v34, %v17645_v52  ;;  %v17799_v44 = vld [vmem:[#allocation18_spill] sm:$0xff] }
 0x5e4   : > { %5922 = vmatmul.mubr.bf16.gmra.mrb[224].mxu0 %v17785_v45  ;;  %8551 = vmatmul.mubr.msk.bf16.gmra.mrb[224].mxu1 %vm667_vm0, %v17790_v40  ;;  %v17792_v45 = vld [vmem:[#allocation166_spill] sm:$0xff]  ;;  %v17793_v40 = vld [vmem:[#allocation165_spill] sm:$0xff] }
 0x5e5   : > { %5929 = vmatprep.mubr.bf16.mxu0 %v17788_v11  ;;  %3131 = vmatprep.mubr.bf16.mxu1 %v17408_v54  ;;  %v17794_v59 = vpack.c.bf16 %v17792_v45, %v17793_v40  ;;  %v13628_v11 = vpop.f32.mrb[89].mxu1  ;;  %v17796_v45 = vld [vmem:[#allocation17_spill] sm:$0xff] }
 0x5e6   : > { %v2754_v26 = vpop.f32.mrb[90].mxu1 }
 0x5e7   : > { %v13633_v40 = vadd.f32 %v2754_v26, %v17645_v52  ;;  %v17797_v26 = vpack.c.bf16 %v13051_v31, %v13048_v63 }
 0x5ec   : > { %5930 = vmatmul.mubr.bf16.gmra.mrb[228].mxu0 %v17794_v59  ;;  %8552 = vmatmul.mubr.msk.bf16.gmra.mrb[228].mxu1 %vm667_vm0, %v17796_v45  ;;  %v13635_v59 = vpop.f32.mrb[91].mxu1 }
 0x5ed   : > { %5937 = vmatprep.mubr.bf16.mxu0 %v17795_v43  ;;  %3141 = vmatprep.mubr.bf16.mxu1 %v17408_v54  ;;  %v2760_v34 = vpop.f32.mrb[92].mxu1 }
 0x5ee   : > { %v13658_v13 = vadd.f32 %v2760_v34, %v17645_v52  ;;  %v13660_v45 = vpop.f32.mrb[93].mxu1  ;;  %v17805_v34 = vld [vmem:[#allocation20_spill] sm:$0xff] }
 0x5ef   : > { %v2764_v8 = vpop.f32.mrb[94].mxu1 }
 0x5f0   : > { %v13665_v63 = vadd.f32 %v2764_v8, %v17645_v52  ;;  %v13667_v31 = vpop.f32.mrb[95].mxu1 }
 0x5f1   : > { %v2770_v8 = vpop.f32.mrb[96].mxu1 }
 0x5f2   : > { %v13689_v41 = vadd.f32 %v2770_v8, %v17645_v52  ;;  %v13691_v7 = vpop.f32.mrb[97].mxu1  ;;  %v17814_v8 = vld [vmem:[#allocation25_spill] sm:$0xff] }
 0x5f3   : > { %v2774_v43 = vpop.f32.mrb[98].mxu1 }
 0x5f4   : > { %5938 = vmatmul.mubr.bf16.gmra.mrb[232].mxu0 %v17797_v26  ;;  %8553 = vmatmul.mubr.msk.bf16.gmra.mrb[232].mxu1 %vm667_vm0, %v17799_v44  ;;  %v17800_v44 = vpack.c.bf16 %v13091_v55, %v13088_v2  ;;  %v13696_v2 = vadd.f32 %v2774_v43, %v17645_v52  ;;  %v13698_v55 = vpop.f32.mrb[99].mxu1 }
 0x5f5   : > { %5945 = vmatprep.mubr.bf16.mxu0 %v17798_v5  ;;  %3151 = vmatprep.mubr.bf16.mxu1 %v17408_v54  ;;  %v17801_v5 = vpack.c.bf16 %v13124_v47, %v13120_v35  ;;  %v13703_v35 = vadd.f32 %v13532_v49, %v17644_v4  ;;  %v13707_v47 = vadd.f32 %v13539_v21, %v17644_v4  ;;  %v2780_v43 = vpop.f32.mrb[100].mxu1 }
 0x5f6   : > { %v13720_v49 = vadd.f32 %v2780_v43, %v17645_v52  ;;  %v13722_v21 = vpop.f32.mrb[101].mxu1 }
 0x5f7   : > { %v2784_v26 = vpop.f32.mrb[102].mxu1 }
 0x5fc   : > { %5946 = vmatmul.mubr.bf16.gmra.mrb[236].mxu0 %v17800_v44  ;;  %8554 = vmatmul.mubr.msk.bf16.gmra.mrb[236].mxu1 %vm667_vm0, %v17802_v19  ;;  %v17803_v19 = vpack.c.bf16 %v13132_v58, %v13128_v38  ;;  %v13727_v38 = vadd.f32 %v2784_v26, %v17645_v52  ;;  %v13729_v58 = vpop.f32.mrb[103].mxu1 }
 0x5fd   : > { %5953 = vmatprep.mubr.bf16.mxu0 %v17801_v5  ;;  %3161 = vmatprep.mubr.bf16.mxu1 %v17408_v54  ;;  %v17804_v5 = vpack.c.bf16 %v13165_v0, %v13161_v61  ;;  %v13734_v61 = vadd.f32 %v13563_v56, %v17644_v4  ;;  %v13738_v0 = vadd.f32 %v13570_v29, %v17644_v4  ;;  %v2790_v26 = vpop.f32.mrb[104].mxu1  ;;  %v10528_v29 = vld [vmem:[%s16945_s3 + $0x1e0] sm:$0xff]  }
 0x5fe   : > { %v13751_v56 = vadd.f32 %v2790_v26, %v17645_v52  ;;  %6243 = vmatpush1.bf16.msra.mxu0 %v10528_v29  ;;  %v17819_v29 = vld [vmem:[#allocation30_spill] sm:$0xff] }
 0x5ff   : > { %6244 = vmatprep.subr.bf16.mxu0 %v17408_v54 }
 0x600   : > { %17808 = vst [vmem:[#allocation70_spill] sm:$0xff] %v13751_v56 }
 0x604   : > { %5954 = vmatmul.mubr.bf16.gmra.mrb[240].mxu0 %v17803_v19  ;;  %8555 = vmatmul.mubr.msk.bf16.gmra.mrb[240].mxu1 %vm667_vm0, %v17805_v34  ;;  %v17806_v34 = vpack.c.bf16 %v13173_v62, %v13169_v12  ;;  %v13756_v19 = vpop.f32.mrb[105].mxu1  ;;  %v17809_v12 = vld [vmem:[#allocation22_spill] sm:$0xff] }
 0x605   : > { %5961 = vmatprep.mubr.bf16.mxu0 %v17804_v5  ;;  %3171 = vmatprep.mubr.bf16.mxu1 %v17408_v54  ;;  %v17807_v5 = vpack.c.bf16 %v13206_v42, %v13202_v57  ;;  %v2794_v44 = vpop.f32.mrb[106].mxu1  ;;  %v13768_v57 = vadd.f32 %v13594_v17, %v17644_v4  ;;  %v13772_v42 = vadd.f32 %v13601_v10, %v17644_v4 }
 0x606   : > { %v13761_v62 = vadd.f32 %v2794_v44, %v17645_v52  ;;  %v17811_v44 = vpack.c.bf16 %v13214_v1, %v13210_v16  ;;  %v17812_v17 = vpack.c.bf16 %v13250_v30, %v13246_v60  ;;  %v13800_v60 = vadd.f32 %v13628_v11, %v17644_v4 }
 0x607   : > { %v13804_v30 = vadd.f32 %v13635_v59, %v17644_v4 }
 0x608   : > { %17810 = vst [vmem:[#allocation78_spill] sm:$0xff] %v13761_v62 }
 0x60c   : > { %5962 = vmatmul.mubr.bf16.gmra.mrb[244].mxu0 %v17806_v34  ;;  %8556 = vmatmul.mubr.msk.bf16.gmra.mrb[244].mxu1 %vm667_vm0, %v17809_v12  ;;  %v13763_v34 = vpop.f32.mrb[107].mxu1 }
 0x60d   : > { %5969 = vmatprep.mubr.bf16.mxu0 %v17807_v5  ;;  %3181 = vmatprep.mubr.bf16.mxu1 %v17408_v54  ;;  %v2800_v5 = vpop.f32.mrb[108].mxu1 }
 0x60e   : > { %v13786_v10 = vadd.f32 %v2800_v5, %v17645_v52  ;;  %v13788_v12 = vpop.f32.mrb[109].mxu1  ;;  %v17834_v5 = vld [vmem:[#allocation48_spill] sm:$0xff] }
 0x60f   : > { %v2804_v43 = vpop.f32.mrb[110].mxu1 }
 0x610   : > { %17813 = vst [vmem:[#allocation77_spill] sm:$0xff] %v13786_v10  ;;  %v13793_v16 = vadd.f32 %v2804_v43, %v17645_v52  ;;  %v13795_v1 = vpop.f32.mrb[111].mxu1 }
 0x611   : > { %v2810_v43 = vpop.f32.mrb[112].mxu1 }
 0x612   : > { %17815 = vst [vmem:[#allocation76_spill] sm:$0xff] %v13793_v16  ;;  %v13817_v11 = vadd.f32 %v2810_v43, %v17645_v52  ;;  %v13819_v59 = vpop.f32.mrb[113].mxu1  ;;  %v17848_v16 = vld [vmem:[#allocation49_spill] sm:$0xff] }
 0x613   : > { %v2814_v26 = vpop.f32.mrb[114].mxu1 }
 0x614   : > { %5970 = vmatmul.mubr.bf16.gmra.mrb[248].mxu0 %v17811_v44  ;;  %8557 = vmatmul.mubr.msk.bf16.gmra.mrb[248].mxu1 %vm667_vm0, %v17814_v8  ;;  %v17816_v8 = vpack.c.bf16 %v13259_v33, %v13255_v9  ;;  %17818 = vst [vmem:[#allocation75_spill] sm:$0xff] %v13817_v11  ;;  %v13824_v9 = vadd.f32 %v2814_v26, %v17645_v52  ;;  %v13826_v33 = vpop.f32.mrb[115].mxu1 }
 0x615   : > { %5977 = vmatprep.mubr.bf16.mxu0 %v17812_v17  ;;  %3191 = vmatprep.mubr.bf16.mxu1 %v17408_v54  ;;  %v17817_v17 = vpack.c.bf16 %v13292_v25, %v13288_v15  ;;  %v13831_v15 = vadd.f32 %v13660_v45, %v17644_v4  ;;  %v13835_v25 = vadd.f32 %v13667_v31, %v17644_v4  ;;  %v2820_v26 = vpop.f32.mrb[116].mxu1 }
 0x616   : > { %17820 = vst [vmem:[#allocation83_spill] sm:$0xff] %v13824_v9  ;;  %v13848_v45 = vadd.f32 %v2820_v26, %v17645_v52  ;;  %v13850_v31 = vpop.f32.mrb[117].mxu1  ;;  %v17838_v9 = vld [vmem:[#allocation44_spill] sm:$0xff]  ;;  %v17844_v26 = vld [vmem:[#allocation53_spill] sm:$0xff] }
 0x617   : > { %v2824_v44 = vpop.f32.mrb[118].mxu1 }
 0x618   : > { %17823 = vst [vmem:[#allocation82_spill] sm:$0xff] %v13848_v45 }
 0x61c   : > { %5978 = vmatmul.mubr.bf16.gmra.mrb[252].mxu0 %v17816_v8  ;;  %8558 = vmatmul.mubr.msk.bf16.gmra.mrb[252].mxu1 %vm667_vm0, %v17819_v29  ;;  %v17821_v29 = vpack.c.bf16 %v13074_v20, %v13062_v48  ;;  %v13855_v48 = vadd.f32 %v2824_v44, %v17645_v52  ;;  %v13857_v20 = vpop.f32.mrb[119].mxu1 }
 0x61d   : > { %5985 = vmatprep.mubr.bf16.mxu0 %v17817_v17  ;;  %3201 = vmatprep.mubr.bf16.mxu1 %v17408_v54  ;;  %v17822_v17 = vpack.c.bf16 %v13323_v18, %v13319_v37  ;;  %v13862_v37 = vadd.f32 %v13691_v7, %v17644_v4  ;;  %v13866_v18 = vadd.f32 %v13698_v55, %v17644_v4  ;;  %v2830_v44 = vpop.f32.mrb[120].mxu1  ;;  %v10529_v55 = vld [vmem:[%s16945_s3 + $0x1e8] sm:$0xff]  }
 0x61e   : > { %17824 = vst [vmem:[#allocation81_spill] sm:$0xff] %v13855_v48  ;;  %v13879_v7 = vadd.f32 %v2830_v44, %v17645_v52  ;;  %6245 = vmatpush1.bf16.msra.mxu0 %v10529_v55  ;;  %v17855_v44 = vld [vmem:[#allocation58_spill] sm:$0xff] }
 0x61f   : > { %6246 = vmatprep.subr.bf16.mxu0 %v17408_v54 }
 0x620   : > { %17828 = vst [vmem:[#allocation80_spill] sm:$0xff] %v13879_v7  ;;  %v17845_v7 = vld [vmem:[#allocation45_spill] sm:$0xff] }
 0x624   : > { %5986 = vmatmul.mubr.bf16.gmra.mrb[0].mxu0 %v17821_v29  ;;  %8559 = vmatmul.mubr.msk.bf16.gmra.mrb[0].mxu1 %vm667_vm0, %v11186_v14  ;;  %v17825_v14 = vpack.c.bf16 %v13113_v27, %v13104_v28  ;;  %v13884_v29 = vpop.f32.mrb[121].mxu1  ;;  %v17829_v28 = vld [vmem:[#allocation39_spill] sm:$0xff] }
 0x625   : > { %5993 = vmatprep.mubr.bf16.mxu0 %v17822_v17  ;;  %3211 = vmatprep.mubr.bf16.mxu1 %v17408_v54  ;;  %v17826_v17 = vld [vmem:[#allocation43_spill] sm:$0xff]  ;;  %v2834_v43 = vpop.f32.mrb[122].mxu1 }
 0x626   : > { %v17827_v8 = vpack.c.bf16 %v13354_v23, %v17826_v17  ;;  %v13889_v27 = vadd.f32 %v2834_v43, %v17645_v52  ;;  %v13896_v23 = vadd.f32 %v13722_v21, %v17644_v4  ;;  %v17831_v17 = vld [vmem:[#allocation28_spill] sm:$0xff]  ;;  %v17832_v43 = vld [vmem:[#allocation29_spill] sm:$0xff] }
 0x627   : > { %v17833_v55 = vpack.c.bf16 %v17831_v17, %v17832_v43  ;;  %v17835_v21 = vld [vmem:[#allocation40_spill] sm:$0xff] }
 0x628   : > { %17830 = vst [vmem:[#allocation88_spill] sm:$0xff] %v13889_v27  ;;  %v17836_v45 = vpack.c.bf16 %v17834_v5, %v17835_v21  ;;  %v13928_v5 = vadd.f32 %v13756_v19, %v17644_v4  ;;  %v17846_v27 = vpack.c.bf16 %v17844_v26, %v17845_v7  ;;  %v13959_v26 = vadd.f32 %v13788_v12, %v17644_v4  ;;  %v6764_v12 = vld [vmem:[%s16947_s5 + $0x8] sm:$0xff] }
 0x629   : > { %v13963_v7 = vadd.f32 %v13795_v1, %v17644_v4  ;;  %v17866_v1 = vld [vmem:[#allocation63_spill] sm:$0xff] }
 0x62a   : > { %17840 = vst [vmem:[#allocation23_spill] sm:$0xff] %v13928_v5  ;;  %17850 = vst [vmem:[#allocation93_spill] sm:$0xff] %v13959_v26  ;;  %v17867_v26 = vld [vmem:[#allocation55_spill] sm:$0xff]  ;;  %v17890_v5 = vld [vmem:[#allocation69_spill] sm:$0xff] }
 0x62b   : > { %17851 = vst [vmem:[#allocation92_spill] sm:$0xff] %v13963_v7 }
 0x62c   : > { %5994 = vmatmul.mubr.bf16.gmra.mrb[4].mxu0 %v17825_v14  ;;  %8560 = vmatmul.mubr.msk.bf16.gmra.mrb[4].mxu1 %vm667_vm0, %v17829_v28  ;;  %v13891_v14 = vpop.f32.mrb[123].mxu1 }
 0x62d   : > { %6001 = vmatprep.mubr.bf16.mxu0 %v17827_v8  ;;  %3221 = vmatprep.mubr.bf16.mxu1 %v17408_v54  ;;  %v13900_v8 = vadd.f32 %v13729_v58, %v17644_v4  ;;  %v2840_v28 = vpop.f32.mrb[124].mxu1 }
 0x62e   : > { %v13914_v58 = vadd.f32 %v2840_v28, %v17645_v52  ;;  %v13916_v48 = vpop.f32.mrb[125].mxu1  ;;  %v17841_v28 = vld [vmem:[#allocation26_spill] sm:$0xff] }
 0x62f   : > { %v2844_v11 = vpop.f32.mrb[126].mxu1 }
 0x630   : > { %17837 = vst [vmem:[#allocation87_spill] sm:$0xff] %v13914_v58  ;;  %v13921_v17 = vadd.f32 %v2844_v11, %v17645_v52  ;;  %v13923_v43 = vpop.f32.mrb[127].mxu1  ;;  %v17856_v58 = vld [vmem:[#allocation50_spill] sm:$0xff] }
 0x631   : > { %v2850_v11 = vpop.f32.mrb[128].mxu1 }
 0x632   : > { %17839 = vst [vmem:[#allocation24_spill] sm:$0xff] %v13921_v17  ;;  %v13945_v19 = vadd.f32 %v2850_v11, %v17645_v52  ;;  %v17857_v17 = vpack.c.bf16 %v17855_v44, %v17856_v58  ;;  %v13996_v44 = vadd.f32 %v13819_v59, %v17644_v4  ;;  %v14000_v58 = vadd.f32 %v13826_v33, %v17644_v4  ;;  %v10530_v33 = vld [vmem:[%s16945_s3 + $0x1f0] sm:$0xff]  }
 0x633   : > { %v17868_v59 = vpack.c.bf16 %v17866_v1, %v17867_v26  ;;  %6247 = vmatpush1.bf16.msra.mxu0 %v10530_v33  ;;  %v14030_v26 = vadd.f32 %v13850_v31, %v17644_v4  ;;  %v14034_v1 = vadd.f32 %v13857_v20, %v17644_v4  ;;  %v17877_v33 = vld [vmem:[#allocation21_spill] sm:$0xff]  ;;  %v17884_v31 = vld [vmem:[#allocation35_spill] sm:$0xff] }
 0x634   : > { %6002 = vmatmul.mubr.bf16.gmra.mrb[8].mxu0 %v17833_v55  ;;  %8561 = vmatmul.mubr.msk.bf16.gmra.mrb[8].mxu1 %vm667_vm0, %v17838_v9  ;;  %v17842_v9 = vld [vmem:[#allocation27_spill] sm:$0xff]  ;;  %17847 = vst [vmem:[#allocation86_spill] sm:$0xff] %v13945_v19  ;;  %v17859_v19 = vld [vmem:[#allocation54_spill] sm:$0xff]  ;;  %17861 = vst [vmem:[#allocation98_spill] sm:$0xff] %v13996_v44 }
 0x635   : > { %6009 = vmatprep.mubr.bf16.mxu0 %v17836_v45  ;;  %3231 = vmatprep.mubr.bf16.mxu1 %v17408_v54  ;;  %v13932_v45 = vadd.f32 %v13763_v34, %v17644_v4  ;;  %v17843_v21 = vpack.c.bf16 %v17841_v28, %v17842_v9  ;;  %v13947_v34 = vpop.f32.mrb[129].mxu1  ;;  %17862 = vst [vmem:[#allocation97_spill] sm:$0xff] %v14000_v58  ;;  %17872 = vst [vmem:[#allocation103_spill] sm:$0xff] %v14030_v26  ;;  %v17888_v58 = vld [vmem:[#allocation65_spill] sm:$0xff] }
 0x636   : > { %v2854_v10 = vpop.f32.mrb[130].mxu1  ;;  %17873 = vst [vmem:[#allocation102_spill] sm:$0xff] %v14034_v1  ;;  %6248 = vmatprep.subr.bf16.mxu0 %v17408_v54 }
 0x637   : > { %v13952_v28 = vadd.f32 %v2854_v10, %v17645_v52  ;;  %v13954_v9 = vpop.f32.mrb[131].mxu1  ;;  %v6763_v10 = vld [vmem:[%s16947_s5] sm:$0xff] }
 0x638   : > { %v2860_v55 = vpop.f32.mrb[132].mxu1 }
 0x639   : > { %17849 = vst [vmem:[#allocation85_spill] sm:$0xff] %v13952_v28 }
 0x63c   : > { %6010 = vmatmul.mubr.bf16.gmra.mrb[12].mxu0 %v17843_v21  ;;  %8562 = vmatmul.mubr.msk.bf16.gmra.mrb[12].mxu1 %vm667_vm0, %v17848_v16  ;;  %v17852_v21 = vld [vmem:[#allocation33_spill] sm:$0xff]  ;;  %v17853_v16 = vld [vmem:[#allocation34_spill] sm:$0xff] }
 0x63d   : > { %6017 = vmatprep.mubr.bf16.mxu0 %v17846_v27  ;;  %3241 = vmatprep.mubr.bf16.mxu1 %v17408_v54  ;;  %v17854_v11 = vpack.c.bf16 %v17852_v21, %v17853_v16  ;;  %v9302_v27 = vpack.c.bf16 %v6764_v12, %v6763_v10  ;;  %v13982_v21 = vadd.f32 %v2860_v55, %v17645_v52  ;;  %v13984_v16 = vpop.f32.mrb[133].mxu1  ;;  %v17863_v55 = vld [vmem:[#allocation31_spill] sm:$0xff] }
 0x63f   : > { %17858 = vst [vmem:[#allocation91_spill] sm:$0xff] %v13982_v21  ;;  %9303 = vmatprep.subr.bf16.mxu1 %v9302_v27  ;;  %v17878_v21 = vld [vmem:[#allocation68_spill] sm:$0xff] }
 0x640   : > { %9305 = vmatpush3.bf16.msra.mxu1 %v9302_v27 }
 0x644   : > { %6018 = vmatmul.mubr.bf16.gmra.mrb[16].mxu0 %v17854_v11  ;;  %v2864_v11 = vpop.f32.mrb[134].mxu1  ;;  %8563 = vmatmul.mubr.msk.bf16.gmra.mrb[16].mxu1 %vm667_vm0, %v17859_v19  ;;  %v17864_v19 = vld [vmem:[#allocation32_spill] sm:$0xff] }
 0x645   : > { %6025 = vmatprep.mubr.bf16.mxu0 %v17857_v17  ;;  %v13989_v28 = vadd.f32 %v2864_v11, %v17645_v52  ;;  %v13991_v56 = vpop.f32.mrb[135].mxu1  ;;  %3251 = vmatprep.mubr.bf16.mxu1 %v17408_v54  ;;  %v17865_v10 = vpack.c.bf16 %v17863_v55, %v17864_v19  ;;  %v17870_v55 = vld [vmem:[#allocation59_spill] sm:$0xff] }
 0x646   : > { %v2870_v12 = vpop.f32.mrb[136].mxu1 }
 0x647   : > { %17860 = vst [vmem:[#allocation90_spill] sm:$0xff] %v13989_v28  ;;  %v14013_v7 = vadd.f32 %v2870_v12, %v17645_v52  ;;  %v14018_v27 = vpop.f32.mrb[137].mxu1  ;;  %v17879_v28 = vld [vmem:[#allocation60_spill] sm:$0xff] }
 0x648   : > { %v2874_v17 = vpop.f32.mrb[138].mxu1  ;;  %v17880_v44 = vpack.c.bf16 %v17878_v21, %v17879_v28  ;;  %v10533_v12 = vld [vmem:[%s16944_s2] sm:$0xff]  ;;  %v14062_v28 = vadd.f32 %v13884_v29, %v17644_v4  ;;  %v14066_v21 = vadd.f32 %v13891_v14, %v17644_v4  ;;  %v17887_v14 = vld [vmem:[#allocation73_spill] sm:$0xff]  ;;  %v17896_v29 = vpack.c.bf16 %v13579_v24, %v13575_v36  ;;  %v17900_v36 = vld [vmem:[#allocation46_spill] sm:$0xff] }
 0x649   : > { %17869 = vst [vmem:[#allocation96_spill] sm:$0xff] %v14013_v7  ;;  %v14023_v19 = vadd.f32 %v2874_v17, %v17645_v52  ;;  %v17875_v52 = vld [vmem:[#allocation38_spill] sm:$0xff]  ;;  %v17889_v62 = vpack.c.bf16 %v17887_v14, %v17888_v58  ;;  %v17901_v24 = vld [vmem:[#allocation47_spill] sm:$0xff] }
 0x64a   : > { %v17894_v58 = vld [vmem:[#allocation42_spill] sm:$0xff] }
 0x64b   : > { %17871 = vst [vmem:[#allocation95_spill] sm:$0xff] %v14023_v19  ;;  %v17885_v19 = vld [vmem:[#allocation36_spill] sm:$0xff] }
 0x64c   : > { %6026 = vmatmul.mubr.bf16.gmra.mrb[20].mxu0 %v17865_v10  ;;  %8564 = vmatmul.mubr.msk.bf16.gmra.mrb[20].mxu1 %vm667_vm0, %v17870_v55  ;;  %v14025_v10 = vpop.f32.mrb[139].mxu1  ;;  %v573_v55 = vsub.s32 6, %v17877_v33  ;;  %v17886_v26 = vpack.c.bf16 %v17884_v31, %v17885_v19  ;;  %v14097_v19 = vadd.f32 %v13916_v48, %v17644_v4 }
 0x64d   : > { %6033 = vmatprep.mubr.bf16.mxu0 %v17868_v59  ;;  %3261 = vmatprep.mubr.bf16.mxu1 %v17408_v54  ;;  %v17874_v59 = vld [vmem:[#allocation37_spill] sm:$0xff]  ;;  %v2913_v11 = vpop.f32.mrb[140].mxu1 }
 0x64e   : > { %v17876_v17 = vpack.c.bf16 %v17874_v59, %v17875_v52  ;;  %v14048_v20 = vpop.f32.mrb[141].mxu1  ;;  %v14053_v7 = vrot.slane %v10533_v12, %v573_v55  ;;  %v17881_v52 = vld [vmem:[#allocation64_spill] sm:$0xff]  ;;  %17891 = vst [vmem:[#allocation108_spill] sm:$0xff] %v14097_v19 }
 0x64f   : > { %v2917_v59 = vpop.f32.mrb[142].mxu1 }
 0x650   : > { %v14072_v55 = vadd.f32 %v2917_v59, %v14053_v7 }
 0x652   : > { %17883 = vst [vmem:[#allocation100_spill] sm:$0xff] %v14072_v55  ;;  %v17897_v55 = vld [vmem:[#allocation74_spill] sm:$0xff] }
 0x654   : > { %6034 = vmatmul.mubr.bf16.gmra.mrb[24].mxu0 %v17876_v17  ;;  %8565 = vmatmul.mubr.msk.bf16.gmra.mrb[24].mxu1 %vm667_vm0, %v17881_v52  ;;  %v14057_v17 = vpop.f32.mrb[143].mxu1 }
 0x655   : > { %6041 = vmatprep.mubr.bf16.mxu0 %v17880_v44  ;;  %3271 = vmatprep.mubr.bf16.mxu1 %v17408_v54  ;;  %v14069_v44 = vadd.f32 %v2913_v11, %v14053_v7  ;;  %v14079_v1 = vpop.f32.mrb[144].mxu1 }
 0x656   : > { %v14086_v11 = vpop.f32.mrb[145].mxu1 }
 0x657   : > { %17882 = vst [vmem:[#allocation101_spill] sm:$0xff] %v14069_v44  ;;  %v14088_v59 = vpop.f32.mrb[146].mxu1 }
 0x658   : > { %v14092_v52 = vpop.f32.mrb[147].mxu1 }
 0x659   : > { %v14106_v14 = vpop.f32.mrb[148].mxu1 }
 0x65a   : > { %v14113_v44 = vpop.f32.mrb[149].mxu1 }
 0x65b   : > { %v14115_v48 = vpop.f32.mrb[150].mxu1 }
 0x65c   : > { %6042 = vmatmul.mubr.bf16.gmra.mrb[28].mxu0 %v17886_v26  ;;  %8566 = vmatmul.mubr.msk.bf16.gmra.mrb[28].mxu1 %vm667_vm0, %v17890_v5  ;;  %v14101_v26 = vadd.f32 %v13923_v43, %v17644_v4  ;;  %v14119_v43 = vpop.f32.mrb[151].mxu1  ;;  %v17903_v5 = vpack.c.bf16 %v13610_v46, %v13606_v32  ;;  %v14154_v32 = vadd.f32 %v13984_v16, %v17644_v4 }
 0x65d   : > { %6049 = vmatprep.mubr.bf16.mxu0 %v17889_v62  ;;  %3281 = vmatprep.mubr.bf16.mxu1 %v17408_v54  ;;  %v17893_v62 = vld [vmem:[#allocation41_spill] sm:$0xff]  ;;  %v14158_v46 = vadd.f32 %v13991_v56, %v17644_v4 }
 0x65e   : > { %17892 = vst [vmem:[#allocation107_spill] sm:$0xff] %v14101_v26  ;;  %v17895_v31 = vpack.c.bf16 %v17893_v62, %v17894_v58  ;;  %v14124_v62 = vadd.f32 %v13947_v34, %v17644_v4  ;;  %v14128_v58 = vadd.f32 %v13954_v9, %v17644_v4  ;;  %v10531_v34 = vld [vmem:[%s16945_s3 + $0x1f8] sm:$0xff]   ;;  %17905 = vst [vmem:[#allocation113_spill] sm:$0xff] %v14154_v32 }
 0x65f   : > { %v17904_v26 = vld [vmem:[#allocation79_spill] sm:$0xff]  ;;  %6249 = vmatpush1.bf16.msra.mxu0 %v10531_v34  ;;  %17906 = vst [vmem:[#allocation112_spill] sm:$0xff] %v14158_v46  ;;  %v17910_v34 = vpack.c.bf16 %v13644_v51, %v13640_v22  ;;  %v577_v22 = vsub.s32 7, %v17877_v33  ;;  %v17912_v51 = vld [vmem:[#allocation56_spill] sm:$0xff] }
 0x660   : > { %17898 = vst [vmem:[#allocation106_spill] sm:$0xff] %v14124_v62  ;;  %17899 = vst [vmem:[#allocation105_spill] sm:$0xff] %v14128_v58  ;;  %v17911_v58 = vld [vmem:[#allocation84_spill] sm:$0xff] }
 0x664   : > { %6050 = vmatmul.mubr.bf16.gmra.mrb[32].mxu0 %v17895_v31  ;;  %8567 = vmatmul.mubr.msk.bf16.gmra.mrb[32].mxu1 %vm667_vm0, %v17897_v55  ;;  %v14133_v31 = vpop.f32.mrb[152].mxu1 }
 0x665   : > { %6057 = vmatprep.mubr.bf16.mxu0 %v17896_v29  ;;  %3291 = vmatprep.mubr.bf16.mxu1 %v17408_v54  ;;  %v17902_v29 = vpack.c.bf16 %v17900_v36, %v17901_v24  ;;  %v14143_v19 = vpop.f32.mrb[153].mxu1  ;;  %v17908_v24 = vld [vmem:[#allocation52_spill] sm:$0xff] }
 0x666   : > { %v14145_v9 = vpop.f32.mrb[154].mxu1 }
 0x667   : > { %v14149_v36 = vpop.f32.mrb[155].mxu1 }
 0x668   : > { %v14163_v55 = vpop.f32.mrb[156].mxu1 }
 0x669   : > { %v14170_v62 = vpop.f32.mrb[157].mxu1 }
 0x66a   : > { %v14172_v16 = vpop.f32.mrb[158].mxu1 }
 0x66b   : > { %v14176_v56 = vpop.f32.mrb[159].mxu1 }
 0x66c   : > { %6058 = vmatmul.mubr.bf16.gmra.mrb[36].mxu0 %v17902_v29  ;;  %8568 = vmatmul.mubr.msk.bf16.gmra.mrb[36].mxu1 %vm667_vm0, %v17904_v26  ;;  %v14191_v26 = vrot.slane %v10533_v12, %v577_v22 }
 0x66d   : > { %6065 = vmatprep.mubr.bf16.mxu0 %v17903_v5  ;;  %3301 = vmatprep.mubr.bf16.mxu1 %v17408_v54  ;;  %v17907_v5 = vld [vmem:[#allocation51_spill] sm:$0xff] }
 0x66e   : > { %v17909_v29 = vpack.c.bf16 %v17907_v5, %v17908_v24  ;;  %v14181_v5 = vadd.f32 %v14018_v27, %v17644_v4  ;;  %v14185_v24 = vadd.f32 %v14025_v10, %v17644_v4  ;;  %v17915_v27 = vpack.c.bf16 %v13676_v50, %v13672_v3  ;;  %v17916_v10 = vld [vmem:[#allocation89_spill] sm:$0xff]  ;;  %v17920_v50 = vld [vmem:[#allocation62_spill] sm:$0xff] }
 0x66f   : > { %v14211_v12 = vadd.f32 %v14048_v20, %v14191_v26  ;;  %v14215_v22 = vadd.f32 %v14057_v17, %v14191_v26  ;;  %v17919_v3 = vld [vmem:[#allocation61_spill] sm:$0xff]  ;;  %v17922_v17 = vpack.c.bf16 %v13707_v47, %v13703_v35  ;;  %v14244_v20 = vadd.f32 %v14086_v11, %v14191_v26  ;;  %v17933_v11 = vld [vmem:[#allocation104_spill] sm:$0xff] }
 0x670   : > { %v14248_v35 = vadd.f32 %v14092_v52, %v14191_v26  ;;  %v14252_v47 = vadd.f32 %v14079_v1, %v14053_v7  ;;  %v17927_v52 = vpack.c.bf16 %v13738_v0, %v13734_v61  ;;  %v14285_v61 = vadd.f32 %v14119_v43, %v14191_v26 }
 0x671   : > { %17917 = vst [vmem:[#allocation111_spill] sm:$0xff] %v14211_v12  ;;  %17918 = vst [vmem:[#allocation110_spill] sm:$0xff] %v14215_v22  ;;  %v17928_v22 = vld [vmem:[#allocation99_spill] sm:$0xff]  ;;  %v14289_v0 = vadd.f32 %v14106_v14, %v14053_v7  ;;  %v17932_v43 = vpack.c.bf16 %v13772_v42, %v13768_v57  ;;  %v14322_v57 = vadd.f32 %v14149_v36, %v14191_v26 }
 0x672   : > { %v14326_v42 = vadd.f32 %v14133_v31, %v14053_v7  ;;  %v17937_v36 = vpack.c.bf16 %v13804_v30, %v13800_v60  ;;  %v14359_v60 = vadd.f32 %v14176_v56, %v14191_v26  ;;  %v14363_v30 = vadd.f32 %v14163_v55, %v14053_v7 }
 0x673   : > { %17929 = vst [vmem:[#allocation118_spill] sm:$0xff] %v14289_v0  ;;  %v17940_v56 = vpack.c.bf16 %v13835_v25, %v13831_v15 }
 0x674   : > { %6066 = vmatmul.mubr.bf16.gmra.mrb[40].mxu0 %v17909_v29  ;;  %8569 = vmatmul.mubr.msk.bf16.gmra.mrb[40].mxu1 %vm667_vm0, %v17911_v58  ;;  %v17913_v29 = vld [vmem:[#allocation57_spill] sm:$0xff]  ;;  %v14193_v58 = vpop.f32.mrb[160].mxu1 }
 0x675   : > { %6073 = vmatprep.mubr.bf16.mxu0 %v17910_v34  ;;  %3311 = vmatprep.mubr.bf16.mxu1 %v17408_v54  ;;  %v17914_v34 = vpack.c.bf16 %v17912_v51, %v17913_v29  ;;  %v14200_v46 = vpop.f32.mrb[161].mxu1  ;;  %v17921_v29 = vpack.c.bf16 %v17919_v3, %v17920_v50  ;;  %v14400_v25 = vadd.f32 %v14193_v58, %v14053_v7 }
 0x676   : > { %v14202_v4 = vpop.f32.mrb[162].mxu1 }
 0x677   : > { %v14206_v51 = vpop.f32.mrb[163].mxu1 }
 0x678   : > { %v14396_v15 = vadd.f32 %v14206_v51, %v14191_v26  ;;  %v17943_v51 = vpack.c.bf16 %v13866_v18, %v13862_v37 }
 0x67c   : > { %6074 = vmatmul.mubr.bf16.gmra.mrb[44].mxu0 %v17914_v34  ;;  %8570 = vmatmul.mubr.msk.bf16.gmra.mrb[44].mxu1 %vm667_vm0, %v17916_v10  ;;  %v6765_v34 = vld [vmem:[%s16947_s5 + $0x10] sm:$0xff]  ;;  %v14226_v10 = vpop.f32.mrb[164].mxu1 }
 0x67d   : > { %6081 = vmatprep.mubr.bf16.mxu0 %v17915_v27  ;;  %3321 = vmatprep.mubr.bf16.mxu1 %v17408_v54  ;;  %v6766_v27 = vld [vmem:[%s16947_s5 + $0x18] sm:$0xff]  ;;  %v14233_v3 = vpop.f32.mrb[165].mxu1  ;;  %v14437_v18 = vadd.f32 %v14226_v10, %v14053_v7 }
 0x67e   : > { %v9306_v32 = vpack.c.bf16 %v6766_v27, %v6765_v34  ;;  %v14235_v50 = vpop.f32.mrb[166].mxu1  ;;  %v14256_v34 = vadd.f32 %v14088_v59, %v14053_v7  ;;  %v17924_v27 = vld [vmem:[#allocation66_spill] sm:$0xff] }
 0x67f   : > { %v14239_v33 = vpop.f32.mrb[167].mxu1  ;;  %17945 = vst [vmem:[#allocation6_spill] sm:$0xff] %v14437_v18  ;;  %v17957_v18 = vld [vmem:[#allocation129_spill] sm:$0xff] }
 0x680   : > { %9307 = vmatprep.subr.bf16.mxu1 %v9306_v32  ;;  %v14261_v12 = vpop.f32.mrb[168].mxu1  ;;  %v14433_v37 = vadd.f32 %v14239_v33, %v14191_v26  ;;  %v17948_v33 = vpack.c.bf16 %v13900_v8, %v13896_v23 }
 0x681   : > { %9309 = vmatpush3.bf16.msra.mxu1 %v9306_v32  ;;  %v14268_v32 = vpop.f32.mrb[169].mxu1  ;;  %v14474_v8 = vadd.f32 %v14261_v12, %v14053_v7 }
 0x682   : > { %v14272_v59 = vpop.f32.mrb[170].mxu1 }
 0x683   : > { %17952 = vst [vmem:[#allocation122_spill] sm:$0xff] %v14474_v8  ;;  %v17964_v8 = vld [vmem:[#allocation92_spill] sm:$0xff] }
 0x684   : > { %6082 = vmatmul.mubr.bf16.gmra.mrb[48].mxu0 %v17921_v29  ;;  %v17923_v29 = vld [vmem:[#allocation94_spill] sm:$0xff] }
 0x685   : > { %6089 = vmatprep.mubr.bf16.mxu0 %v17922_v17  ;;  %8571 = vmatmul.mubr.msk.bf16.gmra.mrb[48].mxu1 %vm667_vm0, %v17923_v29  ;;  %v17925_v17 = vld [vmem:[#allocation67_spill] sm:$0xff] }
 0x686   : > { %3331 = vmatprep.mubr.bf16.mxu1 %v17408_v54  ;;  %v17926_v29 = vpack.c.bf16 %v17924_v27, %v17925_v17  ;;  %v14276_v27 = vpop.f32.mrb[171].mxu1  ;;  %v14281_v17 = vadd.f32 %v14113_v44, %v14191_v26 }
 0x687   : > { %v14470_v23 = vadd.f32 %v14276_v27, %v14191_v26  ;;  %v17955_v27 = vld [vmem:[#allocation23_spill] sm:$0xff] }
 0x688   : > { %v17956_v10 = vpack.c.bf16 %v13932_v45, %v17955_v27  ;;  %v17962_v27 = vld [vmem:[#allocation70_spill] sm:$0xff] }
 0x689   : > { %17951 = vst [vmem:[#allocation123_spill] sm:$0xff] %v14470_v23  ;;  %v17967_v23 = vld [vmem:[#allocation134_spill] sm:$0xff] }
 0x68c   : > { %6090 = vmatmul.mubr.bf16.gmra.mrb[52].mxu0 %v17926_v29  ;;  %v14293_v29 = vadd.f32 %v14115_v48, %v14053_v7 }
 0x68d   : > { %6097 = vmatprep.mubr.bf16.mxu0 %v17927_v52  ;;  %8572 = vmatmul.mubr.msk.bf16.gmra.mrb[52].mxu1 %vm667_vm0, %v17928_v22  ;;  %v17931_v22 = vpack.c.bf16 %v13568_v39, %v13561_v53  ;;  %v14298_v52 = vpop.f32.mrb[172].mxu1  ;;  %v14318_v39 = vadd.f32 %v14143_v19, %v14191_v26  ;;  %v17941_v19 = vld [vmem:[#allocation114_spill] sm:$0xff] }
 0x68e   : > { %3341 = vmatprep.mubr.bf16.mxu1 %v17408_v54  ;;  %17930 = vst [vmem:[#allocation117_spill] sm:$0xff] %v14293_v29  ;;  %v14305_v1 = vpop.f32.mrb[173].mxu1  ;;  %v17938_v29 = vld [vmem:[#allocation109_spill] sm:$0xff] }
 0x68f   : > { %v14309_v48 = vpop.f32.mrb[174].mxu1 }
 0x690   : > { %v14313_v53 = vpop.f32.mrb[175].mxu1 }
 0x691   : > { %v14335_v44 = vpop.f32.mrb[176].mxu1  ;;  %v14507_v45 = vadd.f32 %v14313_v53, %v14191_v26  ;;  %v6768_v53 = vld [vmem:[%s16947_s5 + $0x28] sm:$0xff] }
 0x692   : > { %v14342_v0 = vpop.f32.mrb[177].mxu1 }
 0x694   : > { %6098 = vmatmul.mubr.bf16.gmra.mrb[56].mxu0 %v17931_v22  ;;  %v14330_v22 = vadd.f32 %v14145_v9, %v14053_v7  ;;  %v14346_v9 = vpop.f32.mrb[178].mxu1 }
 0x695   : > { %6105 = vmatprep.mubr.bf16.mxu0 %v17932_v43  ;;  %8573 = vmatmul.mubr.msk.bf16.gmra.mrb[56].mxu1 %vm667_vm0, %v17933_v11  ;;  %v17934_v11 = vld [vmem:[#allocation71_spill] sm:$0xff]  ;;  %v17935_v43 = vld [vmem:[#allocation72_spill] sm:$0xff] }
 0x696   : > { %3351 = vmatprep.mubr.bf16.mxu1 %v17408_v54  ;;  %v17936_v14 = vpack.c.bf16 %v17934_v11, %v17935_v43  ;;  %v14355_v11 = vadd.f32 %v14170_v62, %v14191_v26  ;;  %v14367_v43 = vadd.f32 %v14172_v16, %v14053_v7  ;;  %v17944_v62 = vld [vmem:[#allocation119_spill] sm:$0xff] }
 0x69c   : > { %6106 = vmatmul.mubr.bf16.gmra.mrb[60].mxu0 %v17936_v14  ;;  %v14350_v14 = vpop.f32.mrb[179].mxu1 }
 0x69d   : > { %6113 = vmatprep.mubr.bf16.mxu0 %v17937_v36  ;;  %8574 = vmatmul.mubr.msk.bf16.gmra.mrb[60].mxu1 %vm667_vm0, %v17938_v29  ;;  %v17939_v29 = vpack.c.bf16 %v13633_v40, %v13623_v6  ;;  %v14372_v36 = vpop.f32.mrb[180].mxu1  ;;  %v14392_v40 = vadd.f32 %v14200_v46, %v14191_v26  ;;  %v17949_v46 = vld [vmem:[#allocation124_spill] sm:$0xff] }
 0x69e   : > { %3361 = vmatprep.mubr.bf16.mxu1 %v17408_v54  ;;  %v14379_v31 = vpop.f32.mrb[181].mxu1 }
 0x69f   : > { %v14383_v16 = vpop.f32.mrb[182].mxu1 }
 0x6a0   : > { %v14387_v6 = vpop.f32.mrb[183].mxu1 }
 0x6a4   : > { %6114 = vmatmul.mubr.bf16.gmra.mrb[64].mxu0 %v17939_v29  ;;  %v14404_v29 = vadd.f32 %v14202_v4, %v14053_v7 }
 0x6a5   : > { %6121 = vmatprep.mubr.bf16.mxu0 %v17940_v56  ;;  %8575 = vmatmul.mubr.msk.bf16.gmra.mrb[64].mxu1 %vm667_vm0, %v17941_v19  ;;  %v17942_v19 = vpack.c.bf16 %v13665_v63, %v13658_v13  ;;  %v14409_v56 = vpop.f32.mrb[184].mxu1  ;;  %v14429_v63 = vadd.f32 %v14233_v3, %v14191_v26 }
 0x6a6   : > { %3371 = vmatprep.mubr.bf16.mxu1 %v17408_v54  ;;  %v14416_v55 = vpop.f32.mrb[185].mxu1 }
 0x6a7   : > { %v14420_v4 = vpop.f32.mrb[186].mxu1 }
 0x6a8   : > { %v14424_v13 = vpop.f32.mrb[187].mxu1 }
 0x6ac   : > { %6122 = vmatmul.mubr.bf16.gmra.mrb[68].mxu0 %v17942_v19  ;;  %v14441_v19 = vadd.f32 %v14235_v50, %v14053_v7 }
 0x6ad   : > { %6129 = vmatprep.mubr.bf16.mxu0 %v17943_v51  ;;  %8576 = vmatmul.mubr.msk.bf16.gmra.mrb[68].mxu1 %vm667_vm0, %v17944_v62  ;;  %v17947_v62 = vpack.c.bf16 %v13696_v2, %v13689_v41  ;;  %v14446_v51 = vpop.f32.mrb[188].mxu1  ;;  %v14466_v2 = vadd.f32 %v14268_v32, %v14191_v26 }
 0x6ae   : > { %3381 = vmatprep.mubr.bf16.mxu1 %v17408_v54  ;;  %17946 = vst [vmem:[#allocation116_spill] sm:$0xff] %v14441_v19  ;;  %v14453_v58 = vpop.f32.mrb[189].mxu1 }
 0x6af   : > { %v14457_v50 = vpop.f32.mrb[190].mxu1  ;;  %17950 = vst [vmem:[#allocation115_spill] sm:$0xff] %v14466_v2 }
 0x6b0   : > { %v14461_v41 = vpop.f32.mrb[191].mxu1 }
 0x6b4   : > { %6130 = vmatmul.mubr.bf16.gmra.mrb[72].mxu0 %v17947_v62  ;;  %v14478_v62 = vadd.f32 %v14272_v59, %v14053_v7 }
 0x6b5   : > { %6137 = vmatprep.mubr.bf16.mxu0 %v17948_v33  ;;  %8577 = vmatmul.mubr.msk.bf16.gmra.mrb[72].mxu1 %vm667_vm0, %v17949_v46  ;;  %v17954_v46 = vpack.c.bf16 %v13727_v38, %v13720_v49  ;;  %v14483_v33 = vpop.f32.mrb[192].mxu1  ;;  %v14503_v38 = vadd.f32 %v14305_v1, %v14191_v26  ;;  %v6767_v1 = vld [vmem:[%s16947_s5 + $0x20] sm:$0xff] }
 0x6b6   : > { %3391 = vmatprep.mubr.bf16.mxu1 %v17408_v54  ;;  %17953 = vst [vmem:[#allocation7_spill] sm:$0xff] %v14478_v62  ;;  %v14490_v3 = vpop.f32.mrb[193].mxu1  ;;  %v9310_v2 = vpack.c.bf16 %v6768_v53, %v6767_v1  ;;  %v14554_v1 = vadd.f32 %v14335_v44, %v14053_v7  ;;  %v17972_v53 = vld [vmem:[#allocation76_spill] sm:$0xff] }
 0x6b7   : > { %v14494_v59 = vpop.f32.mrb[194].mxu1  ;;  %17958 = vst [vmem:[#allocation121_spill] sm:$0xff] %v14503_v38  ;;  %v17978_v38 = vld [vmem:[#allocation139_spill] sm:$0xff] }
 0x6b8   : > { %v14498_v49 = vpop.f32.mrb[195].mxu1  ;;  %9311 = vmatprep.subr.bf16.mxu1 %v9310_v2  ;;  %17970 = vst [vmem:[#allocation126_spill] sm:$0xff] %v14554_v1  ;;  %v17984_v1 = vld [vmem:[#allocation102_spill] sm:$0xff] }
 0x6b9   : > { %v14526_v32 = vpop.f32.mrb[196].mxu1  ;;  %9313 = vmatpush3.bf16.msra.mxu1 %v9310_v2 }
 0x6bc   : > { %6138 = vmatmul.mubr.bf16.gmra.mrb[76].mxu0 %v17954_v46  ;;  %v14515_v46 = vadd.f32 %v14309_v48, %v14053_v7  ;;  %v17965_v48 = vld [vmem:[#allocation93_spill] sm:$0xff] }
 0x6bd   : > { %6145 = vmatprep.mubr.bf16.mxu0 %v17956_v10  ;;  %8578 = vmatmul.mubr.msk.bf16.gmra.mrb[76].mxu1 %vm667_vm0, %v17957_v18  ;;  %v14511_v10 = vadd.f32 %v14298_v52, %v14053_v7  ;;  %v17961_v18 = vld [vmem:[#allocation78_spill] sm:$0xff]  ;;  %v17966_v62 = vpack.c.bf16 %v17964_v8, %v17965_v48  ;;  %v14546_v8 = vadd.f32 %v14342_v0, %v14191_v26  ;;  %v17973_v48 = vld [vmem:[#allocation77_spill] sm:$0xff] }
 0x6be   : > { %3401 = vmatprep.mubr.bf16.mxu1 %v17408_v54  ;;  %17960 = vst [vmem:[#allocation128_spill] sm:$0xff] %v14515_v46  ;;  %v17963_v12 = vpack.c.bf16 %v17961_v18, %v17962_v27  ;;  %v14533_v18 = vpop.f32.mrb[197].mxu1 }
 0x6bf   : > { %17959 = vst [vmem:[#allocation120_spill] sm:$0xff] %v14511_v10  ;;  %v14537_v27 = vpop.f32.mrb[198].mxu1  ;;  %17968 = vst [vmem:[#allocation127_spill] sm:$0xff] %v14546_v8  ;;  %v17976_v10 = vld [vmem:[#allocation98_spill] sm:$0xff] }
 0x6c0   : > { %v14541_v19 = vpop.f32.mrb[199].mxu1 }
 0x6c1   : > { %v14563_v52 = vpop.f32.mrb[200].mxu1 }
 0x6c2   : > { %v14570_v46 = vpop.f32.mrb[201].mxu1 }
 0x6c4   : > { %6146 = vmatmul.mubr.bf16.gmra.mrb[80].mxu0 %v17963_v12  ;;  %v17974_v12 = vpack.c.bf16 %v17972_v53, %v17973_v48  ;;  %v14583_v53 = vadd.f32 %v14379_v31, %v14191_v26  ;;  %v14591_v48 = vadd.f32 %v14372_v36, %v14053_v7 }
 0x6c5   : > { %6153 = vmatprep.mubr.bf16.mxu0 %v17966_v62  ;;  %8579 = vmatmul.mubr.msk.bf16.gmra.mrb[80].mxu1 %vm667_vm0, %v17967_v23  ;;  %v14550_v62 = vadd.f32 %v14350_v14, %v14191_v26  ;;  %v14558_v23 = vadd.f32 %v14346_v9, %v14053_v7  ;;  %v17975_v14 = vld [vmem:[#allocation97_spill] sm:$0xff]  ;;  %v14574_v9 = vpop.f32.mrb[202].mxu1 }
 0x6c6   : > { %3411 = vmatprep.mubr.bf16.mxu1 %v17408_v54  ;;  %v17977_v2 = vpack.c.bf16 %v17975_v14, %v17976_v10  ;;  %v14587_v10 = vadd.f32 %v14387_v6, %v14191_v26  ;;  %17979 = vst [vmem:[#allocation133_spill] sm:$0xff] %v14591_v48  ;;  %v14595_v14 = vadd.f32 %v14383_v16, %v14053_v7  ;;  %v17985_v6 = vld [vmem:[#allocation103_spill] sm:$0xff] }
 0x6c7   : > { %17969 = vst [vmem:[#allocation8_spill] sm:$0xff] %v14550_v62  ;;  %17971 = vst [vmem:[#allocation125_spill] sm:$0xff] %v14558_v23  ;;  %v17986_v23 = vpack.c.bf16 %v17984_v1, %v17985_v6  ;;  %v17987_v62 = vld [vmem:[#allocation144_spill] sm:$0xff]  ;;  %v14624_v1 = vadd.f32 %v14424_v13, %v14191_v26  ;;  %v17993_v6 = vld [vmem:[#allocation82_spill] sm:$0xff]  ;;  %v17995_v13 = vpack.c.bf16 %v14066_v21, %v14062_v28 }
 0x6c8   : > { %17980 = vst [vmem:[#allocation132_spill] sm:$0xff] %v14595_v14  ;;  %v17996_v14 = vld [vmem:[#allocation149_spill] sm:$0xff]  ;;  %v14661_v28 = vadd.f32 %v14461_v41, %v14191_v26  ;;  %v14665_v21 = vadd.f32 %v14446_v51, %v14053_v7  ;;  %v18005_v41 = vld [vmem:[#allocation108_spill] sm:$0xff] }
 0x6c9   : > { %17989 = vst [vmem:[#allocation131_spill] sm:$0xff] %v14624_v1  ;;  %v18007_v1 = vld [vmem:[#allocation154_spill] sm:$0xff] }
 0x6ca   : > { %17998 = vst [vmem:[#allocation10_spill] sm:$0xff] %v14661_v28  ;;  %17999 = vst [vmem:[#allocation136_spill] sm:$0xff] %v14665_v21  ;;  %v18015_v21 = vld [vmem:[#allocation105_spill] sm:$0xff]  ;;  %v18018_v28 = vld [vmem:[#allocation159_spill] sm:$0xff] }
 0x6cc   : > { %6154 = vmatmul.mubr.bf16.gmra.mrb[84].mxu0 %v17974_v12  ;;  %v14578_v12 = vpop.f32.mrb[203].mxu1 }
 0x6cd   : > { %6161 = vmatprep.mubr.bf16.mxu0 %v17977_v2  ;;  %8580 = vmatmul.mubr.msk.bf16.gmra.mrb[84].mxu1 %vm667_vm0, %v17978_v38  ;;  %v17981_v38 = vld [vmem:[#allocation83_spill] sm:$0xff]  ;;  %v14600_v0 = vpop.f32.mrb[204].mxu1 }
 0x6ce   : > { %3421 = vmatprep.mubr.bf16.mxu1 %v17408_v54  ;;  %v17982_v2 = vld [vmem:[#allocation75_spill] sm:$0xff]  ;;  %v14607_v8 = vpop.f32.mrb[205].mxu1 }
 0x6cf   : > { %v17983_v44 = vpack.c.bf16 %v17981_v38, %v17982_v2  ;;  %v14611_v16 = vpop.f32.mrb[206].mxu1  ;;  %v14620_v38 = vadd.f32 %v14416_v55, %v14191_v26  ;;  %v14632_v2 = vadd.f32 %v14420_v4, %v14053_v7 }
 0x6d1   : > { %17988 = vst [vmem:[#allocation9_spill] sm:$0xff] %v14620_v38  ;;  %17991 = vst [vmem:[#allocation138_spill] sm:$0xff] %v14632_v2 }
 0x6d4   : > { %6162 = vmatmul.mubr.bf16.gmra.mrb[88].mxu0 %v17983_v44  ;;  %v14615_v44 = vpop.f32.mrb[207].mxu1 }
 0x6d5   : > { %6169 = vmatprep.mubr.bf16.mxu0 %v17986_v23  ;;  %8581 = vmatmul.mubr.msk.bf16.gmra.mrb[88].mxu1 %vm667_vm0, %v17987_v62  ;;  %v14628_v23 = vadd.f32 %v14409_v56, %v14053_v7  ;;  %v17992_v62 = vld [vmem:[#allocation81_spill] sm:$0xff]  ;;  %v14637_v31 = vpop.f32.mrb[208].mxu1 }
 0x6d6   : > { %3431 = vmatprep.mubr.bf16.mxu1 %v17408_v54  ;;  %v17994_v36 = vpack.c.bf16 %v17992_v62, %v17993_v6  ;;  %v14644_v48 = vpop.f32.mrb[209].mxu1  ;;  %v14657_v62 = vadd.f32 %v14453_v58, %v14191_v26  ;;  %v14669_v6 = vadd.f32 %v14457_v50, %v14053_v7 }
 0x6d7   : > { %17990 = vst [vmem:[#allocation130_spill] sm:$0xff] %v14628_v23  ;;  %v14648_v4 = vpop.f32.mrb[210].mxu1  ;;  %v18004_v23 = vld [vmem:[#allocation107_spill] sm:$0xff] }
 0x6d8   : > { %17997 = vst [vmem:[#allocation137_spill] sm:$0xff] %v14657_v62  ;;  %18000 = vst [vmem:[#allocation135_spill] sm:$0xff] %v14669_v6  ;;  %v18006_v2 = vpack.c.bf16 %v18004_v23, %v18005_v41  ;;  %v14698_v23 = vadd.f32 %v14498_v49, %v14191_v26  ;;  %v18013_v41 = vld [vmem:[#allocation87_spill] sm:$0xff]  ;;  %v18016_v49 = vld [vmem:[#allocation106_spill] sm:$0xff] }
 0x6d9   : > { %v18017_v6 = vpack.c.bf16 %v18015_v21, %v18016_v49  ;;  %v14735_v21 = vadd.f32 %v14541_v19, %v14191_v26  ;;  %v18023_v49 = vld [vmem:[#allocation86_spill] sm:$0xff]  ;;  %v18026_v19 = vld [vmem:[#allocation113_spill] sm:$0xff] }
 0x6da   : > { %18009 = vst [vmem:[#allocation142_spill] sm:$0xff] %v14698_v23  ;;  %v18028_v23 = vld [vmem:[#allocation164_spill] sm:$0xff] }
 0x6dc   : > { %6170 = vmatmul.mubr.bf16.gmra.mrb[92].mxu0 %v17994_v36  ;;  %v14652_v36 = vpop.f32.mrb[211].mxu1 }
 0x6dd   : > { %6177 = vmatprep.mubr.bf16.mxu0 %v17995_v13  ;;  %8582 = vmatmul.mubr.msk.bf16.gmra.mrb[92].mxu1 %vm667_vm0, %v17996_v14  ;;  %v18001_v14 = vld [vmem:[#allocation88_spill] sm:$0xff]  ;;  %v14674_v55 = vpop.f32.mrb[212].mxu1 }
 0x6de   : > { %3441 = vmatprep.mubr.bf16.mxu1 %v17408_v54  ;;  %v18002_v13 = vld [vmem:[#allocation80_spill] sm:$0xff]  ;;  %v14681_v38 = vpop.f32.mrb[213].mxu1 }
 0x6df   : > { %v18003_v56 = vpack.c.bf16 %v18001_v14, %v18002_v13  ;;  %v14685_v50 = vpop.f32.mrb[214].mxu1  ;;  %v14694_v14 = vadd.f32 %v14490_v3, %v14191_v26  ;;  %v14706_v13 = vadd.f32 %v14494_v59, %v14053_v7 }
 0x6e1   : > { %18008 = vst [vmem:[#allocation143_spill] sm:$0xff] %v14694_v14  ;;  %18011 = vst [vmem:[#allocation141_spill] sm:$0xff] %v14706_v13 }
 0x6e4   : > { %6178 = vmatmul.mubr.bf16.gmra.mrb[96].mxu0 %v18003_v56  ;;  %v14689_v56 = vpop.f32.mrb[215].mxu1 }
 0x6e5   : > { %6185 = vmatprep.mubr.bf16.mxu0 %v18006_v2  ;;  %8583 = vmatmul.mubr.msk.bf16.gmra.mrb[96].mxu1 %vm667_vm0, %v18007_v1  ;;  %v14702_v2 = vadd.f32 %v14483_v33, %v14053_v7  ;;  %v18012_v1 = vld [vmem:[#allocation24_spill] sm:$0xff]  ;;  %v14711_v58 = vpop.f32.mrb[216].mxu1 }
 0x6e6   : > { %3451 = vmatprep.mubr.bf16.mxu1 %v17408_v54  ;;  %v18014_v51 = vpack.c.bf16 %v18012_v1, %v18013_v41  ;;  %v14718_v62 = vpop.f32.mrb[217].mxu1  ;;  %v14731_v1 = vadd.f32 %v14533_v18, %v14191_v26  ;;  %v14743_v41 = vadd.f32 %v14537_v27, %v14053_v7 }
 0x6e7   : > { %18010 = vst [vmem:[#allocation11_spill] sm:$0xff] %v14702_v2  ;;  %v14722_v59 = vpop.f32.mrb[218].mxu1  ;;  %v18025_v2 = vld [vmem:[#allocation112_spill] sm:$0xff] }
 0x6e8   : > { %18019 = vst [vmem:[#allocation140_spill] sm:$0xff] %v14731_v1  ;;  %18021 = vst [vmem:[#allocation147_spill] sm:$0xff] %v14743_v41  ;;  %v18027_v13 = vpack.c.bf16 %v18025_v2, %v18026_v19  ;;  %v14772_v2 = vadd.f32 %v14578_v12, %v14191_v26  ;;  %v18034_v19 = vld [vmem:[#allocation91_spill] sm:$0xff]  ;;  %v18036_v12 = vpack.c.bf16 %v14185_v24, %v14181_v5  ;;  %v18037_v41 = vld [vmem:[#allocation169_spill] sm:$0xff] }
 0x6e9   : > { %v14809_v5 = vadd.f32 %v14615_v44, %v14191_v26  ;;  %v14813_v24 = vadd.f32 %v14600_v0, %v14053_v7  ;;  %v6770_v44 = vld [vmem:[%s16947_s5 + $0x38] sm:$0xff] }
 0x6ea   : > { %18030 = vst [vmem:[#allocation146_spill] sm:$0xff] %v14772_v2  ;;  %v18045_v2 = vld [vmem:[#allocation170_spill] sm:$0xff] }
 0x6eb   : > { %18038 = vst [vmem:[#allocation152_spill] sm:$0xff] %v14813_v24  ;;  %v18050_v24 = vld [vmem:[#allocation171_spill] sm:$0xff] }
 0x6ec   : > { %6186 = vmatmul.mubr.bf16.gmra.mrb[100].mxu0 %v18014_v51  ;;  %v14726_v51 = vpop.f32.mrb[219].mxu1 }
 0x6ed   : > { %6193 = vmatprep.mubr.bf16.mxu0 %v18017_v6  ;;  %8584 = vmatmul.mubr.msk.bf16.gmra.mrb[100].mxu1 %vm667_vm0, %v18018_v28  ;;  %v14739_v6 = vadd.f32 %v14526_v32, %v14053_v7  ;;  %v18022_v28 = vld [vmem:[#allocation85_spill] sm:$0xff]  ;;  %v14748_v3 = vpop.f32.mrb[220].mxu1 }
 0x6ee   : > { %3461 = vmatprep.mubr.bf16.mxu1 %v17408_v54  ;;  %v18024_v33 = vpack.c.bf16 %v18022_v28, %v18023_v49  ;;  %v14755_v14 = vpop.f32.mrb[221].mxu1  ;;  %v14768_v28 = vadd.f32 %v14570_v46, %v14191_v26  ;;  %v14780_v49 = vadd.f32 %v14574_v9, %v14053_v7 }
 0x6ef   : > { %18020 = vst [vmem:[#allocation148_spill] sm:$0xff] %v14739_v6  ;;  %v14759_v27 = vpop.f32.mrb[222].mxu1 }
 0x6f0   : > { %18029 = vst [vmem:[#allocation12_spill] sm:$0xff] %v14768_v28  ;;  %18032 = vst [vmem:[#allocation153_spill] sm:$0xff] %v14780_v49 }
 0x6f4   : > { %6194 = vmatmul.mubr.bf16.gmra.mrb[104].mxu0 %v18024_v33  ;;  %v14763_v33 = vpop.f32.mrb[223].mxu1 }
 0x6f5   : > { %6201 = vmatprep.mubr.bf16.mxu0 %v18027_v13  ;;  %8585 = vmatmul.mubr.msk.bf16.gmra.mrb[104].mxu1 %vm667_vm0, %v18028_v23  ;;  %v14776_v13 = vadd.f32 %v14563_v52, %v14053_v7  ;;  %v18033_v23 = vld [vmem:[#allocation90_spill] sm:$0xff]  ;;  %v14785_v18 = vpop.f32.mrb[224].mxu1 }
 0x6f6   : > { %3471 = vmatprep.mubr.bf16.mxu1 %v17408_v54  ;;  %v18035_v32 = vpack.c.bf16 %v18033_v23, %v18034_v19  ;;  %v14792_v6 = vpop.f32.mrb[225].mxu1  ;;  %v14805_v23 = vadd.f32 %v14607_v8, %v14191_v26  ;;  %v14817_v19 = vadd.f32 %v14611_v16, %v14053_v7  ;;  %v6769_v8 = vld [vmem:[%s16947_s5 + $0x30] sm:$0xff]  ;;  %v18043_v16 = vld [vmem:[#allocation111_spill] sm:$0xff] }
 0x6f7   : > { %18031 = vst [vmem:[#allocation145_spill] sm:$0xff] %v14776_v13  ;;  %v14796_v9 = vpop.f32.mrb[226].mxu1  ;;  %v18042_v13 = vld [vmem:[#allocation110_spill] sm:$0xff]  ;;  %v9314_v28 = vpack.c.bf16 %v6770_v44, %v6769_v8  ;;  %v14856_v8 = vadd.f32 %v14637_v31, %v14053_v7  ;;  %v18046_v44 = vld [vmem:[#allocation100_spill] sm:$0xff] }
 0x6f8   : > { %v18044_v49 = vpack.c.bf16 %v18042_v13, %v18043_v16  ;;  %v14848_v13 = vadd.f32 %v14644_v48, %v14191_v26  ;;  %v18047_v16 = vld [vmem:[#allocation101_spill] sm:$0xff]  ;;  %v18055_v48 = vld [vmem:[#allocation172_spill] sm:$0xff] }
 0x6f9   : > { %9315 = vmatprep.subr.bf16.mxu1 %v9314_v28 }
 0x6fa   : > { %9317 = vmatpush3.bf16.msra.mxu1 %v9314_v28 }
 0x6fc   : > { %6202 = vmatmul.mubr.bf16.gmra.mrb[108].mxu0 %v18035_v32  ;;  %v14800_v32 = vpop.f32.mrb[227].mxu1 }
 0x6fd   : > { %6209 = vmatprep.mubr.bf16.mxu0 %v18036_v12  ;;  %8586 = vmatmul.mubr.msk.bf16.gmra.mrb[108].mxu1 %vm667_vm0, %v18037_v41  ;;  %v18039_v41 = vld [vmem:[#allocation95_spill] sm:$0xff]  ;;  %v18040_v12 = vld [vmem:[#allocation96_spill] sm:$0xff]  ;;  %v14828_v46 = vpop.f32.mrb[228].mxu1 }
 0x6fe   : > { %3481 = vmatprep.mubr.bf16.mxu1 %v17408_v54  ;;  %v18041_v52 = vpack.c.bf16 %v18039_v41, %v18040_v12  ;;  %v14835_v41 = vpop.f32.mrb[229].mxu1 }
 0x6ff   : > { %v14839_v12 = vpop.f32.mrb[230].mxu1 }
 0x700   : > { %v14843_v1 = vpop.f32.mrb[231].mxu1 }
 0x701   : > { %v14865_v0 = vpop.f32.mrb[232].mxu1 }
 0x702   : > { %v14872_v28 = vpop.f32.mrb[233].mxu1 }
 0x704   : > { %6210 = vmatmul.mubr.bf16.gmra.mrb[112].mxu0 %v18041_v52  ;;  %v18048_v52 = vpack.c.bf16 %v18046_v44, %v18047_v16  ;;  %v14885_v44 = vadd.f32 %v14681_v38, %v14191_v26  ;;  %v14897_v16 = vadd.f32 %v14685_v50, %v14053_v7 }
 0x705   : > { %6250 = vmatprep.mubr.bf16.mxu0 %v18044_v49  ;;  %8587 = vmatmul.mubr.msk.bf16.gmra.mrb[112].mxu1 %vm667_vm0, %v18045_v2  ;;  %v14852_v49 = vadd.f32 %v14652_v36, %v14191_v26  ;;  %v14860_v2 = vadd.f32 %v14648_v4, %v14053_v7  ;;  %v18049_v36 = vpack.c.bf16 %v14248_v35, %v14244_v20  ;;  %v14876_v4 = vpop.f32.mrb[234].mxu1 }
 0x706   : > { %3491 = vmatprep.mubr.bf16.mxu1 %v17408_v54  ;;  %v14889_v20 = vadd.f32 %v14689_v56, %v14191_v26  ;;  %v14893_v35 = vadd.f32 %v14674_v55, %v14053_v7  ;;  %18052 = vst [vmem:[#allocation151_spill] sm:$0xff] %v14897_v16  ;;  %v18054_v56 = vpack.c.bf16 %v14285_v61, %v14281_v17  ;;  %v18060_v16 = vld [vmem:[#allocation173_spill] sm:$0xff] }
 0x707   : > { %v14926_v17 = vadd.f32 %v14726_v51, %v14191_v26  ;;  %v14930_v61 = vadd.f32 %v14711_v58, %v14053_v7  ;;  %v18059_v51 = vpack.c.bf16 %v14322_v57, %v14318_v39  ;;  %v14963_v39 = vadd.f32 %v14763_v33, %v14191_v26 }
 0x708   : > { %18051 = vst [vmem:[#allocation13_spill] sm:$0xff] %v14893_v35  ;;  %v14967_v57 = vadd.f32 %v14748_v3, %v14053_v7  ;;  %v18062_v33 = vpack.c.bf16 %v14359_v60, %v14355_v11  ;;  %v15000_v11 = vadd.f32 %v14800_v32, %v14191_v26  ;;  %v15004_v60 = vadd.f32 %v14785_v18, %v14053_v7  ;;  %v18072_v18 = vld [vmem:[#allocation176_spill] sm:$0xff] }
 0x709   : > { %v18065_v32 = vpack.c.bf16 %v14396_v15, %v14392_v40  ;;  %v15037_v40 = vadd.f32 %v14843_v1, %v14191_v26  ;;  %v15041_v15 = vadd.f32 %v14828_v46, %v14053_v7  ;;  %v18071_v1 = vpack.c.bf16 %v14433_v37, %v14429_v63 }
 0x70a   : > { %v15077_v37 = vadd.f32 %v14865_v0, %v14053_v7 }
 0x70b   : > { %18068 = vst [vmem:[#allocation158_spill] sm:$0xff] %v15041_v15 }
 0x70c   : > { %6251 = vmatmul.mubr.bf16.vlgmr.msra.gmra.mrb[116].mxu0 %v18048_v52  ;;  %v14880_v52 = vpop.f32.mrb[235].mxu1  ;;  %18075 = vst [vmem:[#allocation155_spill] sm:$0xff] %v15077_v37 }
 0x70d   : > { %6258 = vmatprep.mubr.bf16.mxu0 %v18049_v36  ;;  %8588 = vmatmul.mubr.msk.bf16.gmra.mrb[116].mxu1 %vm667_vm0, %v18050_v24  ;;  %v18053_v24 = vpack.c.bf16 %v14256_v34, %v14252_v47  ;;  %v14902_v36 = vpop.f32.mrb[236].mxu1  ;;  %v14922_v34 = vadd.f32 %v14718_v62, %v14191_v26  ;;  %v18063_v62 = vld [vmem:[#allocation174_spill] sm:$0xff]  ;;  %v15073_v63 = vadd.f32 %v14880_v52, %v14191_v26  ;;  %v18081_v52 = vld [vmem:[#allocation115_spill] sm:$0xff] }
 0x70e   : > { %3501 = vmatprep.mubr.bf16.mxu1 %v17408_v54  ;;  %v14909_v31 = vpop.f32.mrb[237].mxu1 }
 0x70f   : > { %v14913_v50 = vpop.f32.mrb[238].mxu1  ;;  %18074 = vst [vmem:[#allocation156_spill] sm:$0xff] %v15073_v63 }
 0x710   : > { %v14917_v47 = vpop.f32.mrb[239].mxu1 }
 0x711   : > { %v14939_v38 = vpop.f32.mrb[240].mxu1 }
 0x712   : > { %v14946_v35 = vpop.f32.mrb[241].mxu1 }
 0x713   : > { %v15143_v63 = vadd.f32 %v14946_v35, %v14191_v26 }
 0x714   : > { %6259 = vmatmul.mubr.bf16.gmra.mrb[120].mxu0 %v18053_v24  ;;  %v14934_v24 = vadd.f32 %v14722_v59, %v14053_v7  ;;  %v14950_v59 = vpop.f32.mrb[242].mxu1 }
 0x715   : > { %6266 = vmatprep.mubr.bf16.mxu0 %v18054_v56  ;;  %8589 = vmatmul.mubr.msk.bf16.gmra.mrb[120].mxu1 %vm667_vm0, %v18055_v48  ;;  %v18056_v48 = vld [vmem:[#allocation117_spill] sm:$0xff]  ;;  %v18057_v56 = vld [vmem:[#allocation118_spill] sm:$0xff]  ;;  %18091 = vst [vmem:[#allocation160_spill] sm:$0xff] %v15143_v63 }
 0x716   : > { %3511 = vmatprep.mubr.bf16.mxu1 %v17408_v54  ;;  %v18058_v55 = vpack.c.bf16 %v18056_v48, %v18057_v56  ;;  %v14959_v48 = vadd.f32 %v14755_v14, %v14191_v26  ;;  %v14971_v56 = vadd.f32 %v14759_v27, %v14053_v7  ;;  %v18066_v14 = vld [vmem:[#allocation175_spill] sm:$0xff] }
 0x71c   : > { %6267 = vmatmul.mubr.bf16.gmra.mrb[124].mxu0 %v18058_v55  ;;  %v14954_v55 = vpop.f32.mrb[243].mxu1 }
 0x71d   : > { %6274 = vmatprep.mubr.bf16.mxu0 %v18059_v51  ;;  %8590 = vmatmul.mubr.msk.bf16.gmra.mrb[124].mxu1 %vm667_vm0, %v18060_v16  ;;  %v18061_v16 = vpack.c.bf16 %v14330_v22, %v14326_v42  ;;  %v14976_v51 = vpop.f32.mrb[244].mxu1  ;;  %v14996_v22 = vadd.f32 %v14792_v6, %v14191_v26  ;;  %v18080_v6 = vld [vmem:[#allocation123_spill] sm:$0xff] }
 0x71e   : > { %3521 = vmatprep.mubr.bf16.mxu1 %v17408_v54  ;;  %v14983_v58 = vpop.f32.mrb[245].mxu1  ;;  %v18082_v15 = vpack.c.bf16 %v18080_v6, %v18081_v52  ;;  %v15111_v6 = vadd.f32 %v14902_v36, %v14053_v7  ;;  %v18087_v52 = vld [vmem:[#allocation122_spill] sm:$0xff]  ;;  %v15147_v36 = vadd.f32 %v14954_v55, %v14191_v26  ;;  %v18097_v55 = vld [vmem:[#allocation8_spill] sm:$0xff] }
 0x71f   : > { %v14987_v27 = vpop.f32.mrb[246].mxu1 }
 0x720   : > { %v14991_v42 = vpop.f32.mrb[247].mxu1  ;;  %18084 = vst [vmem:[#allocation15_spill] sm:$0xff] %v15111_v6  ;;  %v18098_v6 = vld [vmem:[#allocation127_spill] sm:$0xff] }
 0x724   : > { %6275 = vmatmul.mubr.bf16.gmra.mrb[128].mxu0 %v18061_v16  ;;  %v15008_v16 = vadd.f32 %v14796_v9, %v14053_v7 }
 0x725   : > { %6282 = vmatprep.mubr.bf16.mxu0 %v18062_v33  ;;  %8591 = vmatmul.mubr.msk.bf16.gmra.mrb[128].mxu1 %vm667_vm0, %v18063_v62  ;;  %v18064_v62 = vpack.c.bf16 %v14367_v43, %v14363_v30  ;;  %v15013_v33 = vpop.f32.mrb[248].mxu1  ;;  %v15033_v43 = vadd.f32 %v14835_v41, %v14191_v26 }
 0x726   : > { %3531 = vmatprep.mubr.bf16.mxu1 %v17408_v54  ;;  %v15020_v3 = vpop.f32.mrb[249].mxu1 }
 0x727   : > { %v15024_v9 = vpop.f32.mrb[250].mxu1  ;;  %18067 = vst [vmem:[#allocation150_spill] sm:$0xff] %v15033_v43 }
 0x728   : > { %v15028_v30 = vpop.f32.mrb[251].mxu1 }
 0x72c   : > { %6283 = vmatmul.mubr.bf16.gmra.mrb[132].mxu0 %v18064_v62  ;;  %v15045_v62 = vadd.f32 %v14839_v12, %v14053_v7 }
 0x72d   : > { %6290 = vmatprep.mubr.bf16.mxu0 %v18065_v32  ;;  %8592 = vmatmul.mubr.msk.bf16.gmra.mrb[132].mxu1 %vm667_vm0, %v18066_v14  ;;  %v18070_v14 = vpack.c.bf16 %v14404_v29, %v14400_v25  ;;  %v15069_v29 = vadd.f32 %v14872_v28, %v14191_v26 }
 0x72e   : > { %3541 = vmatprep.mubr.bf16.mxu1 %v17408_v54  ;;  %18069 = vst [vmem:[#allocation157_spill] sm:$0xff] %v15045_v62  ;;  %v15050_v54 = vpop.f32.mrb[252].mxu1 }
 0x72f   : > { %v15057_v32 = vpop.f32.mrb[253].mxu1  ;;  %18073 = vst [vmem:[#allocation14_spill] sm:$0xff] %v15069_v29 }
 0x730   : > { %v15061_v12 = vpop.f32.mrb[254].mxu1 }
 0x731   : > { %v15065_v25 = vpop.f32.mrb[255].mxu1 }
 0x732   : > { %v15086_v41 = vpop.f32.mrb[0].mxu1 }
 0x733   : > { %v15093_v62 = vpop.f32.mrb[1].mxu1 }
 0x734   : > { %6291 = vmatmul.mubr.bf16.gmra.mrb[136].mxu0 %v18070_v14  ;;  %v15081_v14 = vadd.f32 %v14876_v4, %v14053_v7  ;;  %v15097_v4 = vpop.f32.mrb[2].mxu1 }
 0x735   : > { %6298 = vmatprep.mubr.bf16.mxu0 %v18071_v1  ;;  %8593 = vmatmul.mubr.msk.bf16.gmra.mrb[136].mxu1 %vm667_vm0, %v18072_v18  ;;  %v18077_v1 = vld [vmem:[#allocation116_spill] sm:$0xff]  ;;  %v18078_v18 = vld [vmem:[#allocation6_spill] sm:$0xff]  ;;  %v15099_v43 = vpop.f32.mrb[3].mxu1 }
 0x736   : > { %18076 = vst [vmem:[#allocation163_spill] sm:$0xff] %v15081_v14  ;;  %v18079_v46 = vpack.c.bf16 %v18077_v1, %v18078_v18  ;;  %v15107_v1 = vadd.f32 %v14917_v47, %v14191_v26  ;;  %v18086_v18 = vld [vmem:[#allocation7_spill] sm:$0xff]  ;;  %v6772_v47 = vld [vmem:[%s16947_s5 + $0x48] sm:$0xff]  ;;  %v15126_v28 = vpop.f32.mrb[4].mxu1 }
 0x737   : > { %v18088_v0 = vpack.c.bf16 %v18086_v18, %v18087_v52  ;;  %v15133_v18 = vpop.f32.mrb[5].mxu1 }
 0x738   : > { %v15137_v52 = vpop.f32.mrb[6].mxu1 }
 0x739   : > { %v15139_v29 = vpop.f32.mrb[7].mxu1 }
 0x73c   : > { %6299 = vmatmul.mubr.bf16.gmra.mrb[140].mxu0 %v18079_v46  ;;  %v15103_v46 = vadd.f32 %v14909_v31, %v14191_v26  ;;  %v6771_v31 = vld [vmem:[%s16947_s5 + $0x40] sm:$0xff] }
 0x73d   : > { %6306 = vmatprep.mubr.bf16.mxu0 %v18082_v15  ;;  %v15115_v15 = vadd.f32 %v14913_v50, %v14053_v7  ;;  %v18089_v50 = vld [vmem:[#allocation121_spill] sm:$0xff]  ;;  %v9318_v14 = vpack.c.bf16 %v6772_v47, %v6771_v31  ;;  %v18094_v31 = vld [vmem:[#allocation128_spill] sm:$0xff] }
 0x73e   : > { %18083 = vst [vmem:[#allocation162_spill] sm:$0xff] %v15103_v46  ;;  %v18090_v37 = vpack.c.bf16 %v14507_v45, %v18089_v50  ;;  %v15151_v45 = vadd.f32 %v14939_v38, %v14053_v7  ;;  %v18095_v47 = vld [vmem:[#allocation120_spill] sm:$0xff] }
 0x73f   : > { %18085 = vst [vmem:[#allocation161_spill] sm:$0xff] %v15115_v15  ;;  %9319 = vmatprep.subr.bf16.mxu1 %v9318_v14  ;;  %v18096_v50 = vpack.c.bf16 %v18094_v31, %v18095_v47  ;;  %v15177_v31 = vadd.f32 %v14983_v58, %v14191_v26  ;;  %v15181_v47 = vadd.f32 %v14991_v42, %v14191_v26 }
 0x740   : > { %9321 = vmatpush3.bf16.msra.mxu1 %v9318_v14  ;;  %18092 = vst [vmem:[#allocation168_spill] sm:$0xff] %v15151_v45  ;;  %v18099_v14 = vpack.c.bf16 %v18097_v55, %v18098_v6  ;;  %v15185_v6 = vadd.f32 %v14976_v51, %v14053_v7  ;;  %v18104_v55 = vld [vmem:[#allocation125_spill] sm:$0xff]  ;;  %v18107_v42 = vpack.c.bf16 %v14587_v10, %v14583_v53 }
 0x741   : > { %18100 = vst [vmem:[#allocation16_spill] sm:$0xff] %v15177_v31  ;;  %18101 = vst [vmem:[#allocation166_spill] sm:$0xff] %v15181_v47  ;;  %v6773_v51 = vld [vmem:[%s16947_s5 + $0x50] sm:$0xff]  ;;  %v15217_v53 = vadd.f32 %v15020_v3, %v14191_v26  ;;  %v15221_v10 = vadd.f32 %v15028_v30, %v14191_v26  ;;  %v15235_v3 = vadd.f32 %v15024_v9, %v14053_v7  ;;  %v18115_v47 = vld [vmem:[#allocation131_spill] sm:$0xff] }
 0x742   : > { %18102 = vst [vmem:[#allocation165_spill] sm:$0xff] %v15185_v6  ;;  %v18113_v6 = vld [vmem:[#allocation133_spill] sm:$0xff]  ;;  %v18122_v31 = vld [vmem:[#allocation10_spill] sm:$0xff] }
 0x743   : > { %18108 = vst [vmem:[#allocation18_spill] sm:$0xff] %v15217_v53  ;;  %18109 = vst [vmem:[#allocation19_spill] sm:$0xff] %v15221_v10  ;;  %v6777_v9 = vld [vmem:[%s16947_s5 + $0x70] sm:$0xff] }
 0x744   : > { %6307 = vmatmul.mubr.bf16.gmra.mrb[144].mxu0 %v18088_v0  ;;  %v15160_v0 = vpop.f32.mrb[8].mxu1  ;;  %18111 = vst [vmem:[#allocation22_spill] sm:$0xff] %v15235_v3 }
 0x745   : > { %6314 = vmatprep.mubr.bf16.mxu0 %v18090_v37  ;;  %v15155_v37 = vadd.f32 %v14950_v59, %v14053_v7  ;;  %v15167_v15 = vpop.f32.mrb[9].mxu1 }
 0x746   : > { %v15171_v59 = vpop.f32.mrb[10].mxu1 }
 0x747   : > { %18093 = vst [vmem:[#allocation167_spill] sm:$0xff] %v15155_v37  ;;  %v15173_v46 = vpop.f32.mrb[11].mxu1  ;;  %v18116_v37 = vld [vmem:[#allocation9_spill] sm:$0xff] }
 0x748   : > { %v15194_v35 = vpop.f32.mrb[12].mxu1  ;;  %v18117_v63 = vpack.c.bf16 %v18115_v47, %v18116_v37  ;;  %v15265_v37 = vadd.f32 %v15065_v25, %v14191_v26 }
 0x749   : > { %v15201_v45 = vpop.f32.mrb[13].mxu1 }
 0x74c   : > { %6315 = vmatmul.mubr.bf16.gmra.mrb[148].mxu0 %v18096_v50  ;;  %v15189_v50 = vadd.f32 %v14987_v27, %v14053_v7  ;;  %v6774_v27 = vld [vmem:[%s16947_s5 + $0x58] sm:$0xff] }
 0x74d   : > { %6322 = vmatprep.mubr.bf16.mxu0 %v18099_v14  ;;  %v18105_v14 = vld [vmem:[#allocation126_spill] sm:$0xff] }
 0x74e   : > { %18103 = vst [vmem:[#allocation17_spill] sm:$0xff] %v15189_v50  ;;  %v18106_v38 = vpack.c.bf16 %v18104_v55, %v18105_v14  ;;  %v15211_v55 = vpop.f32.mrb[14].mxu1  ;;  %v9322_v14 = vpack.c.bf16 %v6774_v27, %v6773_v51  ;;  %v6776_v51 = vld [vmem:[%s16947_s5 + $0x68] sm:$0xff]  ;;  %v15231_v27 = vadd.f32 %v15013_v33, %v14053_v7 }
 0x74f   : > { %v15213_v58 = vpop.f32.mrb[15].mxu1 }
 0x750   : > { %9323 = vmatprep.subr.bf16.mxu1 %v9322_v14  ;;  %18110 = vst [vmem:[#allocation20_spill] sm:$0xff] %v15231_v27  ;;  %v15240_v50 = vpop.f32.mrb[16].mxu1  ;;  %v18123_v27 = vld [vmem:[#allocation137_spill] sm:$0xff] }
 0x751   : > { %9325 = vmatpush3.bf16.msra.mxu1 %v9322_v14  ;;  %v15247_v33 = vpop.f32.mrb[17].mxu1  ;;  %v18124_v3 = vpack.c.bf16 %v18122_v31, %v18123_v27  ;;  %v15302_v31 = vadd.f32 %v15099_v43, %v14191_v26  ;;  %v18128_v43 = vld [vmem:[#allocation135_spill] sm:$0xff] }
 0x754   : > { %6323 = vmatmul.mubr.bf16.gmra.mrb[152].mxu0 %v18106_v38  ;;  %v18112_v38 = vld [vmem:[#allocation132_spill] sm:$0xff] }
 0x755   : > { %6330 = vmatprep.mubr.bf16.mxu0 %v18107_v42  ;;  %v6775_v42 = vld [vmem:[%s16947_s5 + $0x60] sm:$0xff]  ;;  %v18114_v14 = vpack.c.bf16 %v18112_v38, %v18113_v6  ;;  %v6778_v6 = vld [vmem:[%s16947_s5 + $0x78] sm:$0xff]  ;;  %v15255_v38 = vpop.f32.mrb[18].mxu1 }
 0x756   : > { %v9326_v30 = vpack.c.bf16 %v6776_v51, %v6775_v42  ;;  %v9330_v42 = vpack.c.bf16 %v6778_v6, %v6777_v9  ;;  %v15267_v47 = vpop.f32.mrb[19].mxu1  ;;  %v18119_v9 = vld [vmem:[#allocation138_spill] sm:$0xff] }
 0x757   : > { %v18120_v6 = vld [vmem:[#allocation130_spill] sm:$0xff]  ;;  %v3253_v51 = vpop.f32.mrb[20].mxu1 }
 0x758   : > { %9327 = vmatprep.subr.bf16.mxu1 %v9326_v30 }
 0x759   : > { %9329 = vmatpush3.bf16.msra.mxu1 %v9326_v30  ;;  %v15271_v30 = vadd.f32 %v15050_v54, %v14053_v7  ;;  %v3255_v54 = vpop.f32.mrb[21].mxu1 }
 0x75a   : > { %9331 = vmatprep.subr.bf16.mxu1 %v9330_v42  ;;  %v3257_v53 = vpop.f32.mrb[22].mxu1  ;;  %v15291_v10 = vadd.f32 %v3255_v54, %v14191_v26  ;;  %v18129_v54 = vld [vmem:[#allocation136_spill] sm:$0xff] }
 0x75b   : > { %18118 = vst [vmem:[#allocation25_spill] sm:$0xff] %v15271_v30  ;;  %v3259_v27 = vpop.f32.mrb[23].mxu1 }
 0x75c   : > { %6331 = vmatmul.mubr.bf16.gmra.mrb[156].mxu0 %v18114_v14  ;;  %v15275_v14 = vadd.f32 %v15061_v12, %v14053_v7  ;;  %18126 = vst [vmem:[#allocation43_spill] sm:$0xff] %v15291_v10  ;;  %v18130_v12 = vpack.c.bf16 %v18128_v43, %v18129_v54  ;;  %v3263_v25 = vpop.f32.mrb[24].mxu1  ;;  %v15340_v43 = vadd.f32 %v15133_v18, %v14191_v26 }
 0x75d   : > { %6338 = vmatprep.mubr.bf16.mxu0 %v18117_v63  ;;  %v15261_v63 = vadd.f32 %v15057_v32, %v14191_v26  ;;  %9333 = vmatpush3.bf16.msra.mxu1 %v9330_v42  ;;  %v18121_v32 = vpack.c.bf16 %v18119_v9, %v18120_v6  ;;  %v15286_v42 = vadd.f32 %v3253_v51, %v14053_v7 }
 0x75e   : > { %v15294_v9 = vadd.f32 %v3257_v53, %v14053_v7  ;;  %v15298_v6 = vadd.f32 %v15093_v62, %v14191_v26  ;;  %v15307_v51 = vadd.f32 %v3259_v27, %v14191_v26  ;;  %v15315_v53 = vadd.f32 %v15097_v4, %v14053_v7  ;;  %v3265_v4 = vpop.f32.mrb[25].mxu1 }
 0x75f   : > { %18125 = vst [vmem:[#allocation30_spill] sm:$0xff] %v15286_v42  ;;  %v18132_v42 = vld [vmem:[#allocation143_spill] sm:$0xff]  ;;  %v3267_v30 = vpop.f32.mrb[26].mxu1  ;;  %v15333_v10 = vadd.f32 %v3265_v4, %v14191_v26  ;;  %v15353_v54 = vadd.f32 %v15126_v28, %v14053_v7 }
 0x760   : > { %18127 = vst [vmem:[#allocation39_spill] sm:$0xff] %v15294_v9  ;;  %v18139_v4 = vld [vmem:[#allocation11_spill] sm:$0xff] }
 0x761   : > { %18135 = vst [vmem:[#allocation29_spill] sm:$0xff] %v15333_v10 }
 0x764   : > { %6339 = vmatmul.mubr.bf16.gmra.mrb[160].mxu0 %v18121_v32  ;;  %v15311_v32 = vadd.f32 %v15086_v41, %v14053_v7  ;;  %v15328_v41 = vadd.f32 %v3263_v25, %v14053_v7  ;;  %v3269_v25 = vpop.f32.mrb[27].mxu1 }
 0x765   : > { %6346 = vmatprep.mubr.bf16.mxu0 %v18124_v3  ;;  %v18131_v3 = vld [vmem:[#allocation142_spill] sm:$0xff]  ;;  %v3273_v27 = vpop.f32.mrb[28].mxu1 }
 0x766   : > { %v18133_v9 = vpack.c.bf16 %v18131_v3, %v18132_v42  ;;  %18134 = vst [vmem:[#allocation28_spill] sm:$0xff] %v15328_v41  ;;  %v15344_v42 = vadd.f32 %v15139_v29, %v14191_v26  ;;  %v15349_v3 = vadd.f32 %v3269_v25, %v14191_v26  ;;  %v18138_v29 = vld [vmem:[#allocation141_spill] sm:$0xff]  ;;  %v15370_v28 = vadd.f32 %v3273_v27, %v14053_v7 }
 0x767   : > { %v18140_v62 = vpack.c.bf16 %v18138_v29, %v18139_v4  ;;  %v15382_v29 = vadd.f32 %v15167_v15, %v14191_v26  ;;  %v15395_v4 = vadd.f32 %v15160_v0, %v14053_v7 }
 0x768   : > { %18137 = vst [vmem:[#allocation40_spill] sm:$0xff] %v15349_v3  ;;  %18143 = vst [vmem:[#allocation44_spill] sm:$0xff] %v15370_v28  ;;  %v18150_v28 = vld [vmem:[#allocation12_spill] sm:$0xff] }
 0x76c   : > { %6347 = vmatmul.mubr.bf16.gmra.mrb[164].mxu0 %v18130_v12  ;;  %v15336_v12 = vadd.f32 %v3267_v30, %v14053_v7  ;;  %v15357_v30 = vadd.f32 %v15137_v52, %v14053_v7  ;;  %v3275_v52 = vpop.f32.mrb[29].mxu1 }
 0x76d   : > { %6354 = vmatprep.mubr.bf16.mxu0 %v18133_v9  ;;  %v18141_v9 = vld [vmem:[#allocation140_spill] sm:$0xff]  ;;  %v15375_v10 = vadd.f32 %v3275_v52, %v14191_v26 }
 0x76e   : > { %18136 = vst [vmem:[#allocation48_spill] sm:$0xff] %v15336_v12  ;;  %v18142_v41 = vpack.c.bf16 %v14735_v21, %v18141_v9  ;;  %v3277_v12 = vpop.f32.mrb[30].mxu1  ;;  %v15386_v21 = vadd.f32 %v15173_v46, %v14191_v26  ;;  %v18146_v46 = vld [vmem:[#allocation147_spill] sm:$0xff]  ;;  %v18147_v52 = vld [vmem:[#allocation148_spill] sm:$0xff] }
 0x76f   : > { %18144 = vst [vmem:[#allocation26_spill] sm:$0xff] %v15375_v10  ;;  %v3279_v27 = vpop.f32.mrb[31].mxu1  ;;  %v18148_v18 = vpack.c.bf16 %v18146_v46, %v18147_v52  ;;  %v15424_v46 = vadd.f32 %v15201_v45, %v14191_v26  ;;  %v15437_v52 = vadd.f32 %v15194_v35, %v14053_v7 }
 0x770   : > { %v15391_v9 = vadd.f32 %v3279_v27, %v14191_v26  ;;  %v3283_v25 = vpop.f32.mrb[32].mxu1 }
 0x771   : > { %v15412_v0 = vadd.f32 %v3283_v25, %v14053_v7 }
 0x773   : > { %18152 = vst [vmem:[#allocation53_spill] sm:$0xff] %v15412_v0 }
 0x774   : > { %6355 = vmatmul.mubr.bf16.gmra.mrb[168].mxu0 %v18140_v62  ;;  %v15378_v62 = vadd.f32 %v3277_v12, %v14053_v7  ;;  %v15399_v12 = vadd.f32 %v15171_v59, %v14053_v7  ;;  %v3285_v59 = vpop.f32.mrb[33].mxu1 }
 0x775   : > { %6362 = vmatprep.mubr.bf16.mxu0 %v18142_v41  ;;  %v18149_v41 = vld [vmem:[#allocation146_spill] sm:$0xff]  ;;  %v3287_v3 = vpop.f32.mrb[34].mxu1  ;;  %v15417_v10 = vadd.f32 %v3285_v59, %v14191_v26  ;;  %v18155_v59 = vld [vmem:[#allocation145_spill] sm:$0xff] }
 0x776   : > { %18145 = vst [vmem:[#allocation27_spill] sm:$0xff] %v15378_v62  ;;  %v18151_v62 = vpack.c.bf16 %v18149_v41, %v18150_v28  ;;  %v15428_v28 = vadd.f32 %v15213_v58, %v14191_v26  ;;  %v3289_v25 = vpop.f32.mrb[35].mxu1  ;;  %v18154_v58 = vld [vmem:[#allocation153_spill] sm:$0xff] }
 0x777   : > { %v15433_v41 = vadd.f32 %v3289_v25, %v14191_v26  ;;  %v18156_v15 = vpack.c.bf16 %v18154_v58, %v18155_v59  ;;  %v3293_v27 = vpop.f32.mrb[36].mxu1  ;;  %v15466_v58 = vadd.f32 %v15247_v33, %v14191_v26  ;;  %v15479_v59 = vadd.f32 %v15240_v50, %v14053_v7 }
 0x778   : > { %v15454_v35 = vadd.f32 %v3293_v27, %v14053_v7  ;;  %v18161_v27 = vpack.c.bf16 %v14852_v49, %v14848_v13 }
 0x77a   : > { %18158 = vst [vmem:[#allocation49_spill] sm:$0xff] %v15454_v35 }
 0x77c   : > { %6363 = vmatmul.mubr.bf16.gmra.mrb[172].mxu0 %v18148_v18  ;;  %v15420_v18 = vadd.f32 %v3287_v3, %v14053_v7  ;;  %v15441_v3 = vadd.f32 %v15211_v55, %v14053_v7  ;;  %v3295_v55 = vpop.f32.mrb[37].mxu1 }
 0x77d   : > { %6370 = vmatprep.mubr.bf16.mxu0 %v18151_v62  ;;  %v18157_v62 = vpack.c.bf16 %v14809_v5, %v14805_v23  ;;  %v3297_v0 = vpop.f32.mrb[38].mxu1  ;;  %v15470_v23 = vadd.f32 %v15267_v47, %v14191_v26  ;;  %v18159_v47 = vld [vmem:[#allocation152_spill] sm:$0xff] }
 0x77e   : > { %18153 = vst [vmem:[#allocation45_spill] sm:$0xff] %v15420_v18  ;;  %v15459_v18 = vadd.f32 %v3295_v55, %v14191_v26  ;;  %v3299_v5 = vpop.f32.mrb[39].mxu1  ;;  %v18160_v55 = vpack.c.bf16 %v14817_v19, %v18159_v47 }
 0x77f   : > { %v3303_v45 = vpop.f32.mrb[40].mxu1 }
 0x780   : > { %v15496_v50 = vadd.f32 %v3303_v45, %v14053_v7  ;;  %v18163_v45 = vpack.c.bf16 %v14860_v2, %v14856_v8 }
 0x782   : > { %18162 = vst [vmem:[#allocation33_spill] sm:$0xff] %v15496_v50 }
 0x784   : > { %6371 = vmatmul.mubr.bf16.gmra.mrb[176].mxu0 %v18156_v15  ;;  %v15462_v15 = vadd.f32 %v3297_v0, %v14053_v7  ;;  %v15483_v0 = vadd.f32 %v15255_v38, %v14053_v7  ;;  %v3305_v38 = vpop.f32.mrb[41].mxu1 }
 0x785   : > { %6378 = vmatprep.mubr.bf16.mxu0 %v18157_v62  ;;  %v15475_v62 = vadd.f32 %v3299_v5, %v14191_v26  ;;  %v3307_v25 = vpop.f32.mrb[42].mxu1  ;;  %v15501_v35 = vadd.f32 %v3305_v38, %v14191_v26  ;;  %v18164_v38 = vpack.c.bf16 %v14889_v20, %v14885_v44  ;;  %v18166_v20 = vld [vmem:[#allocation151_spill] sm:$0xff] }
 0x786   : > { %v15504_v19 = vadd.f32 %v3307_v25, %v14053_v7  ;;  %v3309_v47 = vpop.f32.mrb[43].mxu1 }
 0x787   : > { %v15509_v13 = vadd.f32 %v3309_v47, %v14191_v26 }
 0x78c   : > { %6379 = vmatmul.mubr.bf16.gmra.mrb[180].mxu0 %v18160_v55 }
 0x78d   : > { %6386 = vmatprep.mubr.bf16.mxu0 %v18161_v27  ;;  %v3313_v27 = vpop.f32.mrb[44].mxu1 }
 0x78e   : > { %v15520_v25 = vadd.f32 %v3313_v27, %v14053_v7  ;;  %v3315_v33 = vpop.f32.mrb[45].mxu1 }
 0x78f   : > { %v3317_v55 = vpop.f32.mrb[46].mxu1  ;;  %v15523_v47 = vadd.f32 %v3315_v33, %v14191_v26  ;;  %v18169_v33 = vpack.c.bf16 %v14926_v17, %v14922_v34  ;;  %v18170_v17 = vpack.c.bf16 %v14934_v24, %v14930_v61 }
 0x790   : > { %18165 = vst [vmem:[#allocation34_spill] sm:$0xff] %v15520_v25  ;;  %v15526_v5 = vadd.f32 %v3317_v55, %v14053_v7  ;;  %v3319_v49 = vpop.f32.mrb[47].mxu1 }
 0x791   : > { %v15531_v2 = vadd.f32 %v3319_v49, %v14191_v26 }
 0x794   : > { %6387 = vmatmul.mubr.bf16.gmra.mrb[184].mxu0 %v18163_v45  ;;  %v18167_v45 = vld [vmem:[#allocation13_spill] sm:$0xff] }
 0x795   : > { %6394 = vmatprep.mubr.bf16.mxu0 %v18164_v38  ;;  %v18168_v27 = vpack.c.bf16 %v18166_v20, %v18167_v45  ;;  %v3323_v38 = vpop.f32.mrb[48].mxu1 }
 0x796   : > { %v15542_v55 = vadd.f32 %v3323_v38, %v14053_v7  ;;  %v3325_v50 = vpop.f32.mrb[49].mxu1 }
 0x797   : > { %v3327_v8 = vpop.f32.mrb[50].mxu1  ;;  %v15545_v49 = vadd.f32 %v3325_v50, %v14191_v26  ;;  %v18171_v50 = vpack.c.bf16 %v14963_v39, %v14959_v48  ;;  %v18172_v39 = vpack.c.bf16 %v14971_v56, %v14967_v57 }
 0x798   : > { %v15548_v25 = vadd.f32 %v3327_v8, %v14053_v7  ;;  %v3329_v44 = vpop.f32.mrb[51].mxu1 }
 0x799   : > { %v15553_v45 = vadd.f32 %v3329_v44, %v14191_v26 }
 0x79c   : > { %6395 = vmatmul.mubr.bf16.gmra.mrb[188].mxu0 %v18168_v27  ;;  %v3333_v27 = vpop.f32.mrb[52].mxu1 }
 0x79d   : > { %6402 = vmatprep.mubr.bf16.mxu0 %v18169_v33  ;;  %v15564_v8 = vadd.f32 %v3333_v27, %v14053_v7  ;;  %v3335_v38 = vpop.f32.mrb[53].mxu1  ;;  %v18173_v27 = vpack.c.bf16 %v15000_v11, %v14996_v22  ;;  %v18178_v11 = vpack.c.bf16 %v15008_v16, %v15004_v60 }
 0x79e   : > { %v3337_v33 = vpop.f32.mrb[54].mxu1  ;;  %v15567_v44 = vadd.f32 %v3335_v38, %v14191_v26 }
 0x79f   : > { %v15570_v20 = vadd.f32 %v3337_v33, %v14053_v7  ;;  %v3339_v34 = vpop.f32.mrb[55].mxu1 }
 0x7a0   : > { %v15575_v24 = vadd.f32 %v3339_v34, %v14191_v26 }
 0x7a4   : > { %6403 = vmatmul.mubr.bf16.gmra.mrb[192].mxu0 %v18170_v17  ;;  %v3343_v17 = vpop.f32.mrb[56].mxu1 }
 0x7a5   : > { %6410 = vmatprep.mubr.bf16.mxu0 %v18171_v50  ;;  %v15586_v50 = vadd.f32 %v3343_v17, %v14053_v7  ;;  %v3345_v38 = vpop.f32.mrb[57].mxu1  ;;  %v18179_v17 = vld [vmem:[#allocation150_spill] sm:$0xff] }
 0x7a6   : > { %v3347_v33 = vpop.f32.mrb[58].mxu1  ;;  %v15589_v34 = vadd.f32 %v3345_v38, %v14191_v26 }
 0x7a7   : > { %18174 = vst [vmem:[#allocation58_spill] sm:$0xff] %v15586_v50  ;;  %v15592_v61 = vadd.f32 %v3347_v33, %v14053_v7  ;;  %v3349_v48 = vpop.f32.mrb[59].mxu1 }
 0x7a8   : > { %18175 = vst [vmem:[#allocation50_spill] sm:$0xff] %v15589_v34  ;;  %v15597_v56 = vadd.f32 %v3349_v48, %v14191_v26 }
 0x7a9   : > { %18176 = vst [vmem:[#allocation54_spill] sm:$0xff] %v15592_v61  ;;  %v18188_v61 = vld [vmem:[#allocation14_spill] sm:$0xff] }
 0x7aa   : > { %18177 = vst [vmem:[#allocation31_spill] sm:$0xff] %v15597_v56 }
 0x7ac   : > { %6411 = vmatmul.mubr.bf16.gmra.mrb[196].mxu0 %v18172_v39  ;;  %v3353_v39 = vpop.f32.mrb[60].mxu1 }
 0x7ad   : > { %6418 = vmatprep.mubr.bf16.mxu0 %v18173_v27  ;;  %v18180_v27 = vpack.c.bf16 %v15037_v40, %v18179_v17  ;;  %v15608_v38 = vadd.f32 %v3353_v39, %v14053_v7  ;;  %v3355_v33 = vpop.f32.mrb[61].mxu1  ;;  %v18185_v39 = vld [vmem:[#allocation158_spill] sm:$0xff] }
 0x7ae   : > { %v3357_v57 = vpop.f32.mrb[62].mxu1  ;;  %v15611_v48 = vadd.f32 %v3355_v33, %v14191_v26  ;;  %v18187_v33 = vld [vmem:[#allocation156_spill] sm:$0xff] }
 0x7af   : > { %18181 = vst [vmem:[#allocation32_spill] sm:$0xff] %v15608_v38  ;;  %v15614_v50 = vadd.f32 %v3357_v57, %v14053_v7  ;;  %v3359_v22 = vpop.f32.mrb[63].mxu1  ;;  %v18189_v34 = vpack.c.bf16 %v18187_v33, %v18188_v61 }
 0x7b0   : > { %18182 = vst [vmem:[#allocation63_spill] sm:$0xff] %v15611_v48  ;;  %v15619_v16 = vadd.f32 %v3359_v22, %v14191_v26 }
 0x7b1   : > { %18183 = vst [vmem:[#allocation55_spill] sm:$0xff] %v15614_v50 }
 0x7b4   : > { %6419 = vmatmul.mubr.bf16.gmra.mrb[200].mxu0 %v18178_v11  ;;  %v18184_v11 = vld [vmem:[#allocation157_spill] sm:$0xff] }
 0x7b5   : > { %6426 = vmatprep.mubr.bf16.mxu0 %v18180_v27  ;;  %v18186_v17 = vpack.c.bf16 %v18184_v11, %v18185_v39  ;;  %v3363_v27 = vpop.f32.mrb[64].mxu1 }
 0x7b6   : > { %v15630_v57 = vadd.f32 %v3363_v27, %v14053_v7  ;;  %v3365_v56 = vpop.f32.mrb[65].mxu1 }
 0x7b7   : > { %v3367_v60 = vpop.f32.mrb[66].mxu1  ;;  %v15633_v22 = vadd.f32 %v3365_v56, %v14191_v26  ;;  %v18197_v56 = vld [vmem:[#allocation162_spill] sm:$0xff] }
 0x7b8   : > { %18190 = vst [vmem:[#allocation59_spill] sm:$0xff] %v15630_v57  ;;  %v15636_v38 = vadd.f32 %v3367_v60, %v14053_v7  ;;  %v3369_v40 = vpop.f32.mrb[67].mxu1  ;;  %v18198_v50 = vpack.c.bf16 %v15107_v1, %v18197_v56 }
 0x7b9   : > { %18191 = vst [vmem:[#allocation37_spill] sm:$0xff] %v15633_v22  ;;  %v15641_v39 = vadd.f32 %v3369_v40, %v14191_v26  ;;  %v3373_v33 = vpop.f32.mrb[68].mxu1 }
 0x7ba   : > { %18192 = vst [vmem:[#allocation38_spill] sm:$0xff] %v15636_v38  ;;  %v15652_v60 = vadd.f32 %v3373_v33, %v14053_v7  ;;  %v3375_v48 = vpop.f32.mrb[69].mxu1 }
 0x7bb   : > { %18193 = vst [vmem:[#allocation68_spill] sm:$0xff] %v15641_v39  ;;  %v3377_v11 = vpop.f32.mrb[70].mxu1  ;;  %v15655_v40 = vadd.f32 %v3375_v48, %v14191_v26  ;;  %v18206_v48 = vld [vmem:[#allocation160_spill] sm:$0xff] }
 0x7bc   : > { %6427 = vmatmul.mubr.bf16.gmra.mrb[204].mxu0 %v18186_v17  ;;  %v18195_v17 = vld [vmem:[#allocation155_spill] sm:$0xff]  ;;  %18199 = vst [vmem:[#allocation60_spill] sm:$0xff] %v15652_v60  ;;  %v15658_v57 = vadd.f32 %v3377_v11, %v14053_v7  ;;  %v3379_v61 = vpop.f32.mrb[71].mxu1  ;;  %v18207_v38 = vpack.c.bf16 %v15147_v36, %v18206_v48 }
 0x7bd   : > { %6434 = vmatprep.mubr.bf16.mxu0 %v18189_v34  ;;  %v18194_v34 = vld [vmem:[#allocation163_spill] sm:$0xff]  ;;  %18200 = vst [vmem:[#allocation64_spill] sm:$0xff] %v15655_v40  ;;  %v3383_v56 = vpop.f32.mrb[72].mxu1 }
 0x7be   : > { %v18196_v27 = vpack.c.bf16 %v18194_v34, %v18195_v17  ;;  %18201 = vst [vmem:[#allocation35_spill] sm:$0xff] %v15658_v57  ;;  %v15663_v17 = vadd.f32 %v3379_v61, %v14191_v26  ;;  %v15674_v11 = vadd.f32 %v3383_v56, %v14053_v7  ;;  %v3385_v22 = vpop.f32.mrb[73].mxu1  ;;  %v18216_v57 = vld [vmem:[#allocation16_spill] sm:$0xff] }
 0x7bf   : > { %v3387_v34 = vpop.f32.mrb[74].mxu1  ;;  %v15677_v61 = vadd.f32 %v3385_v22, %v14191_v26  ;;  %v18215_v22 = vld [vmem:[#allocation166_spill] sm:$0xff] }
 0x7c0   : > { %18202 = vst [vmem:[#allocation36_spill] sm:$0xff] %v15663_v17  ;;  %18208 = vst [vmem:[#allocation73_spill] sm:$0xff] %v15674_v11  ;;  %v15680_v60 = vadd.f32 %v3387_v34, %v14053_v7  ;;  %v3389_v1 = vpop.f32.mrb[75].mxu1  ;;  %v18217_v40 = vpack.c.bf16 %v18215_v22, %v18216_v57 }
 0x7c1   : > { %18209 = vst [vmem:[#allocation65_spill] sm:$0xff] %v15677_v61  ;;  %v3393_v48 = vpop.f32.mrb[76].mxu1 }
 0x7c2   : > { %18210 = vst [vmem:[#allocation69_spill] sm:$0xff] %v15680_v60  ;;  %v15696_v34 = vadd.f32 %v3393_v48, %v14053_v7  ;;  %v3395_v17 = vpop.f32.mrb[77].mxu1  ;;  %v18226_v60 = vld [vmem:[#allocation18_spill] sm:$0xff] }
 0x7c4   : > { %6435 = vmatmul.mubr.bf16.gmra.mrb[208].mxu0 %v18196_v27  ;;  %v18204_v27 = vld [vmem:[#allocation15_spill] sm:$0xff]  ;;  %18218 = vst [vmem:[#allocation42_spill] sm:$0xff] %v15696_v34 }
 0x7c5   : > { %6442 = vmatprep.mubr.bf16.mxu0 %v18198_v50  ;;  %v18203_v50 = vld [vmem:[#allocation161_spill] sm:$0xff] }
 0x7c6   : > { %v18205_v33 = vpack.c.bf16 %v18203_v50, %v18204_v27  ;;  %v15685_v27 = vadd.f32 %v3389_v1, %v14191_v26  ;;  %v3397_v50 = vpop.f32.mrb[78].mxu1  ;;  %v15699_v1 = vadd.f32 %v3395_v17, %v14191_v26  ;;  %v18225_v17 = vld [vmem:[#allocation19_spill] sm:$0xff] }
 0x7c7   : > { %v15702_v11 = vadd.f32 %v3397_v50, %v14053_v7  ;;  %v3399_v36 = vpop.f32.mrb[79].mxu1  ;;  %v18227_v61 = vpack.c.bf16 %v18225_v17, %v18226_v60  ;;  %v15720_v50 = vld [vmem:[%s16946_s4] ss:$0 sm:$0xff] }
 0x7c8   : > { %18211 = vst [vmem:[#allocation41_spill] sm:$0xff] %v15685_v27  ;;  %18219 = vst [vmem:[#allocation74_spill] sm:$0xff] %v15699_v1  ;;  %v3403_v22 = vpop.f32.mrb[80].mxu1  ;;  %v18230_v27 = vld [vmem:[#allocation20_spill] sm:$0xff] }
 0x7c9   : > { %18220 = vst [vmem:[#allocation46_spill] sm:$0xff] %v15702_v11 }
 0x7cc   : > { %6443 = vmatmul.mubr.bf16.gmra.mrb[212].mxu0 %v18205_v33  ;;  %v18213_v33 = vld [vmem:[#allocation168_spill] sm:$0xff] }
 0x7cd   : > { %6450 = vmatprep.mubr.bf16.mxu0 %v18207_v38  ;;  %v18212_v38 = vld [vmem:[#allocation167_spill] sm:$0xff] }
 0x7ce   : > { %v18214_v56 = vpack.c.bf16 %v18212_v38, %v18213_v33  ;;  %v15707_v33 = vadd.f32 %v3399_v36, %v14191_v26  ;;  %v15723_v36 = vadd.f32 %v3403_v22, %v14053_v7  ;;  %v3405_v38 = vpop.f32.mrb[81].mxu1 }
 0x7cf   : > { %v3407_v34 = vpop.f32.mrb[82].mxu1  ;;  %v15726_v11 = vadd.f32 %v3405_v38, %v14191_v26 }
 0x7d0   : > { %18221 = vst [vmem:[#allocation47_spill] sm:$0xff] %v15707_v33  ;;  %18228 = vst [vmem:[#allocation79_spill] sm:$0xff] %v15723_v36 }
 0x7d4   : > { %6451 = vmatmul.mubr.bf16.gmra.mrb[216].mxu0 %v18214_v56  ;;  %v18223_v56 = vld [vmem:[#allocation165_spill] sm:$0xff] }
 0x7d5   : > { %6458 = vmatprep.mubr.bf16.mxu0 %v18217_v40  ;;  %v18222_v40 = vld [vmem:[#allocation17_spill] sm:$0xff] }
 0x7d6   : > { %v18224_v48 = vpack.c.bf16 %v18222_v40, %v18223_v56  ;;  %v15729_v40 = vadd.f32 %v3407_v34, %v14053_v7  ;;  %v3409_v56 = vpop.f32.mrb[83].mxu1  ;;  %v18229_v34 = vld [vmem:[#allocation22_spill] sm:$0xff] }
 0x7d7   : > { %v15735_v22 = vadd.f32 %v3409_v56, %v14191_v26  ;;  %v18231_v39 = vpack.c.bf16 %v18229_v34, %v18230_v27 }
 0x7dc   : > { %6459 = vmatmul.mubr.bf16.gmra.mrb[220].mxu0 %v18224_v48 }
 0x7dd   : > { %6466 = vmatprep.mubr.bf16.mxu0 %v18227_v61 }
 0x7df   : > { %v6252_v57 = vpop.f32.mrb[116].mxu0 }
 0x7e0   : > { %v9530_v60 = vadd.f32 %v15720_v50, %v6252_v57  ;;  %v6254_v61 = vpop.f32.mrb[117].mxu0  ;;  %v3413_v57 = vpop.f32.mrb[84].mxu1 }
 0x7e1   : > { %v6255_v48 = vpop.f32.mrb[118].mxu0  ;;  %v18232_v61 = vpack.c.bf16 %v15265_v37, %v15261_v63  ;;  %v15747_v56 = vadd.f32 %v3413_v57, %v14053_v7  ;;  %v3415_v17 = vpop.f32.mrb[85].mxu1 }
 0x7e2   : > { %v9531_v1 = vadd.f32 %v15720_v50, %v6255_v48  ;;  %v6257_v33 = vpop.f32.mrb[119].mxu0  ;;  %9110 = vmatprep.mubr.f32.mxu1 %v9530_v60  ;;  %v3417_v48 = vpop.f32.mrb[86].mxu1  ;;  %v15750_v60 = vadd.f32 %v3415_v17, %v14191_v26 }
 0x7e3   : > { %v15753_v38 = vadd.f32 %v3417_v48, %v14053_v7  ;;  %v18233_v48 = vld [vmem:[#allocation25_spill] sm:$0xff] }
 0x7e4   : > { %6467 = vmatmul.mubr.bf16.gmra.mrb[224].mxu0 %v18231_v39  ;;  %9111 = vmatmul.mubr.f32.vlgmr.msra.gmra.mrb[140].mxu1 %v9531_v1  ;;  %v3419_v1 = vpop.f32.mrb[87].mxu1  ;;  %v18234_v36 = vpack.c.bf16 %v15275_v14, %v18233_v48 }
 0x7e5   : > { %6474 = vmatprep.mubr.bf16.mxu0 %v18232_v61  ;;  %v15759_v37 = vadd.f32 %v3419_v1, %v14191_v26 }
 0x7e7   : > { %v6260_v33 = vpop.f32.mrb[120].mxu0 }
 0x7e8   : > { %v9532_v39 = vadd.f32 %v15720_v50, %v6260_v33  ;;  %v6262_v27 = vpop.f32.mrb[121].mxu0  ;;  %v3423_v33 = vpop.f32.mrb[88].mxu1 }
 0x7e9   : > { %v6263_v34 = vpop.f32.mrb[122].mxu0  ;;  %v18235_v27 = vpack.c.bf16 %v15302_v31, %v15298_v6  ;;  %v15771_v1 = vadd.f32 %v3423_v33, %v14053_v7  ;;  %v3425_v63 = vpop.f32.mrb[89].mxu1 }
 0x7ea   : > { %v9533_v57 = vadd.f32 %v15720_v50, %v6263_v34  ;;  %v6265_v61 = vpop.f32.mrb[123].mxu0  ;;  %9113 = vmatprep.mubr.f32.mxu1 %v9532_v39  ;;  %v3427_v34 = vpop.f32.mrb[90].mxu1  ;;  %v15774_v39 = vadd.f32 %v3425_v63, %v14191_v26 }
 0x7eb   : > { %v15777_v17 = vadd.f32 %v3427_v34, %v14053_v7  ;;  %v18236_v34 = vpack.c.bf16 %v15315_v53, %v15311_v32 }
 0x7ec   : > { %6475 = vmatmul.mubr.bf16.gmra.mrb[228].mxu0 %v18234_v36  ;;  %9114 = vmatmul.mubr.f32.gmra.mrb[142].mxu1 %v9533_v57  ;;  %v3429_v57 = vpop.f32.mrb[91].mxu1 }
 0x7ed   : > { %6482 = vmatprep.mubr.bf16.mxu0 %v18235_v27  ;;  %v15783_v31 = vadd.f32 %v3429_v57, %v14191_v26 }
 0x7ef   : > { %v6268_v61 = vpop.f32.mrb[124].mxu0 }
 0x7f0   : > { %v9534_v14 = vadd.f32 %v15720_v50, %v6268_v61  ;;  %v6270_v36 = vpop.f32.mrb[125].mxu0  ;;  %v3433_v61 = vpop.f32.mrb[92].mxu1 }
 0x7f1   : > { %v6271_v48 = vpop.f32.mrb[126].mxu0  ;;  %v18237_v36 = vpack.c.bf16 %v15344_v42, %v15340_v43  ;;  %v15795_v57 = vadd.f32 %v3433_v61, %v14053_v7  ;;  %v3435_v6 = vpop.f32.mrb[93].mxu1 }
 0x7f2   : > { %v9535_v33 = vadd.f32 %v15720_v50, %v6271_v48  ;;  %v6273_v27 = vpop.f32.mrb[127].mxu0  ;;  %9116 = vmatprep.mubr.f32.mxu1 %v9534_v14  ;;  %v3437_v48 = vpop.f32.mrb[94].mxu1  ;;  %v15798_v14 = vadd.f32 %v3435_v6, %v14191_v26 }
 0x7f3   : > { %v15801_v63 = vadd.f32 %v3437_v48, %v14053_v7  ;;  %v18238_v48 = vpack.c.bf16 %v15357_v30, %v15353_v54 }
 0x7f4   : > { %6483 = vmatmul.mubr.bf16.gmra.mrb[232].mxu0 %v18236_v34  ;;  %9117 = vmatmul.mubr.f32.gmra.mrb[144].mxu1 %v9535_v33  ;;  %v3439_v33 = vpop.f32.mrb[95].mxu1 }
 0x7f5   : > { %6490 = vmatprep.mubr.bf16.mxu0 %v18237_v36  ;;  %v15807_v42 = vadd.f32 %v3439_v33, %v14191_v26 }
 0x7f7   : > { %v6276_v27 = vpop.f32.mrb[128].mxu0 }
 0x7f8   : > { %v9536_v32 = vadd.f32 %v15720_v50, %v6276_v27  ;;  %v6278_v53 = vpop.f32.mrb[129].mxu0  ;;  %v3443_v27 = vpop.f32.mrb[96].mxu1 }
 0x7f9   : > { %v6279_v34 = vpop.f32.mrb[130].mxu0  ;;  %v18239_v53 = vpack.c.bf16 %v15386_v21, %v15382_v29  ;;  %v15819_v33 = vadd.f32 %v3443_v27, %v14053_v7  ;;  %v3445_v43 = vpop.f32.mrb[97].mxu1 }
 0x7fa   : > { %v9537_v61 = vadd.f32 %v15720_v50, %v6279_v34  ;;  %v6281_v36 = vpop.f32.mrb[131].mxu0  ;;  %9119 = vmatprep.mubr.f32.mxu1 %v9536_v32  ;;  %v3447_v34 = vpop.f32.mrb[98].mxu1  ;;  %v15822_v32 = vadd.f32 %v3445_v43, %v14191_v26 }
 0x7fb   : > { %v15825_v6 = vadd.f32 %v3447_v34, %v14053_v7  ;;  %v18240_v34 = vpack.c.bf16 %v15399_v12, %v15395_v4 }
 0x7fc   : > { %6491 = vmatmul.mubr.bf16.gmra.mrb[236].mxu0 %v18238_v48  ;;  %9120 = vmatmul.mubr.f32.gmra.mrb[146].mxu1 %v9537_v61  ;;  %v3449_v61 = vpop.f32.mrb[99].mxu1 }
 0x7fd   : > { %6498 = vmatprep.mubr.bf16.mxu0 %v18239_v53  ;;  %v15831_v21 = vadd.f32 %v3449_v61, %v14191_v26 }
 0x7ff   : > { %v6284_v36 = vpop.f32.mrb[132].mxu0 }
 0x800   : > { %v9538_v54 = vadd.f32 %v15720_v50, %v6284_v36  ;;  %v6286_v30 = vpop.f32.mrb[133].mxu0  ;;  %v3453_v36 = vpop.f32.mrb[100].mxu1 }
 0x801   : > { %v6287_v48 = vpop.f32.mrb[134].mxu0  ;;  %v18241_v30 = vpack.c.bf16 %v15428_v28, %v15424_v46  ;;  %v15843_v61 = vadd.f32 %v3453_v36, %v14053_v7  ;;  %v3455_v29 = vpop.f32.mrb[101].mxu1 }
 0x802   : > { %v9539_v27 = vadd.f32 %v15720_v50, %v6287_v48  ;;  %v6289_v53 = vpop.f32.mrb[135].mxu0  ;;  %9122 = vmatprep.mubr.f32.mxu1 %v9538_v54  ;;  %v3457_v48 = vpop.f32.mrb[102].mxu1  ;;  %v15846_v54 = vadd.f32 %v3455_v29, %v14191_v26 }
 0x803   : > { %18242 = vst [vmem:[#allocation51_spill] sm:$0xff] %v15843_v61  ;;  %v15849_v43 = vadd.f32 %v3457_v48, %v14053_v7  ;;  %v18243_v48 = vpack.c.bf16 %v15441_v3, %v15437_v52 }
 0x804   : > { %6499 = vmatmul.mubr.bf16.gmra.mrb[240].mxu0 %v18240_v34  ;;  %9123 = vmatmul.mubr.f32.gmra.mrb[148].mxu1 %v9539_v27  ;;  %v3459_v27 = vpop.f32.mrb[103].mxu1 }
 0x805   : > { %6506 = vmatprep.mubr.bf16.mxu0 %v18241_v30  ;;  %v15855_v28 = vadd.f32 %v3459_v27, %v14191_v26 }
 0x807   : > { %v6292_v53 = vpop.f32.mrb[136].mxu0 }
 0x808   : > { %v9540_v4 = vadd.f32 %v15720_v50, %v6292_v53  ;;  %v6294_v12 = vpop.f32.mrb[137].mxu0  ;;  %v3463_v53 = vpop.f32.mrb[104].mxu1 }
 0x809   : > { %v6295_v34 = vpop.f32.mrb[138].mxu0  ;;  %v18244_v12 = vpack.c.bf16 %v15470_v23, %v15466_v58  ;;  %v15867_v27 = vadd.f32 %v3463_v53, %v14053_v7  ;;  %v3465_v46 = vpop.f32.mrb[105].mxu1 }
 0x80a   : > { %v9541_v36 = vadd.f32 %v15720_v50, %v6295_v34  ;;  %v6297_v30 = vpop.f32.mrb[139].mxu0  ;;  %9125 = vmatprep.mubr.f32.mxu1 %v9540_v4  ;;  %v3467_v34 = vpop.f32.mrb[106].mxu1  ;;  %v15870_v4 = vadd.f32 %v3465_v46, %v14191_v26 }
 0x80b   : > { %18245 = vst [vmem:[#allocation52_spill] sm:$0xff] %v15867_v27  ;;  %v15873_v29 = vadd.f32 %v3467_v34, %v14053_v7  ;;  %v18248_v34 = vpack.c.bf16 %v15483_v0, %v15479_v59 }
 0x80c   : > { %6507 = vmatmul.mubr.bf16.gmra.mrb[244].mxu0 %v18243_v48  ;;  %9126 = vmatmul.mubr.f32.gmra.mrb[150].mxu1 %v9541_v36  ;;  %18246 = vst [vmem:[#allocation84_spill] sm:$0xff] %v15870_v4  ;;  %v3469_v36 = vpop.f32.mrb[107].mxu1 }
 0x80d   : > { %6514 = vmatprep.mubr.bf16.mxu0 %v18244_v12  ;;  %18247 = vst [vmem:[#allocation56_spill] sm:$0xff] %v15873_v29  ;;  %v15879_v23 = vadd.f32 %v3469_v36, %v14191_v26  ;;  %v18257_v29 = vld [vmem:[#allocation30_spill] sm:$0xff] }
 0x80f   : > { %v6300_v30 = vpop.f32.mrb[140].mxu0 }
 0x810   : > { %v9542_v52 = vadd.f32 %v15720_v50, %v6300_v30  ;;  %v6302_v3 = vpop.f32.mrb[141].mxu0  ;;  %v3473_v30 = vpop.f32.mrb[108].mxu1 }
 0x811   : > { %v6303_v48 = vpop.f32.mrb[142].mxu0  ;;  %v18249_v3 = vld [vmem:[#allocation43_spill] sm:$0xff]  ;;  %v15891_v36 = vadd.f32 %v3473_v30, %v14053_v7  ;;  %v3475_v58 = vpop.f32.mrb[109].mxu1 }
 0x812   : > { %v9543_v53 = vadd.f32 %v15720_v50, %v6303_v48  ;;  %v6305_v12 = vpop.f32.mrb[143].mxu0  ;;  %9128 = vmatprep.mubr.f32.mxu1 %v9542_v52  ;;  %v18250_v61 = vpack.c.bf16 %v15307_v51, %v18249_v3  ;;  %v3477_v48 = vpop.f32.mrb[110].mxu1  ;;  %v15894_v52 = vadd.f32 %v3475_v58, %v14191_v26 }
 0x813   : > { %18251 = vst [vmem:[#allocation57_spill] sm:$0xff] %v15891_v36  ;;  %v15897_v46 = vadd.f32 %v3477_v48, %v14053_v7 }
 0x814   : > { %6515 = vmatmul.mubr.bf16.gmra.mrb[248].mxu0 %v18248_v34  ;;  %9129 = vmatmul.mubr.f32.gmra.mrb[152].mxu1 %v9543_v53  ;;  %18252 = vst [vmem:[#allocation89_spill] sm:$0xff] %v15894_v52  ;;  %v3479_v53 = vpop.f32.mrb[111].mxu1 }
 0x815   : > { %6522 = vmatprep.mubr.bf16.mxu0 %v18250_v61  ;;  %18253 = vst [vmem:[#allocation61_spill] sm:$0xff] %v15897_v46  ;;  %v15903_v61 = vadd.f32 %v3479_v53, %v14191_v26  ;;  %v3483_v58 = vpop.f32.mrb[112].mxu1 }
 0x816   : > { %v15909_v27 = vadd.f32 %v3483_v58, %v14053_v7 }
 0x817   : > { %v6308_v12 = vpop.f32.mrb[144].mxu0  ;;  %18254 = vst [vmem:[#allocation62_spill] sm:$0xff] %v15903_v61 }
 0x818   : > { %v9544_v59 = vadd.f32 %v15720_v50, %v6308_v12  ;;  %v6310_v0 = vpop.f32.mrb[145].mxu0  ;;  %18255 = vst [vmem:[#allocation94_spill] sm:$0xff] %v15909_v27  ;;  %v3485_v12 = vpop.f32.mrb[113].mxu1  ;;  %v18270_v27 = vld [vmem:[#allocation28_spill] sm:$0xff] }
 0x819   : > { %v6311_v34 = vpop.f32.mrb[146].mxu0  ;;  %v18256_v0 = vld [vmem:[#allocation39_spill] sm:$0xff]  ;;  %v15915_v53 = vadd.f32 %v3485_v12, %v14191_v26  ;;  %v3487_v51 = vpop.f32.mrb[114].mxu1 }
 0x81a   : > { %v9545_v30 = vadd.f32 %v15720_v50, %v6311_v34  ;;  %v6313_v3 = vpop.f32.mrb[147].mxu0  ;;  %9131 = vmatprep.mubr.f32.mxu1 %v9544_v59  ;;  %v18258_v4 = vpack.c.bf16 %v18256_v0, %v18257_v29  ;;  %v18260_v34 = vld [vmem:[#allocation40_spill] sm:$0xff]  ;;  %v15921_v36 = vadd.f32 %v3487_v51, %v14053_v7  ;;  %v3489_v48 = vpop.f32.mrb[115].mxu1 }
 0x81b   : > { %18259 = vst [vmem:[#allocation66_spill] sm:$0xff] %v15915_v53  ;;  %v18261_v3 = vld [vmem:[#allocation29_spill] sm:$0xff]  ;;  %v15924_v58 = vadd.f32 %v3489_v48, %v14191_v26  ;;  %v3493_v46 = vpop.f32.mrb[116].mxu1 }
 0x81c   : > { %6523 = vmatmul.mubr.bf16.gmra.mrb[252].mxu0 %v18258_v4  ;;  %9132 = vmatmul.mubr.f32.gmra.mrb[154].mxu1 %v9545_v30  ;;  %v18262_v59 = vpack.c.bf16 %v18260_v34, %v18261_v3  ;;  %18263 = vst [vmem:[#allocation67_spill] sm:$0xff] %v15921_v36  ;;  %v15932_v0 = vadd.f32 %v3493_v46, %v14053_v7  ;;  %v3495_v51 = vpop.f32.mrb[117].mxu1  ;;  %v18269_v46 = vld [vmem:[#allocation48_spill] sm:$0xff] }
 0x81d   : > { %18264 = vst [vmem:[#allocation99_spill] sm:$0xff] %v15924_v58  ;;  %v15935_v3 = vadd.f32 %v3495_v51, %v14191_v26  ;;  %v3497_v48 = vpop.f32.mrb[118].mxu1  ;;  %v18271_v36 = vpack.c.bf16 %v18269_v46, %v18270_v27 }
 0x81e   : > { %6530 = vmatprep.mubr.bf16.mxu0 %v18262_v59  ;;  %18265 = vst [vmem:[#allocation104_spill] sm:$0xff] %v15932_v0  ;;  %v15939_v29 = vadd.f32 %v3497_v48, %v14053_v7 }
 0x81f   : > { %v6316_v52 = vpop.f32.mrb[148].mxu0  ;;  %18266 = vst [vmem:[#allocation71_spill] sm:$0xff] %v15935_v3 }
 0x820   : > { %v9546_v4 = vadd.f32 %v15720_v50, %v6316_v52  ;;  %v6318_v30 = vpop.f32.mrb[149].mxu0  ;;  %18267 = vst [vmem:[#allocation72_spill] sm:$0xff] %v15939_v29  ;;  %v3499_v52 = vpop.f32.mrb[119].mxu1 }
 0x821   : > { %v6319_v34 = vpop.f32.mrb[150].mxu0  ;;  %v15942_v30 = vadd.f32 %v3499_v52, %v14191_v26  ;;  %v3503_v12 = vpop.f32.mrb[120].mxu1 }
 0x822   : > { %v9547_v59 = vadd.f32 %v15720_v50, %v6319_v34  ;;  %v6321_v61 = vpop.f32.mrb[151].mxu0  ;;  %9134 = vmatprep.mubr.f32.mxu1 %v9546_v4  ;;  %v15950_v34 = vadd.f32 %v3503_v12, %v14053_v7  ;;  %v18273_v4 = vld [vmem:[#allocation26_spill] sm:$0xff] }
 0x823   : > { %18268 = vst [vmem:[#allocation109_spill] sm:$0xff] %v15942_v30  ;;  %v3505_v61 = vpop.f32.mrb[121].mxu1  ;;  %v18274_v48 = vpack.c.bf16 %v15391_v9, %v18273_v4 }
 0x824   : > { %6531 = vmatmul.mubr.bf16.gmra.mrb[0].mxu0 %v18271_v36  ;;  %9135 = vmatmul.mubr.f32.gmra.mrb[156].mxu1 %v9547_v59  ;;  %18272 = vst [vmem:[#allocation114_spill] sm:$0xff] %v15950_v34  ;;  %v15958_v53 = vadd.f32 %v3505_v61, %v14191_v26  ;;  %v3507_v27 = vpop.f32.mrb[122].mxu1  ;;  %v18280_v34 = vld [vmem:[#allocation27_spill] sm:$0xff] }
 0x825   : > { %6538 = vmatprep.mubr.bf16.mxu0 %v18274_v48  ;;  %v15961_v36 = vadd.f32 %v3507_v27, %v14053_v7  ;;  %v3509_v59 = vpop.f32.mrb[123].mxu1 }
 0x826   : > { %v15964_v12 = vadd.f32 %v3509_v59, %v14191_v26  ;;  %v3513_v51 = vpop.f32.mrb[124].mxu1 }
 0x827   : > { %18275 = vst [vmem:[#allocation119_spill] sm:$0xff] %v15961_v36  ;;  %v6324_v46 = vpop.f32.mrb[152].mxu0  ;;  %v15970_v48 = vadd.f32 %v3513_v51, %v14053_v7  ;;  %v3515_v61 = vpop.f32.mrb[125].mxu1  ;;  %v18281_v36 = vld [vmem:[#allocation44_spill] sm:$0xff] }
 0x828   : > { %v9548_v0 = vadd.f32 %v15720_v50, %v6324_v46  ;;  %v6326_v9 = vpop.f32.mrb[153].mxu0  ;;  %v15975_v29 = vadd.f32 %v3515_v61, %v14191_v26  ;;  %v3517_v59 = vpop.f32.mrb[126].mxu1  ;;  %v18282_v58 = vpack.c.bf16 %v18280_v34, %v18281_v36 }
 0x829   : > { %18276 = vst [vmem:[#allocation124_spill] sm:$0xff] %v15970_v48  ;;  %v6327_v52 = vpop.f32.mrb[154].mxu0  ;;  %v15979_v46 = vadd.f32 %v3517_v59, %v14053_v7  ;;  %v3519_v9 = vpop.f32.mrb[127].mxu1 }
 0x82a   : > { %18277 = vst [vmem:[#allocation23_spill] sm:$0xff] %v15975_v29  ;;  %v9549_v3 = vadd.f32 %v15720_v50, %v6327_v52  ;;  %v6329_v30 = vpop.f32.mrb[155].mxu0  ;;  %9137 = vmatprep.mubr.f32.mxu1 %v9548_v0  ;;  %v15982_v51 = vadd.f32 %v3519_v9, %v14191_v26  ;;  %v3523_v4 = vpop.f32.mrb[128].mxu1 }
 0x82b   : > { %18278 = vst [vmem:[#allocation129_spill] sm:$0xff] %v15979_v46  ;;  %v15990_v52 = vadd.f32 %v3523_v4, %v14053_v7  ;;  %v3525_v0 = vpop.f32.mrb[129].mxu1  ;;  %v18284_v30 = vpack.c.bf16 %v15433_v41, %v15417_v10 }
 0x82c   : > { %18279 = vst [vmem:[#allocation78_spill] sm:$0xff] %v15982_v51  ;;  %6539 = vmatmul.mubr.bf16.gmra.mrb[4].mxu0 %v18282_v58  ;;  %9138 = vmatmul.mubr.f32.gmra.mrb[158].mxu1 %v9549_v3  ;;  %v15998_v9 = vadd.f32 %v3525_v0, %v14191_v26  ;;  %v3527_v34 = vpop.f32.mrb[130].mxu1 }
 0x82d   : > { %18283 = vst [vmem:[#allocation70_spill] sm:$0xff] %v15990_v52  ;;  %6546 = vmatprep.mubr.bf16.mxu0 %v18284_v30  ;;  %v16001_v58 = vadd.f32 %v3527_v34, %v14053_v7  ;;  %v3529_v3 = vpop.f32.mrb[131].mxu1  ;;  %v18286_v52 = vld [vmem:[#allocation45_spill] sm:$0xff] }
 0x82e   : > { %v16004_v4 = vadd.f32 %v3529_v3, %v14191_v26  ;;  %v3533_v61 = vpop.f32.mrb[132].mxu1 }
 0x82f   : > { %18285 = vst [vmem:[#allocation92_spill] sm:$0xff] %v16001_v58  ;;  %v6332_v36 = vpop.f32.mrb[156].mxu0  ;;  %v16010_v30 = vadd.f32 %v3533_v61, %v14053_v7  ;;  %v3535_v0 = vpop.f32.mrb[133].mxu1  ;;  %v18287_v58 = vld [vmem:[#allocation53_spill] sm:$0xff] }
 0x830   : > { %v9550_v27 = vadd.f32 %v15720_v50, %v6332_v36  ;;  %v6334_v10 = vpop.f32.mrb[157].mxu0  ;;  %v16015_v48 = vadd.f32 %v3535_v0, %v14191_v26  ;;  %v3537_v3 = vpop.f32.mrb[134].mxu1  ;;  %v18288_v51 = vpack.c.bf16 %v18286_v52, %v18287_v58 }
 0x831   : > { %v6335_v59 = vpop.f32.mrb[158].mxu0  ;;  %v16019_v36 = vadd.f32 %v3537_v3, %v14053_v7  ;;  %v3539_v10 = vpop.f32.mrb[135].mxu1 }
 0x832   : > { %v9551_v46 = vadd.f32 %v15720_v50, %v6335_v59  ;;  %v6337_v29 = vpop.f32.mrb[159].mxu0  ;;  %9140 = vmatprep.mubr.f32.mxu1 %v9550_v27  ;;  %v16022_v61 = vadd.f32 %v3539_v10, %v14191_v26  ;;  %v3543_v41 = vpop.f32.mrb[136].mxu1  ;;  %v18290_v27 = vpack.c.bf16 %v15475_v62, %v15459_v18 }
 0x833   : > { %v16030_v59 = vadd.f32 %v3543_v41, %v14053_v7  ;;  %v3545_v29 = vpop.f32.mrb[137].mxu1 }
 0x834   : > { %6547 = vmatmul.mubr.bf16.gmra.mrb[8].mxu0 %v18288_v51  ;;  %9141 = vmatmul.mubr.f32.gmra.mrb[160].mxu1 %v9551_v46  ;;  %v16038_v10 = vadd.f32 %v3545_v29, %v14191_v26  ;;  %v3547_v52 = vpop.f32.mrb[138].mxu1 }
 0x835   : > { %18289 = vst [vmem:[#allocation93_spill] sm:$0xff] %v16030_v59  ;;  %6554 = vmatprep.mubr.bf16.mxu0 %v18290_v27  ;;  %v16041_v46 = vadd.f32 %v3547_v52, %v14053_v7  ;;  %v3549_v51 = vpop.f32.mrb[139].mxu1  ;;  %v18291_v7 = vld [vmem:[#allocation49_spill] sm:$0xff] }
 0x836   : > { %v16044_v41 = vadd.f32 %v3549_v51, %v14191_v26  ;;  %v18292_v52 = vpack.c.bf16 %v15462_v15, %v18291_v7  ;;  %v18293_v26 = vpack.c.bf16 %v15509_v13, %v15501_v35  ;;  %v18296_v15 = vpack.c.bf16 %v15531_v2, %v15523_v47 }
 0x837   : > { %v6340_v58 = vpop.f32.mrb[160].mxu0 }
 0x838   : > { %v9552_v0 = vadd.f32 %v15720_v50, %v6340_v58  ;;  %v6342_v34 = vpop.f32.mrb[161].mxu0 }
 0x839   : > { %v6343_v62 = vpop.f32.mrb[162].mxu0 }
 0x83a   : > { %v9553_v27 = vadd.f32 %v15720_v50, %v6343_v62  ;;  %v6345_v3 = vpop.f32.mrb[163].mxu0  ;;  %9143 = vmatprep.mubr.f32.mxu1 %v9552_v0  ;;  %v18294_v0 = vld [vmem:[#allocation33_spill] sm:$0xff] }
 0x83b   : > { %v18295_v3 = vpack.c.bf16 %v15504_v19, %v18294_v0  ;;  %v18299_v19 = vpack.c.bf16 %v15553_v45, %v15545_v49 }
 0x83c   : > { %6555 = vmatmul.mubr.bf16.gmra.mrb[12].mxu0 %v18292_v52  ;;  %9144 = vmatmul.mubr.f32.gmra.mrb[162].mxu1 %v9553_v27 }
 0x83d   : > { %6562 = vmatprep.mubr.bf16.mxu0 %v18293_v26 }
 0x83f   : > { %v6348_v34 = vpop.f32.mrb[164].mxu0 }
 0x840   : > { %v9554_v51 = vadd.f32 %v15720_v50, %v6348_v34  ;;  %v6350_v58 = vpop.f32.mrb[165].mxu0 }
 0x841   : > { %v6351_v18 = vpop.f32.mrb[166].mxu0  ;;  %v18300_v58 = vpack.c.bf16 %v15548_v25, %v15542_v55  ;;  %v18303_v25 = vld [vmem:[#allocation31_spill] sm:$0xff]  ;;  %v18304_v55 = vld [vmem:[#allocation50_spill] sm:$0xff] }
 0x842   : > { %v9555_v29 = vadd.f32 %v15720_v50, %v6351_v18  ;;  %v6353_v59 = vpop.f32.mrb[167].mxu0  ;;  %9146 = vmatprep.mubr.f32.mxu1 %v9554_v51 }
 0x843   : > { %v18297_v59 = vld [vmem:[#allocation34_spill] sm:$0xff] }
 0x844   : > { %6563 = vmatmul.mubr.bf16.gmra.mrb[16].mxu0 %v18295_v3  ;;  %9147 = vmatmul.mubr.f32.gmra.mrb[164].mxu1 %v9555_v29  ;;  %v18298_v18 = vpack.c.bf16 %v15526_v5, %v18297_v59  ;;  %v18301_v5 = vpack.c.bf16 %v15575_v24, %v15567_v44 }
 0x845   : > { %6570 = vmatprep.mubr.bf16.mxu0 %v18296_v15 }
 0x847   : > { %v6356_v35 = vpop.f32.mrb[168].mxu0 }
 0x848   : > { %v9556_v13 = vadd.f32 %v15720_v50, %v6356_v35  ;;  %v6358_v62 = vpop.f32.mrb[169].mxu0 }
 0x849   : > { %v6359_v27 = vpop.f32.mrb[170].mxu0  ;;  %v18305_v62 = vpack.c.bf16 %v18303_v25, %v18304_v55 }
 0x84a   : > { %v9557_v7 = vadd.f32 %v15720_v50, %v6359_v27  ;;  %v6361_v52 = vpop.f32.mrb[171].mxu0  ;;  %9149 = vmatprep.mubr.f32.mxu1 %v9556_v13  ;;  %v18302_v13 = vpack.c.bf16 %v15570_v20, %v15564_v8  ;;  %v18309_v20 = vld [vmem:[#allocation63_spill] sm:$0xff] }
 0x84b   : > { %v18310_v8 = vpack.c.bf16 %v15619_v16, %v18309_v20 }
 0x84c   : > { %6571 = vmatmul.mubr.bf16.gmra.mrb[20].mxu0 %v18298_v18  ;;  %9150 = vmatmul.mubr.f32.gmra.mrb[166].mxu1 %v9557_v7  ;;  %v18306_v18 = vld [vmem:[#allocation54_spill] sm:$0xff] }
 0x84d   : > { %6578 = vmatprep.mubr.bf16.mxu0 %v18299_v19  ;;  %v18307_v19 = vld [vmem:[#allocation58_spill] sm:$0xff] }
 0x84f   : > { %v6364_v47 = vpop.f32.mrb[172].mxu0 }
 0x850   : > { %v9558_v2 = vadd.f32 %v15720_v50, %v6364_v47  ;;  %v6366_v29 = vpop.f32.mrb[173].mxu0  ;;  %v18308_v47 = vpack.c.bf16 %v18306_v18, %v18307_v19 }
 0x851   : > { %v6367_v26 = vpop.f32.mrb[174].mxu0 }
 0x852   : > { %v9559_v34 = vadd.f32 %v15720_v50, %v6367_v26  ;;  %v6369_v51 = vpop.f32.mrb[175].mxu0  ;;  %9152 = vmatprep.mubr.f32.mxu1 %v9558_v2 }
 0x854   : > { %6579 = vmatmul.mubr.bf16.gmra.mrb[24].mxu0 %v18300_v58  ;;  %9153 = vmatmul.mubr.f32.gmra.mrb[168].mxu1 %v9559_v34 }
 0x855   : > { %6586 = vmatprep.mubr.bf16.mxu0 %v18301_v5  ;;  %v18311_v5 = vld [vmem:[#allocation55_spill] sm:$0xff] }
 0x857   : > { %v6372_v49 = vpop.f32.mrb[176].mxu0 }
 0x858   : > { %v9560_v45 = vadd.f32 %v15720_v50, %v6372_v49  ;;  %v6374_v0 = vpop.f32.mrb[177].mxu0  ;;  %v18312_v49 = vld [vmem:[#allocation32_spill] sm:$0xff] }
 0x859   : > { %v6375_v3 = vpop.f32.mrb[178].mxu0  ;;  %v18314_v0 = vld [vmem:[#allocation68_spill] sm:$0xff] }
 0x85a   : > { %v9561_v15 = vadd.f32 %v15720_v50, %v6375_v3  ;;  %v6377_v35 = vpop.f32.mrb[179].mxu0  ;;  %9155 = vmatprep.mubr.f32.mxu1 %v9560_v45  ;;  %v18313_v45 = vpack.c.bf16 %v18311_v5, %v18312_v49  ;;  %v18315_v3 = vld [vmem:[#allocation37_spill] sm:$0xff] }
 0x85c   : > { %6587 = vmatmul.mubr.bf16.gmra.mrb[28].mxu0 %v18302_v13  ;;  %9156 = vmatmul.mubr.f32.gmra.mrb[170].mxu1 %v9561_v15  ;;  %v18316_v15 = vpack.c.bf16 %v18314_v0, %v18315_v3 }
 0x85d   : > { %6594 = vmatprep.mubr.bf16.mxu0 %v18305_v62 }
 0x85f   : > { %v6380_v44 = vpop.f32.mrb[180].mxu0 }
 0x860   : > { %v9562_v24 = vadd.f32 %v15720_v50, %v6380_v44  ;;  %v6382_v27 = vpop.f32.mrb[181].mxu0  ;;  %v18317_v44 = vld [vmem:[#allocation38_spill] sm:$0xff] }
 0x861   : > { %v6383_v7 = vpop.f32.mrb[182].mxu0 }
 0x862   : > { %v9563_v52 = vadd.f32 %v15720_v50, %v6383_v7  ;;  %v6385_v59 = vpop.f32.mrb[183].mxu0  ;;  %9158 = vmatprep.mubr.f32.mxu1 %v9562_v24  ;;  %v18318_v24 = vld [vmem:[#allocation59_spill] sm:$0xff]  ;;  %v18320_v7 = vld [vmem:[#allocation36_spill] sm:$0xff] }
 0x863   : > { %v18319_v27 = vpack.c.bf16 %v18317_v44, %v18318_v24 }
 0x864   : > { %6595 = vmatmul.mubr.bf16.gmra.mrb[32].mxu0 %v18308_v47  ;;  %9159 = vmatmul.mubr.f32.gmra.mrb[172].mxu1 %v9563_v52  ;;  %v18321_v52 = vld [vmem:[#allocation64_spill] sm:$0xff] }
 0x865   : > { %6602 = vmatprep.mubr.bf16.mxu0 %v18310_v8  ;;  %v18322_v59 = vpack.c.bf16 %v18320_v7, %v18321_v52 }
 0x867   : > { %v6388_v2 = vpop.f32.mrb[184].mxu0 }
 0x868   : > { %v9564_v29 = vadd.f32 %v15720_v50, %v6388_v2  ;;  %v6390_v26 = vpop.f32.mrb[185].mxu0 }
 0x869   : > { %v6391_v34 = vpop.f32.mrb[186].mxu0  ;;  %v18324_v26 = vld [vmem:[#allocation60_spill] sm:$0xff] }
 0x86a   : > { %v9565_v51 = vadd.f32 %v15720_v50, %v6391_v34  ;;  %v6393_v58 = vpop.f32.mrb[187].mxu0  ;;  %9161 = vmatprep.mubr.f32.mxu1 %v9564_v29  ;;  %v18323_v29 = vld [vmem:[#allocation35_spill] sm:$0xff] }
 0x86b   : > { %v18325_v34 = vpack.c.bf16 %v18323_v29, %v18324_v26  ;;  %v18327_v58 = vld [vmem:[#allocation65_spill] sm:$0xff] }
 0x86c   : > { %6603 = vmatmul.mubr.bf16.gmra.mrb[36].mxu0 %v18313_v45  ;;  %9162 = vmatmul.mubr.f32.gmra.mrb[174].mxu1 %v9565_v51  ;;  %v18326_v51 = vld [vmem:[#allocation41_spill] sm:$0xff] }
 0x86d   : > { %6610 = vmatprep.mubr.bf16.mxu0 %v18316_v15  ;;  %v18328_v5 = vpack.c.bf16 %v18326_v51, %v18327_v58 }
 0x86f   : > { %v6396_v16 = vpop.f32.mrb[188].mxu0 }
 0x870   : > { %v9566_v35 = vadd.f32 %v15720_v50, %v6396_v16  ;;  %v6398_v13 = vpop.f32.mrb[189].mxu0 }
 0x871   : > { %v6399_v25 = vpop.f32.mrb[190].mxu0  ;;  %v18330_v13 = vld [vmem:[#allocation73_spill] sm:$0xff] }
 0x872   : > { %v9567_v55 = vadd.f32 %v15720_v50, %v6399_v25  ;;  %v6401_v62 = vpop.f32.mrb[191].mxu0  ;;  %9164 = vmatprep.mubr.f32.mxu1 %v9566_v35  ;;  %v18329_v35 = vld [vmem:[#allocation69_spill] sm:$0xff] }
 0x873   : > { %v18331_v25 = vpack.c.bf16 %v18329_v35, %v18330_v13  ;;  %v18333_v62 = vld [vmem:[#allocation74_spill] sm:$0xff]  ;;  %v18342_v35 = vpack.c.bf16 %v15753_v38, %v15747_v56  ;;  %v18345_v38 = vpack.c.bf16 %v15807_v42, %v15798_v14 }
 0x874   : > { %6611 = vmatmul.mubr.bf16.gmra.mrb[40].mxu0 %v18319_v27  ;;  %9165 = vmatmul.mubr.f32.gmra.mrb[176].mxu1 %v9567_v55  ;;  %v18332_v55 = vld [vmem:[#allocation47_spill] sm:$0xff] }
 0x875   : > { %6618 = vmatprep.mubr.bf16.mxu0 %v18322_v59  ;;  %v18334_v44 = vpack.c.bf16 %v18332_v55, %v18333_v62 }
 0x877   : > { %v6404_v18 = vpop.f32.mrb[192].mxu0 }
 0x878   : > { %v9568_v19 = vadd.f32 %v15720_v50, %v6404_v18  ;;  %v6406_v47 = vpop.f32.mrb[193].mxu0 }
 0x879   : > { %v6407_v20 = vpop.f32.mrb[194].mxu0  ;;  %v18336_v47 = vld [vmem:[#allocation42_spill] sm:$0xff] }
 0x87a   : > { %v9569_v8 = vadd.f32 %v15720_v50, %v6407_v20  ;;  %v6409_v2 = vpop.f32.mrb[195].mxu0  ;;  %9167 = vmatprep.mubr.f32.mxu1 %v9568_v19  ;;  %v18335_v19 = vld [vmem:[#allocation46_spill] sm:$0xff] }
 0x87b   : > { %v18337_v20 = vpack.c.bf16 %v18335_v19, %v18336_v47  ;;  %v18348_v47 = vpack.c.bf16 %v15825_v6, %v15819_v33 }
 0x87c   : > { %6619 = vmatmul.mubr.bf16.gmra.mrb[44].mxu0 %v18325_v34  ;;  %9168 = vmatmul.mubr.f32.gmra.mrb[178].mxu1 %v9569_v8  ;;  %v18338_v8 = vpack.c.bf16 %v15735_v22, %v15726_v11 }
 0x87d   : > { %6626 = vmatprep.mubr.bf16.mxu0 %v18328_v5  ;;  %v18339_v5 = vld [vmem:[#allocation79_spill] sm:$0xff] }
 0x87f   : > { %v6412_v49 = vpop.f32.mrb[196].mxu0 }
 0x880   : > { %v9570_v45 = vadd.f32 %v15720_v50, %v6412_v49  ;;  %v6414_v0 = vpop.f32.mrb[197].mxu0  ;;  %v18340_v49 = vpack.c.bf16 %v15729_v40, %v18339_v5  ;;  %v18343_v40 = vpack.c.bf16 %v15783_v31, %v15774_v39 }
 0x881   : > { %v6415_v3 = vpop.f32.mrb[198].mxu0 }
 0x882   : > { %v9571_v15 = vadd.f32 %v15720_v50, %v6415_v3  ;;  %v6417_v16 = vpop.f32.mrb[199].mxu0  ;;  %9170 = vmatprep.mubr.f32.mxu1 %v9570_v45  ;;  %v18341_v45 = vpack.c.bf16 %v15759_v37, %v15750_v60 }
 0x884   : > { %6627 = vmatmul.mubr.bf16.gmra.mrb[48].mxu0 %v18331_v25  ;;  %9171 = vmatmul.mubr.f32.gmra.mrb[180].mxu1 %v9571_v15 }
 0x885   : > { %6634 = vmatprep.mubr.bf16.mxu0 %v18334_v44  ;;  %v18344_v44 = vpack.c.bf16 %v15777_v17, %v15771_v1  ;;  %v18347_v17 = vpack.c.bf16 %v15831_v21, %v15822_v32 }
 0x887   : > { %v6420_v24 = vpop.f32.mrb[200].mxu0 }
 0x888   : > { %v9572_v27 = vadd.f32 %v15720_v50, %v6420_v24  ;;  %v6422_v7 = vpop.f32.mrb[201].mxu0 }
 0x889   : > { %v6423_v52 = vpop.f32.mrb[202].mxu0 }
 0x88a   : > { %v9573_v59 = vadd.f32 %v15720_v50, %v6423_v52  ;;  %v6425_v18 = vpop.f32.mrb[203].mxu0  ;;  %9173 = vmatprep.mubr.f32.mxu1 %v9572_v27  ;;  %v18346_v52 = vpack.c.bf16 %v15801_v63, %v15795_v57  ;;  %v18349_v63 = vpack.c.bf16 %v15855_v28, %v15846_v54  ;;  %v16181_v57 = vld [vmem:[%s16948_s6] ss:$0 sm:$0xff] }
 0x88c   : > { %6635 = vmatmul.mubr.bf16.gmra.mrb[52].mxu0 %v18337_v20  ;;  %9174 = vmatmul.mubr.f32.gmra.mrb[182].mxu1 %v9573_v59 }
 0x88d   : > { %6642 = vmatprep.mubr.bf16.mxu0 %v18338_v8 }
 0x88f   : > { %v6428_v2 = vpop.f32.mrb[204].mxu0 }
 0x890   : > { %v9574_v29 = vadd.f32 %v15720_v50, %v6428_v2  ;;  %v6430_v26 = vpop.f32.mrb[205].mxu0 }
 0x891   : > { %v6431_v34 = vpop.f32.mrb[206].mxu0 }
 0x892   : > { %v9575_v51 = vadd.f32 %v15720_v50, %v6431_v34  ;;  %v6433_v58 = vpop.f32.mrb[207].mxu0  ;;  %9176 = vmatprep.mubr.f32.mxu1 %v9574_v29  ;;  %v18350_v34 = vld [vmem:[#allocation51_spill] sm:$0xff] }
 0x893   : > { %v18352_v58 = vld [vmem:[#allocation84_spill] sm:$0xff] }
 0x894   : > { %6643 = vmatmul.mubr.bf16.gmra.mrb[56].mxu0 %v18340_v49  ;;  %9177 = vmatmul.mubr.f32.gmra.mrb[184].mxu1 %v9575_v51  ;;  %v18351_v51 = vpack.c.bf16 %v15849_v43, %v18350_v34  ;;  %v18353_v5 = vpack.c.bf16 %v15879_v23, %v18352_v58  ;;  %v18367_v58 = vld [vmem:[#allocation94_spill] sm:$0xff] }
 0x895   : > { %6650 = vmatprep.mubr.bf16.mxu0 %v18341_v45 }
 0x897   : > { %v6436_v11 = vpop.f32.mrb[208].mxu0 }
 0x898   : > { %v9576_v22 = vadd.f32 %v15720_v50, %v6436_v11  ;;  %v6438_v0 = vpop.f32.mrb[209].mxu0 }
 0x899   : > { %v6439_v3 = vpop.f32.mrb[210].mxu0 }
 0x89a   : > { %v9577_v15 = vadd.f32 %v15720_v50, %v6439_v3  ;;  %v6441_v16 = vpop.f32.mrb[211].mxu0  ;;  %9179 = vmatprep.mubr.f32.mxu1 %v9576_v22 }
 0x89c   : > { %6651 = vmatmul.mubr.bf16.gmra.mrb[60].mxu0 %v18342_v35  ;;  %9180 = vmatmul.mubr.f32.gmra.mrb[186].mxu1 %v9577_v15 }
 0x89d   : > { %6658 = vmatprep.mubr.bf16.mxu0 %v18343_v40  ;;  %v18354_v40 = vld [vmem:[#allocation56_spill] sm:$0xff] }
 0x89f   : > { %v6444_v60 = vpop.f32.mrb[212].mxu0 }
 0x8a0   : > { %v9578_v37 = vadd.f32 %v15720_v50, %v6444_v60  ;;  %v6446_v13 = vpop.f32.mrb[213].mxu0  ;;  %v18355_v60 = vld [vmem:[#allocation52_spill] sm:$0xff] }
 0x8a1   : > { %v6447_v25 = vpop.f32.mrb[214].mxu0  ;;  %v18357_v13 = vld [vmem:[#allocation62_spill] sm:$0xff] }
 0x8a2   : > { %v9579_v55 = vadd.f32 %v15720_v50, %v6447_v25  ;;  %v6449_v62 = vpop.f32.mrb[215].mxu0  ;;  %9182 = vmatprep.mubr.f32.mxu1 %v9578_v37  ;;  %v18356_v37 = vpack.c.bf16 %v18354_v40, %v18355_v60  ;;  %v18358_v25 = vld [vmem:[#allocation89_spill] sm:$0xff] }
 0x8a4   : > { %6659 = vmatmul.mubr.bf16.gmra.mrb[64].mxu0 %v18344_v44  ;;  %9183 = vmatmul.mubr.f32.gmra.mrb[188].mxu1 %v9579_v55  ;;  %v18359_v55 = vpack.c.bf16 %v18357_v13, %v18358_v25 }
 0x8a5   : > { %6666 = vmatprep.mubr.bf16.mxu0 %v18345_v38 }
 0x8a7   : > { %v6452_v56 = vpop.f32.mrb[216].mxu0 }
 0x8a8   : > { %v9580_v39 = vadd.f32 %v15720_v50, %v6452_v56  ;;  %v6454_v31 = vpop.f32.mrb[217].mxu0 }
 0x8a9   : > { %v6455_v24 = vpop.f32.mrb[218].mxu0 }
 0x8aa   : > { %v9581_v27 = vadd.f32 %v15720_v50, %v6455_v24  ;;  %v6457_v7 = vpop.f32.mrb[219].mxu0  ;;  %9185 = vmatprep.mubr.f32.mxu1 %v9580_v39 }
 0x8ac   : > { %6667 = vmatmul.mubr.bf16.gmra.mrb[68].mxu0 %v18346_v52  ;;  %9186 = vmatmul.mubr.f32.gmra.mrb[190].mxu1 %v9581_v27 }
 0x8ad   : > { %6674 = vmatprep.mubr.bf16.mxu0 %v18347_v17 }
 0x8af   : > { %v6460_v1 = vpop.f32.mrb[220].mxu0 }
 0x8b0   : > { %v9582_v14 = vadd.f32 %v15720_v50, %v6460_v1  ;;  %v6462_v42 = vpop.f32.mrb[221].mxu0  ;;  %v18360_v1 = vld [vmem:[#allocation61_spill] sm:$0xff] }
 0x8b1   : > { %v6463_v59 = vpop.f32.mrb[222].mxu0 }
 0x8b2   : > { %v9583_v18 = vadd.f32 %v15720_v50, %v6463_v59  ;;  %v6465_v19 = vpop.f32.mrb[223].mxu0  ;;  %9188 = vmatprep.mubr.f32.mxu1 %v9582_v14  ;;  %v18361_v14 = vld [vmem:[#allocation57_spill] sm:$0xff]  ;;  %v18363_v59 = vld [vmem:[#allocation99_spill] sm:$0xff] }
 0x8b3   : > { %v18362_v42 = vpack.c.bf16 %v18360_v1, %v18361_v14 }
 0x8b4   : > { %6675 = vmatmul.mubr.bf16.gmra.mrb[72].mxu0 %v18348_v47  ;;  %9189 = vmatmul.mubr.f32.gmra.mrb[192].mxu1 %v9583_v18  ;;  %v18364_v18 = vld [vmem:[#allocation66_spill] sm:$0xff] }
 0x8b5   : > { %6682 = vmatprep.mubr.bf16.mxu0 %v18349_v63  ;;  %v18365_v19 = vpack.c.bf16 %v18363_v59, %v18364_v18 }
 0x8b7   : > { %v6468_v32 = vpop.f32.mrb[224].mxu0  ;;  %v9112_v21 = vpop.f32.mrb[140].mxu1 }
 0x8b8   : > { %v9584_v20 = vadd.f32 %v15720_v50, %v6468_v32  ;;  %v16185_v8 = vadd.f32 %v9112_v21, %v16181_v57  ;;  %v6470_v2 = vpop.f32.mrb[225].mxu0  ;;  %v6852_v6 = vpop.f32.mrb[141].mxu1 }
 0x8b9   : > { %v16188_v33 = vadd.f32 %v16181_v57, %v6852_v6  ;;  %v6471_v29 = vpop.f32.mrb[226].mxu0 }
 0x8ba   : > { %v9585_v54 = vadd.f32 %v15720_v50, %v6471_v29  ;;  %v6473_v28 = vpop.f32.mrb[227].mxu0  ;;  %9191 = vmatprep.mubr.f32.mxu1 %v9584_v20 }
 0x8bb   : > { %v9337_v26 = vpack.c.bf16 %v16185_v8, %v16188_v33  ;;  %v18394_v8 = vld [vmem:[#allocation93_spill] sm:$0xff] }
 0x8bc   : > { %6683 = vmatmul.mubr.bf16.gmra.mrb[76].mxu0 %v18351_v51  ;;  %9192 = vmatmul.mubr.f32.gmra.mrb[194].mxu1 %v9585_v54  ;;  %v18366_v51 = vld [vmem:[#allocation67_spill] sm:$0xff]  ;;  %v18395_v33 = vpack.c.bf16 %v16041_v46, %v18394_v8 }
 0x8bd   : > { %6690 = vmatprep.mubr.bf16.mxu0 %v18353_v5  ;;  %v18368_v5 = vpack.c.bf16 %v18366_v51, %v18367_v58 }
 0x8bf   : > { %v6476_v49 = vpop.f32.mrb[228].mxu0  ;;  %v9115_v45 = vpop.f32.mrb[142].mxu1 }
 0x8c0   : > { %v9586_v11 = vadd.f32 %v15720_v50, %v6476_v49  ;;  %v16201_v22 = vadd.f32 %v9115_v45, %v16181_v57  ;;  %v6478_v0 = vpop.f32.mrb[229].mxu0  ;;  %v6862_v3 = vpop.f32.mrb[143].mxu1  ;;  %v18369_v49 = vld [vmem:[#allocation109_spill] sm:$0xff]  ;;  %v18370_v45 = vld [vmem:[#allocation71_spill] sm:$0xff] }
 0x8c1   : > { %v16204_v15 = vadd.f32 %v16181_v57, %v6862_v3  ;;  %v6479_v16 = vpop.f32.mrb[230].mxu0 }
 0x8c2   : > { %v9587_v43 = vadd.f32 %v15720_v50, %v6479_v16  ;;  %v6481_v35 = vpop.f32.mrb[231].mxu0  ;;  %9194 = vmatprep.mubr.f32.mxu1 %v9586_v11  ;;  %v18371_v11 = vpack.c.bf16 %v18369_v49, %v18370_v45 }
 0x8c3   : > { %v9343_v23 = vpack.c.bf16 %v16201_v22, %v16204_v15 }
 0x8c4   : > { %6691 = vmatmul.mubr.bf16.gmra.mrb[80].mxu0 %v18356_v37  ;;  %9195 = vmatmul.mubr.f32.gmra.mrb[196].mxu1 %v9587_v43 }
 0x8c5   : > { %6698 = vmatprep.mubr.bf16.mxu0 %v18359_v55 }
 0x8c7   : > { %v6484_v62 = vpop.f32.mrb[232].mxu0  ;;  %v9118_v44 = vpop.f32.mrb[144].mxu1 }
 0x8c8   : > { %v9588_v38 = vadd.f32 %v15720_v50, %v6484_v62  ;;  %v16217_v56 = vadd.f32 %v9118_v44, %v16181_v57  ;;  %v6486_v39 = vpop.f32.mrb[233].mxu0  ;;  %v6872_v31 = vpop.f32.mrb[145].mxu1  ;;  %v18372_v62 = vld [vmem:[#allocation72_spill] sm:$0xff] }
 0x8c9   : > { %v16220_v24 = vadd.f32 %v16181_v57, %v6872_v31  ;;  %v6487_v27 = vpop.f32.mrb[234].mxu0  ;;  %v18373_v44 = vld [vmem:[#allocation104_spill] sm:$0xff]  ;;  %v18375_v39 = vpack.c.bf16 %v15964_v12, %v15958_v53  ;;  %v18376_v12 = vld [vmem:[#allocation119_spill] sm:$0xff] }
 0x8ca   : > { %v9589_v7 = vadd.f32 %v15720_v50, %v6487_v27  ;;  %v6489_v52 = vpop.f32.mrb[235].mxu0  ;;  %9197 = vmatprep.mubr.f32.mxu1 %v9588_v38  ;;  %v18374_v38 = vpack.c.bf16 %v18372_v62, %v18373_v44 }
 0x8cb   : > { %v9349_v17 = vpack.c.bf16 %v16217_v56, %v16220_v24 }
 0x8cc   : > { %6699 = vmatmul.mubr.bf16.gmra.mrb[84].mxu0 %v18362_v42  ;;  %9198 = vmatmul.mubr.f32.gmra.mrb[198].mxu1 %v9589_v7 }
 0x8cd   : > { %6706 = vmatprep.mubr.bf16.mxu0 %v18365_v19 }
 0x8cf   : > { %v6492_v47 = vpop.f32.mrb[236].mxu0  ;;  %v9121_v63 = vpop.f32.mrb[146].mxu1 }
 0x8d0   : > { %v9590_v32 = vadd.f32 %v15720_v50, %v6492_v47  ;;  %v16233_v21 = vadd.f32 %v9121_v63, %v16181_v57  ;;  %v6494_v20 = vpop.f32.mrb[237].mxu0  ;;  %v6882_v2 = vpop.f32.mrb[147].mxu1  ;;  %v18377_v47 = vld [vmem:[#allocation114_spill] sm:$0xff] }
 0x8d1   : > { %v16236_v6 = vadd.f32 %v16181_v57, %v6882_v2  ;;  %v6495_v29 = vpop.f32.mrb[238].mxu0  ;;  %v18378_v63 = vpack.c.bf16 %v18376_v12, %v18377_v47  ;;  %v18380_v20 = vld [vmem:[#allocation23_spill] sm:$0xff] }
 0x8d2   : > { %v9591_v54 = vadd.f32 %v15720_v50, %v6495_v29  ;;  %v6497_v28 = vpop.f32.mrb[239].mxu0  ;;  %9200 = vmatprep.mubr.f32.mxu1 %v9590_v32  ;;  %v18379_v32 = vld [vmem:[#allocation78_spill] sm:$0xff] }
 0x8d3   : > { %v9355_v34 = vpack.c.bf16 %v16233_v21, %v16236_v6  ;;  %v18381_v2 = vpack.c.bf16 %v18379_v32, %v18380_v20 }
 0x8d4   : > { %6707 = vmatmul.mubr.bf16.gmra.mrb[88].mxu0 %v18368_v5  ;;  %9201 = vmatmul.mubr.f32.gmra.mrb[200].mxu1 %v9591_v54 }
 0x8d5   : > { %6714 = vmatprep.mubr.bf16.mxu0 %v18371_v11 }
 0x8d7   : > { %v6500_v0 = vpop.f32.mrb[240].mxu0  ;;  %v9124_v3 = vpop.f32.mrb[148].mxu1 }
 0x8d8   : > { %v9592_v16 = vadd.f32 %v15720_v50, %v6500_v0  ;;  %v16249_v43 = vadd.f32 %v9124_v3, %v16181_v57  ;;  %v6502_v35 = vpop.f32.mrb[241].mxu0  ;;  %v6892_v40 = vpop.f32.mrb[149].mxu1 }
 0x8d9   : > { %v16252_v60 = vadd.f32 %v16181_v57, %v6892_v40  ;;  %v6503_v37 = vpop.f32.mrb[242].mxu0  ;;  %v18383_v35 = vld [vmem:[#allocation124_spill] sm:$0xff] }
 0x8da   : > { %v9593_v13 = vadd.f32 %v15720_v50, %v6503_v37  ;;  %v6505_v25 = vpop.f32.mrb[243].mxu0  ;;  %9203 = vmatprep.mubr.f32.mxu1 %v9592_v16  ;;  %v18382_v16 = vld [vmem:[#allocation129_spill] sm:$0xff]  ;;  %v18385_v37 = vpack.c.bf16 %v16004_v4, %v15998_v9  ;;  %v18386_v4 = vld [vmem:[#allocation92_spill] sm:$0xff] }
 0x8db   : > { %v9361_v55 = vpack.c.bf16 %v16249_v43, %v16252_v60  ;;  %v18384_v40 = vpack.c.bf16 %v18382_v16, %v18383_v35 }
 0x8dc   : > { %6715 = vmatmul.mubr.bf16.gmra.mrb[92].mxu0 %v18374_v38  ;;  %9204 = vmatmul.mubr.f32.gmra.mrb[202].mxu1 %v9593_v13 }
 0x8dd   : > { %6722 = vmatprep.mubr.bf16.mxu0 %v18375_v39 }
 0x8df   : > { %v6508_v31 = vpop.f32.mrb[244].mxu0  ;;  %v9127_v27 = vpop.f32.mrb[150].mxu1 }
 0x8e0   : > { %v9594_v7 = vadd.f32 %v15720_v50, %v6508_v31  ;;  %v16265_v52 = vadd.f32 %v9127_v27, %v16181_v57  ;;  %v6510_v1 = vpop.f32.mrb[245].mxu0  ;;  %v6902_v14 = vpop.f32.mrb[151].mxu1 }
 0x8e1   : > { %v16268_v42 = vadd.f32 %v16181_v57, %v6902_v14  ;;  %v6511_v59 = vpop.f32.mrb[246].mxu0  ;;  %v18387_v14 = vld [vmem:[#allocation70_spill] sm:$0xff] }
 0x8e2   : > { %v9595_v18 = vadd.f32 %v15720_v50, %v6511_v59  ;;  %v6513_v19 = vpop.f32.mrb[247].mxu0  ;;  %9206 = vmatprep.mubr.f32.mxu1 %v9594_v7  ;;  %v16282_v50 = vld [vmem:[%s16946_s4] ss:$0 sm:$0xff]  ;;  %v18388_v59 = vpack.c.bf16 %v18386_v4, %v18387_v14 }
 0x8e3   : > { %v9367_v53 = vpack.c.bf16 %v16265_v52, %v16268_v42 }
 0x8e4   : > { %6723 = vmatmul.mubr.bf16.gmra.mrb[96].mxu0 %v18378_v63  ;;  %9207 = vmatmul.mubr.f32.gmra.mrb[204].mxu1 %v9595_v18  ;;  %v18389_v18 = vpack.c.bf16 %v16022_v61, %v16015_v48 }
 0x8e5   : > { %6730 = vmatprep.mubr.bf16.mxu0 %v18381_v2 }
 0x8e7   : > { %v6516_v29 = vpop.f32.mrb[248].mxu0  ;;  %v9130_v54 = vpop.f32.mrb[152].mxu1 }
 0x8e8   : > { %v9596_v28 = vadd.f32 %v16282_v50, %v6516_v29  ;;  %v16286_v51 = vadd.f32 %v9130_v54, %v16181_v57  ;;  %v6518_v58 = vpop.f32.mrb[249].mxu0  ;;  %v6912_v5 = vpop.f32.mrb[153].mxu1 }
 0x8e9   : > { %v16289_v49 = vadd.f32 %v16181_v57, %v6912_v5  ;;  %v6519_v45 = vpop.f32.mrb[250].mxu0  ;;  %v18392_v58 = vpack.c.bf16 %v16019_v36, %v16010_v30  ;;  %v18393_v5 = vpack.c.bf16 %v16044_v41, %v16038_v10 }
 0x8ea   : > { %v9597_v11 = vadd.f32 %v16282_v50, %v6519_v45  ;;  %v6521_v0 = vpop.f32.mrb[251].mxu0  ;;  %9209 = vmatprep.mubr.f32.mxu1 %v9596_v28 }
 0x8eb   : > { %v9373_v3 = vpack.c.bf16 %v16286_v51, %v16289_v49 }
 0x8ec   : > { %6731 = vmatmul.mubr.bf16.gmra.mrb[100].mxu0 %v18384_v40  ;;  %9210 = vmatmul.mubr.f32.gmra.mrb[206].mxu1 %v9597_v11 }
 0x8ed   : > { %6738 = vmatprep.mubr.bf16.mxu0 %v18385_v37 }
 0x8ef   : > { %v6524_v13 = vpop.f32.mrb[252].mxu0  ;;  %v9133_v25 = vpop.f32.mrb[154].mxu1 }
 0x8f0   : > { %v9598_v62 = vadd.f32 %v16282_v50, %v6524_v13  ;;  %v16302_v44 = vadd.f32 %v9133_v25, %v16181_v57  ;;  %v6526_v38 = vpop.f32.mrb[253].mxu0  ;;  %v6922_v39 = vpop.f32.mrb[155].mxu1 }
 0x8f1   : > { %v16305_v31 = vadd.f32 %v16181_v57, %v6922_v39  ;;  %v6527_v27 = vpop.f32.mrb[254].mxu0 }
 0x8f2   : > { %v9599_v7 = vadd.f32 %v16282_v50, %v6527_v27  ;;  %v6529_v1 = vpop.f32.mrb[255].mxu0  ;;  %9212 = vmatprep.mubr.f32.mxu1 %v9598_v62 }
 0x8f3   : > { %v9379_v9 = vpack.c.bf16 %v16302_v44, %v16305_v31 }
 0x8f4   : > { %6739 = vmatmul.mubr.bf16.gmra.mrb[104].mxu0 %v18388_v59  ;;  %9213 = vmatmul.mubr.f32.gmra.mrb[208].mxu1 %v9599_v7 }
 0x8f5   : > { %6746 = vmatprep.mubr.bf16.mxu0 %v18389_v18 }
 0x8f7   : > { %v6532_v19 = vpop.f32.mrb[0].mxu0  ;;  %v9136_v12 = vpop.f32.mrb[156].mxu1 }
 0x8f8   : > { %v9600_v47 = vadd.f32 %v16282_v50, %v6532_v19  ;;  %v6938_v63 = vadd.f32 %v9136_v12, %v16181_v57  ;;  %v6534_v32 = vpop.f32.mrb[1].mxu0  ;;  %v6932_v20 = vpop.f32.mrb[157].mxu1 }
 0x8f9   : > { %v6933_v2 = vadd.f32 %v16181_v57, %v6932_v20  ;;  %v6535_v29 = vpop.f32.mrb[2].mxu0 }
 0x8fa   : > { %v9601_v54 = vadd.f32 %v16282_v50, %v6535_v29  ;;  %v6537_v28 = vpop.f32.mrb[3].mxu0  ;;  %9215 = vmatprep.mubr.f32.mxu1 %v9600_v47 }
 0x8fb   : > { %v9334_v61 = vpack.c.bf16 %v6938_v63, %v6933_v2 }
 0x8fc   : > { %6747 = vmatmul.mubr.bf16.gmra.mrb[108].mxu0 %v18392_v58  ;;  %9216 = vmatmul.mubr.f32.gmra.mrb[210].mxu1 %v9601_v54 }
 0x8fd   : > { %6754 = vmatprep.mubr.bf16.mxu0 %v18393_v5  ;;  %9336 = vmatprep.subr.msk.bf16.mxu1 %vm16322_vm2, %v9334_v61 }
 0x8fe   : > { %9339 = vmatpush3.bf16.xpose.msk.msra.mxu1 %vm16322_vm2, %v9337_v26 }
 0x8ff   : > { %v6540_v45 = vpop.f32.mrb[4].mxu0  ;;  %v9139_v11 = vpop.f32.mrb[158].mxu1 }
 0x900   : > { %v9602_v0 = vadd.f32 %v16282_v50, %v6540_v45  ;;  %v6948_v30 = vadd.f32 %v9139_v11, %v16181_v57  ;;  %v6542_v36 = vpop.f32.mrb[5].mxu0  ;;  %v6942_v16 = vpop.f32.mrb[159].mxu1 }
 0x901   : > { %v6943_v10 = vadd.f32 %v16181_v57, %v6942_v16  ;;  %v6543_v41 = vpop.f32.mrb[6].mxu0 }
 0x902   : > { %v9603_v35 = vadd.f32 %v16282_v50, %v6543_v41  ;;  %v6545_v40 = vpop.f32.mrb[7].mxu0  ;;  %9218 = vmatprep.mubr.f32.mxu1 %v9602_v0 }
 0x903   : > { %v9340_v37 = vpack.c.bf16 %v6948_v30, %v6943_v10 }
 0x904   : > { %6755 = vmatmul.mubr.bf16.gmra.mrb[112].mxu0 %v18395_v33  ;;  %9219 = vmatmul.mubr.f32.gmra.mrb[212].mxu1 %v9603_v35 }
 0x905   : > { %9342 = vmatprep.subr.msk.bf16.mxu1 %vm16322_vm2, %v9340_v37 }
 0x906   : > { %9345 = vmatpush3.bf16.xpose.msk.msra.mxu1 %vm16322_vm2, %v9343_v23 }
 0x907   : > { %v6548_v26 = vpop.f32.mrb[8].mxu0  ;;  %v9142_v13 = vpop.f32.mrb[160].mxu1 }
 0x908   : > { %v9604_v25 = vadd.f32 %v16282_v50, %v6548_v26  ;;  %v6958_v62 = vadd.f32 %v9142_v13, %v16181_v57  ;;  %v6550_v38 = vpop.f32.mrb[9].mxu0  ;;  %v6952_v39 = vpop.f32.mrb[161].mxu1 }
 0x909   : > { %v6953_v46 = vadd.f32 %v16181_v57, %v6952_v39  ;;  %v6551_v27 = vpop.f32.mrb[10].mxu0 }
 0x90a   : > { %v9605_v7 = vadd.f32 %v16282_v50, %v6551_v27  ;;  %v6553_v1 = vpop.f32.mrb[11].mxu0  ;;  %9221 = vmatprep.mubr.f32.mxu1 %v9604_v25 }
 0x90b   : > { %v9346_v4 = vpack.c.bf16 %v6958_v62, %v6953_v46 }
 0x90c   : > { %9222 = vmatmul.mubr.f32.gmra.mrb[214].mxu1 %v9605_v7 }
 0x90d   : > { %9348 = vmatprep.subr.msk.bf16.mxu1 %vm16322_vm2, %v9346_v4 }
 0x90e   : > { %9351 = vmatpush3.bf16.xpose.msk.msra.mxu1 %vm16322_vm2, %v9349_v17 }
 0x90f   : > { %v6556_v22 = vpop.f32.mrb[12].mxu0  ;;  %v9145_v15 = vpop.f32.mrb[162].mxu1 }
 0x910   : > { %v9606_v23 = vadd.f32 %v16282_v50, %v6556_v22  ;;  %v6968_v14 = vadd.f32 %v9145_v15, %v16181_v57  ;;  %v6558_v59 = vpop.f32.mrb[13].mxu0  ;;  %v6962_v18 = vpop.f32.mrb[163].mxu1 }
 0x911   : > { %v6963_v19 = vadd.f32 %v16181_v57, %v6962_v18  ;;  %v6559_v12 = vpop.f32.mrb[14].mxu0 }
 0x912   : > { %v9607_v47 = vadd.f32 %v16282_v50, %v6559_v12  ;;  %v6561_v63 = vpop.f32.mrb[15].mxu0  ;;  %9224 = vmatprep.mubr.f32.mxu1 %v9606_v23 }
 0x913   : > { %v9352_v32 = vpack.c.bf16 %v6968_v14, %v6963_v19 }
 0x914   : > { %9225 = vmatmul.mubr.f32.gmra.mrb[216].mxu1 %v9607_v47 }
 0x915   : > { %9354 = vmatprep.subr.msk.bf16.mxu1 %vm16322_vm2, %v9352_v32 }
 0x916   : > { %9357 = vmatpush3.bf16.xpose.msk.msra.mxu1 %vm16322_vm2, %v9355_v34 }
 0x917   : > { %v6564_v56 = vpop.f32.mrb[16].mxu0  ;;  %v9148_v24 = vpop.f32.mrb[164].mxu1 }
 0x918   : > { %v9608_v17 = vadd.f32 %v16282_v50, %v6564_v56  ;;  %v6978_v20 = vadd.f32 %v9148_v24, %v16181_v57  ;;  %v6566_v2 = vpop.f32.mrb[17].mxu0  ;;  %v6972_v29 = vpop.f32.mrb[165].mxu1 }
 0x919   : > { %v6973_v54 = vadd.f32 %v16181_v57, %v6972_v29  ;;  %v6567_v28 = vpop.f32.mrb[18].mxu0 }
 0x91a   : > { %v9609_v61 = vadd.f32 %v16282_v50, %v6567_v28  ;;  %v6569_v58 = vpop.f32.mrb[19].mxu0  ;;  %9227 = vmatprep.mubr.f32.mxu1 %v9608_v17 }
 0x91b   : > { %v9358_v5 = vpack.c.bf16 %v6978_v20, %v6973_v54 }
 0x91c   : > { %9228 = vmatmul.mubr.f32.gmra.mrb[218].mxu1 %v9609_v61 }
 0x91d   : > { %9360 = vmatprep.subr.msk.bf16.mxu1 %vm16322_vm2, %v9358_v5 }
 0x91e   : > { %9363 = vmatpush3.bf16.xpose.msk.msra.mxu1 %vm16322_vm2, %v9361_v55 }
 0x91f   : > { %v6572_v21 = vpop.f32.mrb[20].mxu0  ;;  %v9151_v6 = vpop.f32.mrb[166].mxu1 }
 0x920   : > { %v9610_v34 = vadd.f32 %v16282_v50, %v6572_v21  ;;  %v6988_v45 = vadd.f32 %v9151_v6, %v16181_v57  ;;  %v6574_v11 = vpop.f32.mrb[21].mxu0  ;;  %v6982_v0 = vpop.f32.mrb[167].mxu1 }
 0x921   : > { %v6983_v30 = vadd.f32 %v16181_v57, %v6982_v0  ;;  %v6575_v36 = vpop.f32.mrb[22].mxu0 }
 0x922   : > { %v9611_v16 = vadd.f32 %v16282_v50, %v6575_v36  ;;  %v6577_v10 = vpop.f32.mrb[23].mxu0  ;;  %9230 = vmatprep.mubr.f32.mxu1 %v9610_v34 }
 0x923   : > { %v9364_v41 = vpack.c.bf16 %v6988_v45, %v6983_v30 }
 0x924   : > { %9231 = vmatmul.mubr.f32.gmra.mrb[220].mxu1 %v9611_v16 }
 0x925   : > { %9366 = vmatprep.subr.msk.bf16.mxu1 %vm16322_vm2, %v9364_v41 }
 0x926   : > { %9369 = vmatpush3.bf16.xpose.msk.msra.mxu1 %vm16322_vm2, %v9367_v53 }
 0x927   : > { %v6580_v43 = vpop.f32.mrb[24].mxu0  ;;  %v9154_v60 = vpop.f32.mrb[168].mxu1 }
 0x928   : > { %v9612_v55 = vadd.f32 %v16282_v50, %v6580_v43  ;;  %v6998_v35 = vadd.f32 %v9154_v60, %v16181_v57  ;;  %v6582_v40 = vpop.f32.mrb[25].mxu0  ;;  %v6992_v37 = vpop.f32.mrb[169].mxu1 }
 0x929   : > { %v6993_v8 = vadd.f32 %v16181_v57, %v6992_v37  ;;  %v6583_v33 = vpop.f32.mrb[26].mxu0 }
 0x92a   : > { %v9613_v26 = vadd.f32 %v16282_v50, %v6583_v33  ;;  %v6585_v13 = vpop.f32.mrb[27].mxu0  ;;  %9233 = vmatprep.mubr.f32.mxu1 %v9612_v55 }
 0x92b   : > { %v9370_v25 = vpack.c.bf16 %v6998_v35, %v6993_v8 }
 0x92c   : > { %9234 = vmatmul.mubr.f32.gmra.mrb[222].mxu1 %v9613_v26 }
 0x92d   : > { %9372 = vmatprep.subr.msk.bf16.mxu1 %vm16322_vm2, %v9370_v25 }
 0x92e   : > { %9375 = vmatpush3.bf16.xpose.msk.msra.mxu1 %vm16322_vm2, %v9373_v3 }
 0x92f   : > { %v6588_v52 = vpop.f32.mrb[28].mxu0  ;;  %v9157_v42 = vpop.f32.mrb[170].mxu1 }
 0x930   : > { %v9614_v53 = vadd.f32 %v16282_v50, %v6588_v52  ;;  %v7008_v62 = vadd.f32 %v9157_v42, %v16181_v57  ;;  %v6590_v38 = vpop.f32.mrb[29].mxu0  ;;  %v7002_v39 = vpop.f32.mrb[171].mxu1 }
 0x931   : > { %v7003_v46 = vadd.f32 %v16181_v57, %v7002_v39  ;;  %v6591_v27 = vpop.f32.mrb[30].mxu0 }
 0x932   : > { %v9615_v7 = vadd.f32 %v16282_v50, %v6591_v27  ;;  %v6593_v1 = vpop.f32.mrb[31].mxu0  ;;  %9236 = vmatprep.mubr.f32.mxu1 %v9614_v53 }
 0x933   : > { %v9376_v4 = vpack.c.bf16 %v7008_v62, %v7003_v46 }
 0x934   : > { %9237 = vmatmul.mubr.f32.gmra.mrb[224].mxu1 %v9615_v7 }
 0x935   : > { %9378 = vmatprep.subr.msk.bf16.mxu1 %vm16322_vm2, %v9376_v4 }
 0x936   : > { %9381 = vmatpush3.bf16.xpose.msk.msra.mxu1 %vm16322_vm2, %v9379_v9 }
 0x937   : > { %v6596_v51 = vpop.f32.mrb[32].mxu0  ;;  %v9160_v49 = vpop.f32.mrb[172].mxu1 }
 0x938   : > { %v9616_v3 = vadd.f32 %v16282_v50, %v6596_v51  ;;  %v16421_v22 = vadd.f32 %v9160_v49, %v16181_v57  ;;  %v6598_v15 = vpop.f32.mrb[33].mxu0  ;;  %v7012_v23 = vpop.f32.mrb[173].mxu1 }
 0x939   : > { %v16424_v14 = vadd.f32 %v16181_v57, %v7012_v23  ;;  %v6599_v59 = vpop.f32.mrb[34].mxu0 }
 0x93a   : > { %v9617_v18 = vadd.f32 %v16282_v50, %v6599_v59  ;;  %v6601_v19 = vpop.f32.mrb[35].mxu0  ;;  %9239 = vmatprep.mubr.f32.mxu1 %v9616_v3 }
 0x93b   : > { %v9385_v44 = vpack.c.bf16 %v16421_v22, %v16424_v14 }
 0x93c   : > { %9240 = vmatmul.mubr.f32.gmra.mrb[226].mxu1 %v9617_v18 }
 0x93f   : > { %v6604_v31 = vpop.f32.mrb[36].mxu0  ;;  %v9163_v9 = vpop.f32.mrb[174].mxu1 }
 0x940   : > { %v9618_v12 = vadd.f32 %v16282_v50, %v6604_v31  ;;  %v16431_v47 = vadd.f32 %v9163_v9, %v16181_v57  ;;  %v6606_v63 = vpop.f32.mrb[37].mxu0  ;;  %v7022_v32 = vpop.f32.mrb[175].mxu1 }
 0x941   : > { %v16434_v56 = vadd.f32 %v16181_v57, %v7022_v32  ;;  %v6607_v24 = vpop.f32.mrb[38].mxu0 }
 0x942   : > { %v9619_v17 = vadd.f32 %v16282_v50, %v6607_v24  ;;  %v6609_v20 = vpop.f32.mrb[39].mxu0  ;;  %9242 = vmatprep.mubr.f32.mxu1 %v9618_v12 }
 0x943   : > { %v9391_v2 = vpack.c.bf16 %v16431_v47, %v16434_v56 }
 0x944   : > { %9243 = vmatmul.mubr.f32.gmra.mrb[228].mxu1 %v9619_v17 }
 0x947   : > { %v6612_v29 = vpop.f32.mrb[40].mxu0  ;;  %v9166_v54 = vpop.f32.mrb[176].mxu1 }
 0x948   : > { %v9620_v28 = vadd.f32 %v16282_v50, %v6612_v29  ;;  %v16441_v61 = vadd.f32 %v9166_v54, %v16181_v57  ;;  %v6614_v58 = vpop.f32.mrb[41].mxu0  ;;  %v7032_v5 = vpop.f32.mrb[177].mxu1 }
 0x949   : > { %v16444_v21 = vadd.f32 %v16181_v57, %v7032_v5  ;;  %v6615_v6 = vpop.f32.mrb[42].mxu0 }
 0x94a   : > { %v9621_v34 = vadd.f32 %v16282_v50, %v6615_v6  ;;  %v6617_v45 = vpop.f32.mrb[43].mxu0  ;;  %9245 = vmatprep.mubr.f32.mxu1 %v9620_v28 }
 0x94b   : > { %v9397_v11 = vpack.c.bf16 %v16441_v61, %v16444_v21 }
 0x94c   : > { %9246 = vmatmul.mubr.f32.gmra.mrb[230].mxu1 %v9621_v34 }
 0x94f   : > { %v6620_v0 = vpop.f32.mrb[44].mxu0  ;;  %v9169_v30 = vpop.f32.mrb[178].mxu1 }
 0x950   : > { %v9622_v36 = vadd.f32 %v16282_v50, %v6620_v0  ;;  %v16451_v16 = vadd.f32 %v9169_v30, %v16181_v57  ;;  %v6622_v10 = vpop.f32.mrb[45].mxu0  ;;  %v7042_v41 = vpop.f32.mrb[179].mxu1 }
 0x951   : > { %v16454_v43 = vadd.f32 %v16181_v57, %v7042_v41  ;;  %v6623_v60 = vpop.f32.mrb[46].mxu0 }
 0x952   : > { %v9623_v55 = vadd.f32 %v16282_v50, %v6623_v60  ;;  %v6625_v35 = vpop.f32.mrb[47].mxu0  ;;  %9248 = vmatprep.mubr.f32.mxu1 %v9622_v36 }
 0x953   : > { %v9403_v40 = vpack.c.bf16 %v16451_v16, %v16454_v43 }
 0x954   : > { %9249 = vmatmul.mubr.f32.gmra.mrb[232].mxu1 %v9623_v55 }
 0x957   : > { %v6628_v37 = vpop.f32.mrb[48].mxu0  ;;  %v9172_v8 = vpop.f32.mrb[180].mxu1 }
 0x958   : > { %v9624_v33 = vadd.f32 %v16282_v50, %v6628_v37  ;;  %v16461_v26 = vadd.f32 %v9172_v8, %v16181_v57  ;;  %v6630_v13 = vpop.f32.mrb[49].mxu0  ;;  %v7052_v25 = vpop.f32.mrb[181].mxu1 }
 0x959   : > { %v16464_v52 = vadd.f32 %v16181_v57, %v7052_v25  ;;  %v6631_v42 = vpop.f32.mrb[50].mxu0 }
 0x95a   : > { %v9625_v53 = vadd.f32 %v16282_v50, %v6631_v42  ;;  %v6633_v62 = vpop.f32.mrb[51].mxu0  ;;  %9251 = vmatprep.mubr.f32.mxu1 %v9624_v33 }
 0x95b   : > { %v9409_v38 = vpack.c.bf16 %v16461_v26, %v16464_v52 }
 0x95c   : > { %9252 = vmatmul.mubr.f32.gmra.mrb[234].mxu1 %v9625_v53 }
 0x95f   : > { %v6636_v39 = vpop.f32.mrb[52].mxu0  ;;  %v9175_v46 = vpop.f32.mrb[182].mxu1 }
 0x960   : > { %v9626_v27 = vadd.f32 %v16282_v50, %v6636_v39  ;;  %v16471_v7 = vadd.f32 %v9175_v46, %v16181_v57  ;;  %v6638_v1 = vpop.f32.mrb[53].mxu0  ;;  %v7062_v4 = vpop.f32.mrb[183].mxu1 }
 0x961   : > { %v16474_v51 = vadd.f32 %v16181_v57, %v7062_v4  ;;  %v6639_v49 = vpop.f32.mrb[54].mxu0 }
 0x962   : > { %v9627_v3 = vadd.f32 %v16282_v50, %v6639_v49  ;;  %v6641_v15 = vpop.f32.mrb[55].mxu0  ;;  %9254 = vmatprep.mubr.f32.mxu1 %v9626_v27 }
 0x963   : > { %v9415_v23 = vpack.c.bf16 %v16471_v7, %v16474_v51 }
 0x964   : > { %9255 = vmatmul.mubr.f32.gmra.mrb[236].mxu1 %v9627_v3 }
 0x967   : > { %v6644_v59 = vpop.f32.mrb[56].mxu0  ;;  %v9178_v18 = vpop.f32.mrb[184].mxu1 }
 0x968   : > { %v9628_v19 = vadd.f32 %v16282_v50, %v6644_v59  ;;  %v16481_v31 = vadd.f32 %v9178_v18, %v16181_v57  ;;  %v6646_v9 = vpop.f32.mrb[57].mxu0  ;;  %v7072_v12 = vpop.f32.mrb[185].mxu1 }
 0x969   : > { %v16484_v63 = vadd.f32 %v16181_v57, %v7072_v12  ;;  %v6647_v32 = vpop.f32.mrb[58].mxu0 }
 0x96a   : > { %v9629_v24 = vadd.f32 %v16282_v50, %v6647_v32  ;;  %v6649_v17 = vpop.f32.mrb[59].mxu0  ;;  %9257 = vmatprep.mubr.f32.mxu1 %v9628_v19 }
 0x96c   : > { %9258 = vmatmul.mubr.f32.gmra.mrb[238].mxu1 %v9629_v24 }
 0x96f   : > { %v6652_v29 = vpop.f32.mrb[60].mxu0  ;;  %v9181_v54 = vpop.f32.mrb[186].mxu1 }
 0x970   : > { %v9630_v28 = vadd.f32 %v16282_v50, %v6652_v29  ;;  %v16491_v58 = vadd.f32 %v9181_v54, %v16181_v57  ;;  %v6654_v5 = vpop.f32.mrb[61].mxu0  ;;  %v7082_v6 = vpop.f32.mrb[187].mxu1 }
 0x971   : > { %v16494_v34 = vadd.f32 %v16181_v57, %v7082_v6  ;;  %v6655_v45 = vpop.f32.mrb[62].mxu0 }
 0x972   : > { %v9631_v0 = vadd.f32 %v16282_v50, %v6655_v45  ;;  %v6657_v30 = vpop.f32.mrb[63].mxu0  ;;  %9260 = vmatprep.mubr.f32.mxu1 %v9630_v28 }
 0x974   : > { %9261 = vmatmul.mubr.f32.gmra.mrb[240].mxu1 %v9631_v0 }
 0x977   : > { %v6660_v10 = vpop.f32.mrb[64].mxu0  ;;  %v9184_v41 = vpop.f32.mrb[188].mxu1 }
 0x978   : > { %v9632_v60 = vadd.f32 %v16282_v50, %v6660_v10  ;;  %v7098_v55 = vadd.f32 %v9184_v41, %v16181_v57  ;;  %v6662_v35 = vpop.f32.mrb[65].mxu0  ;;  %v7092_v37 = vpop.f32.mrb[189].mxu1 }
 0x979   : > { %v7093_v8 = vadd.f32 %v16181_v57, %v7092_v37  ;;  %v6663_v33 = vpop.f32.mrb[66].mxu0 }
 0x97a   : > { %v9633_v13 = vadd.f32 %v16282_v50, %v6663_v33  ;;  %v6665_v25 = vpop.f32.mrb[67].mxu0  ;;  %9263 = vmatprep.mubr.f32.mxu1 %v9632_v60 }
 0x97b   : > { %v9382_v42 = vpack.c.bf16 %v7098_v55, %v7093_v8 }
 0x97c   : > { %9264 = vmatmul.mubr.f32.gmra.mrb[242].mxu1 %v9633_v13 }
 0x97d   : > { %9384 = vmatprep.subr.msk.bf16.mxu1 %vm16322_vm2, %v9382_v42 }
 0x97f   : > { %v6668_v53 = vpop.f32.mrb[68].mxu0  ;;  %v9187_v62 = vpop.f32.mrb[190].mxu1 }
 0x980   : > { %v9634_v39 = vadd.f32 %v16282_v50, %v6668_v53  ;;  %v16507_v46 = vadd.f32 %v9187_v62, %v16181_v57  ;;  %v6670_v27 = vpop.f32.mrb[69].mxu0  ;;  %v7102_v1 = vpop.f32.mrb[191].mxu1 }
 0x981   : > { %v16510_v4 = vadd.f32 %v16181_v57, %v7102_v1  ;;  %v6671_v49 = vpop.f32.mrb[70].mxu0 }
 0x982   : > { %v9635_v3 = vadd.f32 %v16282_v50, %v6671_v49  ;;  %v6673_v15 = vpop.f32.mrb[71].mxu0  ;;  %9266 = vmatprep.mubr.f32.mxu1 %v9634_v39 }
 0x983   : > { %v9388_v59 = vpack.c.bf16 %v16507_v46, %v16510_v4 }
 0x984   : > { %9267 = vmatmul.mubr.f32.gmra.mrb[244].mxu1 %v9635_v3 }
 0x987   : > { %v6676_v18 = vpop.f32.mrb[72].mxu0  ;;  %v9190_v19 = vpop.f32.mrb[192].mxu1 }
 0x988   : > { %v9636_v9 = vadd.f32 %v16282_v50, %v6676_v18  ;;  %v16517_v12 = vadd.f32 %v9190_v19, %v16181_v57  ;;  %v6678_v32 = vpop.f32.mrb[73].mxu0  ;;  %v7112_v24 = vpop.f32.mrb[193].mxu1 }
 0x989   : > { %v16520_v17 = vadd.f32 %v16181_v57, %v7112_v24  ;;  %v6679_v29 = vpop.f32.mrb[74].mxu0 }
 0x98a   : > { %v9637_v54 = vadd.f32 %v16282_v50, %v6679_v29  ;;  %v6681_v28 = vpop.f32.mrb[75].mxu0  ;;  %9269 = vmatprep.mubr.f32.mxu1 %v9636_v9 }
 0x98b   : > { %v9394_v5 = vpack.c.bf16 %v16517_v12, %v16520_v17 }
 0x98c   : > { %9270 = vmatmul.mubr.f32.gmra.mrb[246].mxu1 %v9637_v54 }
 0x98f   : > { %v6684_v6 = vpop.f32.mrb[76].mxu0  ;;  %v9193_v45 = vpop.f32.mrb[194].mxu1 }
 0x990   : > { %v9638_v0 = vadd.f32 %v16282_v50, %v6684_v6  ;;  %v16527_v30 = vadd.f32 %v9193_v45, %v16181_v57  ;;  %v6686_v10 = vpop.f32.mrb[77].mxu0  ;;  %v7122_v41 = vpop.f32.mrb[195].mxu1 }
 0x991   : > { %v16530_v60 = vadd.f32 %v16181_v57, %v7122_v41  ;;  %v6687_v55 = vpop.f32.mrb[78].mxu0 }
 0x992   : > { %v9639_v35 = vadd.f32 %v16282_v50, %v6687_v55  ;;  %v6689_v37 = vpop.f32.mrb[79].mxu0  ;;  %9272 = vmatprep.mubr.f32.mxu1 %v9638_v0 }
 0x993   : > { %v9400_v8 = vpack.c.bf16 %v16527_v30, %v16530_v60 }
 0x994   : > { %9273 = vmatmul.mubr.f32.gmra.mrb[248].mxu1 %v9639_v35 }
 0x997   : > { %v6692_v33 = vpop.f32.mrb[80].mxu0  ;;  %v9196_v13 = vpop.f32.mrb[196].mxu1 }
 0x998   : > { %v9640_v25 = vadd.f32 %v16282_v50, %v6692_v33  ;;  %v16537_v42 = vadd.f32 %v9196_v13, %v16181_v57  ;;  %v6694_v53 = vpop.f32.mrb[81].mxu0  ;;  %v7132_v62 = vpop.f32.mrb[197].mxu1 }
 0x999   : > { %v16540_v39 = vadd.f32 %v16181_v57, %v7132_v62  ;;  %v6695_v27 = vpop.f32.mrb[82].mxu0 }
 0x99a   : > { %v9641_v1 = vadd.f32 %v16282_v50, %v6695_v27  ;;  %v6697_v49 = vpop.f32.mrb[83].mxu0  ;;  %9275 = vmatprep.mubr.f32.mxu1 %v9640_v25 }
 0x99b   : > { %v9406_v3 = vpack.c.bf16 %v16537_v42, %v16540_v39 }
 0x99c   : > { %9276 = vmatmul.mubr.f32.gmra.mrb[250].mxu1 %v9641_v1 }
 0x99f   : > { %v6700_v15 = vpop.f32.mrb[84].mxu0  ;;  %v9199_v18 = vpop.f32.mrb[198].mxu1 }
 0x9a0   : > { %v9642_v19 = vadd.f32 %v16282_v50, %v6700_v15  ;;  %v16547_v9 = vadd.f32 %v9199_v18, %v16181_v57  ;;  %v6702_v32 = vpop.f32.mrb[85].mxu0  ;;  %v7142_v24 = vpop.f32.mrb[199].mxu1 }
 0x9a1   : > { %v16550_v29 = vadd.f32 %v16181_v57, %v7142_v24  ;;  %v6703_v54 = vpop.f32.mrb[86].mxu0 }
 0x9a2   : > { %v9643_v28 = vadd.f32 %v16282_v50, %v6703_v54  ;;  %v6705_v6 = vpop.f32.mrb[87].mxu0  ;;  %9278 = vmatprep.mubr.f32.mxu1 %v9642_v19 }
 0x9a3   : > { %v9412_v45 = vpack.c.bf16 %v16547_v9, %v16550_v29 }
 0x9a4   : > { %9279 = vmatmul.mubr.f32.gmra.mrb[252].mxu1 %v9643_v28 }
 0x9a7   : > { %v6708_v0 = vpop.f32.mrb[88].mxu0  ;;  %v9202_v10 = vpop.f32.mrb[200].mxu1 }
 0x9a8   : > { %v9644_v41 = vadd.f32 %v16282_v50, %v6708_v0  ;;  %v16557_v55 = vadd.f32 %v9202_v10, %v16181_v57  ;;  %v6710_v35 = vpop.f32.mrb[89].mxu0  ;;  %v7152_v37 = vpop.f32.mrb[201].mxu1 }
 0x9a9   : > { %v16560_v33 = vadd.f32 %v16181_v57, %v7152_v37  ;;  %v6711_v13 = vpop.f32.mrb[90].mxu0 }
 0x9aa   : > { %v9645_v25 = vadd.f32 %v16282_v50, %v6711_v13  ;;  %v6713_v53 = vpop.f32.mrb[91].mxu0  ;;  %9281 = vmatprep.mubr.f32.mxu1 %v9644_v41 }
 0x9ab   : > { %v9418_v62 = vpack.c.bf16 %v16557_v55, %v16560_v33  ;;  %v18398_v55 = vpack.c.bf16 %v16491_v58, %v16494_v34 }
 0x9ac   : > { %9282 = vmatmul.mubr.f32.gmra.mrb[254].mxu1 %v9645_v25 }
 0x9af   : > { %v6716_v27 = vpop.f32.mrb[92].mxu0  ;;  %v9205_v1 = vpop.f32.mrb[202].mxu1 }
 0x9b0   : > { %v9646_v49 = vadd.f32 %v16282_v50, %v6716_v27  ;;  %v16567_v15 = vadd.f32 %v9205_v1, %v16181_v57  ;;  %v6718_v18 = vpop.f32.mrb[93].mxu0  ;;  %v7162_v19 = vpop.f32.mrb[203].mxu1 }
 0x9b1   : > { %v16570_v32 = vadd.f32 %v16181_v57, %v7162_v19  ;;  %v6719_v24 = vpop.f32.mrb[94].mxu0 }
 0x9b2   : > { %v9647_v54 = vadd.f32 %v16282_v50, %v6719_v24  ;;  %v6721_v28 = vpop.f32.mrb[95].mxu0  ;;  %9284 = vmatprep.mubr.f32.mxu1 %v9646_v49 }
 0x9b3   : > { %v18397_v7 = vpack.c.bf16 %v16567_v15, %v16570_v32 }
 0x9b4   : > { %9285 = vmatmul.mubr.f32.gmra.mrb[0].mxu1 %v9647_v54 }
 0x9b7   : > { %v6724_v0 = vpop.f32.mrb[96].mxu0  ;;  %v9208_v10 = vpop.f32.mrb[204].mxu1 }
 0x9b8   : > { %v9648_v41 = vadd.f32 %v16282_v50, %v6724_v0  ;;  %v16577_v35 = vadd.f32 %v9208_v10, %v16181_v57  ;;  %v6726_v37 = vpop.f32.mrb[97].mxu0  ;;  %v7172_v13 = vpop.f32.mrb[205].mxu1 }
 0x9b9   : > { %v16580_v25 = vadd.f32 %v16181_v57, %v7172_v13  ;;  %v6727_v53 = vpop.f32.mrb[98].mxu0 }
 0x9ba   : > { %v9649_v27 = vadd.f32 %v16282_v50, %v6727_v53  ;;  %v6729_v1 = vpop.f32.mrb[99].mxu0  ;;  %9287 = vmatprep.mubr.f32.mxu1 %v9648_v41 }
 0x9bb   : > { %v18399_v32 = vpack.c.bf16 %v16577_v35, %v16580_v25 }
 0x9bc   : > { %9288 = vmatmul.mubr.f32.gmra.mrb[2].mxu1 %v9649_v27 }
 0x9bf   : > { %v6732_v18 = vpop.f32.mrb[100].mxu0  ;;  %v9211_v19 = vpop.f32.mrb[206].mxu1 }
 0x9c0   : > { %v9650_v24 = vadd.f32 %v16282_v50, %v6732_v18  ;;  %v16587_v54 = vadd.f32 %v9211_v19, %v16181_v57  ;;  %v6734_v28 = vpop.f32.mrb[101].mxu0  ;;  %v7182_v0 = vpop.f32.mrb[207].mxu1 }
 0x9c1   : > { %v16590_v10 = vadd.f32 %v16181_v57, %v7182_v0  ;;  %v6735_v37 = vpop.f32.mrb[102].mxu0 }
 0x9c2   : > { %v9651_v13 = vadd.f32 %v16282_v50, %v6735_v37  ;;  %v6737_v41 = vpop.f32.mrb[103].mxu0  ;;  %9290 = vmatprep.mubr.f32.mxu1 %v9650_v24 }
 0x9c4   : > { %9291 = vmatmul.mubr.f32.gmra.mrb[4].mxu1 %v9651_v13 }
 0x9c7   : > { %v6740_v27 = vpop.f32.mrb[104].mxu0  ;;  %v9214_v1 = vpop.f32.mrb[208].mxu1 }
 0x9c8   : > { %v9652_v18 = vadd.f32 %v16282_v50, %v6740_v27  ;;  %v16597_v19 = vadd.f32 %v9214_v1, %v16181_v57  ;;  %v6742_v28 = vpop.f32.mrb[105].mxu0  ;;  %v7192_v49 = vpop.f32.mrb[209].mxu1 }
 0x9c9   : > { %v16600_v0 = vadd.f32 %v16181_v57, %v7192_v49  ;;  %v6743_v36 = vpop.f32.mrb[106].mxu0  ;;  %v8164_v49 = vld [vmem:[#allocation2] sm:$0x1] }
 0x9ca   : > { %v9653_v37 = vadd.f32 %v16282_v50, %v6743_v36  ;;  %v6745_v24 = vpop.f32.mrb[107].mxu0  ;;  %9293 = vmatprep.mubr.f32.mxu1 %v9652_v18  ;;  %8167 = vperm.xlu0 %10467, %v8164_v49  }
 0x9cc   : > { %9294 = vmatmul.mubr.f32.gmra.mrb[6].mxu1 %v9653_v37 }
 0x9cf   : > { %v6748_v41 = vpop.f32.mrb[108].mxu0  ;;  %v9217_v53 = vpop.f32.mrb[210].mxu1 }
 0x9d0   : > { %v9654_v27 = vadd.f32 %v16282_v50, %v6748_v41  ;;  %v16607_v1 = vadd.f32 %v9217_v53, %v16181_v57  ;;  %v6750_v28 = vpop.f32.mrb[109].mxu0  ;;  %v7202_v6 = vpop.f32.mrb[211].mxu1 }
 0x9d1   : > { %v16610_v20 = vadd.f32 %v16181_v57, %v7202_v6  ;;  %v6751_v36 = vpop.f32.mrb[110].mxu0  ;;  %v16619_v28 = vld [vmem:[%s16948_s6] ss:$0 sm:$0xff] }
 0x9d2   : > { %v9655_v18 = vadd.f32 %v16282_v50, %v6751_v36  ;;  %v6753_v24 = vpop.f32.mrb[111].mxu0  ;;  %9296 = vmatprep.mubr.f32.mxu1 %v9654_v27 }
 0x9d4   : > { %9297 = vmatmul.mubr.f32.gmra.mrb[8].mxu1 %v9655_v18 }
 0x9d7   : > { %v6756_v41 = vpop.f32.mrb[112].mxu0  ;;  %v9220_v13 = vpop.f32.mrb[212].mxu1 }
 0x9d8   : > { %v9656_v53 = vadd.f32 %v16282_v50, %v6756_v41  ;;  %v16622_v57 = vadd.f32 %v16619_v28, %v9220_v13  ;;  %v6758_v6 = vpop.f32.mrb[113].mxu0  ;;  %v7212_v49 = vpop.f32.mrb[213].mxu1  ;;  %v16631_v41 = vld [vmem:[%s16949_s7] sm:$0xff] }
 0x9d9   : > { %v16625_v27 = vadd.f32 %v16619_v28, %v7212_v49  ;;  %v6759_v36 = vpop.f32.mrb[114].mxu0 }
 0x9da   : > { %v9657_v18 = vadd.f32 %v16282_v50, %v6759_v36  ;;  %v6761_v24 = vpop.f32.mrb[115].mxu0  ;;  %9299 = vmatprep.mubr.f32.mxu1 %v9656_v53 }
 0x9db   : > { %v9457_v37 = vpack.c.bf16 %v16622_v57, %v16625_v27 }
 0x9dc   : > { %9300 = vmatmul.mubr.f32.gmra.mrb[10].mxu1 %v9657_v18 }
 0x9dd   : > { %8974 = vmatprep.mubr.msk.f32.mxu1 %vm7492_vm1, %v16631_v41 }
 0x9df   : > { %v9223_v13 = vpop.f32.mrb[214].mxu1 }
 0x9e0   : > { %v16638_v6 = vadd.f32 %v16619_v28, %v9223_v13  ;;  %v7222_v49 = vpop.f32.mrb[215].mxu1  ;;  %8975 = vmatmul.mubr.msk.f32.vlgmr.msra.gmra.mrb[12].mxu1 %vm7492_vm1, %v16631_v41 }
 0x9e1   : > { %v16643_v50 = vadd.f32 %v16619_v28, %v7222_v49  ;;  %9387 = vmatpush3.bf16.xpose.msk.msra.mxu1 %vm16322_vm2, %v9385_v44  ;;  %9008 = vmatprep.mubr.msk.f32.mxu1 %vm7492_vm1, %v16631_v41 }
 0x9e2   : > { %9390 = vmatprep.subr.msk.bf16.mxu1 %vm16322_vm2, %v9388_v59 }
 0x9e3   : > { %v9463_v53 = vpack.c.bf16 %v16638_v6, %v16643_v50 }
 0x9e7   : > { %v9226_v36 = vpop.f32.mrb[216].mxu1 }
 0x9e8   : > { %v16660_v18 = vadd.f32 %v16619_v28, %v9226_v36  ;;  %v7232_v22 = vpop.f32.mrb[217].mxu1 }
 0x9e9   : > { %v16663_v14 = vadd.f32 %v16619_v28, %v7232_v22  ;;  %9393 = vmatpush3.bf16.xpose.msk.msra.mxu1 %vm16322_vm2, %v9391_v2  ;;  %v18400_v22 = vpack.c.bf16 %v16587_v54, %v16590_v10 }
 0x9ea   : > { %9396 = vmatprep.subr.msk.bf16.mxu1 %vm16322_vm2, %v9394_v5 }
 0x9eb   : > { %v9469_v44 = vpack.c.bf16 %v16660_v18, %v16663_v14 }
 0x9ef   : > { %v9229_v46 = vpop.f32.mrb[218].mxu1 }
 0x9f0   : > { %v16678_v4 = vadd.f32 %v16619_v28, %v9229_v46  ;;  %v7242_v59 = vpop.f32.mrb[219].mxu1 }
 0x9f1   : > { %v16681_v24 = vadd.f32 %v16619_v28, %v7242_v59  ;;  %9399 = vmatpush3.bf16.xpose.msk.msra.mxu1 %vm16322_vm2, %v9397_v11 }
 0x9f2   : > { %9402 = vmatprep.subr.msk.bf16.mxu1 %vm16322_vm2, %v9400_v8 }
 0x9f3   : > { %v9475_v47 = vpack.c.bf16 %v16678_v4, %v16681_v24 }
 0x9f7   : > { %v9232_v56 = vpop.f32.mrb[220].mxu1 }
 0x9f8   : > { %v7258_v2 = vadd.f32 %v16619_v28, %v9232_v56  ;;  %v7252_v12 = vpop.f32.mrb[221].mxu1 }
 0x9f9   : > { %v7253_v17 = vadd.f32 %v16619_v28, %v7252_v12  ;;  %9405 = vmatpush3.bf16.xpose.msk.msra.mxu1 %vm16322_vm2, %v9403_v40 }
 0x9fa   : > { %9408 = vmatprep.subr.msk.bf16.mxu1 %vm16322_vm2, %v9406_v3  ;;  %v18396_v3 = vpack.c.bf16 %v16481_v31, %v16484_v63 }
 0x9fb   : > { %v9430_v61 = vpack.c.bf16 %v7258_v2, %v7253_v17  ;;  %v18401_v2 = vpack.c.bf16 %v16597_v19, %v16600_v0 }
 0x9ff   : > { %v9235_v21 = vpop.f32.mrb[222].mxu1 }
 0xa00   : > { %v7268_v11 = vadd.f32 %v16619_v28, %v9235_v21  ;;  %v7262_v5 = vpop.f32.mrb[223].mxu1  ;;  %v18402_v21 = vpack.c.bf16 %v16607_v1, %v16610_v20 }
 0xa01   : > { %v7263_v30 = vadd.f32 %v16619_v28, %v7262_v5  ;;  %9411 = vmatpush3.bf16.xpose.msk.msra.mxu1 %vm16322_vm2, %v9409_v38 }
 0xa02   : > { %9414 = vmatprep.subr.msk.bf16.mxu1 %vm16322_vm2, %v9412_v45 }
 0xa03   : > { %v9436_v16 = vpack.c.bf16 %v7268_v11, %v7263_v30 }
 0xa07   : > { %v9238_v43 = vpop.f32.mrb[224].mxu1 }
 0xa08   : > { %v7278_v40 = vadd.f32 %v16619_v28, %v9238_v43  ;;  %v7272_v60 = vpop.f32.mrb[225].mxu1 }
 0xa09   : > { %v7273_v8 = vadd.f32 %v16619_v28, %v7272_v60  ;;  %9417 = vmatpush3.bf16.xpose.msk.msra.mxu1 %vm16322_vm2, %v9415_v23 }
 0xa0a   : > { %9420 = vmatprep.subr.msk.bf16.mxu1 %vm16322_vm2, %v9418_v62 }
 0xa0b   : > { %v9442_v26 = vpack.c.bf16 %v7278_v40, %v7273_v8 }
 0xa0f   : > { %v9241_v52 = vpop.f32.mrb[226].mxu1 }
 0xa10   : > { %v7288_v38 = vadd.f32 %v16619_v28, %v9241_v52  ;;  %v7282_v42 = vpop.f32.mrb[227].mxu1 }
 0xa11   : > { %v7283_v39 = vadd.f32 %v16619_v28, %v7282_v42  ;;  %9423 = vmatpush3.bf16.xpose.msk.msra.mxu1 %vm16322_vm2, %v18396_v3 }
 0xa12   : > { %9426 = vmatprep.subr.msk.bf16.mxu1 %vm16322_vm2, %v18397_v7 }
 0xa13   : > { %v9448_v51 = vpack.c.bf16 %v7288_v38, %v7283_v39 }
 0xa17   : > { %v9244_v23 = vpop.f32.mrb[228].mxu1 }
 0xa18   : > { %v7298_v9 = vadd.f32 %v16619_v28, %v9244_v23  ;;  %v7292_v29 = vpop.f32.mrb[229].mxu1 }
 0xa19   : > { %v7293_v45 = vadd.f32 %v16619_v28, %v7292_v29  ;;  %9429 = vmatpush3.bf16.xpose.msk.msra.mxu1 %vm16322_vm2, %v18398_v55 }
 0xa1a   : > { %9432 = vmatprep.subr.msk.bf16.mxu1 %vm16322_vm2, %v9430_v61 }
 0xa1b   : > { %v9454_v31 = vpack.c.bf16 %v7298_v9, %v7293_v45 }
 0xa1f   : > { %v9247_v63 = vpop.f32.mrb[230].mxu1 }
 0xa20   : > { %v7308_v33 = vadd.f32 %v16619_v28, %v9247_v63  ;;  %9009 = vmatmul.mubr.msk.f32.vlgmr.msra.gmra.mrb[14].mxu1 %vm7492_vm1, %v16631_v41  ;;  %v7302_v62 = vpop.f32.mrb[231].mxu1 }
 0xa21   : > { %v7303_v15 = vadd.f32 %v16619_v28, %v7302_v62  ;;  %9435 = vmatpush3.bf16.xpose.msk.msra.mxu1 %vm16322_vm2, %v18399_v32  ;;  %9042 = vmatprep.mubr.msk.f32.mxu1 %vm7492_vm1, %v16631_v41 }
 0xa22   : > { %9438 = vmatprep.subr.msk.bf16.mxu1 %vm16322_vm2, %v9436_v16 }
 0xa23   : > { %v9460_v58 = vpack.c.bf16 %v7308_v33, %v7303_v15 }
 0xa27   : > { %v9250_v34 = vpop.f32.mrb[232].mxu1 }
 0xa28   : > { %v7318_v13 = vadd.f32 %v16619_v28, %v9250_v34  ;;  %v7312_v49 = vpop.f32.mrb[233].mxu1 }
 0xa29   : > { %v7313_v36 = vadd.f32 %v16619_v28, %v7312_v49  ;;  %9441 = vmatpush3.bf16.xpose.msk.msra.mxu1 %vm16322_vm2, %v18400_v22 }
 0xa2a   : > { %9444 = vmatprep.subr.msk.bf16.mxu1 %vm16322_vm2, %v9442_v26 }
 0xa2b   : > { %v9466_v35 = vpack.c.bf16 %v7318_v13, %v7313_v36 }
 0xa2f   : > { %v9253_v25 = vpop.f32.mrb[234].mxu1 }
 0xa30   : > { %v7328_v46 = vadd.f32 %v16619_v28, %v9253_v25  ;;  %v7322_v59 = vpop.f32.mrb[235].mxu1 }
 0xa31   : > { %v7323_v56 = vadd.f32 %v16619_v28, %v7322_v59  ;;  %9447 = vmatpush3.bf16.xpose.msk.msra.mxu1 %vm16322_vm2, %v18401_v2 }
 0xa32   : > { %9450 = vmatprep.subr.msk.bf16.mxu1 %vm16322_vm2, %v9448_v51 }
 0xa33   : > { %v9472_v54 = vpack.c.bf16 %v7328_v46, %v7323_v56 }
 0xa37   : > { %v9256_v10 = vpop.f32.mrb[236].mxu1 }
 0xa38   : > { %v7338_v12 = vadd.f32 %v16619_v28, %v9256_v10  ;;  %v7332_v17 = vpop.f32.mrb[237].mxu1 }
 0xa39   : > { %v7333_v61 = vadd.f32 %v16619_v28, %v7332_v17  ;;  %9453 = vmatpush3.bf16.xpose.msk.msra.mxu1 %vm16322_vm2, %v18402_v21 }
 0xa3a   : > { %9456 = vmatprep.subr.msk.bf16.mxu1 %vm16322_vm2, %v9454_v31 }
 0xa3b   : > { %v9481_v19 = vpack.c.bf16 %v7338_v12, %v7333_v61 }
 0xa3f   : > { %v9259_v0 = vpop.f32.mrb[238].mxu1 }
 0xa40   : > { %v7348_v11 = vadd.f32 %v16619_v28, %v9259_v0  ;;  %v7342_v5 = vpop.f32.mrb[239].mxu1 }
 0xa41   : > { %v7343_v30 = vadd.f32 %v16619_v28, %v7342_v5  ;;  %9459 = vmatpush3.bf16.xpose.msk.msra.mxu1 %vm16322_vm2, %v9457_v37 }
 0xa42   : > { %9462 = vmatprep.subr.msk.bf16.mxu1 %vm16322_vm2, %v9460_v58 }
 0xa43   : > { %v9487_v20 = vpack.c.bf16 %v7348_v11, %v7343_v30 }
 0xa47   : > { %v9262_v1 = vpop.f32.mrb[240].mxu1 }
 0xa48   : > { %v7358_v16 = vadd.f32 %v16619_v28, %v9262_v1  ;;  %v7352_v43 = vpop.f32.mrb[241].mxu1 }
 0xa49   : > { %v7353_v40 = vadd.f32 %v16619_v28, %v7352_v43  ;;  %9465 = vmatpush3.bf16.xpose.msk.msra.mxu1 %vm16322_vm2, %v9463_v53 }
 0xa4a   : > { %9468 = vmatprep.subr.msk.bf16.mxu1 %vm16322_vm2, %v9466_v35 }
 0xa4b   : > { %v9493_v37 = vpack.c.bf16 %v7358_v16, %v7353_v40 }
 0xa4f   : > { %v9265_v57 = vpop.f32.mrb[242].mxu1 }
 0xa50   : > { %v7368_v27 = vadd.f32 %v16619_v28, %v9265_v57  ;;  %v7362_v60 = vpop.f32.mrb[243].mxu1 }
 0xa51   : > { %v7363_v8 = vadd.f32 %v16619_v28, %v7362_v60  ;;  %9471 = vmatpush3.bf16.xpose.msk.msra.mxu1 %vm16322_vm2, %v9469_v44 }
 0xa52   : > { %9474 = vmatprep.subr.msk.bf16.mxu1 %vm16322_vm2, %v9472_v54 }
 0xa53   : > { %v9499_v6 = vpack.c.bf16 %v7368_v27, %v7363_v8  ;;  %v18403_v8 = vld [vmem:[#allocation21_spill] sm:$0xff] }
 0xa57   : > { %v9268_v50 = vpop.f32.mrb[244].mxu1 }
 0xa58   : > { %v7378_v53 = vadd.f32 %v16619_v28, %v9268_v50  ;;  %v7372_v26 = vpop.f32.mrb[245].mxu1 }
 0xa59   : > { %v7373_v52 = vadd.f32 %v16619_v28, %v7372_v26  ;;  %9477 = vmatpush3.bf16.xpose.msk.msra.mxu1 %vm16322_vm2, %v9475_v47 }
 0xa5b   : > { %v9505_v18 = vpack.c.bf16 %v7378_v53, %v7373_v52 }
 0xa5f   : > { %v9271_v14 = vpop.f32.mrb[246].mxu1 }
 0xa60   : > { %v7388_v44 = vadd.f32 %v16619_v28, %v9271_v14  ;;  %v7382_v38 = vpop.f32.mrb[247].mxu1  ;;  %9043 = vmatmul.mubr.msk.f32.vlgmr.msra.gmra.mrb[16].mxu1 %vm7492_vm1, %v16631_v41 }
 0xa61   : > { %v7383_v42 = vadd.f32 %v16619_v28, %v7382_v38  ;;  %9076 = vmatprep.mubr.msk.f32.mxu1 %vm7492_vm1, %v16631_v41 }
 0xa63   : > { %v9511_v39 = vpack.c.bf16 %v7388_v44, %v7383_v42  ;;  %v10601_v42 = vmov 1966171168  }
 0xa67   : > { %v9274_v3 = vpop.f32.mrb[248].mxu1 }
 0xa68   : > { %v7398_v4 = vadd.f32 %v16619_v28, %v9274_v3  ;;  %v7392_v24 = vpop.f32.mrb[249].mxu1 }
 0xa69   : > { %v7393_v47 = vadd.f32 %v16619_v28, %v7392_v24 }
 0xa6b   : > { %v9517_v7 = vpack.c.bf16 %v7398_v4, %v7393_v47 }
 0xa6f   : > { %v9277_v51 = vpop.f32.mrb[250].mxu1 }
 0xa70   : > { %v16835_v23 = vadd.f32 %v16619_v28, %v9277_v51  ;;  %v7402_v9 = vpop.f32.mrb[251].mxu1 }
 0xa71   : > { %v16838_v29 = vadd.f32 %v16619_v28, %v7402_v9 }
 0xa73   : > { %v9523_v45 = vpack.c.bf16 %v16835_v23, %v16838_v29 }
 0xa77   : > { %v9280_v55 = vpop.f32.mrb[252].mxu1 }
 0xa78   : > { %v7418_v31 = vadd.f32 %v16619_v28, %v9280_v55  ;;  %v7412_v63 = vpop.f32.mrb[253].mxu1 }
 0xa79   : > { %v7413_v33 = vadd.f32 %v16619_v28, %v7412_v63 }
 0xa7b   : > { %v9478_v62 = vpack.c.bf16 %v7418_v31, %v7413_v33 }
 0xa7d   : > { %9480 = vmatprep.subr.msk.bf16.mxu1 %vm16322_vm2, %v9478_v62 }
 0xa7e   : > { %9483 = vmatpush3.bf16.xpose.msk.msra.mxu1 %vm16322_vm2, %v9481_v19 }
 0xa7f   : > { %v9283_v15 = vpop.f32.mrb[254].mxu1 }
 0xa80   : > { %v7428_v32 = vadd.f32 %v16619_v28, %v9283_v15  ;;  %v7422_v58 = vpop.f32.mrb[255].mxu1 }
 0xa81   : > { %v7423_v34 = vadd.f32 %v16619_v28, %v7422_v58 }
 0xa83   : > { %v9484_v13 = vpack.c.bf16 %v7428_v32, %v7423_v34 }
 0xa85   : > { %9486 = vmatprep.subr.msk.bf16.mxu1 %vm16322_vm2, %v9484_v13 }
 0xa86   : > { %9489 = vmatpush3.bf16.xpose.msk.msra.mxu1 %vm16322_vm2, %v9487_v20 }
 0xa87   : > { %v9286_v49 = vpop.f32.mrb[0].mxu1 }
 0xa88   : > { %v7438_v36 = vadd.f32 %v16619_v28, %v9286_v49  ;;  %v7432_v22 = vpop.f32.mrb[1].mxu1 }
 0xa89   : > { %v7433_v35 = vadd.f32 %v16619_v28, %v7432_v22 }
 0xa8b   : > { %v9490_v25 = vpack.c.bf16 %v7438_v36, %v7433_v35 }
 0xa8d   : > { %9492 = vmatprep.subr.msk.bf16.mxu1 %vm16322_vm2, %v9490_v25 }
 0xa8e   : > { %9495 = vmatpush3.bf16.xpose.msk.msra.mxu1 %vm16322_vm2, %v9493_v37  ;;  %v8168_v37 = vpop.permute.xlu0 %8167 }
 0xa8f   : > { %v9289_v46 = vpop.f32.mrb[2].mxu1 }
 0xa90   : > { %v7448_v59 = vadd.f32 %v16619_v28, %v9289_v46  ;;  %v7442_v56 = vpop.f32.mrb[3].mxu1 }
 0xa91   : > { %v7443_v2 = vadd.f32 %v16619_v28, %v7442_v56 }
 0xa93   : > { %v9496_v54 = vpack.c.bf16 %v7448_v59, %v7443_v2 }
 0xa95   : > { %9498 = vmatprep.subr.msk.bf16.mxu1 %vm16322_vm2, %v9496_v54 }
 0xa96   : > { %9501 = vmatpush3.bf16.xpose.msk.msra.mxu1 %vm16322_vm2, %v9499_v6  ;;  %v18404_v6 = vsub.s32 0, %v18403_v8 }
 0xa97   : > { %v9292_v10 = vpop.f32.mrb[4].mxu1 }
 0xa98   : > { %v7458_v12 = vadd.f32 %v16619_v28, %v9292_v10  ;;  %v7452_v17 = vpop.f32.mrb[5].mxu1  ;;  %v8173_v50 = vrot.slane %v8168_v37, %v18404_v6 }
 0xa99   : > { %v7453_v61 = vadd.f32 %v16619_v28, %v7452_v17 }
 0xa9b   : > { %v9502_v21 = vpack.c.bf16 %v7458_v12, %v7453_v61 }
 0xa9d   : > { %9504 = vmatprep.subr.msk.bf16.mxu1 %vm16322_vm2, %v9502_v21 }
 0xa9e   : > { %9507 = vmatpush3.bf16.xpose.msk.msra.mxu1 %vm16322_vm2, %v9505_v18 }
 0xa9f   : > { %v9295_v19 = vpop.f32.mrb[6].mxu1 }
 0xaa0   : > { %v7468_v0 = vadd.f32 %v16619_v28, %v9295_v19  ;;  %v7462_v11 = vpop.f32.mrb[7].mxu1 }
 0xaa1   : > { %v7463_v5 = vadd.f32 %v16619_v28, %v7462_v11 }
 0xaa3   : > { %v9508_v30 = vpack.c.bf16 %v7468_v0, %v7463_v5 }
 0xaa5   : > { %9510 = vmatprep.subr.msk.bf16.mxu1 %vm16322_vm2, %v9508_v30 }
 0xaa6   : > { %9513 = vmatpush3.bf16.xpose.msk.msra.mxu1 %vm16322_vm2, %v9511_v39  ;;  %v8195_v39 = vunpack.c.l.s4 %v10601_v42 }
 0xaa7   : > { %v9298_v20 = vpop.f32.mrb[8].mxu1 }
 0xaa8   : > { %v7478_v1 = vadd.f32 %v16619_v28, %v9298_v20  ;;  %v7472_v16 = vpop.f32.mrb[9].mxu1  ;;  %v8196_v3 = vunpack.c.0.s8 %v8195_v39 }
 0xaa9   : > { %v7473_v43 = vadd.f32 %v16619_v28, %v7472_v16 }
 0xaaa   : > { %v8199_v47 = vsub.s32 %v8196_v3, %v18403_v8 }
 0xaab   : > { %v9514_v40 = vpack.c.bf16 %v7478_v1, %v7473_v43 }
 0xaad   : > { %9516 = vmatprep.subr.msk.bf16.mxu1 %vm16322_vm2, %v9514_v40 }
 0xaae   : > { %9519 = vmatpush3.bf16.xpose.msk.msra.mxu1 %vm16322_vm2, %v9517_v7 }
 0xaaf   : > { %v9301_v57 = vpop.f32.mrb[10].mxu1 }
 0xab0   : > { %v7488_v27 = vadd.f32 %v16619_v28, %v9301_v57  ;;  %v7482_v60 = vpop.f32.mrb[11].mxu1 }
 0xab1   : > { %v7483_v53 = vadd.f32 %v16619_v28, %v7482_v60 }
 0xab3   : > { %v9520_v26 = vpack.c.bf16 %v7488_v27, %v7483_v53  ;;  %v7946_v52 = vpop.f32.mrb[12].mxu1 }
 0xab4   : > { %v8174_v18 = vadd.f32 %v8173_v50, %v7946_v52  ;;  %v7948_v14 = vpop.f32.mrb[13].mxu1 }
 0xab5   : > { %9522 = vmatprep.subr.msk.bf16.mxu1 %vm16322_vm2, %v9520_v26  ;;  %v8175_v44 = vadd.f32 %v8173_v50, %v7948_v14 }
 0xab6   : > { %9525 = vmatpush3.bf16.xpose.msk.msra.mxu1 %vm16322_vm2, %v9523_v45 }
 0xab7   : > { %v8190_v38 = vcombine.low %v8174_v18, %v8175_v44 }
 0xab9   : > { %v8200_v23 = vrot.slane %v8190_v38, %v8199_v47 }
 0xabd   : > { %9077 = vmatmul.mubr.msk.f32.vlgmr.msra.gmra.mrb[18].mxu1 %vm7492_vm1, %v16631_v41 }
 0xaf3   : > { %v8017_v28 = vpop.f32.mrb[14].mxu1 }
 0xaf4   : > { %v8176_v4 = vadd.f32 %v8173_v50, %v8017_v28  ;;  %v8019_v24 = vpop.f32.mrb[15].mxu1 }
 0xaf5   : > { %v8177_v7 = vadd.f32 %v8173_v50, %v8019_v24 }
 0xaf7   : > { %v8191_v51 = vcombine.low %v8176_v4, %v8177_v7 }
 0xaf9   : > { %v8207_v9 = vrot.slane %v8191_v51, %v8199_v47 }
 0xafb   : > { %v8222_v29 = vcombine.low %v8200_v23, %v8207_v9 }
 0xafd   : > { %v8230_v49 = vrot.slane %v8222_v29, %v8199_v47 }
 0xb33   : > { %v8088_v48 = vpop.f32.mrb[16].mxu1 }
 0xb34   : > { %v8178_v45 = vadd.f32 %v8173_v50, %v8088_v48  ;;  %v8090_v55 = vpop.f32.mrb[17].mxu1 }
 0xb35   : > { %v8179_v31 = vadd.f32 %v8173_v50, %v8090_v55 }
 0xb37   : > { %v8192_v63 = vcombine.low %v8178_v45, %v8179_v31 }
 0xb39   : > { %v8214_v58 = vrot.slane %v8192_v63, %v8199_v47 }
 0xb90   : > { %v8159_v41 = vpop.f32.mrb[18].mxu1 }
 0xb91   : > { %v8180_v33 = vadd.f32 %v8173_v50, %v8159_v41  ;;  %v8161_v62 = vpop.f32.mrb[19].mxu1 }
 0xb92   : > { %v8181_v15 = vadd.f32 %v8173_v50, %v8161_v62 }
 0xb94   : > { %v8193_v32 = vcombine.low %v8180_v33, %v8181_v15 }
 0xb96   : > { %v8221_v34 = vrot.slane %v8193_v32, %v8199_v47 }
 0xb98   : > { %v8223_v13 = vcombine.low %v8214_v58, %v8221_v34 }
 0xb9a   : > { %v8237_v36 = vrot.slane %v8223_v13, %v8199_v47 }
 0xb9c   : > { %v8238_v22 = vcombine.low %v8230_v49, %v8237_v36 }
 0xb9e   : > { %8240 = vst [vmem:[%s328_s18] sm:$0xff] %v8238_v22 }
 0xb9f   : > { %10549 = shalt.err (!%p10546_p3)
}
 0xba0   : > { %s10550_s28 = scalar_lea.hbm %s16900_s17, 128  ;;  %s10554_s15 = scalar_lea.hbm %s16951_s9, 256 }
 0xba1   : > { %p10551_p4 = scmp.ne.s32.totalorder %s16900_s17, %s10550_s28  ;;  %p10555_p9 = scmp.lt.u32.totalorder %s16900_s17, %s16951_s9 }
 0xba2   : > { %p10556_p10 = scmp.lt.u32.totalorder %s10554_s15, %s10550_s28  ;;  %p10558_p12 = scmp.lt.u32.totalorder %s10550_s28, %s16900_s17 }
 0xba3   : > { %p10552_p7 = pnand %p10551_p4, %p10691_p5 }
 0xba4   : > { %p10557_p11 = por %p10556_p10, %p10555_p9 }
 0xba5   : > { %p10553_p8 = pneg %p10552_p7 }
 0xba6   : > { %p10559_p13 = por %p10558_p12, %p10557_p11 }
 0xba8   : > { %p10560_p0 = pnand %p10559_p13, %p10553_p8 }
 0xbaa   : > { %10563 = shalt.err (!%p10560_p0)
}
 0xbab   : > { %10426 = dma.vmem_to_hbm [thread:$0]  (%p10691_p5), %s16902_s22, 128, %s16900_s17, %s8242_s25  }
 0xbac PF: > { %p10432_p1 = scmp.ge.s32.totalorder %s10598_s14, 2  ;;  %s8268_s24 = sand.u32 1, %s10586_s11  }
 0xbad   : > { %s8269_s26 = scalar_lea.sflag [#allocation4], %s8268_s24 }
 0xbae   : > { %p10429_p2 = pnand %p10432_p1, %p10695_p6 }
 0xbb0   : > { %10581 = dma.done.wait (!%p10429_p2), %s8269_s26, 128  }
 0xbb1   : > { %10583 = vsyncadd (!%p10429_p2), %s8269_s26, 4294967168  ;;  %p21_p3 = scmp.ge.s32.totalorder %s10679_s16, 4   ;;  %s18405_s11 = smov %s10590_s12 }
 0xbb2   : > { %s18406_s12 = smov %s10594_s13  ;;  %s18407_s13 = smov %s10689_s19 }
 0xbb3   : > { %s18408_s14 = smov %s10679_s16  ;;  %23 = sbr.rel (!%p21_p3) target bundleno = 6 (0x6), region = 91 }
 0xbba   :  { %8274 = vsyncpa [#allocation4], 1 }
 0xbbb   :  { %8276 = vsyncpa [#allocation4 + $0x1], 1 }

</bundles_post_ra>
